<compile_context>
chip_gen: v6e
topology: v6e:2x2x1
jax: 0.10.0
libtpu: 0.0.40
codegen_flags: <defaults>
</compile_context>

<pallas_src>
import math
from functools import partial

import jax
import jax.numpy as jnp
from jax import lax
from jax.experimental import pallas as pl
from jax.experimental.pallas import tpu as pltpu

EPS = 1e-5
K = 3                               # conv kernel size
LANES = 128                         # pad matmul-output channels to a multiple of this
SUBLANES = 8                        # pad contraction channels to a multiple of this
VMEM_LIMIT = 64 * 1024 * 1024


def _round_up(x, m):
    return (x + m - 1) // m * m


# ---------------------------------------------------------------------------
# kernels
# ---------------------------------------------------------------------------

def _conv_taps(plane_refs, w_ref, H, W):
    """3x3x3 conv on one output depth slice as 27 shifted matmuls (f32 accumulate).

    plane_refs: three refs with blocks (1, 1, H+2, W+2, C) -- padded depth planes
                d, d+1, d+2 (bf16).
    w_ref:      ref with block (27, C, N) -- tap-major weights, N lane-padded (bf16).
    returns (H*W, N) float32.
    """
    acc = None
    t = 0
    for kd in range(K):
        pr = plane_refs[kd]
        for kh in range(K):
            for kw in range(K):
                xt = pr[0, 0, kh:kh + H, kw:kw + W, :]          # (H, W, C)
                xt = xt.reshape(H * W, xt.shape[-1])
                d = jnp.dot(xt, w_ref[t], preferred_element_type=jnp.float32)
                acc = d if acc is None else acc + d
                t += 1
    return acc


def _row_stats(v):
    """Per-channel [sum ; sum of squares] over rows -> (2, C) float32."""
    return jnp.concatenate(
        [jnp.sum(v, axis=0, keepdims=True),
         jnp.sum(v * v, axis=0, keepdims=True)], axis=0)


def _conv1_skip_kernel(x0_ref, x1_ref, x2_ref, w1_ref, ws_ref,
                       h1_ref, s_ref, st1_ref, sts_ref, *, H, W):
    """conv1 (3x3x3, pad 1, no bias) + skip 1x1x1 conv + BN statistics."""
    @pl.when(pl.program_id(1) == 0)             # first depth slice of this batch elem
    def _init():
        st1_ref[...] = jnp.zeros_like(st1_ref)
        sts_ref[...] = jnp.zeros_like(sts_ref)

    h = _conv_taps([x0_ref, x1_ref, x2_ref], w1_ref, H, W)        # (H*W, Cmid_p) f32

    # skip branch: 1x1x1 conv on the centre (un-padded) voxels of the same tile
    xc = x1_ref[0, 0, 1:H + 1, 1:W + 1, :]
    xc = xc.reshape(H * W, xc.shape[-1])
    s = jnp.dot(xc, ws_ref[...], preferred_element_type=jnp.float32)  # (H*W, Cout_p)

    h1_ref[...] = h[None, None]
    s_ref[...] = s[None, None]
    st1_ref[...] += _row_stats(h)[None]
    sts_ref[...] += _row_stats(s)[None]


def _conv2_kernel(a0_ref, a1_ref, a2_ref, w2_ref, h2_ref, st2_ref, *, H, W):
    """conv2 (3x3x3, pad 1, no bias) + BN statistics."""
    @pl.when(pl.program_id(1) == 0)
    def _init():
        st2_ref[...] = jnp.zeros_like(st2_ref)

    h = _conv_taps([a0_ref, a1_ref, a2_ref], w2_ref, H, W)
    h2_ref[...] = h[None, None]
    st2_ref[...] += _row_stats(h)[None]


def _bn1_time_relu_kernel(h_ref, scale_ref, shift_ref, a_ref):
    """BN1 (precomputed scale, per-batch shift incl. time embedding) + ReLU -> bf16."""
    a = h_ref[...] * scale_ref[...] + shift_ref[...]
    a_ref[...] = jnp.maximum(a, 0.0).astype(a_ref.dtype)


def _bn2_residual_relu_kernel(h2_ref, s_ref, p2_ref, ps_ref, o_ref, *, inv_sqrt2):
    """BN2 + skip-BN + residual add, /sqrt(2), final ReLU."""
    h2n = h2_ref[...] * p2_ref[0:1, :] + p2_ref[1:2, :]
    sn = s_ref[...] * ps_ref[0:1, :] + ps_ref[1:2, :]
    o_ref[...] = jnp.maximum((h2n + sn) * inv_sqrt2, 0.0)


# ---------------------------------------------------------------------------
# block specs
# ---------------------------------------------------------------------------

def _plane_specs(Hp, Wp, C):
    # three overlapping depth planes (d, d+1, d+2) of the spatially padded tensor
    return [pl.BlockSpec((1, 1, Hp, Wp, C),
                         lambda b, d, _k=k: (b, d + _k, 0, 0, 0))
            for k in range(K)]


def _slab_spec(HW, C):
    return pl.BlockSpec((1, 1, HW, C), lambda b, d: (b, d, 0, 0))


def _const_spec(shape):
    zeros = (0,) * len(shape)
    return pl.BlockSpec(shape, lambda b, d, _z=zeros: _z)


def _batch_stats_spec(C):
    return pl.BlockSpec((1, 2, C), lambda b, d: (b, 0, 0))


def _bn_scale_shift(stats, gamma, beta, n_rows):
    mean = stats[0:1, :] / n_rows
    var = jnp.maximum(stats[1:2, :] / n_rows - mean * mean, 0.0)
    scale = gamma * lax.rsqrt(var + EPS)
    shift = beta - mean * scale
    return scale, shift


# ---------------------------------------------------------------------------
# forward
# ---------------------------------------------------------------------------

def unet_block_forward(x_ncdhw, t, params):
    B, Cin, D, H, W = x_ncdhw.shape
    assert D == H == W and D >= 3                     # min_input_size (padded_conv=True)
    HW = H * W
    Hp, Wp = H + 2, W + 2
    Cmid = params["w1"].shape[-1]
    Cout = params["w2"].shape[-1]
    Cin_p = _round_up(Cin, SUBLANES)
    Cmid_p = _round_up(Cmid, LANES)
    Cout_p = _round_up(Cout, LANES)
    n_rows = float(B * D * H * W)
    f32, bf16 = jnp.float32, jnp.bfloat16

    # ---- layout & parameter prep (pure data movement / tiny ops stay in XLA) ----
    x = jnp.transpose(x_ncdhw, (0, 2, 3, 4, 1)).astype(f32)           # NDHWC
    xp = jnp.pad(x, ((0, 0), (1, 1), (1, 1), (1, 1), (0, Cin_p - Cin))).astype(bf16)

    w1r = jnp.pad(params["w1"].astype(f32),
                  ((0, 0), (0, 0), (0, 0), (0, Cin_p - Cin), (0, Cmid_p - Cmid))
                  ).reshape(K * K * K, Cin_p, Cmid_p).astype(bf16)
    w2r = jnp.pad(params["w2"].astype(f32),
                  ((0, 0), (0, 0), (0, 0), (0, Cmid_p - Cmid), (0, Cout_p - Cout))
                  ).reshape(K * K * K, Cmid_p, Cout_p).astype(bf16)
    wsr = jnp.pad(params["ws"].astype(f32),
                  ((0, Cin_p - Cin), (0, Cout_p - Cout))).astype(bf16)

    padc_mid = ((0, 0), (0, Cmid_p - Cmid))
    padc_out = ((0, 0), (0, Cout_p - Cout))
    g1 = jnp.pad(params["g1"], padc_mid); b1 = jnp.pad(params["b1"], padc_mid)
    g2 = jnp.pad(params["g2"], padc_out); b2 = jnp.pad(params["b2"], padc_out)
    gs = jnp.pad(params["gs"], padc_out); bs = jnp.pad(params["bs"], padc_out)
    wt = jnp.pad(params["wt"], ((0, 0), (0, Cmid_p - Cmid)))
    bt = jnp.pad(params["bt"], padc_mid)
    temb = t.astype(f32) @ wt + bt                                    # (B, Cmid_p), tiny

    # ---- pass 1: conv1 + skip conv + BN statistics   grid = (batch, depth) ----
    h1_raw, s_raw, st1_b, sts_b = pl.pallas_call(
        partial(_conv1_skip_kernel, H=H, W=W),
        grid=(B, D),
        in_specs=_plane_specs(Hp, Wp, Cin_p) + [
            _const_spec((K * K * K, Cin_p, Cmid_p)),
            _const_spec((Cin_p, Cout_p)),
        ],
        out_specs=(_slab_spec(HW, Cmid_p), _slab_spec(HW, Cout_p),
                   _batch_stats_spec(Cmid_p), _batch_stats_spec(Cout_p)),
        out_shape=(jax.ShapeDtypeStruct((B, D, HW, Cmid_p), f32),
                   jax.ShapeDtypeStruct((B, D, HW, Cout_p), f32),
                   jax.ShapeDtypeStruct((B, 2, Cmid_p), f32),
                   jax.ShapeDtypeStruct((B, 2, Cout_p), f32)),
        compiler_params=pltpu.CompilerParams(
            dimension_semantics=("parallel", "arbitrary"),
            vmem_limit_bytes=VMEM_LIMIT),
    )(xp, xp, xp, w1r, wsr)

    scale1, shift1 = _bn_scale_shift(jnp.sum(st1_b, axis=0), g1, b1, n_rows)
    scale_s, shift_s = _bn_scale_shift(jnp.sum(sts_b, axis=0), gs, bs, n_rows)
    # fold the time embedding into the per-batch BN1 shift: act1 = ReLU(bn1(h) + temb)
    shiftb = (shift1 + temb).reshape(B, 1, Cmid_p)

    # ---- pass 2: BN1 normalize + time embedding + ReLU -> bf16 activations ----
    a1 = pl.pallas_call(
        _bn1_time_relu_kernel,
        grid=(B, D),
        in_specs=[_slab_spec(HW, Cmid_p),
                  _const_spec((1, Cmid_p)),
                  pl.BlockSpec((1, 1, Cmid_p), lambda b, d: (b, 0, 0))],
        out_specs=_slab_spec(HW, Cmid_p),
        out_shape=jax.ShapeDtypeStruct((B, D, HW, Cmid_p), bf16),
        compiler_params=pltpu.CompilerParams(
            dimension_semantics=("parallel", "parallel"),
            vmem_limit_bytes=VMEM_LIMIT),
    )(h1_raw, scale1, shiftb)

    a1p = jnp.pad(a1.reshape(B, D, H, W, Cmid_p),
                  ((0, 0), (1, 1), (1, 1), (1, 1), (0, 0)))           # halo, bf16

    # ---- pass 3: conv2 + BN statistics ----
    h2_raw, st2_b = pl.pallas_call(
        partial(_conv2_kernel, H=H, W=W),
        grid=(B, D),
        in_specs=_plane_specs(Hp, Wp, Cmid_p) + [
            _const_spec((K * K * K, Cmid_p, Cout_p)),
        ],
        out_specs=(_slab_spec(HW, Cout_p), _batch_stats_spec(Cout_p)),
        out_shape=(jax.ShapeDtypeStruct((B, D, HW, Cout_p), f32),
                   jax.ShapeDtypeStruct((B, 2, Cout_p), f32)),
        compiler_params=pltpu.CompilerParams(
            dimension_semantics=("parallel", "arbitrary"),
            vmem_limit_bytes=VMEM_LIMIT),
    )(a1p, a1p, a1p, w2r)

    scale2, shift2 = _bn_scale_shift(jnp.sum(st2_b, axis=0), g2, b2, n_rows)
    p2 = jnp.concatenate([scale2, shift2], axis=0)                    # (2, Cout_p)
    ps = jnp.concatenate([scale_s, shift_s], axis=0)                  # (2, Cout_p)

    # ---- pass 4: BN2 + skip-BN + residual /sqrt(2) + final ReLU ----
    out_p = pl.pallas_call(
        partial(_bn2_residual_relu_kernel, inv_sqrt2=1.0 / math.sqrt(2.0)),
        grid=(B, D),
        in_specs=[_slab_spec(HW, Cout_p), _slab_spec(HW, Cout_p),
                  _const_spec((2, Cout_p)), _const_spec((2, Cout_p))],
        out_specs=_slab_spec(HW, Cout_p),
        out_shape=jax.ShapeDtypeStruct((B, D, HW, Cout_p), f32),
        compiler_params=pltpu.CompilerParams(
            dimension_semantics=("parallel", "parallel"),
            vmem_limit_bytes=VMEM_LIMIT),
    )(h2_raw, s_raw, p2, ps)

    out = out_p.reshape(B, D, H, W, Cout_p)[..., :Cout]
    return jnp.transpose(out, (0, 4, 1, 2, 3))                        # back to NCDHW


# ---------------------------------------------------------------------------
# pure-JAX reference (lax conv, f32) to validate the Pallas path
# ---------------------------------------------------------------------------

def unet_block_reference(x_ncdhw, t, params):
    x = jnp.transpose(x_ncdhw, (0, 2, 3, 4, 1)).astype(jnp.float32)

    def conv3(inp, w):
        return lax.conv_general_dilated(
            inp, w, window_strides=(1, 1, 1), padding="SAME",
            dimension_numbers=("NDHWC", "DHWIO", "NDHWC"))

    def bn(h, g, b):
        mu = jnp.mean(h, axis=(0, 1, 2, 3), keepdims=True)
        var = jnp.mean(jnp.square(h - mu), axis=(0, 1, 2, 3), keepdims=True)
        return (h - mu) * lax.rsqrt(var + EPS) * g + b

    h = bn(conv3(x, params["w1"]), params["g1"], params["b1"])
    temb = t @ params["wt"] + params["bt"]
    h = jnp.maximum(h + temb[:, None, None, None, :], 0.0)
    h = bn(conv3(h, params["w2"]), params["g2"], params["b2"])
    s = bn(jnp.einsum("bdhwc,co->bdhwo", x, params["ws"]), params["gs"], params["bs"])
    out = jnp.maximum((h + s) / math.sqrt(2.0), 0.0)
    return jnp.transpose(out, (0, 4, 1, 2, 3))


if __name__ == "__main__":
    B, Cin, Cmid, Cout, D, T = 2, 4, 8, 8, 8, 16
    key = jax.random.PRNGKey(0)
    ks = jax.random.split(key, 12)

    def init(k, shape, fan_in):
        return jax.random.normal(k, shape, jnp.float32) * math.sqrt(2.0 / fan_in)

    def q(v):  # bf16-representable values so reference & kernel see identical weights
        return v.astype(jnp.bfloat16).astype(jnp.float32)

    params = dict(
        w1=q(init(ks[0], (K, K, K, Cin, Cmid), K ** 3 * Cin)),
        g1=1.0 + 0.1 * jax.random.normal(ks[1], (1, Cmid), jnp.float32),
        b1=0.1 * jax.random.normal(ks[2], (1, Cmid), jnp.float32),
        wt=init(ks[3], (T, Cmid), T),
        bt=0.1 * jax.random.normal(ks[4], (1, Cmid), jnp.float32),
        w2=q(init(ks[5], (K, K, K, Cmid, Cout), K ** 3 * Cmid)),
        g2=1.0 + 0.1 * jax.random.normal(ks[6], (1, Cout), jnp.float32),
        b2=0.1 * jax.random.normal(ks[7], (1, Cout), jnp.float32),
        ws=q(init(ks[8], (Cin, Cout), Cin)),
        gs=1.0 + 0.1 * jax.random.normal(ks[9], (1, Cout), jnp.float32),
        bs=0.1 * jax.random.normal(ks[10], (1, Cout), jnp.float32),
    )

    x = q(jax.random.normal(ks[11], (B, Cin, D, D, D), jnp.float32))  # NCDHW, W==H==D
    t = jax.random.normal(jax.random.PRNGKey(1), (B, T), jnp.float32)

    out = jax.block_until_ready(jax.jit(unet_block_forward)(x, t, params))
    ref = jax.block_until_ready(unet_block_reference(x, t, params))

    assert out.shape == (B, Cout, D, D, D), out.shape
    # bf16 activation/weight storage with f32 accumulation -> small quantization error
    assert jnp.allclose(out, ref, rtol=2e-2, atol=2e-2), float(jnp.max(jnp.abs(out - ref)))
    print("KERNEL_OK")
</pallas_src>

<mosaic_0001>
module attributes {stable_mosaic.version = 11 : i64} {
  func.func @_bn1_time_relu_kernel(%arg0: i32, %arg1: i32, %arg2: memref<1x1x64x128xf32, #tpu.memory_space<vmem>>, %arg3: memref<1x128xf32, #tpu.memory_space<vmem>>, %arg4: memref<1x1x128xf32, #tpu.memory_space<vmem>>, %arg5: memref<1x1x64x128xbf16, #tpu.memory_space<vmem>>) attributes {dimension_semantics = [#tpu.dimension_semantics<parallel>, #tpu.dimension_semantics<parallel>], iteration_bounds = array<i64: 2, 8>, scalar_prefetch = 0 : i64, scratch_operands = 0 : i64, tpu.core_type = #tpu.core_type<tc>, window_params = [{transform_indices = @transform_0, window_bounds = array<i64: 1, 1, 64, 128>}, {pipeline_mode = #tpu.pipeline_mode<synchronous>, transform_indices = @transform_1, window_bounds = array<i64: 1, 128>}, {transform_indices = @transform_2, window_bounds = array<i64: 1, 1, 128>}, {transform_indices = @transform_3, window_bounds = array<i64: 1, 1, 64, 128>}]} {
    %c0 = arith.constant 0 : index
    %c0_0 = arith.constant 0 : index
    %c0_1 = arith.constant 0 : index
    %c0_2 = arith.constant 0 : index
    %0 = vector.load %arg2[%c0, %c0_0, %c0_1, %c0_2] : memref<1x1x64x128xf32, #tpu.memory_space<vmem>>, vector<1x1x64x128xf32>
    %c0_3 = arith.constant 0 : index
    %c0_4 = arith.constant 0 : index
    %1 = vector.load %arg3[%c0_3, %c0_4] : memref<1x128xf32, #tpu.memory_space<vmem>>, vector<1x128xf32>
    %2 = vector.shape_cast %1 : vector<1x128xf32> to vector<1x1x1x128xf32>
    %3 = vector.broadcast %2 : vector<1x1x1x128xf32> to vector<1x1x64x128xf32>
    %4 = arith.mulf %0, %3 : vector<1x1x64x128xf32>
    %c0_5 = arith.constant 0 : index
    %c0_6 = arith.constant 0 : index
    %c0_7 = arith.constant 0 : index
    %5 = vector.load %arg4[%c0_5, %c0_6, %c0_7] : memref<1x1x128xf32, #tpu.memory_space<vmem>>, vector<1x1x128xf32>
    %6 = vector.shape_cast %5 : vector<1x1x128xf32> to vector<1x1x1x128xf32>
    %7 = vector.broadcast %6 : vector<1x1x1x128xf32> to vector<1x1x64x128xf32>
    %8 = arith.addf %4, %7 : vector<1x1x64x128xf32>
    %cst = arith.constant 0.000000e+00 : f32
    %9 = vector.broadcast %cst : f32 to vector<1x1x64x128xf32>
    %10 = arith.maximumf %8, %9 : vector<1x1x64x128xf32>
    %11 = arith.truncf %10 : vector<1x1x64x128xf32> to vector<1x1x64x128xbf16>
    %c0_8 = arith.constant 0 : index
    %c0_9 = arith.constant 0 : index
    %c0_10 = arith.constant 0 : index
    %c0_11 = arith.constant 0 : index
    %12 = vector.load %arg5[%c0_8, %c0_9, %c0_10, %c0_11] : memref<1x1x64x128xbf16, #tpu.memory_space<vmem>>, vector<1x1x64x128xbf16>
    tpu.vector_store %arg5[%c0_8, %c0_9, %c0_10, %c0_11], %11 {strides = array<i32>} : memref<1x1x64x128xbf16, #tpu.memory_space<vmem>>, vector<1x1x64x128xbf16>,
    return
  }
  func.func @transform_0(%arg0: i32, %arg1: i32) -> (i32, i32, i32, i32) {
    %c0_i32 = arith.constant 0 : i32
    %c0_i32_0 = arith.constant 0 : i32
    %c0_i32_1 = arith.constant 0 : i32
    return %arg0, %arg1, %c0_i32, %c0_i32_0 : i32, i32, i32, i32
  }
  func.func @transform_1(%arg0: i32, %arg1: i32) -> (i32, i32) {
    %c0_i32 = arith.constant 0 : i32
    %c0_i32_0 = arith.constant 0 : i32
    %c0_i32_1 = arith.constant 0 : i32
    return %c0_i32, %c0_i32_0 : i32, i32
  }
  func.func @transform_2(%arg0: i32, %arg1: i32) -> (i32, i32, i32) {
    %c0_i32 = arith.constant 0 : i32
    %c0_i32_0 = arith.constant 0 : i32
    %c0_i32_1 = arith.constant 0 : i32
    return %arg0, %c0_i32, %c0_i32_0 : i32, i32, i32
  }
  func.func @transform_3(%arg0: i32, %arg1: i32) -> (i32, i32, i32, i32) {
    %c0_i32 = arith.constant 0 : i32
    %c0_i32_0 = arith.constant 0 : i32
    %c0_i32_1 = arith.constant 0 : i32
    return %arg0, %arg1, %c0_i32, %c0_i32_0 : i32, i32, i32, i32
  }
}

module attributes {stable_mosaic.version = 11 : i64} {
  func.func @_conv1_skip_kernel(%arg0: i32, %arg1: i32, %arg2: memref<1x1x10x10x8xbf16, #tpu.memory_space<vmem>>, %arg3: memref<1x1x10x10x8xbf16, #tpu.memory_space<vmem>>, %arg4: memref<1x1x10x10x8xbf16, #tpu.memory_space<vmem>>, %arg5: memref<27x8x128xbf16, #tpu.memory_space<vmem>>, %arg6: memref<8x128xbf16, #tpu.memory_space<vmem>>, %arg7: memref<1x1x64x128xf32, #tpu.memory_space<vmem>>, %arg8: memref<1x1x64x128xf32, #tpu.memory_space<vmem>>, %arg9: memref<1x2x128xf32, #tpu.memory_space<vmem>>, %arg10: memref<1x2x128xf32, #tpu.memory_space<vmem>>) attributes {dimension_semantics = [#tpu.dimension_semantics<parallel>, #tpu.dimension_semantics<arbitrary>], iteration_bounds = array<i64: 2, 8>, scalar_prefetch = 0 : i64, scratch_operands = 0 : i64, tpu.core_type = #tpu.core_type<tc>, window_params = [{transform_indices = @transform_0, window_bounds = array<i64: 1, 1, 10, 10, 8>}, {transform_indices = @transform_1, window_bounds = array<i64: 1, 1, 10, 10, 8>}, {transform_indices = @transform_2, window_bounds = array<i64: 1, 1, 10, 10, 8>}, {pipeline_mode = #tpu.pipeline_mode<synchronous>, transform_indices = @transform_3, window_bounds = array<i64: 27, 8, 128>}, {pipeline_mode = #tpu.pipeline_mode<synchronous>, transform_indices = @transform_4, window_bounds = array<i64: 8, 128>}, {transform_indices = @transform_5, window_bounds = array<i64: 1, 1, 64, 128>}, {transform_indices = @transform_6, window_bounds = array<i64: 1, 1, 64, 128>}, {transform_indices = @transform_7, window_bounds = array<i64: 1, 2, 128>}, {transform_indices = @transform_8, window_bounds = array<i64: 1, 2, 128>}]} {
    %c0_i32 = arith.constant 0 : i32
    %0 = arith.cmpi eq, %arg1, %c0_i32 : i32
    %1 = arith.extui %0 : i1 to i32
    %c0_i32_0 = arith.constant 0 : i32
    %2 = arith.cmpi ne, %1, %c0_i32_0 : i32
    scf.if %2 {
      %cst_248 = arith.constant 0.000000e+00 : f32
      %220 = vector.broadcast %cst_248 : f32 to vector<1x2x128xf32>
      %c0_249 = arith.constant 0 : index
      %c0_250 = arith.constant 0 : index
      %c0_251 = arith.constant 0 : index
      %221 = vector.load %arg9[%c0_249, %c0_250, %c0_251] : memref<1x2x128xf32, #tpu.memory_space<vmem>>, vector<1x2x128xf32>
      tpu.vector_store %arg9[%c0_249, %c0_250, %c0_251], %220 {strides = array<i32>} : memref<1x2x128xf32, #tpu.memory_space<vmem>>, vector<1x2x128xf32>,
      %cst_252 = arith.constant 0.000000e+00 : f32
      %222 = vector.broadcast %cst_252 : f32 to vector<1x2x128xf32>
      %c0_253 = arith.constant 0 : index
      %c0_254 = arith.constant 0 : index
      %c0_255 = arith.constant 0 : index
      %223 = vector.load %arg10[%c0_253, %c0_254, %c0_255] : memref<1x2x128xf32, #tpu.memory_space<vmem>>, vector<1x2x128xf32>
      tpu.vector_store %arg10[%c0_253, %c0_254, %c0_255], %222 {strides = array<i32>} : memref<1x2x128xf32, #tpu.memory_space<vmem>>, vector<1x2x128xf32>,
    } else {
    }
    %c0 = arith.constant 0 : index
    %c0_1 = arith.constant 0 : index
    %c0_2 = arith.constant 0 : index
    %c0_3 = arith.constant 0 : index
    %c0_4 = arith.constant 0 : index
    %3 = vector.load %arg2[%c0, %c0_1, %c0_2, %c0_3, %c0_4] : memref<1x1x10x10x8xbf16, #tpu.memory_space<vmem>>, vector<1x1x8x8x8xbf16>
    %4 = vector.shape_cast %3 : vector<1x1x8x8x8xbf16> to vector<8x8x8xbf16>
    %5 = vector.shape_cast %4 : vector<8x8x8xbf16> to vector<64x8xbf16>
    %c0_5 = arith.constant 0 : index
    %c0_6 = arith.constant 0 : index
    %c0_7 = arith.constant 0 : index
    %6 = vector.load %arg5[%c0_5, %c0_6, %c0_7] : memref<27x8x128xbf16, #tpu.memory_space<vmem>>, vector<1x8x128xbf16>
    %7 = vector.shape_cast %6 : vector<1x8x128xbf16> to vector<8x128xbf16>
    %cst = arith.constant dense<0.000000e+00> : vector<64x128xf32>
    %8 = tpu.matmul %5, %7, %cst {dimension_numbers = #tpu.dot_dimension_numbers<[1], [0], [0], [1], [0, 0, 1, 1], [], []>} : vector<64x8xbf16>, vector<8x128xbf16>, vector<64x128xf32> -> vector<64x128xf32>
    %c0_8 = arith.constant 0 : index
    %c0_9 = arith.constant 0 : index
    %c0_10 = arith.constant 0 : index
    %c1 = arith.constant 1 : index
    %c0_11 = arith.constant 0 : index
    %9 = vector.load %arg2[%c0_8, %c0_9, %c0_10, %c1, %c0_11] : memref<1x1x10x10x8xbf16, #tpu.memory_space<vmem>>, vector<1x1x8x8x8xbf16>
    %10 = vector.shape_cast %9 : vector<1x1x8x8x8xbf16> to vector<8x8x8xbf16>
    %11 = vector.shape_cast %10 : vector<8x8x8xbf16> to vector<64x8xbf16>
    %c1_12 = arith.constant 1 : index
    %c0_13 = arith.constant 0 : index
    %c0_14 = arith.constant 0 : index
    %12 = vector.load %arg5[%c1_12, %c0_13, %c0_14] : memref<27x8x128xbf16, #tpu.memory_space<vmem>>, vector<1x8x128xbf16>
    %13 = vector.shape_cast %12 : vector<1x8x128xbf16> to vector<8x128xbf16>
    %cst_15 = arith.constant dense<0.000000e+00> : vector<64x128xf32>
    %14 = tpu.matmul %11, %13, %cst_15 {dimension_numbers = #tpu.dot_dimension_numbers<[1], [0], [0], [1], [0, 0, 1, 1], [], []>} : vector<64x8xbf16>, vector<8x128xbf16>, vector<64x128xf32> -> vector<64x128xf32>
    %15 = arith.addf %8, %14 : vector<64x128xf32>
    %c0_16 = arith.constant 0 : index
    %c0_17 = arith.constant 0 : index
    %c0_18 = arith.constant 0 : index
    %c2 = arith.constant 2 : index
    %c0_19 = arith.constant 0 : index
    %16 = vector.load %arg2[%c0_16, %c0_17, %c0_18, %c2, %c0_19] : memref<1x1x10x10x8xbf16, #tpu.memory_space<vmem>>, vector<1x1x8x8x8xbf16>
    %17 = vector.shape_cast %16 : vector<1x1x8x8x8xbf16> to vector<8x8x8xbf16>
    %18 = vector.shape_cast %17 : vector<8x8x8xbf16> to vector<64x8xbf16>
    %c2_20 = arith.constant 2 : index
    %c0_21 = arith.constant 0 : index
    %c0_22 = arith.constant 0 : index
    %19 = vector.load %arg5[%c2_20, %c0_21, %c0_22] : memref<27x8x128xbf16, #tpu.memory_space<vmem>>, vector<1x8x128xbf16>
    %20 = vector.shape_cast %19 : vector<1x8x128xbf16> to vector<8x128xbf16>
    %cst_23 = arith.constant dense<0.000000e+00> : vector<64x128xf32>
    %21 = tpu.matmul %18, %20, %cst_23 {dimension_numbers = #tpu.dot_dimension_numbers<[1], [0], [0], [1], [0, 0, 1, 1], [], []>} : vector<64x8xbf16>, vector<8x128xbf16>, vector<64x128xf32> -> vector<64x128xf32>
    %22 = arith.addf %15, %21 : vector<64x128xf32>
    %c0_24 = arith.constant 0 : index
    %c0_25 = arith.constant 0 : index
    %c1_26 = arith.constant 1 : index
    %c0_27 = arith.constant 0 : index
    %c0_28 = arith.constant 0 : index
    %23 = vector.load %arg2[%c0_24, %c0_25, %c1_26, %c0_27, %c0_28] : memref<1x1x10x10x8xbf16, #tpu.memory_space<vmem>>, vector<1x1x8x8x8xbf16>
    %24 = vector.shape_cast %23 : vector<1x1x8x8x8xbf16> to vector<8x8x8xbf16>
    %25 = vector.shape_cast %24 : vector<8x8x8xbf16> to vector<64x8xbf16>
    %c3 = arith.constant 3 : index
    %c0_29 = arith.constant 0 : index
    %c0_30 = arith.constant 0 : index
    %26 = vector.load %arg5[%c3, %c0_29, %c0_30] : memref<27x8x128xbf16, #tpu.memory_space<vmem>>, vector<1x8x128xbf16>
    %27 = vector.shape_cast %26 : vector<1x8x128xbf16> to vector<8x128xbf16>
    %cst_31 = arith.constant dense<0.000000e+00> : vector<64x128xf32>
    %28 = tpu.matmul %25, %27, %cst_31 {dimension_numbers = #tpu.dot_dimension_numbers<[1], [0], [0], [1], [0, 0, 1, 1], [], []>} : vector<64x8xbf16>, vector<8x128xbf16>, vector<64x128xf32> -> vector<64x128xf32>
    %29 = arith.addf %22, %28 : vector<64x128xf32>
    %c0_32 = arith.constant 0 : index
    %c0_33 = arith.constant 0 : index
    %c1_34 = arith.constant 1 : index
    %c1_35 = arith.constant 1 : index
    %c0_36 = arith.constant 0 : index
    %30 = vector.load %arg2[%c0_32, %c0_33, %c1_34, %c1_35, %c0_36] : memref<1x1x10x10x8xbf16, #tpu.memory_space<vmem>>, vector<1x1x8x8x8xbf16>
    %31 = vector.shape_cast %30 : vector<1x1x8x8x8xbf16> to vector<8x8x8xbf16>
    %32 = vector.shape_cast %31 : vector<8x8x8xbf16> to vector<64x8xbf16>
    %c4 = arith.constant 4 : index
    %c0_37 = arith.constant 0 : index
    %c0_38 = arith.constant 0 : index
    %33 = vector.load %arg5[%c4, %c0_37, %c0_38] : memref<27x8x128xbf16, #tpu.memory_space<vmem>>, vector<1x8x128xbf16>
    %34 = vector.shape_cast %33 : vector<1x8x128xbf16> to vector<8x128xbf16>
    %cst_39 = arith.constant dense<0.000000e+00> : vector<64x128xf32>
    %35 = tpu.matmul %32, %34, %cst_39 {dimension_numbers = #tpu.dot_dimension_numbers<[1], [0], [0], [1], [0, 0, 1, 1], [], []>} : vector<64x8xbf16>, vector<8x128xbf16>, vector<64x128xf32> -> vector<64x128xf32>
    %36 = arith.addf %29, %35 : vector<64x128xf32>
    %c0_40 = arith.constant 0 : index
    %c0_41 = arith.constant 0 : index
    %c1_42 = arith.constant 1 : index
    %c2_43 = arith.constant 2 : index
    %c0_44 = arith.constant 0 : index
    %37 = vector.load %arg2[%c0_40, %c0_41, %c1_42, %c2_43, %c0_44] : memref<1x1x10x10x8xbf16, #tpu.memory_space<vmem>>, vector<1x1x8x8x8xbf16>
    %38 = vector.shape_cast %37 : vector<1x1x8x8x8xbf16> to vector<8x8x8xbf16>
    %39 = vector.shape_cast %38 : vector<8x8x8xbf16> to vector<64x8xbf16>
    %c5 = arith.constant 5 : index
    %c0_45 = arith.constant 0 : index
    %c0_46 = arith.constant 0 : index
    %40 = vector.load %arg5[%c5, %c0_45, %c0_46] : memref<27x8x128xbf16, #tpu.memory_space<vmem>>, vector<1x8x128xbf16>
    %41 = vector.shape_cast %40 : vector<1x8x128xbf16> to vector<8x128xbf16>
    %cst_47 = arith.constant dense<0.000000e+00> : vector<64x128xf32>
    %42 = tpu.matmul %39, %41, %cst_47 {dimension_numbers = #tpu.dot_dimension_numbers<[1], [0], [0], [1], [0, 0, 1, 1], [], []>} : vector<64x8xbf16>, vector<8x128xbf16>, vector<64x128xf32> -> vector<64x128xf32>
    %43 = arith.addf %36, %42 : vector<64x128xf32>
    %c0_48 = arith.constant 0 : index
    %c0_49 = arith.constant 0 : index
    %c2_50 = arith.constant 2 : index
    %c0_51 = arith.constant 0 : index
    %c0_52 = arith.constant 0 : index
    %44 = vector.load %arg2[%c0_48, %c0_49, %c2_50, %c0_51, %c0_52] : memref<1x1x10x10x8xbf16, #tpu.memory_space<vmem>>, vector<1x1x8x8x8xbf16>
    %45 = vector.shape_cast %44 : vector<1x1x8x8x8xbf16> to vector<8x8x8xbf16>
    %46 = vector.shape_cast %45 : vector<8x8x8xbf16> to vector<64x8xbf16>
    %c6 = arith.constant 6 : index
    %c0_53 = arith.constant 0 : index
    %c0_54 = arith.constant 0 : index
    %47 = vector.load %arg5[%c6, %c0_53, %c0_54] : memref<27x8x128xbf16, #tpu.memory_space<vmem>>, vector<1x8x128xbf16>
    %48 = vector.shape_cast %47 : vector<1x8x128xbf16> to vector<8x128xbf16>
    %cst_55 = arith.constant dense<0.000000e+00> : vector<64x128xf32>
    %49 = tpu.matmul %46, %48, %cst_55 {dimension_numbers = #tpu.dot_dimension_numbers<[1], [0], [0], [1], [0, 0, 1, 1], [], []>} : vector<64x8xbf16>, vector<8x128xbf16>, vector<64x128xf32> -> vector<64x128xf32>
    %50 = arith.addf %43, %49 : vector<64x128xf32>
    %c0_56 = arith.constant 0 : index
    %c0_57 = arith.constant 0 : index
    %c2_58 = arith.constant 2 : index
    %c1_59 = arith.constant 1 : index
    %c0_60 = arith.constant 0 : index
    %51 = vector.load %arg2[%c0_56, %c0_57, %c2_58, %c1_59, %c0_60] : memref<1x1x10x10x8xbf16, #tpu.memory_space<vmem>>, vector<1x1x8x8x8xbf16>
    %52 = vector.shape_cast %51 : vector<1x1x8x8x8xbf16> to vector<8x8x8xbf16>
    %53 = vector.shape_cast %52 : vector<8x8x8xbf16> to vector<64x8xbf16>
    %c7 = arith.constant 7 : index
    %c0_61 = arith.constant 0 : index
    %c0_62 = arith.constant 0 : index
    %54 = vector.load %arg5[%c7, %c0_61, %c0_62] : memref<27x8x128xbf16, #tpu.memory_space<vmem>>, vector<1x8x128xbf16>
    %55 = vector.shape_cast %54 : vector<1x8x128xbf16> to vector<8x128xbf16>
    %cst_63 = arith.constant dense<0.000000e+00> : vector<64x128xf32>
    %56 = tpu.matmul %53, %55, %cst_63 {dimension_numbers = #tpu.dot_dimension_numbers<[1], [0], [0], [1], [0, 0, 1, 1], [], []>} : vector<64x8xbf16>, vector<8x128xbf16>, vector<64x128xf32> -> vector<64x128xf32>
    %57 = arith.addf %50, %56 : vector<64x128xf32>
    %c0_64 = arith.constant 0 : index
    %c0_65 = arith.constant 0 : index
    %c2_66 = arith.constant 2 : index
    %c2_67 = arith.constant 2 : index
    %c0_68 = arith.constant 0 : index
    %58 = vector.load %arg2[%c0_64, %c0_65, %c2_66, %c2_67, %c0_68] : memref<1x1x10x10x8xbf16, #tpu.memory_space<vmem>>, vector<1x1x8x8x8xbf16>
    %59 = vector.shape_cast %58 : vector<1x1x8x8x8xbf16> to vector<8x8x8xbf16>
    %60 = vector.shape_cast %59 : vector<8x8x8xbf16> to vector<64x8xbf16>
    %c8 = arith.constant 8 : index
    %c0_69 = arith.constant 0 : index
    %c0_70 = arith.constant 0 : index
    %61 = vector.load %arg5[%c8, %c0_69, %c0_70] : memref<27x8x128xbf16, #tpu.memory_space<vmem>>, vector<1x8x128xbf16>
    %62 = vector.shape_cast %61 : vector<1x8x128xbf16> to vector<8x128xbf16>
    %cst_71 = arith.constant dense<0.000000e+00> : vector<64x128xf32>
    %63 = tpu.matmul %60, %62, %cst_71 {dimension_numbers = #tpu.dot_dimension_numbers<[1], [0], [0], [1], [0, 0, 1, 1], [], []>} : vector<64x8xbf16>, vector<8x128xbf16>, vector<64x128xf32> -> vector<64x128xf32>
    %64 = arith.addf %57, %63 : vector<64x128xf32>
    %c0_72 = arith.constant 0 : index
    %c0_73 = arith.constant 0 : index
    %c0_74 = arith.constant 0 : index
    %c0_75 = arith.constant 0 : index
    %c0_76 = arith.constant 0 : index
    %65 = vector.load %arg3[%c0_72, %c0_73, %c0_74, %c0_75, %c0_76] : memref<1x1x10x10x8xbf16, #tpu.memory_space<vmem>>, vector<1x1x8x8x8xbf16>
    %66 = vector.shape_cast %65 : vector<1x1x8x8x8xbf16> to vector<8x8x8xbf16>
    %67 = vector.shape_cast %66 : vector<8x8x8xbf16> to vector<64x8xbf16>
    %c9 = arith.constant 9 : index
    %c0_77 = arith.constant 0 : index
    %c0_78 = arith.constant 0 : index
    %68 = vector.load %arg5[%c9, %c0_77, %c0_78] : memref<27x8x128xbf16, #tpu.memory_space<vmem>>, vector<1x8x128xbf16>
    %69 = vector.shape_cast %68 : vector<1x8x128xbf16> to vector<8x128xbf16>
    %cst_79 = arith.constant dense<0.000000e+00> : vector<64x128xf32>
    %70 = tpu.matmul %67, %69, %cst_79 {dimension_numbers = #tpu.dot_dimension_numbers<[1], [0], [0], [1], [0, 0, 1, 1], [], []>} : vector<64x8xbf16>, vector<8x128xbf16>, vector<64x128xf32> -> vector<64x128xf32>
    %71 = arith.addf %64, %70 : vector<64x128xf32>
    %c0_80 = arith.constant 0 : index
    %c0_81 = arith.constant 0 : index
    %c0_82 = arith.constant 0 : index
    %c1_83 = arith.constant 1 : index
    %c0_84 = arith.constant 0 : index
    %72 = vector.load %arg3[%c0_80, %c0_81, %c0_82, %c1_83, %c0_84] : memref<1x1x10x10x8xbf16, #tpu.memory_space<vmem>>, vector<1x1x8x8x8xbf16>
    %73 = vector.shape_cast %72 : vector<1x1x8x8x8xbf16> to vector<8x8x8xbf16>
    %74 = vector.shape_cast %73 : vector<8x8x8xbf16> to vector<64x8xbf16>
    %c10 = arith.constant 10 : index
    %c0_85 = arith.constant 0 : index
    %c0_86 = arith.constant 0 : index
    %75 = vector.load %arg5[%c10, %c0_85, %c0_86] : memref<27x8x128xbf16, #tpu.memory_space<vmem>>, vector<1x8x128xbf16>
    %76 = vector.shape_cast %75 : vector<1x8x128xbf16> to vector<8x128xbf16>
    %cst_87 = arith.constant dense<0.000000e+00> : vector<64x128xf32>
    %77 = tpu.matmul %74, %76, %cst_87 {dimension_numbers = #tpu.dot_dimension_numbers<[1], [0], [0], [1], [0, 0, 1, 1], [], []>} : vector<64x8xbf16>, vector<8x128xbf16>, vector<64x128xf32> -> vector<64x128xf32>
    %78 = arith.addf %71, %77 : vector<64x128xf32>
    %c0_88 = arith.constant 0 : index
    %c0_89 = arith.constant 0 : index
    %c0_90 = arith.constant 0 : index
    %c2_91 = arith.constant 2 : index
    %c0_92 = arith.constant 0 : index
    %79 = vector.load %arg3[%c0_88, %c0_89, %c0_90, %c2_91, %c0_92] : memref<1x1x10x10x8xbf16, #tpu.memory_space<vmem>>, vector<1x1x8x8x8xbf16>
    %80 = vector.shape_cast %79 : vector<1x1x8x8x8xbf16> to vector<8x8x8xbf16>
    %81 = vector.shape_cast %80 : vector<8x8x8xbf16> to vector<64x8xbf16>
    %c11 = arith.constant 11 : index
    %c0_93 = arith.constant 0 : index
    %c0_94 = arith.constant 0 : index
    %82 = vector.load %arg5[%c11, %c0_93, %c0_94] : memref<27x8x128xbf16, #tpu.memory_space<vmem>>, vector<1x8x128xbf16>
    %83 = vector.shape_cast %82 : vector<1x8x128xbf16> to vector<8x128xbf16>
    %cst_95 = arith.constant dense<0.000000e+00> : vector<64x128xf32>
    %84 = tpu.matmul %81, %83, %cst_95 {dimension_numbers = #tpu.dot_dimension_numbers<[1], [0], [0], [1], [0, 0, 1, 1], [], []>} : vector<64x8xbf16>, vector<8x128xbf16>, vector<64x128xf32> -> vector<64x128xf32>
    %85 = arith.addf %78, %84 : vector<64x128xf32>
    %c0_96 = arith.constant 0 : index
    %c0_97 = arith.constant 0 : index
    %c1_98 = arith.constant 1 : index
    %c0_99 = arith.constant 0 : index
    %c0_100 = arith.constant 0 : index
    %86 = vector.load %arg3[%c0_96, %c0_97, %c1_98, %c0_99, %c0_100] : memref<1x1x10x10x8xbf16, #tpu.memory_space<vmem>>, vector<1x1x8x8x8xbf16>
    %87 = vector.shape_cast %86 : vector<1x1x8x8x8xbf16> to vector<8x8x8xbf16>
    %88 = vector.shape_cast %87 : vector<8x8x8xbf16> to vector<64x8xbf16>
    %c12 = arith.constant 12 : index
    %c0_101 = arith.constant 0 : index
    %c0_102 = arith.constant 0 : index
    %89 = vector.load %arg5[%c12, %c0_101, %c0_102] : memref<27x8x128xbf16, #tpu.memory_space<vmem>>, vector<1x8x128xbf16>
    %90 = vector.shape_cast %89 : vector<1x8x128xbf16> to vector<8x128xbf16>
    %cst_103 = arith.constant dense<0.000000e+00> : vector<64x128xf32>
    %91 = tpu.matmul %88, %90, %cst_103 {dimension_numbers = #tpu.dot_dimension_numbers<[1], [0], [0], [1], [0, 0, 1, 1], [], []>} : vector<64x8xbf16>, vector<8x128xbf16>, vector<64x128xf32> -> vector<64x128xf32>
    %92 = arith.addf %85, %91 : vector<64x128xf32>
    %c0_104 = arith.constant 0 : index
    %c0_105 = arith.constant 0 : index
    %c1_106 = arith.constant 1 : index
    %c1_107 = arith.constant 1 : index
    %c0_108 = arith.constant 0 : index
    %93 = vector.load %arg3[%c0_104, %c0_105, %c1_106, %c1_107, %c0_108] : memref<1x1x10x10x8xbf16, #tpu.memory_space<vmem>>, vector<1x1x8x8x8xbf16>
    %94 = vector.shape_cast %93 : vector<1x1x8x8x8xbf16> to vector<8x8x8xbf16>
    %95 = vector.shape_cast %94 : vector<8x8x8xbf16> to vector<64x8xbf16>
    %c13 = arith.constant 13 : index
    %c0_109 = arith.constant 0 : index
    %c0_110 = arith.constant 0 : index
    %96 = vector.load %arg5[%c13, %c0_109, %c0_110] : memref<27x8x128xbf16, #tpu.memory_space<vmem>>, vector<1x8x128xbf16>
    %97 = vector.shape_cast %96 : vector<1x8x128xbf16> to vector<8x128xbf16>
    %cst_111 = arith.constant dense<0.000000e+00> : vector<64x128xf32>
    %98 = tpu.matmul %95, %97, %cst_111 {dimension_numbers = #tpu.dot_dimension_numbers<[1], [0], [0], [1], [0, 0, 1, 1], [], []>} : vector<64x8xbf16>, vector<8x128xbf16>, vector<64x128xf32> -> vector<64x128xf32>
    %99 = arith.addf %92, %98 : vector<64x128xf32>
    %c0_112 = arith.constant 0 : index
    %c0_113 = arith.constant 0 : index
    %c1_114 = arith.constant 1 : index
    %c2_115 = arith.constant 2 : index
    %c0_116 = arith.constant 0 : index
    %100 = vector.load %arg3[%c0_112, %c0_113, %c1_114, %c2_115, %c0_116] : memref<1x1x10x10x8xbf16, #tpu.memory_space<vmem>>, vector<1x1x8x8x8xbf16>
    %101 = vector.shape_cast %100 : vector<1x1x8x8x8xbf16> to vector<8x8x8xbf16>
    %102 = vector.shape_cast %101 : vector<8x8x8xbf16> to vector<64x8xbf16>
    %c14 = arith.constant 14 : index
    %c0_117 = arith.constant 0 : index
    %c0_118 = arith.constant 0 : index
    %103 = vector.load %arg5[%c14, %c0_117, %c0_118] : memref<27x8x128xbf16, #tpu.memory_space<vmem>>, vector<1x8x128xbf16>
    %104 = vector.shape_cast %103 : vector<1x8x128xbf16> to vector<8x128xbf16>
    %cst_119 = arith.constant dense<0.000000e+00> : vector<64x128xf32>
    %105 = tpu.matmul %102, %104, %cst_119 {dimension_numbers = #tpu.dot_dimension_numbers<[1], [0], [0], [1], [0, 0, 1, 1], [], []>} : vector<64x8xbf16>, vector<8x128xbf16>, vector<64x128xf32> -> vector<64x128xf32>
    %106 = arith.addf %99, %105 : vector<64x128xf32>
    %c0_120 = arith.constant 0 : index
    %c0_121 = arith.constant 0 : index
    %c2_122 = arith.constant 2 : index
    %c0_123 = arith.constant 0 : index
    %c0_124 = arith.constant 0 : index
    %107 = vector.load %arg3[%c0_120, %c0_121, %c2_122, %c0_123, %c0_124] : memref<1x1x10x10x8xbf16, #tpu.memory_space<vmem>>, vector<1x1x8x8x8xbf16>
    %108 = vector.shape_cast %107 : vector<1x1x8x8x8xbf16> to vector<8x8x8xbf16>
    %109 = vector.shape_cast %108 : vector<8x8x8xbf16> to vector<64x8xbf16>
    %c15 = arith.constant 15 : index
    %c0_125 = arith.constant 0 : index
    %c0_126 = arith.constant 0 : index
    %110 = vector.load %arg5[%c15, %c0_125, %c0_126] : memref<27x8x128xbf16, #tpu.memory_space<vmem>>, vector<1x8x128xbf16>
    %111 = vector.shape_cast %110 : vector<1x8x128xbf16> to vector<8x128xbf16>
    %cst_127 = arith.constant dense<0.000000e+00> : vector<64x128xf32>
    %112 = tpu.matmul %109, %111, %cst_127 {dimension_numbers = #tpu.dot_dimension_numbers<[1], [0], [0], [1], [0, 0, 1, 1], [], []>} : vector<64x8xbf16>, vector<8x128xbf16>, vector<64x128xf32> -> vector<64x128xf32>
    %113 = arith.addf %106, %112 : vector<64x128xf32>
    %c0_128 = arith.constant 0 : index
    %c0_129 = arith.constant 0 : index
    %c2_130 = arith.constant 2 : index
    %c1_131 = arith.constant 1 : index
    %c0_132 = arith.constant 0 : index
    %114 = vector.load %arg3[%c0_128, %c0_129, %c2_130, %c1_131, %c0_132] : memref<1x1x10x10x8xbf16, #tpu.memory_space<vmem>>, vector<1x1x8x8x8xbf16>
    %115 = vector.shape_cast %114 : vector<1x1x8x8x8xbf16> to vector<8x8x8xbf16>
    %116 = vector.shape_cast %115 : vector<8x8x8xbf16> to vector<64x8xbf16>
    %c16 = arith.constant 16 : index
    %c0_133 = arith.constant 0 : index
    %c0_134 = arith.constant 0 : index
    %117 = vector.load %arg5[%c16, %c0_133, %c0_134] : memref<27x8x128xbf16, #tpu.memory_space<vmem>>, vector<1x8x128xbf16>
    %118 = vector.shape_cast %117 : vector<1x8x128xbf16> to vector<8x128xbf16>
    %cst_135 = arith.constant dense<0.000000e+00> : vector<64x128xf32>
    %119 = tpu.matmul %116, %118, %cst_135 {dimension_numbers = #tpu.dot_dimension_numbers<[1], [0], [0], [1], [0, 0, 1, 1], [], []>} : vector<64x8xbf16>, vector<8x128xbf16>, vector<64x128xf32> -> vector<64x128xf32>
    %120 = arith.addf %113, %119 : vector<64x128xf32>
    %c0_136 = arith.constant 0 : index
    %c0_137 = arith.constant 0 : index
    %c2_138 = arith.constant 2 : index
    %c2_139 = arith.constant 2 : index
    %c0_140 = arith.constant 0 : index
    %121 = vector.load %arg3[%c0_136, %c0_137, %c2_138, %c2_139, %c0_140] : memref<1x1x10x10x8xbf16, #tpu.memory_space<vmem>>, vector<1x1x8x8x8xbf16>
    %122 = vector.shape_cast %121 : vector<1x1x8x8x8xbf16> to vector<8x8x8xbf16>
    %123 = vector.shape_cast %122 : vector<8x8x8xbf16> to vector<64x8xbf16>
    %c17 = arith.constant 17 : index
    %c0_141 = arith.constant 0 : index
    %c0_142 = arith.constant 0 : index
    %124 = vector.load %arg5[%c17, %c0_141, %c0_142] : memref<27x8x128xbf16, #tpu.memory_space<vmem>>, vector<1x8x128xbf16>
    %125 = vector.shape_cast %124 : vector<1x8x128xbf16> to vector<8x128xbf16>
    %cst_143 = arith.constant dense<0.000000e+00> : vector<64x128xf32>
    %126 = tpu.matmul %123, %125, %cst_143 {dimension_numbers = #tpu.dot_dimension_numbers<[1], [0], [0], [1], [0, 0, 1, 1], [], []>} : vector<64x8xbf16>, vector<8x128xbf16>, vector<64x128xf32> -> vector<64x128xf32>
    %127 = arith.addf %120, %126 : vector<64x128xf32>
    %c0_144 = arith.constant 0 : index
    %c0_145 = arith.constant 0 : index
    %c0_146 = arith.constant 0 : index
    %c0_147 = arith.constant 0 : index
    %c0_148 = arith.constant 0 : index
    %128 = vector.load %arg4[%c0_144, %c0_145, %c0_146, %c0_147, %c0_148] : memref<1x1x10x10x8xbf16, #tpu.memory_space<vmem>>, vector<1x1x8x8x8xbf16>
    %129 = vector.shape_cast %128 : vector<1x1x8x8x8xbf16> to vector<8x8x8xbf16>
    %130 = vector.shape_cast %129 : vector<8x8x8xbf16> to vector<64x8xbf16>
    %c18 = arith.constant 18 : index
    %c0_149 = arith.constant 0 : index
    %c0_150 = arith.constant 0 : index
    %131 = vector.load %arg5[%c18, %c0_149, %c0_150] : memref<27x8x128xbf16, #tpu.memory_space<vmem>>, vector<1x8x128xbf16>
    %132 = vector.shape_cast %131 : vector<1x8x128xbf16> to vector<8x128xbf16>
    %cst_151 = arith.constant dense<0.000000e+00> : vector<64x128xf32>
    %133 = tpu.matmul %130, %132, %cst_151 {dimension_numbers = #tpu.dot_dimension_numbers<[1], [0], [0], [1], [0, 0, 1, 1], [], []>} : vector<64x8xbf16>, vector<8x128xbf16>, vector<64x128xf32> -> vector<64x128xf32>
    %134 = arith.addf %127, %133 : vector<64x128xf32>
    %c0_152 = arith.constant 0 : index
    %c0_153 = arith.constant 0 : index
    %c0_154 = arith.constant 0 : index
    %c1_155 = arith.constant 1 : index
    %c0_156 = arith.constant 0 : index
    %135 = vector.load %arg4[%c0_152, %c0_153, %c0_154, %c1_155, %c0_156] : memref<1x1x10x10x8xbf16, #tpu.memory_space<vmem>>, vector<1x1x8x8x8xbf16>
    %136 = vector.shape_cast %135 : vector<1x1x8x8x8xbf16> to vector<8x8x8xbf16>
    %137 = vector.shape_cast %136 : vector<8x8x8xbf16> to vector<64x8xbf16>
    %c19 = arith.constant 19 : index
    %c0_157 = arith.constant 0 : index
    %c0_158 = arith.constant 0 : index
    %138 = vector.load %arg5[%c19, %c0_157, %c0_158] : memref<27x8x128xbf16, #tpu.memory_space<vmem>>, vector<1x8x128xbf16>
    %139 = vector.shape_cast %138 : vector<1x8x128xbf16> to vector<8x128xbf16>
    %cst_159 = arith.constant dense<0.000000e+00> : vector<64x128xf32>
    %140 = tpu.matmul %137, %139, %cst_159 {dimension_numbers = #tpu.dot_dimension_numbers<[1], [0], [0], [1], [0, 0, 1, 1], [], []>} : vector<64x8xbf16>, vector<8x128xbf16>, vector<64x128xf32> -> vector<64x128xf32>
    %141 = arith.addf %134, %140 : vector<64x128xf32>
    %c0_160 = arith.constant 0 : index
    %c0_161 = arith.constant 0 : index
    %c0_162 = arith.constant 0 : index
    %c2_163 = arith.constant 2 : index
    %c0_164 = arith.constant 0 : index
    %142 = vector.load %arg4[%c0_160, %c0_161, %c0_162, %c2_163, %c0_164] : memref<1x1x10x10x8xbf16, #tpu.memory_space<vmem>>, vector<1x1x8x8x8xbf16>
    %143 = vector.shape_cast %142 : vector<1x1x8x8x8xbf16> to vector<8x8x8xbf16>
    %144 = vector.shape_cast %143 : vector<8x8x8xbf16> to vector<64x8xbf16>
    %c20 = arith.constant 20 : index
    %c0_165 = arith.constant 0 : index
    %c0_166 = arith.constant 0 : index
    %145 = vector.load %arg5[%c20, %c0_165, %c0_166] : memref<27x8x128xbf16, #tpu.memory_space<vmem>>, vector<1x8x128xbf16>
    %146 = vector.shape_cast %145 : vector<1x8x128xbf16> to vector<8x128xbf16>
    %cst_167 = arith.constant dense<0.000000e+00> : vector<64x128xf32>
    %147 = tpu.matmul %144, %146, %cst_167 {dimension_numbers = #tpu.dot_dimension_numbers<[1], [0], [0], [1], [0, 0, 1, 1], [], []>} : vector<64x8xbf16>, vector<8x128xbf16>, vector<64x128xf32> -> vector<64x128xf32>
    %148 = arith.addf %141, %147 : vector<64x128xf32>
    %c0_168 = arith.constant 0 : index
    %c0_169 = arith.constant 0 : index
    %c1_170 = arith.constant 1 : index
    %c0_171 = arith.constant 0 : index
    %c0_172 = arith.constant 0 : index
    %149 = vector.load %arg4[%c0_168, %c0_169, %c1_170, %c0_171, %c0_172] : memref<1x1x10x10x8xbf16, #tpu.memory_space<vmem>>, vector<1x1x8x8x8xbf16>
    %150 = vector.shape_cast %149 : vector<1x1x8x8x8xbf16> to vector<8x8x8xbf16>
    %151 = vector.shape_cast %150 : vector<8x8x8xbf16> to vector<64x8xbf16>
    %c21 = arith.constant 21 : index
    %c0_173 = arith.constant 0 : index
    %c0_174 = arith.constant 0 : index
    %152 = vector.load %arg5[%c21, %c0_173, %c0_174] : memref<27x8x128xbf16, #tpu.memory_space<vmem>>, vector<1x8x128xbf16>
    %153 = vector.shape_cast %152 : vector<1x8x128xbf16> to vector<8x128xbf16>
    %cst_175 = arith.constant dense<0.000000e+00> : vector<64x128xf32>
    %154 = tpu.matmul %151, %153, %cst_175 {dimension_numbers = #tpu.dot_dimension_numbers<[1], [0], [0], [1], [0, 0, 1, 1], [], []>} : vector<64x8xbf16>, vector<8x128xbf16>, vector<64x128xf32> -> vector<64x128xf32>
    %155 = arith.addf %148, %154 : vector<64x128xf32>
    %c0_176 = arith.constant 0 : index
    %c0_177 = arith.constant 0 : index
    %c1_178 = arith.constant 1 : index
    %c1_179 = arith.constant 1 : index
    %c0_180 = arith.constant 0 : index
    %156 = vector.load %arg4[%c0_176, %c0_177, %c1_178, %c1_179, %c0_180] : memref<1x1x10x10x8xbf16, #tpu.memory_space<vmem>>, vector<1x1x8x8x8xbf16>
    %157 = vector.shape_cast %156 : vector<1x1x8x8x8xbf16> to vector<8x8x8xbf16>
    %158 = vector.shape_cast %157 : vector<8x8x8xbf16> to vector<64x8xbf16>
    %c22 = arith.constant 22 : index
    %c0_181 = arith.constant 0 : index
    %c0_182 = arith.constant 0 : index
    %159 = vector.load %arg5[%c22, %c0_181, %c0_182] : memref<27x8x128xbf16, #tpu.memory_space<vmem>>, vector<1x8x128xbf16>
    %160 = vector.shape_cast %159 : vector<1x8x128xbf16> to vector<8x128xbf16>
    %cst_183 = arith.constant dense<0.000000e+00> : vector<64x128xf32>
    %161 = tpu.matmul %158, %160, %cst_183 {dimension_numbers = #tpu.dot_dimension_numbers<[1], [0], [0], [1], [0, 0, 1, 1], [], []>} : vector<64x8xbf16>, vector<8x128xbf16>, vector<64x128xf32> -> vector<64x128xf32>
    %162 = arith.addf %155, %161 : vector<64x128xf32>
    %c0_184 = arith.constant 0 : index
    %c0_185 = arith.constant 0 : index
    %c1_186 = arith.constant 1 : index
    %c2_187 = arith.constant 2 : index
    %c0_188 = arith.constant 0 : index
    %163 = vector.load %arg4[%c0_184, %c0_185, %c1_186, %c2_187, %c0_188] : memref<1x1x10x10x8xbf16, #tpu.memory_space<vmem>>, vector<1x1x8x8x8xbf16>
    %164 = vector.shape_cast %163 : vector<1x1x8x8x8xbf16> to vector<8x8x8xbf16>
    %165 = vector.shape_cast %164 : vector<8x8x8xbf16> to vector<64x8xbf16>
    %c23 = arith.constant 23 : index
    %c0_189 = arith.constant 0 : index
    %c0_190 = arith.constant 0 : index
    %166 = vector.load %arg5[%c23, %c0_189, %c0_190] : memref<27x8x128xbf16, #tpu.memory_space<vmem>>, vector<1x8x128xbf16>
    %167 = vector.shape_cast %166 : vector<1x8x128xbf16> to vector<8x128xbf16>
    %cst_191 = arith.constant dense<0.000000e+00> : vector<64x128xf32>
    %168 = tpu.matmul %165, %167, %cst_191 {dimension_numbers = #tpu.dot_dimension_numbers<[1], [0], [0], [1], [0, 0, 1, 1], [], []>} : vector<64x8xbf16>, vector<8x128xbf16>, vector<64x128xf32> -> vector<64x128xf32>
    %169 = arith.addf %162, %168 : vector<64x128xf32>
    %c0_192 = arith.constant 0 : index
    %c0_193 = arith.constant 0 : index
    %c2_194 = arith.constant 2 : index
    %c0_195 = arith.constant 0 : index
    %c0_196 = arith.constant 0 : index
    %170 = vector.load %arg4[%c0_192, %c0_193, %c2_194, %c0_195, %c0_196] : memref<1x1x10x10x8xbf16, #tpu.memory_space<vmem>>, vector<1x1x8x8x8xbf16>
    %171 = vector.shape_cast %170 : vector<1x1x8x8x8xbf16> to vector<8x8x8xbf16>
    %172 = vector.shape_cast %171 : vector<8x8x8xbf16> to vector<64x8xbf16>
    %c24 = arith.constant 24 : index
    %c0_197 = arith.constant 0 : index
    %c0_198 = arith.constant 0 : index
    %173 = vector.load %arg5[%c24, %c0_197, %c0_198] : memref<27x8x128xbf16, #tpu.memory_space<vmem>>, vector<1x8x128xbf16>
    %174 = vector.shape_cast %173 : vector<1x8x128xbf16> to vector<8x128xbf16>
    %cst_199 = arith.constant dense<0.000000e+00> : vector<64x128xf32>
    %175 = tpu.matmul %172, %174, %cst_199 {dimension_numbers = #tpu.dot_dimension_numbers<[1], [0], [0], [1], [0, 0, 1, 1], [], []>} : vector<64x8xbf16>, vector<8x128xbf16>, vector<64x128xf32> -> vector<64x128xf32>
    %176 = arith.addf %169, %175 : vector<64x128xf32>
    %c0_200 = arith.constant 0 : index
    %c0_201 = arith.constant 0 : index
    %c2_202 = arith.constant 2 : index
    %c1_203 = arith.constant 1 : index
    %c0_204 = arith.constant 0 : index
    %177 = vector.load %arg4[%c0_200, %c0_201, %c2_202, %c1_203, %c0_204] : memref<1x1x10x10x8xbf16, #tpu.memory_space<vmem>>, vector<1x1x8x8x8xbf16>
    %178 = vector.shape_cast %177 : vector<1x1x8x8x8xbf16> to vector<8x8x8xbf16>
    %179 = vector.shape_cast %178 : vector<8x8x8xbf16> to vector<64x8xbf16>
    %c25 = arith.constant 25 : index
    %c0_205 = arith.constant 0 : index
    %c0_206 = arith.constant 0 : index
    %180 = vector.load %arg5[%c25, %c0_205, %c0_206] : memref<27x8x128xbf16, #tpu.memory_space<vmem>>, vector<1x8x128xbf16>
    %181 = vector.shape_cast %180 : vector<1x8x128xbf16> to vector<8x128xbf16>
    %cst_207 = arith.constant dense<0.000000e+00> : vector<64x128xf32>
    %182 = tpu.matmul %179, %181, %cst_207 {dimension_numbers = #tpu.dot_dimension_numbers<[1], [0], [0], [1], [0, 0, 1, 1], [], []>} : vector<64x8xbf16>, vector<8x128xbf16>, vector<64x128xf32> -> vector<64x128xf32>
    %183 = arith.addf %176, %182 : vector<64x128xf32>
    %c0_208 = arith.constant 0 : index
    %c0_209 = arith.constant 0 : index
    %c2_210 = arith.constant 2 : index
    %c2_211 = arith.constant 2 : index
    %c0_212 = arith.constant 0 : index
    %184 = vector.load %arg4[%c0_208, %c0_209, %c2_210, %c2_211, %c0_212] : memref<1x1x10x10x8xbf16, #tpu.memory_space<vmem>>, vector<1x1x8x8x8xbf16>
    %185 = vector.shape_cast %184 : vector<1x1x8x8x8xbf16> to vector<8x8x8xbf16>
    %186 = vector.shape_cast %185 : vector<8x8x8xbf16> to vector<64x8xbf16>
    %c26 = arith.constant 26 : index
    %c0_213 = arith.constant 0 : index
    %c0_214 = arith.constant 0 : index
    %187 = vector.load %arg5[%c26, %c0_213, %c0_214] : memref<27x8x128xbf16, #tpu.memory_space<vmem>>, vector<1x8x128xbf16>
    %188 = vector.shape_cast %187 : vector<1x8x128xbf16> to vector<8x128xbf16>
    %cst_215 = arith.constant dense<0.000000e+00> : vector<64x128xf32>
    %189 = tpu.matmul %186, %188, %cst_215 {dimension_numbers = #tpu.dot_dimension_numbers<[1], [0], [0], [1], [0, 0, 1, 1], [], []>} : vector<64x8xbf16>, vector<8x128xbf16>, vector<64x128xf32> -> vector<64x128xf32>
    %190 = arith.addf %183, %189 : vector<64x128xf32>
    %c0_216 = arith.constant 0 : index
    %c0_217 = arith.constant 0 : index
    %c1_218 = arith.constant 1 : index
    %c1_219 = arith.constant 1 : index
    %c0_220 = arith.constant 0 : index
    %191 = vector.load %arg3[%c0_216, %c0_217, %c1_218, %c1_219, %c0_220] : memref<1x1x10x10x8xbf16, #tpu.memory_space<vmem>>, vector<1x1x8x8x8xbf16>
    %192 = vector.shape_cast %191 : vector<1x1x8x8x8xbf16> to vector<8x8x8xbf16>
    %193 = vector.shape_cast %192 : vector<8x8x8xbf16> to vector<64x8xbf16>
    %c0_221 = arith.constant 0 : index
    %c0_222 = arith.constant 0 : index
    %194 = vector.load %arg6[%c0_221, %c0_222] : memref<8x128xbf16, #tpu.memory_space<vmem>>, vector<8x128xbf16>
    %cst_223 = arith.constant dense<0.000000e+00> : vector<64x128xf32>
    %195 = tpu.matmul %193, %194, %cst_223 {dimension_numbers = #tpu.dot_dimension_numbers<[1], [0], [0], [1], [0, 0, 1, 1], [], []>} : vector<64x8xbf16>, vector<8x128xbf16>, vector<64x128xf32> -> vector<64x128xf32>
    %196 = vector.shape_cast %190 : vector<64x128xf32> to vector<1x1x64x128xf32>
    %c0_224 = arith.constant 0 : index
    %c0_225 = arith.constant 0 : index
    %c0_226 = arith.constant 0 : index
    %c0_227 = arith.constant 0 : index
    %197 = vector.load %arg7[%c0_224, %c0_225, %c0_226, %c0_227] : memref<1x1x64x128xf32, #tpu.memory_space<vmem>>, vector<1x1x64x128xf32>
    tpu.vector_store %arg7[%c0_224, %c0_225, %c0_226, %c0_227], %196 {strides = array<i32>} : memref<1x1x64x128xf32, #tpu.memory_space<vmem>>, vector<1x1x64x128xf32>,
    %198 = vector.shape_cast %195 : vector<64x128xf32> to vector<1x1x64x128xf32>
    %c0_228 = arith.constant 0 : index
    %c0_229 = arith.constant 0 : index
    %c0_230 = arith.constant 0 : index
    %c0_231 = arith.constant 0 : index
    %199 = vector.load %arg8[%c0_228, %c0_229, %c0_230, %c0_231] : memref<1x1x64x128xf32, #tpu.memory_space<vmem>>, vector<1x1x64x128xf32>
    tpu.vector_store %arg8[%c0_228, %c0_229, %c0_230, %c0_231], %198 {strides = array<i32>} : memref<1x1x64x128xf32, #tpu.memory_space<vmem>>, vector<1x1x64x128xf32>,
    %c0_232 = arith.constant 0 : index
    %c0_233 = arith.constant 0 : index
    %c0_234 = arith.constant 0 : index
    %200 = vector.load %arg9[%c0_232, %c0_233, %c0_234] : memref<1x2x128xf32, #tpu.memory_space<vmem>>, vector<1x2x128xf32>
    %cst_235 = arith.constant dense<0.000000e+00> : vector<128xf32>
    %201 = vector.multi_reduction <add>, %190, %cst_235 [0] : vector<64x128xf32> to vector<128xf32>
    %202 = vector.shape_cast %201 : vector<128xf32> to vector<1x128xf32>
    %203 = arith.mulf %190, %190 : vector<64x128xf32>
    %cst_236 = arith.constant dense<0.000000e+00> : vector<128xf32>
    %204 = vector.multi_reduction <add>, %203, %cst_236 [0] : vector<64x128xf32> to vector<128xf32>
    %205 = vector.shape_cast %204 : vector<128xf32> to vector<1x128xf32>
    %206 = tpu.concatenate %202, %205 in 0 : vector<1x128xf32>, vector<1x128xf32> -> vector<2x128xf32>
    %207 = vector.shape_cast %206 : vector<2x128xf32> to vector<1x2x128xf32>
    %208 = arith.addf %200, %207 : vector<1x2x128xf32>
    %c0_237 = arith.constant 0 : index
    %c0_238 = arith.constant 0 : index
    %c0_239 = arith.constant 0 : index
    %209 = vector.load %arg9[%c0_237, %c0_238, %c0_239] : memref<1x2x128xf32, #tpu.memory_space<vmem>>, vector<1x2x128xf32>
    tpu.vector_store %arg9[%c0_237, %c0_238, %c0_239], %208 {strides = array<i32>} : memref<1x2x128xf32, #tpu.memory_space<vmem>>, vector<1x2x128xf32>,
    %c0_240 = arith.constant 0 : index
    %c0_241 = arith.constant 0 : index
    %c0_242 = arith.constant 0 : index
    %210 = vector.load %arg10[%c0_240, %c0_241, %c0_242] : memref<1x2x128xf32, #tpu.memory_space<vmem>>, vector<1x2x128xf32>
    %cst_243 = arith.constant dense<0.000000e+00> : vector<128xf32>
    %211 = vector.multi_reduction <add>, %195, %cst_243 [0] : vector<64x128xf32> to vector<128xf32>
    %212 = vector.shape_cast %211 : vector<128xf32> to vector<1x128xf32>
    %213 = arith.mulf %195, %195 : vector<64x128xf32>
    %cst_244 = arith.constant dense<0.000000e+00> : vector<128xf32>
    %214 = vector.multi_reduction <add>, %213, %cst_244 [0] : vector<64x128xf32> to vector<128xf32>
    %215 = vector.shape_cast %214 : vector<128xf32> to vector<1x128xf32>
    %216 = tpu.concatenate %212, %215 in 0 : vector<1x128xf32>, vector<1x128xf32> -> vector<2x128xf32>
    %217 = vector.shape_cast %216 : vector<2x128xf32> to vector<1x2x128xf32>
    %218 = arith.addf %210, %217 : vector<1x2x128xf32>
    %c0_245 = arith.constant 0 : index
    %c0_246 = arith.constant 0 : index
    %c0_247 = arith.constant 0 : index
    %219 = vector.load %arg10[%c0_245, %c0_246, %c0_247] : memref<1x2x128xf32, #tpu.memory_space<vmem>>, vector<1x2x128xf32>
    tpu.vector_store %arg10[%c0_245, %c0_246, %c0_247], %218 {strides = array<i32>} : memref<1x2x128xf32, #tpu.memory_space<vmem>>, vector<1x2x128xf32>,
    return
  }
  func.func @transform_0(%arg0: i32, %arg1: i32) -> (i32, i32, i32, i32, i32) {
    %c0_i32 = arith.constant 0 : i32
    %0 = arith.addi %arg1, %c0_i32 : i32
    %c0_i32_0 = arith.constant 0 : i32
    %c0_i32_1 = arith.constant 0 : i32
    %c0_i32_2 = arith.constant 0 : i32
    %c0_i32_3 = arith.constant 0 : i32
    return %arg0, %0, %c0_i32_0, %c0_i32_1, %c0_i32_2 : i32, i32, i32, i32, i32
  }
  func.func @transform_1(%arg0: i32, %arg1: i32) -> (i32, i32, i32, i32, i32) {
    %c1_i32 = arith.constant 1 : i32
    %0 = arith.addi %arg1, %c1_i32 : i32
    %c0_i32 = arith.constant 0 : i32
    %c0_i32_0 = arith.constant 0 : i32
    %c0_i32_1 = arith.constant 0 : i32
    %c0_i32_2 = arith.constant 0 : i32
    return %arg0, %0, %c0_i32, %c0_i32_0, %c0_i32_1 : i32, i32, i32, i32, i32
  }
  func.func @transform_2(%arg0: i32, %arg1: i32) -> (i32, i32, i32, i32, i32) {
    %c2_i32 = arith.constant 2 : i32
    %0 = arith.addi %arg1, %c2_i32 : i32
    %c0_i32 = arith.constant 0 : i32
    %c0_i32_0 = arith.constant 0 : i32
    %c0_i32_1 = arith.constant 0 : i32
    %c0_i32_2 = arith.constant 0 : i32
    return %arg0, %0, %c0_i32, %c0_i32_0, %c0_i32_1 : i32, i32, i32, i32, i32
  }
  func.func @transform_3(%arg0: i32, %arg1: i32) -> (i32, i32, i32) {
    %c0_i32 = arith.constant 0 : i32
    %c0_i32_0 = arith.constant 0 : i32
    %c0_i32_1 = arith.constant 0 : i32
    %c0_i32_2 = arith.constant 0 : i32
    return %c0_i32, %c0_i32_0, %c0_i32_1 : i32, i32, i32
  }
  func.func @transform_4(%arg0: i32, %arg1: i32) -> (i32, i32) {
    %c0_i32 = arith.constant 0 : i32
    %c0_i32_0 = arith.constant 0 : i32
    %c0_i32_1 = arith.constant 0 : i32
    return %c0_i32, %c0_i32_0 : i32, i32
  }
  func.func @transform_5(%arg0: i32, %arg1: i32) -> (i32, i32, i32, i32) {
    %c0_i32 = arith.constant 0 : i32
    %c0_i32_0 = arith.constant 0 : i32
    %c0_i32_1 = arith.constant 0 : i32
    return %arg0, %arg1, %c0_i32, %c0_i32_0 : i32, i32, i32, i32
  }
  func.func @transform_6(%arg0: i32, %arg1: i32) -> (i32, i32, i32, i32) {
    %c0_i32 = arith.constant 0 : i32
    %c0_i32_0 = arith.constant 0 : i32
    %c0_i32_1 = arith.constant 0 : i32
    return %arg0, %arg1, %c0_i32, %c0_i32_0 : i32, i32, i32, i32
  }
  func.func @transform_7(%arg0: i32, %arg1: i32) -> (i32, i32, i32) {
    %c0_i32 = arith.constant 0 : i32
    %c0_i32_0 = arith.constant 0 : i32
    %c0_i32_1 = arith.constant 0 : i32
    return %arg0, %c0_i32, %c0_i32_0 : i32, i32, i32
  }
  func.func @transform_8(%arg0: i32, %arg1: i32) -> (i32, i32, i32) {
    %c0_i32 = arith.constant 0 : i32
    %c0_i32_0 = arith.constant 0 : i32
    %c0_i32_1 = arith.constant 0 : i32
    return %arg0, %c0_i32, %c0_i32_0 : i32, i32, i32
  }
}

module attributes {stable_mosaic.version = 11 : i64} {
  func.func @_conv2_kernel(%arg0: i32, %arg1: i32, %arg2: memref<1x1x10x10x128xbf16, #tpu.memory_space<vmem>>, %arg3: memref<1x1x10x10x128xbf16, #tpu.memory_space<vmem>>, %arg4: memref<1x1x10x10x128xbf16, #tpu.memory_space<vmem>>, %arg5: memref<27x128x128xbf16, #tpu.memory_space<vmem>>, %arg6: memref<1x1x64x128xf32, #tpu.memory_space<vmem>>, %arg7: memref<1x2x128xf32, #tpu.memory_space<vmem>>) attributes {dimension_semantics = [#tpu.dimension_semantics<parallel>, #tpu.dimension_semantics<arbitrary>], iteration_bounds = array<i64: 2, 8>, scalar_prefetch = 0 : i64, scratch_operands = 0 : i64, tpu.core_type = #tpu.core_type<tc>, window_params = [{transform_indices = @transform_0, window_bounds = array<i64: 1, 1, 10, 10, 128>}, {transform_indices = @transform_1, window_bounds = array<i64: 1, 1, 10, 10, 128>}, {transform_indices = @transform_2, window_bounds = array<i64: 1, 1, 10, 10, 128>}, {pipeline_mode = #tpu.pipeline_mode<synchronous>, transform_indices = @transform_3, window_bounds = array<i64: 27, 128, 128>}, {transform_indices = @transform_4, window_bounds = array<i64: 1, 1, 64, 128>}, {transform_indices = @transform_5, window_bounds = array<i64: 1, 2, 128>}]} {
    %c0_i32 = arith.constant 0 : i32
    %0 = arith.cmpi eq, %arg1, %c0_i32 : i32
    %1 = arith.extui %0 : i1 to i32
    %c0_i32_0 = arith.constant 0 : i32
    %2 = arith.cmpi ne, %1, %c0_i32_0 : i32
    scf.if %2 {
      %cst_228 = arith.constant 0.000000e+00 : f32
      %203 = vector.broadcast %cst_228 : f32 to vector<1x2x128xf32>
      %c0_229 = arith.constant 0 : index
      %c0_230 = arith.constant 0 : index
      %c0_231 = arith.constant 0 : index
      %204 = vector.load %arg7[%c0_229, %c0_230, %c0_231] : memref<1x2x128xf32, #tpu.memory_space<vmem>>, vector<1x2x128xf32>
      tpu.vector_store %arg7[%c0_229, %c0_230, %c0_231], %203 {strides = array<i32>} : memref<1x2x128xf32, #tpu.memory_space<vmem>>, vector<1x2x128xf32>,
    } else {
    }
    %c0 = arith.constant 0 : index
    %c0_1 = arith.constant 0 : index
    %c0_2 = arith.constant 0 : index
    %c0_3 = arith.constant 0 : index
    %c0_4 = arith.constant 0 : index
    %3 = vector.load %arg2[%c0, %c0_1, %c0_2, %c0_3, %c0_4] : memref<1x1x10x10x128xbf16, #tpu.memory_space<vmem>>, vector<1x1x8x8x128xbf16>
    %4 = vector.shape_cast %3 : vector<1x1x8x8x128xbf16> to vector<8x8x128xbf16>
    %5 = vector.shape_cast %4 : vector<8x8x128xbf16> to vector<64x128xbf16>
    %c0_5 = arith.constant 0 : index
    %c0_6 = arith.constant 0 : index
    %c0_7 = arith.constant 0 : index
    %6 = vector.load %arg5[%c0_5, %c0_6, %c0_7] : memref<27x128x128xbf16, #tpu.memory_space<vmem>>, vector<1x128x128xbf16>
    %7 = vector.shape_cast %6 : vector<1x128x128xbf16> to vector<128x128xbf16>
    %cst = arith.constant dense<0.000000e+00> : vector<64x128xf32>
    %8 = tpu.matmul %5, %7, %cst {dimension_numbers = #tpu.dot_dimension_numbers<[1], [0], [0], [1], [0, 0, 1, 1], [], []>} : vector<64x128xbf16>, vector<128x128xbf16>, vector<64x128xf32> -> vector<64x128xf32>
    %c0_8 = arith.constant 0 : index
    %c0_9 = arith.constant 0 : index
    %c0_10 = arith.constant 0 : index
    %c1 = arith.constant 1 : index
    %c0_11 = arith.constant 0 : index
    %9 = vector.load %arg2[%c0_8, %c0_9, %c0_10, %c1, %c0_11] : memref<1x1x10x10x128xbf16, #tpu.memory_space<vmem>>, vector<1x1x8x8x128xbf16>
    %10 = vector.shape_cast %9 : vector<1x1x8x8x128xbf16> to vector<8x8x128xbf16>
    %11 = vector.shape_cast %10 : vector<8x8x128xbf16> to vector<64x128xbf16>
    %c1_12 = arith.constant 1 : index
    %c0_13 = arith.constant 0 : index
    %c0_14 = arith.constant 0 : index
    %12 = vector.load %arg5[%c1_12, %c0_13, %c0_14] : memref<27x128x128xbf16, #tpu.memory_space<vmem>>, vector<1x128x128xbf16>
    %13 = vector.shape_cast %12 : vector<1x128x128xbf16> to vector<128x128xbf16>
    %cst_15 = arith.constant dense<0.000000e+00> : vector<64x128xf32>
    %14 = tpu.matmul %11, %13, %cst_15 {dimension_numbers = #tpu.dot_dimension_numbers<[1], [0], [0], [1], [0, 0, 1, 1], [], []>} : vector<64x128xbf16>, vector<128x128xbf16>, vector<64x128xf32> -> vector<64x128xf32>
    %15 = arith.addf %8, %14 : vector<64x128xf32>
    %c0_16 = arith.constant 0 : index
    %c0_17 = arith.constant 0 : index
    %c0_18 = arith.constant 0 : index
    %c2 = arith.constant 2 : index
    %c0_19 = arith.constant 0 : index
    %16 = vector.load %arg2[%c0_16, %c0_17, %c0_18, %c2, %c0_19] : memref<1x1x10x10x128xbf16, #tpu.memory_space<vmem>>, vector<1x1x8x8x128xbf16>
    %17 = vector.shape_cast %16 : vector<1x1x8x8x128xbf16> to vector<8x8x128xbf16>
    %18 = vector.shape_cast %17 : vector<8x8x128xbf16> to vector<64x128xbf16>
    %c2_20 = arith.constant 2 : index
    %c0_21 = arith.constant 0 : index
    %c0_22 = arith.constant 0 : index
    %19 = vector.load %arg5[%c2_20, %c0_21, %c0_22] : memref<27x128x128xbf16, #tpu.memory_space<vmem>>, vector<1x128x128xbf16>
    %20 = vector.shape_cast %19 : vector<1x128x128xbf16> to vector<128x128xbf16>
    %cst_23 = arith.constant dense<0.000000e+00> : vector<64x128xf32>
    %21 = tpu.matmul %18, %20, %cst_23 {dimension_numbers = #tpu.dot_dimension_numbers<[1], [0], [0], [1], [0, 0, 1, 1], [], []>} : vector<64x128xbf16>, vector<128x128xbf16>, vector<64x128xf32> -> vector<64x128xf32>
    %22 = arith.addf %15, %21 : vector<64x128xf32>
    %c0_24 = arith.constant 0 : index
    %c0_25 = arith.constant 0 : index
    %c1_26 = arith.constant 1 : index
    %c0_27 = arith.constant 0 : index
    %c0_28 = arith.constant 0 : index
    %23 = vector.load %arg2[%c0_24, %c0_25, %c1_26, %c0_27, %c0_28] : memref<1x1x10x10x128xbf16, #tpu.memory_space<vmem>>, vector<1x1x8x8x128xbf16>
    %24 = vector.shape_cast %23 : vector<1x1x8x8x128xbf16> to vector<8x8x128xbf16>
    %25 = vector.shape_cast %24 : vector<8x8x128xbf16> to vector<64x128xbf16>
    %c3 = arith.constant 3 : index
    %c0_29 = arith.constant 0 : index
    %c0_30 = arith.constant 0 : index
    %26 = vector.load %arg5[%c3, %c0_29, %c0_30] : memref<27x128x128xbf16, #tpu.memory_space<vmem>>, vector<1x128x128xbf16>
    %27 = vector.shape_cast %26 : vector<1x128x128xbf16> to vector<128x128xbf16>
    %cst_31 = arith.constant dense<0.000000e+00> : vector<64x128xf32>
    %28 = tpu.matmul %25, %27, %cst_31 {dimension_numbers = #tpu.dot_dimension_numbers<[1], [0], [0], [1], [0, 0, 1, 1], [], []>} : vector<64x128xbf16>, vector<128x128xbf16>, vector<64x128xf32> -> vector<64x128xf32>
    %29 = arith.addf %22, %28 : vector<64x128xf32>
    %c0_32 = arith.constant 0 : index
    %c0_33 = arith.constant 0 : index
    %c1_34 = arith.constant 1 : index
    %c1_35 = arith.constant 1 : index
    %c0_36 = arith.constant 0 : index
    %30 = vector.load %arg2[%c0_32, %c0_33, %c1_34, %c1_35, %c0_36] : memref<1x1x10x10x128xbf16, #tpu.memory_space<vmem>>, vector<1x1x8x8x128xbf16>
    %31 = vector.shape_cast %30 : vector<1x1x8x8x128xbf16> to vector<8x8x128xbf16>
    %32 = vector.shape_cast %31 : vector<8x8x128xbf16> to vector<64x128xbf16>
    %c4 = arith.constant 4 : index
    %c0_37 = arith.constant 0 : index
    %c0_38 = arith.constant 0 : index
    %33 = vector.load %arg5[%c4, %c0_37, %c0_38] : memref<27x128x128xbf16, #tpu.memory_space<vmem>>, vector<1x128x128xbf16>
    %34 = vector.shape_cast %33 : vector<1x128x128xbf16> to vector<128x128xbf16>
    %cst_39 = arith.constant dense<0.000000e+00> : vector<64x128xf32>
    %35 = tpu.matmul %32, %34, %cst_39 {dimension_numbers = #tpu.dot_dimension_numbers<[1], [0], [0], [1], [0, 0, 1, 1], [], []>} : vector<64x128xbf16>, vector<128x128xbf16>, vector<64x128xf32> -> vector<64x128xf32>
    %36 = arith.addf %29, %35 : vector<64x128xf32>
    %c0_40 = arith.constant 0 : index
    %c0_41 = arith.constant 0 : index
    %c1_42 = arith.constant 1 : index
    %c2_43 = arith.constant 2 : index
    %c0_44 = arith.constant 0 : index
    %37 = vector.load %arg2[%c0_40, %c0_41, %c1_42, %c2_43, %c0_44] : memref<1x1x10x10x128xbf16, #tpu.memory_space<vmem>>, vector<1x1x8x8x128xbf16>
    %38 = vector.shape_cast %37 : vector<1x1x8x8x128xbf16> to vector<8x8x128xbf16>
    %39 = vector.shape_cast %38 : vector<8x8x128xbf16> to vector<64x128xbf16>
    %c5 = arith.constant 5 : index
    %c0_45 = arith.constant 0 : index
    %c0_46 = arith.constant 0 : index
    %40 = vector.load %arg5[%c5, %c0_45, %c0_46] : memref<27x128x128xbf16, #tpu.memory_space<vmem>>, vector<1x128x128xbf16>
    %41 = vector.shape_cast %40 : vector<1x128x128xbf16> to vector<128x128xbf16>
    %cst_47 = arith.constant dense<0.000000e+00> : vector<64x128xf32>
    %42 = tpu.matmul %39, %41, %cst_47 {dimension_numbers = #tpu.dot_dimension_numbers<[1], [0], [0], [1], [0, 0, 1, 1], [], []>} : vector<64x128xbf16>, vector<128x128xbf16>, vector<64x128xf32> -> vector<64x128xf32>
    %43 = arith.addf %36, %42 : vector<64x128xf32>
    %c0_48 = arith.constant 0 : index
    %c0_49 = arith.constant 0 : index
    %c2_50 = arith.constant 2 : index
    %c0_51 = arith.constant 0 : index
    %c0_52 = arith.constant 0 : index
    %44 = vector.load %arg2[%c0_48, %c0_49, %c2_50, %c0_51, %c0_52] : memref<1x1x10x10x128xbf16, #tpu.memory_space<vmem>>, vector<1x1x8x8x128xbf16>
    %45 = vector.shape_cast %44 : vector<1x1x8x8x128xbf16> to vector<8x8x128xbf16>
    %46 = vector.shape_cast %45 : vector<8x8x128xbf16> to vector<64x128xbf16>
    %c6 = arith.constant 6 : index
    %c0_53 = arith.constant 0 : index
    %c0_54 = arith.constant 0 : index
    %47 = vector.load %arg5[%c6, %c0_53, %c0_54] : memref<27x128x128xbf16, #tpu.memory_space<vmem>>, vector<1x128x128xbf16>
    %48 = vector.shape_cast %47 : vector<1x128x128xbf16> to vector<128x128xbf16>
    %cst_55 = arith.constant dense<0.000000e+00> : vector<64x128xf32>
    %49 = tpu.matmul %46, %48, %cst_55 {dimension_numbers = #tpu.dot_dimension_numbers<[1], [0], [0], [1], [0, 0, 1, 1], [], []>} : vector<64x128xbf16>, vector<128x128xbf16>, vector<64x128xf32> -> vector<64x128xf32>
    %50 = arith.addf %43, %49 : vector<64x128xf32>
    %c0_56 = arith.constant 0 : index
    %c0_57 = arith.constant 0 : index
    %c2_58 = arith.constant 2 : index
    %c1_59 = arith.constant 1 : index
    %c0_60 = arith.constant 0 : index
    %51 = vector.load %arg2[%c0_56, %c0_57, %c2_58, %c1_59, %c0_60] : memref<1x1x10x10x128xbf16, #tpu.memory_space<vmem>>, vector<1x1x8x8x128xbf16>
    %52 = vector.shape_cast %51 : vector<1x1x8x8x128xbf16> to vector<8x8x128xbf16>
    %53 = vector.shape_cast %52 : vector<8x8x128xbf16> to vector<64x128xbf16>
    %c7 = arith.constant 7 : index
    %c0_61 = arith.constant 0 : index
    %c0_62 = arith.constant 0 : index
    %54 = vector.load %arg5[%c7, %c0_61, %c0_62] : memref<27x128x128xbf16, #tpu.memory_space<vmem>>, vector<1x128x128xbf16>
    %55 = vector.shape_cast %54 : vector<1x128x128xbf16> to vector<128x128xbf16>
    %cst_63 = arith.constant dense<0.000000e+00> : vector<64x128xf32>
    %56 = tpu.matmul %53, %55, %cst_63 {dimension_numbers = #tpu.dot_dimension_numbers<[1], [0], [0], [1], [0, 0, 1, 1], [], []>} : vector<64x128xbf16>, vector<128x128xbf16>, vector<64x128xf32> -> vector<64x128xf32>
    %57 = arith.addf %50, %56 : vector<64x128xf32>
    %c0_64 = arith.constant 0 : index
    %c0_65 = arith.constant 0 : index
    %c2_66 = arith.constant 2 : index
    %c2_67 = arith.constant 2 : index
    %c0_68 = arith.constant 0 : index
    %58 = vector.load %arg2[%c0_64, %c0_65, %c2_66, %c2_67, %c0_68] : memref<1x1x10x10x128xbf16, #tpu.memory_space<vmem>>, vector<1x1x8x8x128xbf16>
    %59 = vector.shape_cast %58 : vector<1x1x8x8x128xbf16> to vector<8x8x128xbf16>
    %60 = vector.shape_cast %59 : vector<8x8x128xbf16> to vector<64x128xbf16>
    %c8 = arith.constant 8 : index
    %c0_69 = arith.constant 0 : index
    %c0_70 = arith.constant 0 : index
    %61 = vector.load %arg5[%c8, %c0_69, %c0_70] : memref<27x128x128xbf16, #tpu.memory_space<vmem>>, vector<1x128x128xbf16>
    %62 = vector.shape_cast %61 : vector<1x128x128xbf16> to vector<128x128xbf16>
    %cst_71 = arith.constant dense<0.000000e+00> : vector<64x128xf32>
    %63 = tpu.matmul %60, %62, %cst_71 {dimension_numbers = #tpu.dot_dimension_numbers<[1], [0], [0], [1], [0, 0, 1, 1], [], []>} : vector<64x128xbf16>, vector<128x128xbf16>, vector<64x128xf32> -> vector<64x128xf32>
    %64 = arith.addf %57, %63 : vector<64x128xf32>
    %c0_72 = arith.constant 0 : index
    %c0_73 = arith.constant 0 : index
    %c0_74 = arith.constant 0 : index
    %c0_75 = arith.constant 0 : index
    %c0_76 = arith.constant 0 : index
    %65 = vector.load %arg3[%c0_72, %c0_73, %c0_74, %c0_75, %c0_76] : memref<1x1x10x10x128xbf16, #tpu.memory_space<vmem>>, vector<1x1x8x8x128xbf16>
    %66 = vector.shape_cast %65 : vector<1x1x8x8x128xbf16> to vector<8x8x128xbf16>
    %67 = vector.shape_cast %66 : vector<8x8x128xbf16> to vector<64x128xbf16>
    %c9 = arith.constant 9 : index
    %c0_77 = arith.constant 0 : index
    %c0_78 = arith.constant 0 : index
    %68 = vector.load %arg5[%c9, %c0_77, %c0_78] : memref<27x128x128xbf16, #tpu.memory_space<vmem>>, vector<1x128x128xbf16>
    %69 = vector.shape_cast %68 : vector<1x128x128xbf16> to vector<128x128xbf16>
    %cst_79 = arith.constant dense<0.000000e+00> : vector<64x128xf32>
    %70 = tpu.matmul %67, %69, %cst_79 {dimension_numbers = #tpu.dot_dimension_numbers<[1], [0], [0], [1], [0, 0, 1, 1], [], []>} : vector<64x128xbf16>, vector<128x128xbf16>, vector<64x128xf32> -> vector<64x128xf32>
    %71 = arith.addf %64, %70 : vector<64x128xf32>
    %c0_80 = arith.constant 0 : index
    %c0_81 = arith.constant 0 : index
    %c0_82 = arith.constant 0 : index
    %c1_83 = arith.constant 1 : index
    %c0_84 = arith.constant 0 : index
    %72 = vector.load %arg3[%c0_80, %c0_81, %c0_82, %c1_83, %c0_84] : memref<1x1x10x10x128xbf16, #tpu.memory_space<vmem>>, vector<1x1x8x8x128xbf16>
    %73 = vector.shape_cast %72 : vector<1x1x8x8x128xbf16> to vector<8x8x128xbf16>
    %74 = vector.shape_cast %73 : vector<8x8x128xbf16> to vector<64x128xbf16>
    %c10 = arith.constant 10 : index
    %c0_85 = arith.constant 0 : index
    %c0_86 = arith.constant 0 : index
    %75 = vector.load %arg5[%c10, %c0_85, %c0_86] : memref<27x128x128xbf16, #tpu.memory_space<vmem>>, vector<1x128x128xbf16>
    %76 = vector.shape_cast %75 : vector<1x128x128xbf16> to vector<128x128xbf16>
    %cst_87 = arith.constant dense<0.000000e+00> : vector<64x128xf32>
    %77 = tpu.matmul %74, %76, %cst_87 {dimension_numbers = #tpu.dot_dimension_numbers<[1], [0], [0], [1], [0, 0, 1, 1], [], []>} : vector<64x128xbf16>, vector<128x128xbf16>, vector<64x128xf32> -> vector<64x128xf32>
    %78 = arith.addf %71, %77 : vector<64x128xf32>
    %c0_88 = arith.constant 0 : index
    %c0_89 = arith.constant 0 : index
    %c0_90 = arith.constant 0 : index
    %c2_91 = arith.constant 2 : index
    %c0_92 = arith.constant 0 : index
    %79 = vector.load %arg3[%c0_88, %c0_89, %c0_90, %c2_91, %c0_92] : memref<1x1x10x10x128xbf16, #tpu.memory_space<vmem>>, vector<1x1x8x8x128xbf16>
    %80 = vector.shape_cast %79 : vector<1x1x8x8x128xbf16> to vector<8x8x128xbf16>
    %81 = vector.shape_cast %80 : vector<8x8x128xbf16> to vector<64x128xbf16>
    %c11 = arith.constant 11 : index
    %c0_93 = arith.constant 0 : index
    %c0_94 = arith.constant 0 : index
    %82 = vector.load %arg5[%c11, %c0_93, %c0_94] : memref<27x128x128xbf16, #tpu.memory_space<vmem>>, vector<1x128x128xbf16>
    %83 = vector.shape_cast %82 : vector<1x128x128xbf16> to vector<128x128xbf16>
    %cst_95 = arith.constant dense<0.000000e+00> : vector<64x128xf32>
    %84 = tpu.matmul %81, %83, %cst_95 {dimension_numbers = #tpu.dot_dimension_numbers<[1], [0], [0], [1], [0, 0, 1, 1], [], []>} : vector<64x128xbf16>, vector<128x128xbf16>, vector<64x128xf32> -> vector<64x128xf32>
    %85 = arith.addf %78, %84 : vector<64x128xf32>
    %c0_96 = arith.constant 0 : index
    %c0_97 = arith.constant 0 : index
    %c1_98 = arith.constant 1 : index
    %c0_99 = arith.constant 0 : index
    %c0_100 = arith.constant 0 : index
    %86 = vector.load %arg3[%c0_96, %c0_97, %c1_98, %c0_99, %c0_100] : memref<1x1x10x10x128xbf16, #tpu.memory_space<vmem>>, vector<1x1x8x8x128xbf16>
    %87 = vector.shape_cast %86 : vector<1x1x8x8x128xbf16> to vector<8x8x128xbf16>
    %88 = vector.shape_cast %87 : vector<8x8x128xbf16> to vector<64x128xbf16>
    %c12 = arith.constant 12 : index
    %c0_101 = arith.constant 0 : index
    %c0_102 = arith.constant 0 : index
    %89 = vector.load %arg5[%c12, %c0_101, %c0_102] : memref<27x128x128xbf16, #tpu.memory_space<vmem>>, vector<1x128x128xbf16>
    %90 = vector.shape_cast %89 : vector<1x128x128xbf16> to vector<128x128xbf16>
    %cst_103 = arith.constant dense<0.000000e+00> : vector<64x128xf32>
    %91 = tpu.matmul %88, %90, %cst_103 {dimension_numbers = #tpu.dot_dimension_numbers<[1], [0], [0], [1], [0, 0, 1, 1], [], []>} : vector<64x128xbf16>, vector<128x128xbf16>, vector<64x128xf32> -> vector<64x128xf32>
    %92 = arith.addf %85, %91 : vector<64x128xf32>
    %c0_104 = arith.constant 0 : index
    %c0_105 = arith.constant 0 : index
    %c1_106 = arith.constant 1 : index
    %c1_107 = arith.constant 1 : index
    %c0_108 = arith.constant 0 : index
    %93 = vector.load %arg3[%c0_104, %c0_105, %c1_106, %c1_107, %c0_108] : memref<1x1x10x10x128xbf16, #tpu.memory_space<vmem>>, vector<1x1x8x8x128xbf16>
    %94 = vector.shape_cast %93 : vector<1x1x8x8x128xbf16> to vector<8x8x128xbf16>
    %95 = vector.shape_cast %94 : vector<8x8x128xbf16> to vector<64x128xbf16>
    %c13 = arith.constant 13 : index
    %c0_109 = arith.constant 0 : index
    %c0_110 = arith.constant 0 : index
    %96 = vector.load %arg5[%c13, %c0_109, %c0_110] : memref<27x128x128xbf16, #tpu.memory_space<vmem>>, vector<1x128x128xbf16>
    %97 = vector.shape_cast %96 : vector<1x128x128xbf16> to vector<128x128xbf16>
    %cst_111 = arith.constant dense<0.000000e+00> : vector<64x128xf32>
    %98 = tpu.matmul %95, %97, %cst_111 {dimension_numbers = #tpu.dot_dimension_numbers<[1], [0], [0], [1], [0, 0, 1, 1], [], []>} : vector<64x128xbf16>, vector<128x128xbf16>, vector<64x128xf32> -> vector<64x128xf32>
    %99 = arith.addf %92, %98 : vector<64x128xf32>
    %c0_112 = arith.constant 0 : index
    %c0_113 = arith.constant 0 : index
    %c1_114 = arith.constant 1 : index
    %c2_115 = arith.constant 2 : index
    %c0_116 = arith.constant 0 : index
    %100 = vector.load %arg3[%c0_112, %c0_113, %c1_114, %c2_115, %c0_116] : memref<1x1x10x10x128xbf16, #tpu.memory_space<vmem>>, vector<1x1x8x8x128xbf16>
    %101 = vector.shape_cast %100 : vector<1x1x8x8x128xbf16> to vector<8x8x128xbf16>
    %102 = vector.shape_cast %101 : vector<8x8x128xbf16> to vector<64x128xbf16>
    %c14 = arith.constant 14 : index
    %c0_117 = arith.constant 0 : index
    %c0_118 = arith.constant 0 : index
    %103 = vector.load %arg5[%c14, %c0_117, %c0_118] : memref<27x128x128xbf16, #tpu.memory_space<vmem>>, vector<1x128x128xbf16>
    %104 = vector.shape_cast %103 : vector<1x128x128xbf16> to vector<128x128xbf16>
    %cst_119 = arith.constant dense<0.000000e+00> : vector<64x128xf32>
    %105 = tpu.matmul %102, %104, %cst_119 {dimension_numbers = #tpu.dot_dimension_numbers<[1], [0], [0], [1], [0, 0, 1, 1], [], []>} : vector<64x128xbf16>, vector<128x128xbf16>, vector<64x128xf32> -> vector<64x128xf32>
    %106 = arith.addf %99, %105 : vector<64x128xf32>
    %c0_120 = arith.constant 0 : index
    %c0_121 = arith.constant 0 : index
    %c2_122 = arith.constant 2 : index
    %c0_123 = arith.constant 0 : index
    %c0_124 = arith.constant 0 : index
    %107 = vector.load %arg3[%c0_120, %c0_121, %c2_122, %c0_123, %c0_124] : memref<1x1x10x10x128xbf16, #tpu.memory_space<vmem>>, vector<1x1x8x8x128xbf16>
    %108 = vector.shape_cast %107 : vector<1x1x8x8x128xbf16> to vector<8x8x128xbf16>
    %109 = vector.shape_cast %108 : vector<8x8x128xbf16> to vector<64x128xbf16>
    %c15 = arith.constant 15 : index
    %c0_125 = arith.constant 0 : index
    %c0_126 = arith.constant 0 : index
    %110 = vector.load %arg5[%c15, %c0_125, %c0_126] : memref<27x128x128xbf16, #tpu.memory_space<vmem>>, vector<1x128x128xbf16>
    %111 = vector.shape_cast %110 : vector<1x128x128xbf16> to vector<128x128xbf16>
    %cst_127 = arith.constant dense<0.000000e+00> : vector<64x128xf32>
    %112 = tpu.matmul %109, %111, %cst_127 {dimension_numbers = #tpu.dot_dimension_numbers<[1], [0], [0], [1], [0, 0, 1, 1], [], []>} : vector<64x128xbf16>, vector<128x128xbf16>, vector<64x128xf32> -> vector<64x128xf32>
    %113 = arith.addf %106, %112 : vector<64x128xf32>
    %c0_128 = arith.constant 0 : index
    %c0_129 = arith.constant 0 : index
    %c2_130 = arith.constant 2 : index
    %c1_131 = arith.constant 1 : index
    %c0_132 = arith.constant 0 : index
    %114 = vector.load %arg3[%c0_128, %c0_129, %c2_130, %c1_131, %c0_132] : memref<1x1x10x10x128xbf16, #tpu.memory_space<vmem>>, vector<1x1x8x8x128xbf16>
    %115 = vector.shape_cast %114 : vector<1x1x8x8x128xbf16> to vector<8x8x128xbf16>
    %116 = vector.shape_cast %115 : vector<8x8x128xbf16> to vector<64x128xbf16>
    %c16 = arith.constant 16 : index
    %c0_133 = arith.constant 0 : index
    %c0_134 = arith.constant 0 : index
    %117 = vector.load %arg5[%c16, %c0_133, %c0_134] : memref<27x128x128xbf16, #tpu.memory_space<vmem>>, vector<1x128x128xbf16>
    %118 = vector.shape_cast %117 : vector<1x128x128xbf16> to vector<128x128xbf16>
    %cst_135 = arith.constant dense<0.000000e+00> : vector<64x128xf32>
    %119 = tpu.matmul %116, %118, %cst_135 {dimension_numbers = #tpu.dot_dimension_numbers<[1], [0], [0], [1], [0, 0, 1, 1], [], []>} : vector<64x128xbf16>, vector<128x128xbf16>, vector<64x128xf32> -> vector<64x128xf32>
    %120 = arith.addf %113, %119 : vector<64x128xf32>
    %c0_136 = arith.constant 0 : index
    %c0_137 = arith.constant 0 : index
    %c2_138 = arith.constant 2 : index
    %c2_139 = arith.constant 2 : index
    %c0_140 = arith.constant 0 : index
    %121 = vector.load %arg3[%c0_136, %c0_137, %c2_138, %c2_139, %c0_140] : memref<1x1x10x10x128xbf16, #tpu.memory_space<vmem>>, vector<1x1x8x8x128xbf16>
    %122 = vector.shape_cast %121 : vector<1x1x8x8x128xbf16> to vector<8x8x128xbf16>
    %123 = vector.shape_cast %122 : vector<8x8x128xbf16> to vector<64x128xbf16>
    %c17 = arith.constant 17 : index
    %c0_141 = arith.constant 0 : index
    %c0_142 = arith.constant 0 : index
    %124 = vector.load %arg5[%c17, %c0_141, %c0_142] : memref<27x128x128xbf16, #tpu.memory_space<vmem>>, vector<1x128x128xbf16>
    %125 = vector.shape_cast %124 : vector<1x128x128xbf16> to vector<128x128xbf16>
    %cst_143 = arith.constant dense<0.000000e+00> : vector<64x128xf32>
    %126 = tpu.matmul %123, %125, %cst_143 {dimension_numbers = #tpu.dot_dimension_numbers<[1], [0], [0], [1], [0, 0, 1, 1], [], []>} : vector<64x128xbf16>, vector<128x128xbf16>, vector<64x128xf32> -> vector<64x128xf32>
    %127 = arith.addf %120, %126 : vector<64x128xf32>
    %c0_144 = arith.constant 0 : index
    %c0_145 = arith.constant 0 : index
    %c0_146 = arith.constant 0 : index
    %c0_147 = arith.constant 0 : index
    %c0_148 = arith.constant 0 : index
    %128 = vector.load %arg4[%c0_144, %c0_145, %c0_146, %c0_147, %c0_148] : memref<1x1x10x10x128xbf16, #tpu.memory_space<vmem>>, vector<1x1x8x8x128xbf16>
    %129 = vector.shape_cast %128 : vector<1x1x8x8x128xbf16> to vector<8x8x128xbf16>
    %130 = vector.shape_cast %129 : vector<8x8x128xbf16> to vector<64x128xbf16>
    %c18 = arith.constant 18 : index
    %c0_149 = arith.constant 0 : index
    %c0_150 = arith.constant 0 : index
    %131 = vector.load %arg5[%c18, %c0_149, %c0_150] : memref<27x128x128xbf16, #tpu.memory_space<vmem>>, vector<1x128x128xbf16>
    %132 = vector.shape_cast %131 : vector<1x128x128xbf16> to vector<128x128xbf16>
    %cst_151 = arith.constant dense<0.000000e+00> : vector<64x128xf32>
    %133 = tpu.matmul %130, %132, %cst_151 {dimension_numbers = #tpu.dot_dimension_numbers<[1], [0], [0], [1], [0, 0, 1, 1], [], []>} : vector<64x128xbf16>, vector<128x128xbf16>, vector<64x128xf32> -> vector<64x128xf32>
    %134 = arith.addf %127, %133 : vector<64x128xf32>
    %c0_152 = arith.constant 0 : index
    %c0_153 = arith.constant 0 : index
    %c0_154 = arith.constant 0 : index
    %c1_155 = arith.constant 1 : index
    %c0_156 = arith.constant 0 : index
    %135 = vector.load %arg4[%c0_152, %c0_153, %c0_154, %c1_155, %c0_156] : memref<1x1x10x10x128xbf16, #tpu.memory_space<vmem>>, vector<1x1x8x8x128xbf16>
    %136 = vector.shape_cast %135 : vector<1x1x8x8x128xbf16> to vector<8x8x128xbf16>
    %137 = vector.shape_cast %136 : vector<8x8x128xbf16> to vector<64x128xbf16>
    %c19 = arith.constant 19 : index
    %c0_157 = arith.constant 0 : index
    %c0_158 = arith.constant 0 : index
    %138 = vector.load %arg5[%c19, %c0_157, %c0_158] : memref<27x128x128xbf16, #tpu.memory_space<vmem>>, vector<1x128x128xbf16>
    %139 = vector.shape_cast %138 : vector<1x128x128xbf16> to vector<128x128xbf16>
    %cst_159 = arith.constant dense<0.000000e+00> : vector<64x128xf32>
    %140 = tpu.matmul %137, %139, %cst_159 {dimension_numbers = #tpu.dot_dimension_numbers<[1], [0], [0], [1], [0, 0, 1, 1], [], []>} : vector<64x128xbf16>, vector<128x128xbf16>, vector<64x128xf32> -> vector<64x128xf32>
    %141 = arith.addf %134, %140 : vector<64x128xf32>
    %c0_160 = arith.constant 0 : index
    %c0_161 = arith.constant 0 : index
    %c0_162 = arith.constant 0 : index
    %c2_163 = arith.constant 2 : index
    %c0_164 = arith.constant 0 : index
    %142 = vector.load %arg4[%c0_160, %c0_161, %c0_162, %c2_163, %c0_164] : memref<1x1x10x10x128xbf16, #tpu.memory_space<vmem>>, vector<1x1x8x8x128xbf16>
    %143 = vector.shape_cast %142 : vector<1x1x8x8x128xbf16> to vector<8x8x128xbf16>
    %144 = vector.shape_cast %143 : vector<8x8x128xbf16> to vector<64x128xbf16>
    %c20 = arith.constant 20 : index
    %c0_165 = arith.constant 0 : index
    %c0_166 = arith.constant 0 : index
    %145 = vector.load %arg5[%c20, %c0_165, %c0_166] : memref<27x128x128xbf16, #tpu.memory_space<vmem>>, vector<1x128x128xbf16>
    %146 = vector.shape_cast %145 : vector<1x128x128xbf16> to vector<128x128xbf16>
    %cst_167 = arith.constant dense<0.000000e+00> : vector<64x128xf32>
    %147 = tpu.matmul %144, %146, %cst_167 {dimension_numbers = #tpu.dot_dimension_numbers<[1], [0], [0], [1], [0, 0, 1, 1], [], []>} : vector<64x128xbf16>, vector<128x128xbf16>, vector<64x128xf32> -> vector<64x128xf32>
    %148 = arith.addf %141, %147 : vector<64x128xf32>
    %c0_168 = arith.constant 0 : index
    %c0_169 = arith.constant 0 : index
    %c1_170 = arith.constant 1 : index
    %c0_171 = arith.constant 0 : index
    %c0_172 = arith.constant 0 : index
    %149 = vector.load %arg4[%c0_168, %c0_169, %c1_170, %c0_171, %c0_172] : memref<1x1x10x10x128xbf16, #tpu.memory_space<vmem>>, vector<1x1x8x8x128xbf16>
    %150 = vector.shape_cast %149 : vector<1x1x8x8x128xbf16> to vector<8x8x128xbf16>
    %151 = vector.shape_cast %150 : vector<8x8x128xbf16> to vector<64x128xbf16>
    %c21 = arith.constant 21 : index
    %c0_173 = arith.constant 0 : index
    %c0_174 = arith.constant 0 : index
    %152 = vector.load %arg5[%c21, %c0_173, %c0_174] : memref<27x128x128xbf16, #tpu.memory_space<vmem>>, vector<1x128x128xbf16>
    %153 = vector.shape_cast %152 : vector<1x128x128xbf16> to vector<128x128xbf16>
    %cst_175 = arith.constant dense<0.000000e+00> : vector<64x128xf32>
    %154 = tpu.matmul %151, %153, %cst_175 {dimension_numbers = #tpu.dot_dimension_numbers<[1], [0], [0], [1], [0, 0, 1, 1], [], []>} : vector<64x128xbf16>, vector<128x128xbf16>, vector<64x128xf32> -> vector<64x128xf32>
    %155 = arith.addf %148, %154 : vector<64x128xf32>
    %c0_176 = arith.constant 0 : index
    %c0_177 = arith.constant 0 : index
    %c1_178 = arith.constant 1 : index
    %c1_179 = arith.constant 1 : index
    %c0_180 = arith.constant 0 : index
    %156 = vector.load %arg4[%c0_176, %c0_177, %c1_178, %c1_179, %c0_180] : memref<1x1x10x10x128xbf16, #tpu.memory_space<vmem>>, vector<1x1x8x8x128xbf16>
    %157 = vector.shape_cast %156 : vector<1x1x8x8x128xbf16> to vector<8x8x128xbf16>
    %158 = vector.shape_cast %157 : vector<8x8x128xbf16> to vector<64x128xbf16>
    %c22 = arith.constant 22 : index
    %c0_181 = arith.constant 0 : index
    %c0_182 = arith.constant 0 : index
    %159 = vector.load %arg5[%c22, %c0_181, %c0_182] : memref<27x128x128xbf16, #tpu.memory_space<vmem>>, vector<1x128x128xbf16>
    %160 = vector.shape_cast %159 : vector<1x128x128xbf16> to vector<128x128xbf16>
    %cst_183 = arith.constant dense<0.000000e+00> : vector<64x128xf32>
    %161 = tpu.matmul %158, %160, %cst_183 {dimension_numbers = #tpu.dot_dimension_numbers<[1], [0], [0], [1], [0, 0, 1, 1], [], []>} : vector<64x128xbf16>, vector<128x128xbf16>, vector<64x128xf32> -> vector<64x128xf32>
    %162 = arith.addf %155, %161 : vector<64x128xf32>
    %c0_184 = arith.constant 0 : index
    %c0_185 = arith.constant 0 : index
    %c1_186 = arith.constant 1 : index
    %c2_187 = arith.constant 2 : index
    %c0_188 = arith.constant 0 : index
    %163 = vector.load %arg4[%c0_184, %c0_185, %c1_186, %c2_187, %c0_188] : memref<1x1x10x10x128xbf16, #tpu.memory_space<vmem>>, vector<1x1x8x8x128xbf16>
    %164 = vector.shape_cast %163 : vector<1x1x8x8x128xbf16> to vector<8x8x128xbf16>
    %165 = vector.shape_cast %164 : vector<8x8x128xbf16> to vector<64x128xbf16>
    %c23 = arith.constant 23 : index
    %c0_189 = arith.constant 0 : index
    %c0_190 = arith.constant 0 : index
    %166 = vector.load %arg5[%c23, %c0_189, %c0_190] : memref<27x128x128xbf16, #tpu.memory_space<vmem>>, vector<1x128x128xbf16>
    %167 = vector.shape_cast %166 : vector<1x128x128xbf16> to vector<128x128xbf16>
    %cst_191 = arith.constant dense<0.000000e+00> : vector<64x128xf32>
    %168 = tpu.matmul %165, %167, %cst_191 {dimension_numbers = #tpu.dot_dimension_numbers<[1], [0], [0], [1], [0, 0, 1, 1], [], []>} : vector<64x128xbf16>, vector<128x128xbf16>, vector<64x128xf32> -> vector<64x128xf32>
    %169 = arith.addf %162, %168 : vector<64x128xf32>
    %c0_192 = arith.constant 0 : index
    %c0_193 = arith.constant 0 : index
    %c2_194 = arith.constant 2 : index
    %c0_195 = arith.constant 0 : index
    %c0_196 = arith.constant 0 : index
    %170 = vector.load %arg4[%c0_192, %c0_193, %c2_194, %c0_195, %c0_196] : memref<1x1x10x10x128xbf16, #tpu.memory_space<vmem>>, vector<1x1x8x8x128xbf16>
    %171 = vector.shape_cast %170 : vector<1x1x8x8x128xbf16> to vector<8x8x128xbf16>
    %172 = vector.shape_cast %171 : vector<8x8x128xbf16> to vector<64x128xbf16>
    %c24 = arith.constant 24 : index
    %c0_197 = arith.constant 0 : index
    %c0_198 = arith.constant 0 : index
    %173 = vector.load %arg5[%c24, %c0_197, %c0_198] : memref<27x128x128xbf16, #tpu.memory_space<vmem>>, vector<1x128x128xbf16>
    %174 = vector.shape_cast %173 : vector<1x128x128xbf16> to vector<128x128xbf16>
    %cst_199 = arith.constant dense<0.000000e+00> : vector<64x128xf32>
    %175 = tpu.matmul %172, %174, %cst_199 {dimension_numbers = #tpu.dot_dimension_numbers<[1], [0], [0], [1], [0, 0, 1, 1], [], []>} : vector<64x128xbf16>, vector<128x128xbf16>, vector<64x128xf32> -> vector<64x128xf32>
    %176 = arith.addf %169, %175 : vector<64x128xf32>
    %c0_200 = arith.constant 0 : index
    %c0_201 = arith.constant 0 : index
    %c2_202 = arith.constant 2 : index
    %c1_203 = arith.constant 1 : index
    %c0_204 = arith.constant 0 : index
    %177 = vector.load %arg4[%c0_200, %c0_201, %c2_202, %c1_203, %c0_204] : memref<1x1x10x10x128xbf16, #tpu.memory_space<vmem>>, vector<1x1x8x8x128xbf16>
    %178 = vector.shape_cast %177 : vector<1x1x8x8x128xbf16> to vector<8x8x128xbf16>
    %179 = vector.shape_cast %178 : vector<8x8x128xbf16> to vector<64x128xbf16>
    %c25 = arith.constant 25 : index
    %c0_205 = arith.constant 0 : index
    %c0_206 = arith.constant 0 : index
    %180 = vector.load %arg5[%c25, %c0_205, %c0_206] : memref<27x128x128xbf16, #tpu.memory_space<vmem>>, vector<1x128x128xbf16>
    %181 = vector.shape_cast %180 : vector<1x128x128xbf16> to vector<128x128xbf16>
    %cst_207 = arith.constant dense<0.000000e+00> : vector<64x128xf32>
    %182 = tpu.matmul %179, %181, %cst_207 {dimension_numbers = #tpu.dot_dimension_numbers<[1], [0], [0], [1], [0, 0, 1, 1], [], []>} : vector<64x128xbf16>, vector<128x128xbf16>, vector<64x128xf32> -> vector<64x128xf32>
    %183 = arith.addf %176, %182 : vector<64x128xf32>
    %c0_208 = arith.constant 0 : index
    %c0_209 = arith.constant 0 : index
    %c2_210 = arith.constant 2 : index
    %c2_211 = arith.constant 2 : index
    %c0_212 = arith.constant 0 : index
    %184 = vector.load %arg4[%c0_208, %c0_209, %c2_210, %c2_211, %c0_212] : memref<1x1x10x10x128xbf16, #tpu.memory_space<vmem>>, vector<1x1x8x8x128xbf16>
    %185 = vector.shape_cast %184 : vector<1x1x8x8x128xbf16> to vector<8x8x128xbf16>
    %186 = vector.shape_cast %185 : vector<8x8x128xbf16> to vector<64x128xbf16>
    %c26 = arith.constant 26 : index
    %c0_213 = arith.constant 0 : index
    %c0_214 = arith.constant 0 : index
    %187 = vector.load %arg5[%c26, %c0_213, %c0_214] : memref<27x128x128xbf16, #tpu.memory_space<vmem>>, vector<1x128x128xbf16>
    %188 = vector.shape_cast %187 : vector<1x128x128xbf16> to vector<128x128xbf16>
    %cst_215 = arith.constant dense<0.000000e+00> : vector<64x128xf32>
    %189 = tpu.matmul %186, %188, %cst_215 {dimension_numbers = #tpu.dot_dimension_numbers<[1], [0], [0], [1], [0, 0, 1, 1], [], []>} : vector<64x128xbf16>, vector<128x128xbf16>, vector<64x128xf32> -> vector<64x128xf32>
    %190 = arith.addf %183, %189 : vector<64x128xf32>
    %191 = vector.shape_cast %190 : vector<64x128xf32> to vector<1x1x64x128xf32>
    %c0_216 = arith.constant 0 : index
    %c0_217 = arith.constant 0 : index
    %c0_218 = arith.constant 0 : index
    %c0_219 = arith.constant 0 : index
    %192 = vector.load %arg6[%c0_216, %c0_217, %c0_218, %c0_219] : memref<1x1x64x128xf32, #tpu.memory_space<vmem>>, vector<1x1x64x128xf32>
    tpu.vector_store %arg6[%c0_216, %c0_217, %c0_218, %c0_219], %191 {strides = array<i32>} : memref<1x1x64x128xf32, #tpu.memory_space<vmem>>, vector<1x1x64x128xf32>,
    %c0_220 = arith.constant 0 : index
    %c0_221 = arith.constant 0 : index
    %c0_222 = arith.constant 0 : index
    %193 = vector.load %arg7[%c0_220, %c0_221, %c0_222] : memref<1x2x128xf32, #tpu.memory_space<vmem>>, vector<1x2x128xf32>
    %cst_223 = arith.constant dense<0.000000e+00> : vector<128xf32>
    %194 = vector.multi_reduction <add>, %190, %cst_223 [0] : vector<64x128xf32> to vector<128xf32>
    %195 = vector.shape_cast %194 : vector<128xf32> to vector<1x128xf32>
    %196 = arith.mulf %190, %190 : vector<64x128xf32>
    %cst_224 = arith.constant dense<0.000000e+00> : vector<128xf32>
    %197 = vector.multi_reduction <add>, %196, %cst_224 [0] : vector<64x128xf32> to vector<128xf32>
    %198 = vector.shape_cast %197 : vector<128xf32> to vector<1x128xf32>
    %199 = tpu.concatenate %195, %198 in 0 : vector<1x128xf32>, vector<1x128xf32> -> vector<2x128xf32>
    %200 = vector.shape_cast %199 : vector<2x128xf32> to vector<1x2x128xf32>
    %201 = arith.addf %193, %200 : vector<1x2x128xf32>
    %c0_225 = arith.constant 0 : index
    %c0_226 = arith.constant 0 : index
    %c0_227 = arith.constant 0 : index
    %202 = vector.load %arg7[%c0_225, %c0_226, %c0_227] : memref<1x2x128xf32, #tpu.memory_space<vmem>>, vector<1x2x128xf32>
    tpu.vector_store %arg7[%c0_225, %c0_226, %c0_227], %201 {strides = array<i32>} : memref<1x2x128xf32, #tpu.memory_space<vmem>>, vector<1x2x128xf32>,
    return
  }
  func.func @transform_0(%arg0: i32, %arg1: i32) -> (i32, i32, i32, i32, i32) {
    %c0_i32 = arith.constant 0 : i32
    %0 = arith.addi %arg1, %c0_i32 : i32
    %c0_i32_0 = arith.constant 0 : i32
    %c0_i32_1 = arith.constant 0 : i32
    %c0_i32_2 = arith.constant 0 : i32
    %c0_i32_3 = arith.constant 0 : i32
    return %arg0, %0, %c0_i32_0, %c0_i32_1, %c0_i32_2 : i32, i32, i32, i32, i32
  }
  func.func @transform_1(%arg0: i32, %arg1: i32) -> (i32, i32, i32, i32, i32) {
    %c1_i32 = arith.constant 1 : i32
    %0 = arith.addi %arg1, %c1_i32 : i32
    %c0_i32 = arith.constant 0 : i32
    %c0_i32_0 = arith.constant 0 : i32
    %c0_i32_1 = arith.constant 0 : i32
    %c0_i32_2 = arith.constant 0 : i32
    return %arg0, %0, %c0_i32, %c0_i32_0, %c0_i32_1 : i32, i32, i32, i32, i32
  }
  func.func @transform_2(%arg0: i32, %arg1: i32) -> (i32, i32, i32, i32, i32) {
    %c2_i32 = arith.constant 2 : i32
    %0 = arith.addi %arg1, %c2_i32 : i32
    %c0_i32 = arith.constant 0 : i32
    %c0_i32_0 = arith.constant 0 : i32
    %c0_i32_1 = arith.constant 0 : i32
    %c0_i32_2 = arith.constant 0 : i32
    return %arg0, %0, %c0_i32, %c0_i32_0, %c0_i32_1 : i32, i32, i32, i32, i32
  }
  func.func @transform_3(%arg0: i32, %arg1: i32) -> (i32, i32, i32) {
    %c0_i32 = arith.constant 0 : i32
    %c0_i32_0 = arith.constant 0 : i32
    %c0_i32_1 = arith.constant 0 : i32
    %c0_i32_2 = arith.constant 0 : i32
    return %c0_i32, %c0_i32_0, %c0_i32_1 : i32, i32, i32
  }
  func.func @transform_4(%arg0: i32, %arg1: i32) -> (i32, i32, i32, i32) {
    %c0_i32 = arith.constant 0 : i32
    %c0_i32_0 = arith.constant 0 : i32
    %c0_i32_1 = arith.constant 0 : i32
    return %arg0, %arg1, %c0_i32, %c0_i32_0 : i32, i32, i32, i32
  }
  func.func @transform_5(%arg0: i32, %arg1: i32) -> (i32, i32, i32) {
    %c0_i32 = arith.constant 0 : i32
    %c0_i32_0 = arith.constant 0 : i32
    %c0_i32_1 = arith.constant 0 : i32
    return %arg0, %c0_i32, %c0_i32_0 : i32, i32, i32
  }
}

module attributes {stable_mosaic.version = 11 : i64} {
  func.func @_bn2_residual_relu_kernel(%arg0: i32, %arg1: i32, %arg2: memref<1x1x64x128xf32, #tpu.memory_space<vmem>>, %arg3: memref<1x1x64x128xf32, #tpu.memory_space<vmem>>, %arg4: memref<2x128xf32, #tpu.memory_space<vmem>>, %arg5: memref<2x128xf32, #tpu.memory_space<vmem>>, %arg6: memref<1x1x64x128xf32, #tpu.memory_space<vmem>>) attributes {dimension_semantics = [#tpu.dimension_semantics<parallel>, #tpu.dimension_semantics<parallel>], iteration_bounds = array<i64: 2, 8>, scalar_prefetch = 0 : i64, scratch_operands = 0 : i64, tpu.core_type = #tpu.core_type<tc>, window_params = [{transform_indices = @transform_0, window_bounds = array<i64: 1, 1, 64, 128>}, {transform_indices = @transform_1, window_bounds = array<i64: 1, 1, 64, 128>}, {pipeline_mode = #tpu.pipeline_mode<synchronous>, transform_indices = @transform_2, window_bounds = array<i64: 2, 128>}, {pipeline_mode = #tpu.pipeline_mode<synchronous>, transform_indices = @transform_3, window_bounds = array<i64: 2, 128>}, {transform_indices = @transform_4, window_bounds = array<i64: 1, 1, 64, 128>}]} {
    %c0 = arith.constant 0 : index
    %c0_0 = arith.constant 0 : index
    %c0_1 = arith.constant 0 : index
    %c0_2 = arith.constant 0 : index
    %0 = vector.load %arg2[%c0, %c0_0, %c0_1, %c0_2] : memref<1x1x64x128xf32, #tpu.memory_space<vmem>>, vector<1x1x64x128xf32>
    %c0_3 = arith.constant 0 : index
    %c0_4 = arith.constant 0 : index
    %1 = vector.load %arg4[%c0_3, %c0_4] : memref<2x128xf32, #tpu.memory_space<vmem>>, vector<1x128xf32>
    %2 = vector.shape_cast %1 : vector<1x128xf32> to vector<1x1x1x128xf32>
    %3 = vector.broadcast %2 : vector<1x1x1x128xf32> to vector<1x1x64x128xf32>
    %4 = arith.mulf %0, %3 : vector<1x1x64x128xf32>
    %c1 = arith.constant 1 : index
    %c0_5 = arith.constant 0 : index
    %5 = vector.load %arg4[%c1, %c0_5] : memref<2x128xf32, #tpu.memory_space<vmem>>, vector<1x128xf32>
    %6 = vector.shape_cast %5 : vector<1x128xf32> to vector<1x1x1x128xf32>
    %7 = vector.broadcast %6 : vector<1x1x1x128xf32> to vector<1x1x64x128xf32>
    %8 = arith.addf %4, %7 : vector<1x1x64x128xf32>
    %c0_6 = arith.constant 0 : index
    %c0_7 = arith.constant 0 : index
    %c0_8 = arith.constant 0 : index
    %c0_9 = arith.constant 0 : index
    %9 = vector.load %arg3[%c0_6, %c0_7, %c0_8, %c0_9] : memref<1x1x64x128xf32, #tpu.memory_space<vmem>>, vector<1x1x64x128xf32>
    %c0_10 = arith.constant 0 : index
    %c0_11 = arith.constant 0 : index
    %10 = vector.load %arg5[%c0_10, %c0_11] : memref<2x128xf32, #tpu.memory_space<vmem>>, vector<1x128xf32>
    %11 = vector.shape_cast %10 : vector<1x128xf32> to vector<1x1x1x128xf32>
    %12 = vector.broadcast %11 : vector<1x1x1x128xf32> to vector<1x1x64x128xf32>
    %13 = arith.mulf %9, %12 : vector<1x1x64x128xf32>
    %c1_12 = arith.constant 1 : index
    %c0_13 = arith.constant 0 : index
    %14 = vector.load %arg5[%c1_12, %c0_13] : memref<2x128xf32, #tpu.memory_space<vmem>>, vector<1x128xf32>
    %15 = vector.shape_cast %14 : vector<1x128xf32> to vector<1x1x1x128xf32>
    %16 = vector.broadcast %15 : vector<1x1x1x128xf32> to vector<1x1x64x128xf32>
    %17 = arith.addf %13, %16 : vector<1x1x64x128xf32>
    %18 = arith.addf %8, %17 : vector<1x1x64x128xf32>
    %cst = arith.constant 0.707106769 : f32
    %19 = vector.broadcast %cst : f32 to vector<1x1x64x128xf32>
    %20 = arith.mulf %18, %19 : vector<1x1x64x128xf32>
    %cst_14 = arith.constant 0.000000e+00 : f32
    %21 = vector.broadcast %cst_14 : f32 to vector<1x1x64x128xf32>
    %22 = arith.maximumf %20, %21 : vector<1x1x64x128xf32>
    %c0_15 = arith.constant 0 : index
    %c0_16 = arith.constant 0 : index
    %c0_17 = arith.constant 0 : index
    %c0_18 = arith.constant 0 : index
    %23 = vector.load %arg6[%c0_15, %c0_16, %c0_17, %c0_18] : memref<1x1x64x128xf32, #tpu.memory_space<vmem>>, vector<1x1x64x128xf32>
    tpu.vector_store %arg6[%c0_15, %c0_16, %c0_17, %c0_18], %22 {strides = array<i32>} : memref<1x1x64x128xf32, #tpu.memory_space<vmem>>, vector<1x1x64x128xf32>,
    return
  }
  func.func @transform_0(%arg0: i32, %arg1: i32) -> (i32, i32, i32, i32) {
    %c0_i32 = arith.constant 0 : i32
    %c0_i32_0 = arith.constant 0 : i32
    %c0_i32_1 = arith.constant 0 : i32
    return %arg0, %arg1, %c0_i32, %c0_i32_0 : i32, i32, i32, i32
  }
  func.func @transform_1(%arg0: i32, %arg1: i32) -> (i32, i32, i32, i32) {
    %c0_i32 = arith.constant 0 : i32
    %c0_i32_0 = arith.constant 0 : i32
    %c0_i32_1 = arith.constant 0 : i32
    return %arg0, %arg1, %c0_i32, %c0_i32_0 : i32, i32, i32, i32
  }
  func.func @transform_2(%arg0: i32, %arg1: i32) -> (i32, i32) {
    %c0_i32 = arith.constant 0 : i32
    %c0_i32_0 = arith.constant 0 : i32
    %c0_i32_1 = arith.constant 0 : i32
    return %c0_i32, %c0_i32_0 : i32, i32
  }
  func.func @transform_3(%arg0: i32, %arg1: i32) -> (i32, i32) {
    %c0_i32 = arith.constant 0 : i32
    %c0_i32_0 = arith.constant 0 : i32
    %c0_i32_1 = arith.constant 0 : i32
    return %c0_i32, %c0_i32_0 : i32, i32
  }
  func.func @transform_4(%arg0: i32, %arg1: i32) -> (i32, i32, i32, i32) {
    %c0_i32 = arith.constant 0 : i32
    %c0_i32_0 = arith.constant 0 : i32
    %c0_i32_1 = arith.constant 0 : i32
    return %arg0, %arg1, %c0_i32, %c0_i32_0 : i32, i32, i32, i32
  }
}

</mosaic_0001>

<bundles_post_ra>
// kernel: unet_block_forward.5
= control target key start
LH: loop header
LB: loop body
LE: loop exit
PB: predicated region body
PF: predicated region fallthrough
CT: control target
= control target key end

     0   :  { %s565_s12 = smov 0   ;;  %s567_s13 = smov 0   ;;  %s626_s0 = inlined_call_operand.vmem [shape: f32[2,8,64,128], index: 0, kind: input, shape index: {}]   ;;  %s627_s1 = inlined_call_operand.vmem [shape: f32[1,128], index: 1, kind: input, shape index: {}]   ;;  %s628_s2 = inlined_call_operand.vmem [shape: f32[2,1,128], index: 2, kind: input, shape index: {}]   ;;  %s629_s3 = inlined_call_operand.vmem [shape: bf16[2,8,64,128], index: 3, kind: output, shape index: {}]  }
   0x1   :  { %s569_s14 = smov 0   ;;  %s571_s15 = smov 0  }
   0x2   :  { %s573_s16 = smov 0  }
   0x3 LB: > { %s22_s17 = sadd.s32 1, %s535_s14  ;;  %s25_s18 = sadd.s32 1, %s539_s15  ;;  %s543_s16 = sphi %s573_s16, %s13_s16   ;;  %s539_s15 = sphi %s571_s15, %s633_s15   ;;  %s535_s14 = sphi %s569_s14, %s632_s14   ;;  %s531_s13 = sphi %s567_s13, %s631_s13   ;;  %s527_s12 = sphi %s565_s12, %s630_s12  }
   0x4   : > { %p23_p0 = scmp.ge.s32.totalorder %s22_s17, 8  ;;  %p415_p1 = scmp.ge.s32.totalorder %s543_s16, 1 }
   0x5   : > { %p165_p2 = scmp.lt.s32.totalorder %s543_s16, 17 }
   0x6   : > { %s635_s17 = smov (%p23_p0, %s22_s17), 0  ;;  %s637_s18 = smov (!%p23_p0, %s25_s18), %s539_s15 }
   0x7   : > { %p166_p3 = pnand %p415_p1, %p165_p2  ;;  %p27_p4 = scmp.ge.s32.totalorder %s637_s18, 2 }
   0x8   : > { %p200_p5 = scmp.lt.s32.totalorder (!%p166_p3), %s531_s13, 1  ;;  %p202_p6 = scmp.lt.s32.totalorder (!%p166_p3), %s527_s12, 7 }
   0x9   : > { %s639_s18 = smov (%p27_p4, %s637_s18), 0  ;;  %169 = sbr.rel (%p166_p3) target bundleno = 32 (0x20), region = 32 }
   0xe   : > { %s641_s13 = smov (!%p200_p5, %s531_s13), 1  ;;  %s643_s12 = smov (!%p202_p6, %s527_s12), 7  ;;  %v422_v0 = vld [vmem:[%s627_s1] ss:$0 sm:$0xff] }
   0xf   : > { %s417_s19 = sshll.u32 %s641_s13, 6  ;;  %s416_s20 = sshll.u32 %s643_s12, 3 }
  0x10   : > { %s211_s23 = scalar_lea.vmem %s628_s2, %s641_s13  ;;  %s598_s24 = sadd.s32 %s417_s19, %s416_s20 }
  0x11   : > { %s418_s25 = sshll.u32 %s598_s24, 3  ;;  %v423_v1 = vld [vmem:[%s211_s23] ss:$0 sm:$0xff]  ;;  %s421_s4 = sshll.u32 %s598_s24, 2 }
  0x12   : > { %s208_s30 = scalar_lea.vmem %s626_s0, %s418_s25  ;;  %s220_s7 = scalar_lea.vmem %s629_s3, %s421_s4 }
  0x13   : > { %v221_v2 = vld [vmem:[%s208_s30] sm:$0xff]  ;;  %v222_v3 = vld [vmem:[%s208_s30 + $0x8] sm:$0xff]  ;;  %v223_v4 = vld [vmem:[%s208_s30 + $0x10] sm:$0xff] }
  0x14   : > { %v236_v5 = vmul.f32 %v422_v0, %v221_v2  ;;  %v237_v6 = vmul.f32 %v422_v0, %v222_v3  ;;  %v224_v7 = vld [vmem:[%s208_s30 + $0x18] sm:$0xff]  ;;  %v238_v8 = vmul.f32 %v422_v0, %v223_v4  ;;  %v225_v9 = vld [vmem:[%s208_s30 + $0x20] sm:$0xff]  ;;  %v226_v10 = vld [vmem:[%s208_s30 + $0x28] sm:$0xff] }
  0x15   : > { %v239_v11 = vmul.f32 %v422_v0, %v224_v7  ;;  %v240_v12 = vmul.f32 %v422_v0, %v225_v9  ;;  %v241_v13 = vmul.f32 %v422_v0, %v226_v10  ;;  %v227_v14 = vld [vmem:[%s208_s30 + $0x30] sm:$0xff]  ;;  %v228_v15 = vld [vmem:[%s208_s30 + $0x38] sm:$0xff] }
  0x16   : > { %v251_v16 = vadd.f32 %v423_v1, %v236_v5  ;;  %v252_v17 = vadd.f32 %v423_v1, %v237_v6  ;;  %v253_v18 = vadd.f32 %v423_v1, %v238_v8  ;;  %v242_v19 = vmul.f32 %v422_v0, %v227_v14 }
  0x17   : > { %v254_v20 = vadd.f32 %v423_v1, %v239_v11  ;;  %v255_v21 = vadd.f32 %v423_v1, %v240_v12  ;;  %v256_v22 = vadd.f32 %v423_v1, %v241_v13  ;;  %v243_v23 = vmul.f32 %v422_v0, %v228_v15 }
  0x18   : > { %v259_v24 = vmax.f32 %v251_v16, 0.0  ;;  %v260_v25 = vmax.f32 %v252_v17, 0.0  ;;  %v261_v26 = vmax.f32 %v253_v18, 0.0  ;;  %v257_v27 = vadd.f32 %v423_v1, %v242_v19 }
  0x19   : > { %v262_v28 = vmax.f32 %v254_v20, 0.0  ;;  %v263_v29 = vmax.f32 %v255_v21, 0.0  ;;  %v264_v30 = vmax.f32 %v256_v22, 0.0  ;;  %v258_v31 = vadd.f32 %v423_v1, %v243_v23 }
  0x1a   : > { %v445_v32 = vpack.c.bf16 %v260_v25, %v259_v24  ;;  %v265_v33 = vmax.f32 %v257_v27, 0.0 }
  0x1b   : > { %v450_v34 = vpack.c.bf16 %v262_v28, %v261_v26  ;;  %v455_v35 = vpack.c.bf16 %v264_v30, %v263_v29  ;;  %v266_v36 = vmax.f32 %v258_v31, 0.0 }
  0x1c   : > { %446 = vst [vmem:[%s220_s7] sm:$0xff] %v445_v32  }
  0x1d   : > { %462 = vst [vmem:[%s220_s7 + $0x8] sm:$0xff] %v450_v34   ;;  %463 = vst [vmem:[%s220_s7 + $0x10] sm:$0xff] %v455_v35   ;;  %v460_v37 = vpack.c.bf16 %v266_v36, %v265_v33 }
  0x1f   : > { %464 = vst [vmem:[%s220_s7 + $0x18] sm:$0xff] %v460_v37  }
  0x20 PF: > { %s13_s16 = sadd.s32 1, %s543_s16   ;;  %s630_s12 = smov %s535_s14 }
  0x21   : > { %p10_p7 = scmp.ge.s32.totalorder %s13_s16, 18   ;;  %s631_s13 = smov %s539_s15 }
  0x22   : > { %s632_s14 = smov %s635_s17  ;;  %s633_s15 = smov %s639_s18 }
  0x23   :  { %12 = sbr.rel (!%p10_p7) target bundleno = 3 (0x3), region = 65 }

// kernel: unet_block_forward.7
= control target key start
LH: loop header
LB: loop body
LE: loop exit
PB: predicated region body
PF: predicated region fallthrough
CT: control target
= control target key end

     0   :  { %s609_s15 = smov 0   ;;  %s611_s16 = smov 0   ;;  %s750_s0 = inlined_call_operand.vmem [shape: f32[2,8,64,128], index: 0, kind: input, shape index: {}]   ;;  %s751_s1 = inlined_call_operand.vmem [shape: f32[2,8,64,128], index: 1, kind: input, shape index: {}]   ;;  %s752_s2 = inlined_call_operand.vmem [shape: f32[2,128], index: 2, kind: input, shape index: {}]   ;;  %s753_s3 = inlined_call_operand.vmem [shape: f32[2,128], index: 3, kind: input, shape index: {}]   ;;  %s754_s4 = inlined_call_operand.vmem [shape: f32[2,8,64,128], index: 4, kind: output, shape index: {}]  }
   0x1   :  { %s613_s17 = smov 0   ;;  %s615_s18 = smov 0  }
   0x2   :  { %s617_s19 = smov 0  }
   0x3 LB: > { %s23_s20 = sadd.s32 1, %s574_s17  ;;  %s26_s21 = sadd.s32 1, %s578_s18  ;;  %s582_s19 = sphi %s617_s19, %s14_s19   ;;  %s578_s18 = sphi %s615_s18, %s758_s18   ;;  %s574_s17 = sphi %s613_s17, %s757_s17   ;;  %s570_s16 = sphi %s611_s16, %s756_s16   ;;  %s566_s15 = sphi %s609_s15, %s755_s15  }
   0x4   : > { %p24_p0 = scmp.ge.s32.totalorder %s23_s20, 8  ;;  %p488_p1 = scmp.ge.s32.totalorder %s582_s19, 1 }
   0x5   : > { %p198_p2 = scmp.lt.s32.totalorder %s582_s19, 17 }
   0x6   : > { %s760_s20 = smov (%p24_p0, %s23_s20), 0  ;;  %s762_s21 = smov (!%p24_p0, %s26_s21), %s578_s18 }
   0x7   : > { %p199_p3 = pnand %p488_p1, %p198_p2  ;;  %p28_p4 = scmp.ge.s32.totalorder %s762_s21, 2 }
   0x8   : > { %p241_p5 = scmp.lt.s32.totalorder (!%p199_p3), %s570_s16, 1  ;;  %p243_p6 = scmp.lt.s32.totalorder (!%p199_p3), %s566_s15, 7 }
   0x9   : > { %s764_s21 = smov (%p28_p4, %s762_s21), 0  ;;  %202 = sbr.rel (%p199_p3) target bundleno = 42 (0x2a), region = 36 }
   0xe   : > { %s766_s16 = smov (!%p241_p5, %s570_s16), 1  ;;  %s768_s15 = smov (!%p243_p6, %s566_s15), 7  ;;  %v644_v0 = vld [vmem:[%s752_s2] ss:$0 sm:$0xff]  ;;  %v666_v2 = vld [vmem:[%s752_s2 + $0x1] ss:$0 sm:$0xff] }
   0xf   : > { %s490_s22 = sshll.u32 %s766_s16, 6  ;;  %s489_s23 = sshll.u32 %s768_s15, 3  ;;  %v649_v1 = vld [vmem:[%s753_s3] ss:$0 sm:$0xff]  ;;  %v671_v3 = vld [vmem:[%s753_s3 + $0x1] ss:$0 sm:$0xff] }
  0x10   : > { %s247_s24 = sadd.s32 %s490_s22, %s489_s23 }
  0x11   : > { %s639_s25 = sshll.u32 %s247_s24, 3 }
  0x12   : > { %s655_s6 = scalar_lea.vmem %s750_s0, %s639_s25  ;;  %s661_s9 = scalar_lea.vmem %s751_s1, %s639_s25 }
  0x13   : > { %v268_v4 = vld [vmem:[%s655_s6] sm:$0xff]  ;;  %v269_v6 = vld [vmem:[%s655_s6 + $0x8] sm:$0xff]  ;;  %v270_v11 = vld [vmem:[%s655_s6 + $0x10] sm:$0xff]  ;;  %s713_s16 = scalar_lea.vmem %s754_s4, %s639_s25 }
  0x14   : > { %v302_v5 = vld [vmem:[%s661_s9] sm:$0xff]  ;;  %v281_v7 = vmul.f32 %v644_v0, %v268_v4  ;;  %v282_v9 = vmul.f32 %v644_v0, %v269_v6  ;;  %v303_v10 = vld [vmem:[%s661_s9 + $0x8] sm:$0xff]  ;;  %v304_v12 = vld [vmem:[%s661_s9 + $0x10] sm:$0xff]  ;;  %v283_v14 = vmul.f32 %v644_v0, %v270_v11 }
  0x15   : > { %v315_v8 = vmul.f32 %v649_v1, %v302_v5  ;;  %v316_v13 = vmul.f32 %v649_v1, %v303_v10  ;;  %v317_v15 = vmul.f32 %v649_v1, %v304_v12  ;;  %v271_v16 = vld [vmem:[%s655_s6 + $0x18] sm:$0xff]  ;;  %v272_v18 = vld [vmem:[%s655_s6 + $0x20] sm:$0xff]  ;;  %v273_v24 = vld [vmem:[%s655_s6 + $0x28] sm:$0xff] }
  0x16   : > { %v305_v17 = vld [vmem:[%s661_s9 + $0x18] sm:$0xff]  ;;  %v294_v19 = vadd.f32 %v666_v2, %v281_v7  ;;  %v295_v21 = vadd.f32 %v666_v2, %v282_v9  ;;  %v284_v22 = vmul.f32 %v644_v0, %v271_v16  ;;  %v306_v23 = vld [vmem:[%s661_s9 + $0x20] sm:$0xff]  ;;  %v296_v26 = vadd.f32 %v666_v2, %v283_v14  ;;  %v307_v29 = vld [vmem:[%s661_s9 + $0x28] sm:$0xff] }
  0x17   : > { %v328_v20 = vadd.f32 %v671_v3, %v315_v8  ;;  %v329_v25 = vadd.f32 %v671_v3, %v316_v13  ;;  %v330_v27 = vadd.f32 %v671_v3, %v317_v15  ;;  %v318_v28 = vmul.f32 %v649_v1, %v305_v17  ;;  %v274_v38 = vld [vmem:[%s655_s6 + $0x30] sm:$0xff]  ;;  %v275_v48 = vld [vmem:[%s655_s6 + $0x38] sm:$0xff] }
  0x18   : > { %v297_v31 = vadd.f32 %v666_v2, %v284_v22  ;;  %v285_v32 = vmul.f32 %v644_v0, %v272_v18  ;;  %v319_v33 = vmul.f32 %v649_v1, %v306_v23  ;;  %v286_v37 = vmul.f32 %v644_v0, %v273_v24  ;;  %v308_v43 = vld [vmem:[%s661_s9 + $0x30] sm:$0xff]  ;;  %v309_v53 = vld [vmem:[%s661_s9 + $0x38] sm:$0xff] }
  0x19   : > { %v336_v30 = vadd.f32 %v328_v20, %v294_v19  ;;  %v337_v34 = vadd.f32 %v329_v25, %v295_v21  ;;  %v338_v35 = vadd.f32 %v330_v27, %v296_v26  ;;  %v331_v36 = vadd.f32 %v671_v3, %v318_v28 }
  0x1a   : > { %v298_v40 = vadd.f32 %v666_v2, %v285_v32  ;;  %v332_v41 = vadd.f32 %v671_v3, %v319_v33  ;;  %v320_v42 = vmul.f32 %v649_v1, %v307_v29  ;;  %v299_v47 = vadd.f32 %v666_v2, %v286_v37 }
  0x1b   : > { %v344_v39 = vmul.f32 0.70710677, %v336_v30  ;;  %v345_v44 = vmul.f32 0.70710677, %v337_v34  ;;  %v346_v45 = vmul.f32 0.70710677, %v338_v35  ;;  %v339_v46 = vadd.f32 %v331_v36, %v297_v31 }
  0x1c   : > { %v340_v50 = vadd.f32 %v332_v41, %v298_v40  ;;  %v333_v51 = vadd.f32 %v671_v3, %v320_v42  ;;  %v287_v52 = vmul.f32 %v644_v0, %v274_v38  ;;  %v321_v57 = vmul.f32 %v649_v1, %v308_v43 }
  0x1d   : > { %v352_v49 = vmax.f32 %v344_v39, 0.0  ;;  %v353_v54 = vmax.f32 %v345_v44, 0.0  ;;  %v354_v55 = vmax.f32 %v346_v45, 0.0  ;;  %v347_v56 = vmul.f32 0.70710677, %v339_v46 }
  0x1e   : > { %v348_v58 = vmul.f32 0.70710677, %v340_v50  ;;  %v341_v59 = vadd.f32 %v333_v51, %v299_v47  ;;  %v300_v60 = vadd.f32 %v666_v2, %v287_v52  ;;  %v288_v61 = vmul.f32 %v644_v0, %v275_v48 }
  0x1f   : > { %360 = vst [vmem:[%s713_s16] sm:$0xff] %v352_v49  ;;  %361 = vst [vmem:[%s713_s16 + $0x8] sm:$0xff] %v353_v54  ;;  %v355_v62 = vmax.f32 %v347_v56, 0.0  ;;  %v334_v63 = vadd.f32 %v671_v3, %v321_v57  ;;  %v322_v4 = vmul.f32 %v649_v1, %v309_v53 }
  0x20   : > { %362 = vst [vmem:[%s713_s16 + $0x10] sm:$0xff] %v354_v55  ;;  %v356_v5 = vmax.f32 %v348_v58, 0.0  ;;  %v349_v6 = vmul.f32 0.70710677, %v341_v59  ;;  %v301_v7 = vadd.f32 %v666_v2, %v288_v61 }
  0x21   : > { %363 = vst [vmem:[%s713_s16 + $0x18] sm:$0xff] %v355_v62  ;;  %v342_v8 = vadd.f32 %v334_v63, %v300_v60  ;;  %v335_v9 = vadd.f32 %v671_v3, %v322_v4 }
  0x22   : > { %364 = vst [vmem:[%s713_s16 + $0x20] sm:$0xff] %v356_v5  ;;  %v357_v0 = vmax.f32 %v349_v6, 0.0 }
  0x23   : > { %v350_v10 = vmul.f32 0.70710677, %v342_v8  ;;  %v343_v11 = vadd.f32 %v335_v9, %v301_v7 }
  0x24   : > { %365 = vst [vmem:[%s713_s16 + $0x28] sm:$0xff] %v357_v0 }
  0x25   : > { %v358_v12 = vmax.f32 %v350_v10, 0.0  ;;  %v351_v13 = vmul.f32 0.70710677, %v343_v11 }
  0x27   : > { %366 = vst [vmem:[%s713_s16 + $0x30] sm:$0xff] %v358_v12  ;;  %v359_v14 = vmax.f32 %v351_v13, 0.0 }
  0x29   : > { %367 = vst [vmem:[%s713_s16 + $0x38] sm:$0xff] %v359_v14 }
  0x2a PF: > { %s14_s19 = sadd.s32 1, %s582_s19   ;;  %s755_s15 = smov %s574_s17 }
  0x2b   : > { %p11_p7 = scmp.ge.s32.totalorder %s14_s19, 18   ;;  %s756_s16 = smov %s578_s18 }
  0x2c   : > { %s757_s17 = smov %s760_s20  ;;  %s758_s18 = smov %s764_s21 }
  0x2d   :  { %13 = sbr.rel (!%p11_p7) target bundleno = 3 (0x3), region = 69 }

// kernel: unet_block_forward.4
= control target key start
LH: loop header
LB: loop body
LE: loop exit
PB: predicated region body
PF: predicated region fallthrough
CT: control target
= control target key end

     0   :  { %s6575_s27 = smov 0   ;;  %s6577_s28 = smov 0   ;;  %s8249_s0 = inlined_call_operand.vmem [shape: bf16[2,10,10,10,8], index: 0, kind: input, shape index: {}, may-alias: {0,1,2}]   ;;  %s8250_s1 = inlined_call_operand.vmem [shape: bf16[2,10,10,10,8], index: 1, kind: input, shape index: {}, may-alias: {0,1,2}]   ;;  %s8251_s2 = inlined_call_operand.vmem [shape: bf16[2,10,10,10,8], index: 2, kind: input, shape index: {}, may-alias: {0,1,2}]   ;;  %s8252_s3 = inlined_call_operand.vmem [shape: bf16[27,8,128], index: 3, kind: input, shape index: {}]   ;;  %s8253_s4 = inlined_call_operand.vmem [shape: bf16[8,128], index: 4, kind: input, shape index: {}]   ;;  %s8254_s5 = inlined_call_operand.vmem [shape: f32[2,8,64,128], index: 5, kind: output, shape index: {0}]   ;;  %s8255_s6 = inlined_call_operand.vmem [shape: f32[2,8,64,128], index: 6, kind: output, shape index: {1}]   ;;  %s8256_s7 = inlined_call_operand.vmem [shape: f32[2,2,128], index: 7, kind: output, shape index: {2}]   ;;  %s8257_s8 = inlined_call_operand.vmem [shape: f32[2,2,128], index: 8, kind: output, shape index: {3}]  }
   0x1   :  { %8264 = sst [smem:[#allocation20_spill]] %s8249_s0  ;;  %s6579_s29 = smov 0  }
   0x2   :  { %8265 = sst [smem:[#allocation21_spill]] %s8256_s7  ;;  %s6581_s30 = smov 0  }
   0x3   :  { %s6583_s9 = smov 0  }
   0x4 LB: > { %8266 = sst [smem:[#allocation2_spill]] %s6519_s29  ;;  %s28_s10 = sadd.s32 1, %s6519_s29  ;;  %s6527_s9 = sphi %s6583_s9, %s19_s9   ;;  %s6523_s30 = sphi %s6581_s30, %s8322_s30   ;;  %s6519_s29 = sphi %s6579_s29, %s8321_s29   ;;  %s6515_s28 = sphi %s6577_s28, %s8320_s28   ;;  %s6511_s27 = sphi %s6575_s27, %s8319_s27  }
   0x5   : > { %8267 = sst [smem:[#allocation3_spill]] %s6523_s30  ;;  %s31_s11 = sadd.s32 1, %s6523_s30 }
   0x6   : > { %8268 = sst [smem:[#allocation4_spill]] %s6527_s9  ;;  %p29_p0 = scmp.ge.s32.totalorder %s28_s10, 8 }
   0x7   : > { %p5435_p1 = scmp.ge.s32.totalorder %s6527_s9, 1  ;;  %p331_p2 = scmp.lt.s32.totalorder %s6527_s9, 17 }
   0x8   : > { %s8324_s10 = smov (%p29_p0, %s28_s10), 0  ;;  %s8326_s11 = smov (!%p29_p0, %s31_s11), %s6523_s30 }
   0x9   : > { %8269 = sst [smem:[#allocation5_spill]] %s8324_s10  ;;  %p332_p3 = pnand %p5435_p1, %p331_p2 }
   0xa   : > { %p33_p4 = scmp.ge.s32.totalorder %s8326_s11, 2 }
   0xb   : > { %335 = sbr.rel (%p332_p3) target bundleno = 524 (0x20c), region = 40 }
   0xc   : > { %s8328_s11 = smov (%p33_p4, %s8326_s11), 0 }
   0xd   : > { %8270 = sst [smem:[#allocation6_spill]] %s8328_s11 }
  0x10   : > { %p410_p5 = scmp.lt.s32.totalorder %s6515_s28, 1  ;;  %p412_p6 = scmp.lt.s32.totalorder %s6511_s27, 9 }
  0x11   : > { %s419_s12 = sadd.s32 1, %s6511_s27  ;;  %s430_s13 = sadd.s32 2, %s6511_s27 }
  0x12   : > { %s8330_s28 = smov (!%p410_p5, %s6515_s28), 1  ;;  %p422_p7 = scmp.lt.s32.totalorder %s419_s12, 9 }
  0x13   : > { %s413_s14 = scalar_select %p412_p6, %s6511_s27, 9 }
  0x14   : > { %s6409_s15 = smul.u32 200, %s8330_s28  ;;  %p6611_p8 = scmp.lt.s32.totalorder %s430_s13, 9 }
  0x15   : > { %s6408_s16 = smul.u32 20, %s413_s14  ;;  %s8332_s12 = smov (!%p422_p7, %s419_s12), 9 }
  0x16   : > { %p443_p9 = scmp.lt.s32.totalorder %s6511_s27, 7  ;;  %s6410_s20 = smul.u32 20, %s8332_s12 }
  0x17   : > { %s416_s18 = sadd.s32 %s6409_s15, %s6408_s16  ;;  %s8272_s0 = sld [smem:[#allocation20_spill]] }
  0x18   : > { %s5436_s19 = sshll.u32 %s416_s18, 2  ;;  %s5440_s24 = sshll.u32 %s8330_s28, 6 }
  0x19   : > { %s426_s25 = sadd.s32 %s6410_s20, %s6409_s15  ;;  %s5445_s26 = sshll.u32 %s8330_s28, 1 }
  0x1a   : > { %s5437_s14 = sshll.u32 %s426_s25, 2  ;;  %s8273_s7 = sld [smem:[#allocation21_spill]] }
  0x1b   : > { %s6629_s16 = scalar_lea.vmem %s8250_s1, %s5437_s14  ;;  %s6634_s21 = scalar_lea.vmem %s8257_s8, %s5445_s26 }
  0x1c   : > { %s8334_s13 = smov (!%p6611_p8, %s430_s13), 9  ;;  %p5447_p10 = scmp.ne.s32.totalorder %s6511_s27, 0 }
  0x1d   : > { %s6619_s23 = scalar_lea.vmem %s8272_s0, %s5436_s19  ;;  %s6411_s28 = smul.u32 20, %s8334_s13 }
  0x1e   : > { %s444_s19 = scalar_select %p443_p9, %s6511_s27, 7 }
  0x1f   : > { %s437_s22 = sadd.s32 %s6411_s28, %s6409_s15  ;;  %471 = sbr.rel (%p5447_p10) target bundleno = 38 (0x26), region = 44 }
  0x20   : > { %s6624_s30 = scalar_lea.vmem %s8273_s7, %s5445_s26  ;;  %s5439_s20 = sshll.u32 %s444_s19, 3 }
  0x21   : > { %s447_s25 = sadd.s32 %s5440_s24, %s5439_s20  ;;  %s5438_s10 = sshll.u32 %s437_s22, 2 }
  0x22   : > { %s5441_s11 = sshll.u32 %s447_s25, 3  ;;  %s6642_s29 = scalar_lea.vmem %s8251_s2, %s5438_s10 }
  0x23   : > { %s6647_s12 = scalar_lea.vmem %s8254_s5, %s5441_s11  ;;  %s6652_s18 = scalar_lea.vmem %s8255_s6, %s5441_s11 }
  0x24   : > { %v6529_v0 = vmov 0.0  }
  0x25   : > { %472 = vst [vmem:[%s6624_s30] sm:$0x3] %v6529_v0  ;;  %473 = vst [vmem:[%s6634_s21] sm:$0x3] %v6529_v0 }
  0x26 PF: > { %v482_v1 = vld [vmem:[%s8252_s3] sm:$0xf]  ;;  %vm633_vm0 = vcmask 1043456   ;;  %v475_v4 = vld [vmem:[%s6619_s23 + $0x8] sm:$0xf]  ;;  %vm620_vm1 = vcmask 64512  }
  0x27   : > { %v474_v2 = vld [vmem:[%s6619_s23] sm:$0xf]  ;;  %6381 = vmatprep.subr.msk.bf16.mxu1 %vm633_vm0, %v482_v1  ;;  %v735_v3 = vsel %vm633_vm0, %v482_v1, 0  ;;  %v509_v7 = vshrl.u32 %v475_v4, 16  ;;  %v512_v8 = vshll.u32 %v475_v4, 16  ;;  %vm826_vm5 = vcmask 1042432  }
  0x28   : > { %v495_v5 = vshrl.u32 %v474_v2, 16  ;;  %v498_v6 = vshll.u32 %v474_v2, 16  ;;  %6111 = vmatpush3.bf16.msra.mxu1 %v735_v3  ;;  %v5457_v9 = vcombine.low %v474_v2, %v475_v4  ;;  %v476_v10 = vld [vmem:[%s6619_s23 + $0x10] sm:$0xf]  ;;  %v477_v11 = vld [vmem:[%s6619_s23 + $0x18] sm:$0xf] }
  0x29   : > { %v523_v14 = vshrl.u32 %v476_v10, 16  ;;  %v526_v15 = vshll.u32 %v476_v10, 16  ;;  %v5448_v16 = vld [vmem:[%s8252_s3 + $0x4] sm:$0xf]  ;;  %v511_v17 = vrot.slane %v509_v7, 4  ;;  %v514_v18 = vrot.slane %v512_v8, 5 }
  0x2a   : > { %v497_v12 = vrot.slane %v495_v5, 4  ;;  %v500_v13 = vrot.slane %v498_v6, 5  ;;  %6112 = vmatprep.mubr.msk.bf16.mxu1 %vm620_vm1, %v5457_v9  ;;  %v537_v19 = vshrl.u32 %v477_v11, 16  ;;  %v540_v20 = vshll.u32 %v477_v11, 16  ;;  %6380 = vmatprep.subr.msk.bf16.mxu0 %vm633_vm0, %v5448_v16  ;;  %v6672_v21 = vld [vmem:[%s6619_s23 + $0x4] sm:$0x1] }
  0x2b   : > { %v525_v22 = vrot.slane %v523_v14, 4  ;;  %v528_v23 = vrot.slane %v526_v15, 5  ;;  %v5458_v24 = vcombine.low %v476_v10, %v477_v11  ;;  %v635_v25 = vsel %vm633_vm0, %v5448_v16, 0  ;;  %v6676_v26 = vld [vmem:[%s6619_s23 + $0xc] sm:$0x1] }
  0x2c   : > { %v539_v27 = vrot.slane %v537_v19, 4  ;;  %v542_v28 = vrot.slane %v540_v20, 5  ;;  %6101 = vmatpush3.bf16.msra.mxu0 %v635_v25  ;;  %vm491_vm2 = vsmask.f32 3328  ;;  %vm492_vm3 = vsmask.f32 7440 }
  0x2d   : > { %6113 = vmatmul.mubr.msk.bf16.vlgmr.msra.gmra.mxu1 %vm620_vm1, %v5458_v24  ;;  %v501_v29 = vor.u32 %v500_v13, %v497_v12  ;;  %v504_v30 = vshll.u32 %v6672_v21, 16  ;;  %v515_v31 = vor.u32 %v514_v18, %v511_v17  ;;  %v518_v32 = vshll.u32 %v6676_v26, 16  ;;  %v478_v33 = vld [vmem:[%s6619_s23 + $0x20] sm:$0xf]  ;;  %v479_v34 = vld [vmem:[%s6619_s23 + $0x28] sm:$0xf]  ;;  %vm6683_vm4 = vmor %vm491_vm2, %vm492_vm3 }
  0x2e   : > { %v831_v36 = vrot.slane %v6672_v21, 5  ;;  %v835_v37 = vrot.slane %v6676_v26, 5  ;;  %v551_v38 = vshrl.u32 %v478_v33, 16  ;;  %v554_v39 = vshll.u32 %v478_v33, 16  ;;  %v5473_v40 = vld [vmem:[%s8252_s3 + $0x8] sm:$0xf] }
  0x2f   : > { %v502_v41 = vrot.slane %v501_v29, 4  ;;  %v506_v42 = vrot.slane %v504_v30, 5  ;;  %v516_v43 = vrot.slane %v515_v31, 4  ;;  %v520_v44 = vrot.slane %v518_v32, 5  ;;  %6382 = vmatprep.subr.msk.bf16.mxu0 %vm633_vm0, %v5473_v40  ;;  %v6694_v45 = vld [vmem:[%s6619_s23 + $0x14] sm:$0x1] }
  0x30   : > { %v553_v46 = vrot.slane %v551_v38, 4  ;;  %v556_v47 = vrot.slane %v554_v39, 5  ;;  %v565_v48 = vshrl.u32 %v479_v34, 16  ;;  %v568_v49 = vshll.u32 %v479_v34, 16  ;;  %v6697_v50 = vld [vmem:[%s6619_s23 + $0x1c] sm:$0x1] }
  0x31   : > { %v507_v51 = vsel %vm6683_vm4, %v502_v41, %v506_v42  ;;  %v521_v52 = vsel %vm6683_vm4, %v516_v43, %v520_v44  ;;  %v5459_v53 = vcombine.low %v478_v33, %v479_v34  ;;  %v529_v54 = vor.u32 %v528_v23, %v525_v22  ;;  %v480_v55 = vld [vmem:[%s6619_s23 + $0x30] sm:$0xf]  ;;  %v5490_v56 = vld [vmem:[%s8252_s3 + $0xc] sm:$0xf]  ;;  %v481_v61 = vld [vmem:[%s6619_s23 + $0x38] sm:$0xf] }
  0x32   : > { %v5449_v57 = vcombine.low %v507_v51, %v521_v52  ;;  %v567_v58 = vrot.slane %v565_v48, 4  ;;  %v570_v59 = vrot.slane %v568_v49, 5  ;;  %v532_v60 = vshll.u32 %v6694_v45, 16  ;;  %6383 = vmatprep.subr.msk.bf16.mxu1 %vm633_vm0, %v5490_v56  ;;  %v6714_v2 = vld [vmem:[%s6619_s23 + $0x24] sm:$0x1] }
  0x33   : > { %6116 = vmatprep.mubr.msk.bf16.mxu1 %vm620_vm1, %v5459_v53  ;;  %v530_v62 = vrot.slane %v529_v54, 4  ;;  %v543_v63 = vor.u32 %v542_v28, %v539_v27  ;;  %v546_v0 = vshll.u32 %v6697_v50, 16  ;;  %v839_v1 = vrot.slane %v6694_v45, 5  ;;  %v6719_v7 = vld [vmem:[%s6619_s23 + $0x2c] sm:$0x1] }
  0x34   : > { %6102 = vmatprep.mubr.msk.bf16.mxu0 %vm620_vm1, %v5449_v57  ;;  %v534_v3 = vrot.slane %v532_v60, 5  ;;  %v843_v4 = vrot.slane %v6697_v50, 5  ;;  %v579_v5 = vshrl.u32 %v480_v55, 16  ;;  %v582_v6 = vshll.u32 %v480_v55, 16  ;;  %v6457_v16 = vld [vmem:[%s6619_s23 + $0x8] ss:$8 sps:$4 sm:$0xff]  }
  0x35   : > { %v544_v8 = vrot.slane %v543_v63, 4  ;;  %v548_v9 = vrot.slane %v546_v0, 5  ;;  %v593_v10 = vshrl.u32 %v481_v61, 16  ;;  %v596_v11 = vshll.u32 %v481_v61, 16  ;;  %v6725_v17 = vld [vmem:[%s6619_s23 + $0x34] sm:$0x1] }
  0x36   : > { %v535_v12 = vsel %vm6683_vm4, %v530_v62, %v534_v3  ;;  %v581_v13 = vrot.slane %v579_v5, 4  ;;  %v584_v14 = vrot.slane %v582_v6, 5  ;;  %v5460_v15 = vcombine.low %v480_v55, %v481_v61  ;;  %v6731_v23 = vld [vmem:[%s6619_s23 + $0x3c] sm:$0x1]  ;;  %v802_v33 = vld [vmem:[%s6619_s23] sm:$0xe] }
  0x37   : > { %v549_v18 = vsel %vm6683_vm4, %v544_v8, %v548_v9  ;;  %v595_v19 = vrot.slane %v593_v10, 4  ;;  %v598_v20 = vrot.slane %v596_v11, 5  ;;  %v888_v22 = vsel %vm633_vm0, %v5473_v40, 0  ;;  %v6458_v41 = vld [vmem:[%s6619_s23 + $0x18] ss:$8 sps:$4 sm:$0xff]  }
  0x38   : > { %v5450_v24 = vcombine.low %v535_v12, %v549_v18  ;;  %6117 = vmatmul.mubr.msk.bf16.gmra.mxu1 %vm620_vm1, %v5460_v15  ;;  %v1007_v25 = vsel %vm633_vm0, %v5490_v56, 0  ;;  %v557_v27 = vor.u32 %v556_v47, %v553_v46  ;;  %v560_v28 = vshll.u32 %v6714_v2, 16  ;;  %v803_v42 = vld [vmem:[%s6619_s23 + $0x8] sm:$0xe]  ;;  %v804_v61 = vld [vmem:[%s6619_s23 + $0x10] sm:$0xe] }
  0x39   : > { %6131 = vmatpush3.bf16.msra.mxu1 %v1007_v25  ;;  %v571_v29 = vor.u32 %v570_v59, %v567_v58  ;;  %v574_v30 = vshll.u32 %v6719_v7, 16  ;;  %6132 = vmatprep.mubr.msk.bf16.mxu1 %vm620_vm1, %v6457_v16  ;;  %v585_v31 = vor.u32 %v584_v14, %v581_v13  ;;  %v588_v32 = vshll.u32 %v6725_v17, 16  ;;  %v6459_v57 = vld [vmem:[%s6619_s23 + $0x28] ss:$8 sps:$4 sm:$0xff]   ;;  %v805_v62 = vld [vmem:[%s6619_s23 + $0x18] sm:$0xe] }
  0x3a   : > { %6103 = vmatmul.mubr.msk.bf16.vlgmr.msra.gmra.mxu0 %vm620_vm1, %v5450_v24  ;;  %v558_v34 = vrot.slane %v557_v27, 4  ;;  %v562_v38 = vrot.slane %v560_v28, 5  ;;  %v599_v39 = vor.u32 %v598_v20, %v595_v19  ;;  %v602_v40 = vshll.u32 %v6731_v23, 16  ;;  %v5515_v58 = vld [vmem:[%s8252_s3 + $0x10] sm:$0xf] }
  0x3b   : > { %6121 = vmatpush3.bf16.msra.mxu0 %v888_v22  ;;  %v572_v43 = vrot.slane %v571_v29, 4  ;;  %v576_v44 = vrot.slane %v574_v30, 5  ;;  %v586_v46 = vrot.slane %v585_v31, 4  ;;  %v590_v47 = vrot.slane %v588_v32, 5  ;;  %v5540_v21 = vld [vmem:[%s8252_s3 + $0x14] sm:$0xf] }
  0x3c   : > { %v563_v48 = vsel %vm6683_vm4, %v558_v34, %v562_v38  ;;  %v600_v49 = vrot.slane %v599_v39, 4  ;;  %v604_v51 = vrot.slane %v602_v40, 5  ;;  %vm827_vm6 = vcmask 1046532   ;;  %6384 = vmatprep.subr.msk.bf16.mxu0 %vm633_vm0, %v5515_v58  ;;  %v806_v26 = vld [vmem:[%s6619_s23 + $0x20] sm:$0xe]  ;;  %6385 = vmatprep.subr.msk.bf16.mxu1 %vm633_vm0, %v5540_v21 }
  0x3d   : > { %v577_v52 = vsel %vm6683_vm4, %v572_v43, %v576_v44  ;;  %v591_v53 = vsel %vm6683_vm4, %v586_v46, %v590_v47  ;;  %vm6751_vm7 = vmor %vm826_vm5, %vm827_vm6  ;;  %v5465_v55 = vrot.slane %v802_v33, 9  ;;  %v5466_v56 = vrot.slane %v803_v42, 9  ;;  %v807_v10 = vld [vmem:[%s6619_s23 + $0x28] sm:$0xe]  ;;  %v6460_v13 = vld [vmem:[%s6619_s23 + $0x38] ss:$8 sps:$4 sm:$0xff]  }
  0x3e   : > { %v5451_v59 = vcombine.low %v563_v48, %v577_v52  ;;  %v605_v60 = vsel %vm6683_vm4, %v600_v49, %v604_v51  ;;  %v5467_v5 = vrot.slane %v804_v61, 9  ;;  %v5468_v8 = vrot.slane %v805_v62, 9  ;;  %v5500_v15 = vld [vmem:[%s6619_s23 + $0xc] sm:$0x1]  ;;  %v5502_v16 = vld [vmem:[%s6619_s23 + $0x14] sm:$0x1] }
  0x3f   : > { %v5452_v63 = vcombine.low %v591_v53, %v605_v60  ;;  %v832_v0 = vsel %vm6751_vm7, %v5465_v55, %v831_v36  ;;  %v836_v3 = vsel %vm6751_vm7, %v5466_v56, %v835_v37  ;;  %v6775_v9 = vsel %vm633_vm0, %v5515_v58, 0  ;;  %v5524_v18 = vld [vmem:[%s6619_s23 + $0x8] sm:$0xe]  ;;  %v5525_v50 = vld [vmem:[%s6619_s23 + $0x10] sm:$0xe] }
  0x40   : > { %6106 = vmatprep.mubr.msk.bf16.mxu0 %vm620_vm1, %v5451_v59  ;;  %6133 = vmatmul.mubr.msk.bf16.vlgmr.msra.gmra.mxu1 %vm620_vm1, %v6458_v41  ;;  %v5474_v6 = vcombine.low %v832_v0, %v836_v3  ;;  %v840_v36 = vsel %vm6751_vm7, %v5467_v5, %v839_v1  ;;  %v1395_v37 = vsel %vm633_vm0, %v5540_v21, 0  ;;  %v5469_v11 = vrot.slane %v806_v26, 9  ;;  %v808_v25 = vld [vmem:[%s6619_s23 + $0x30] sm:$0xe]  ;;  %v809_v27 = vld [vmem:[%s6619_s23 + $0x38] sm:$0xe] }
  0x41   : > { %6136 = vmatprep.mubr.msk.bf16.mxu1 %vm620_vm1, %v6459_v57  ;;  %v847_v12 = vrot.slane %v6714_v2, 5  ;;  %v844_v45 = vsel %vm6751_vm7, %v5468_v8, %v843_v4  ;;  %6151 = vmatpush3.bf16.msra.mxu1 %v1395_v37  ;;  %v5470_v1 = vrot.slane %v807_v10, 9  ;;  %v851_v14 = vrot.slane %v6719_v7, 5  ;;  %v5504_v32 = vld [vmem:[%s6619_s23 + $0x1c] sm:$0x1] }
  0x42   : > { %6107 = vmatmul.mubr.msk.bf16.gmra.mxu0 %vm620_vm1, %v5452_v63  ;;  %v1338_v19 = vrot.slane %v5500_v15, 5  ;;  %v1342_v4 = vrot.slane %v5502_v16, 5  ;;  %v5475_v20 = vcombine.low %v840_v36, %v844_v45  ;;  %v5532_v24 = vrot.slane %v5524_v18, 9  ;;  %v6816_v39 = vld [vmem:[%s6619_s23 + $0x24] sm:$0x1] }
  0x43   : > { %6122 = vmatprep.mubr.msk.bf16.mxu0 %vm620_vm1, %v5474_v6  ;;  %v848_v2 = vsel %vm6751_vm7, %v5469_v11, %v847_v12  ;;  %v852_v22 = vsel %vm6751_vm7, %v5470_v1, %v851_v14  ;;  %v5533_v7 = vrot.slane %v5525_v50, 9  ;;  %v5471_v29 = vrot.slane %v808_v25, 9  ;;  %v5526_v40 = vld [vmem:[%s6619_s23 + $0x18] sm:$0xe]  ;;  %v5499_v47 = vld [vmem:[%s6619_s23 + $0x8] sm:$0xf] }
  0x44   : > { %v5476_v28 = vcombine.low %v848_v2, %v852_v22  ;;  %v855_v30 = vrot.slane %v6725_v17, 5  ;;  %v5472_v31 = vrot.slane %v809_v27, 9  ;;  %v1339_v33 = vsel %vm6751_vm7, %v5532_v24, %v1338_v19  ;;  %v5527_v17 = vld [vmem:[%s6619_s23 + $0x20] sm:$0xe]  ;;  %v5501_v49 = vld [vmem:[%s6619_s23 + $0x10] sm:$0xf] }
  0x45   : > { %v1343_v34 = vsel %vm6751_vm7, %v5533_v7, %v1342_v4  ;;  %v859_v38 = vrot.slane %v6731_v23, 5  ;;  %v1346_v41 = vrot.slane %v5504_v32, 5  ;;  %v5534_v44 = vrot.slane %v5526_v40, 9  ;;  %v6835_v58 = vld [vmem:[%s6619_s23 + $0x2c] sm:$0x1] }
  0x46   : > { %v5541_v42 = vcombine.low %v1339_v33, %v1343_v34  ;;  %v6821_v43 = vsel %vm6751_vm7, %v5471_v29, %v855_v30  ;;  %v1350_v46 = vrot.slane %v6816_v39, 5  ;;  %v5535_v48 = vrot.slane %v5527_v17, 9  ;;  %v6838_v59 = vld [vmem:[%s6619_s23 + $0x34] sm:$0x1]  ;;  %v5528_v0 = vld [vmem:[%s6619_s23 + $0x28] sm:$0xe] }
  0x47   : > { %v860_v23 = vsel %vm6751_vm7, %v5472_v31, %v859_v38  ;;  %v1099_v51 = vshrl.u32 %v5499_v47, 16  ;;  %v1102_v52 = vshll.u32 %v5499_v47, 16  ;;  %v1347_v55 = vsel %vm6751_vm7, %v5534_v44, %v1346_v41  ;;  %v5529_v21 = vld [vmem:[%s6619_s23 + $0x30] sm:$0xe]  ;;  %v5557_v11 = vld [vmem:[%s8252_s3 + $0x18] sm:$0xf] }
  0x48   : > { %6137 = vmatmul.mubr.msk.bf16.gmra.mxu1 %vm620_vm1, %v6460_v13  ;;  %v5477_v53 = vcombine.low %v6821_v43, %v860_v23  ;;  %v1108_v56 = vshll.u32 %v5500_v15, 16  ;;  %v1113_v57 = vshrl.u32 %v5501_v49, 16  ;;  %v1351_v60 = vsel %vm6751_vm7, %v5535_v48, %v1350_v46  ;;  %v5503_v13 = vld [vmem:[%s6619_s23 + $0x18] sm:$0xf]  ;;  %v5505_v2 = vld [vmem:[%s6619_s23 + $0x20] sm:$0xf] }
  0x49   : > { %6152 = vmatprep.mubr.msk.bf16.mxu1 %vm620_vm1, %v5541_v42  ;;  %v1101_v61 = vrot.slane %v1099_v51, 4  ;;  %v1104_v62 = vrot.slane %v1102_v52, 5  ;;  %v1116_v63 = vshll.u32 %v5501_v49, 16  ;;  %v5542_v3 = vcombine.low %v1347_v55, %v1351_v60  ;;  %v6858_v50 = vld [vmem:[%s6619_s23 + $0x3c] sm:$0x1] }
  0x4a   : > { %6123 = vmatmul.mubr.msk.bf16.vlgmr.msra.gmra.mxu0 %vm620_vm1, %v5475_v20  ;;  %v1110_v5 = vrot.slane %v1108_v56, 5  ;;  %v1115_v6 = vrot.slane %v1113_v57, 4  ;;  %v1122_v8 = vshll.u32 %v5502_v16, 16  ;;  %v5536_v37 = vrot.slane %v5528_v0, 9  ;;  %v6863_v24 = vld [vmem:[%s6619_s23 + $0x44] sm:$0x1] }
  0x4b   : > { %6141 = vmatpush3.bf16.msra.mxu0 %v6775_v9  ;;  %6126 = vmatprep.mubr.msk.bf16.mxu0 %vm620_vm1, %v5476_v28  ;;  %v1105_v26 = vor.u32 %v1104_v62, %v1101_v61  ;;  %v1118_v36 = vrot.slane %v1116_v63, 5  ;;  %v1354_v10 = vrot.slane %v6835_v58, 5  ;;  %v5537_v12 = vrot.slane %v5529_v21, 9  ;;  %v5530_v29 = vld [vmem:[%s6619_s23 + $0x38] sm:$0xe] }
  0x4c   : > { %v1124_v9 = vrot.slane %v1122_v8, 5  ;;  %v1358_v45 = vrot.slane %v6838_v59, 5  ;;  %6386 = vmatprep.subr.msk.bf16.mxu0 %vm633_vm0, %v5557_v11  ;;  %v1136_v1 = vshll.u32 %v5504_v32, 16  ;;  %v1127_v18 = vshrl.u32 %v5503_v13, 16  ;;  %v5531_v30 = vld [vmem:[%s6619_s23 + $0x40] sm:$0xe] }
  0x4d   : > { %v1106_v14 = vrot.slane %v1105_v26, 4  ;;  %v1119_v15 = vor.u32 %v1118_v36, %v1115_v6  ;;  %v1355_v16 = vsel %vm6751_vm7, %v5536_v37, %v1354_v10  ;;  %v1130_v4 = vshll.u32 %v5503_v13, 16  ;;  %v5582_v38 = vld [vmem:[%s8252_s3 + $0x1c] sm:$0xf]  ;;  %v5507_v17 = vld [vmem:[%s6619_s23 + $0x28] sm:$0xf] }
  0x4e   : > { %v1359_v19 = vsel %vm6751_vm7, %v5537_v12, %v1358_v45  ;;  %v1138_v20 = vrot.slane %v1136_v1, 5  ;;  %v1141_v22 = vshrl.u32 %v5505_v2, 16  ;;  %v1129_v28 = vrot.slane %v1127_v18, 4  ;;  %6387 = vmatprep.subr.msk.bf16.mxu1 %vm633_vm0, %v5582_v38  ;;  %v5509_v23 = vld [vmem:[%s6619_s23 + $0x30] sm:$0xf] }
  0x4f   : > { %v1111_v7 = vsel %vm6683_vm4, %v1106_v14, %v1110_v5  ;;  %v1120_v25 = vrot.slane %v1119_v15, 4  ;;  %v5543_v27 = vcombine.low %v1355_v16, %v1359_v19  ;;  %v1132_v31 = vrot.slane %v1130_v4, 5  ;;  %v5566_v0 = vld [vmem:[%s6619_s23 + $0x10] sm:$0xf]  ;;  %v6895_v21 = vld [vmem:[%s6619_s23 + $0x14] sm:$0x1] }
  0x50   : > { %6153 = vmatmul.mubr.msk.bf16.vlgmr.msra.gmra.mxu1 %vm620_vm1, %v5542_v3  ;;  %v1143_v32 = vrot.slane %v1141_v22, 4  ;;  %v1144_v33 = vshll.u32 %v5505_v2, 16  ;;  %v1150_v34 = vshll.u32 %v6816_v39, 16  ;;  %v5538_v41 = vrot.slane %v5530_v29, 9  ;;  %v6903_v15 = vld [vmem:[%s6619_s23 + $0x1c] sm:$0x1] }
  0x51   : > { %v1125_v40 = vsel %vm6683_vm4, %v1120_v25, %v1124_v9  ;;  %6156 = vmatprep.mubr.msk.bf16.mxu1 %vm620_vm1, %v5543_v27  ;;  %v1362_v42 = vrot.slane %v6858_v50, 5  ;;  %v5539_v43 = vrot.slane %v5531_v30, 9  ;;  %v1133_v46 = vor.u32 %v1132_v31, %v1129_v28  ;;  %v5511_v2 = vld [vmem:[%s6619_s23 + $0x38] sm:$0xf]  ;;  %v5513_v30 = vld [vmem:[%s6619_s23 + $0x40] sm:$0xf] }
  0x52   : > { %6127 = vmatmul.mubr.msk.bf16.gmra.mxu0 %vm620_vm1, %v5477_v53  ;;  %v5516_v44 = vcombine.low %v1111_v7, %v1125_v40  ;;  %v1146_v47 = vrot.slane %v1144_v33, 5  ;;  %v1152_v39 = vrot.slane %v1150_v34, 5  ;;  %v1366_v49 = vrot.slane %v6863_v24, 5  ;;  %v5570_v40 = vld [vmem:[%s6619_s23 + $0x20] sm:$0xf] }
  0x53   : > { %v1363_v48 = vsel %vm6751_vm7, %v5538_v41, %v1362_v42  ;;  %v1514_v51 = vsel %vm633_vm0, %v5557_v11, 0  ;;  %v1744_v52 = vsel %vm633_vm0, %v5582_v38, 0  ;;  %v1134_v53 = vrot.slane %v1133_v46, 4  ;;  %v5568_v11 = vld [vmem:[%s6619_s23 + $0x18] sm:$0xf] }
  0x54   : > { %6142 = vmatprep.mubr.msk.bf16.mxu0 %vm620_vm1, %v5516_v44  ;;  %v1147_v55 = vor.u32 %v1146_v47, %v1143_v32  ;;  %6171 = vmatpush3.bf16.msra.mxu1 %v1744_v52  ;;  %v1155_v56 = vshrl.u32 %v5507_v17, 16  ;;  %v1158_v57 = vshll.u32 %v5507_v17, 16  ;;  %v1367_v60 = vsel %vm6751_vm7, %v5539_v43, %v1366_v49  ;;  %v6916_v44 = vld [vmem:[%s6619_s23 + $0x24] sm:$0x1]  ;;  %v5935_v35 = vld [vmem:[%s6642_s29 + $0x40] sm:$0xe] }
  0x55   : > { %v1164_v61 = vshll.u32 %v6835_v58, 16  ;;  %v1169_v62 = vshrl.u32 %v5509_v23, 16  ;;  %v1172_v63 = vshll.u32 %v5509_v23, 16  ;;  %v1139_v3 = vsel %vm6683_vm4, %v1134_v53, %v1138_v20  ;;  %v6925_v53 = vld [vmem:[%s6619_s23 + $0x2c] sm:$0x1] }
  0x56   : > { %v1148_v5 = vrot.slane %v1147_v55, 4  ;;  %v5544_v6 = vcombine.low %v1363_v48, %v1367_v60  ;;  %v1157_v8 = vrot.slane %v1155_v56, 4  ;;  %v1160_v26 = vrot.slane %v1158_v57, 5  ;;  %v5572_v48 = vld [vmem:[%s6619_s23 + $0x28] sm:$0xf] }
  0x57   : > { %v1166_v36 = vrot.slane %v1164_v61, 5  ;;  %v1171_v37 = vrot.slane %v1169_v62, 4  ;;  %v1174_v10 = vrot.slane %v1172_v63, 5  ;;  %v1178_v9 = vshll.u32 %v6838_v59, 16  ;;  %v6930_v56 = vld [vmem:[%s8252_s3 + $0x20] sm:$0xf] }
  0x58   : > { %v1153_v58 = vsel %vm6683_vm4, %v1148_v5, %v1152_v39  ;;  %6157 = vmatmul.mubr.msk.bf16.gmra.mxu1 %vm620_vm1, %v5544_v6  ;;  %v1606_v12 = vshrl.u32 %v5566_v0, 16  ;;  %v1609_v45 = vshll.u32 %v5566_v0, 16  ;;  %v1161_v1 = vor.u32 %v1160_v26, %v1157_v8  ;;  %v5574_v26 = vld [vmem:[%s6619_s23 + $0x30] sm:$0xf] }
  0x59   : > { %v5517_v13 = vcombine.low %v1139_v3, %v1153_v58  ;;  %v1175_v14 = vor.u32 %v1174_v10, %v1171_v37  ;;  %v1615_v16 = vshll.u32 %v6895_v21, 16  ;;  %v1180_v18 = vrot.slane %v1178_v9, 5  ;;  %v6939_v58 = vld [vmem:[%s6619_s23 + $0x34] sm:$0x1]  ;;  %v5576_v9 = vld [vmem:[%s6619_s23 + $0x38] sm:$0xf] }
  0x5a   : > { %v1608_v19 = vrot.slane %v1606_v12, 4  ;;  %v1611_v4 = vrot.slane %v1609_v45, 5  ;;  %v1620_v20 = vshrl.u32 %v5568_v11, 16  ;;  %v1162_v22 = vrot.slane %v1161_v1, 4 }
  0x5b   : > { %6143 = vmatmul.mubr.msk.bf16.vlgmr.msra.gmra.mxu0 %vm620_vm1, %v5517_v13  ;;  %v1176_v59 = vrot.slane %v1175_v14, 4  ;;  %v1617_v7 = vrot.slane %v1615_v16, 5  ;;  %v1623_v25 = vshll.u32 %v5568_v11, 16  ;;  %v1629_v29 = vshll.u32 %v6903_v15, 16  ;;  %v6946_v14 = vld [vmem:[%s6619_s23 + $0x3c] sm:$0x1] }
  0x5c   : > { %6161 = vmatpush3.bf16.msra.mxu0 %v1514_v51  ;;  %v1612_v27 = vor.u32 %v1611_v4, %v1608_v19  ;;  %v1622_v28 = vrot.slane %v1620_v20, 4  ;;  %v1183_v31 = vshrl.u32 %v5511_v2, 16  ;;  %v1167_v32 = vsel %vm6683_vm4, %v1162_v22, %v1166_v36  ;;  %v6461_v19 = vld [vmem:[%s6619_s23 + $0x10] ss:$8 sps:$4 sm:$0xff]   ;;  %v5578_v20 = vld [vmem:[%s6619_s23 + $0x40] sm:$0xf] }
  0x5d   : > { %v1181_v33 = vsel %vm6683_vm4, %v1176_v59, %v1180_v18  ;;  %v1625_v34 = vrot.slane %v1623_v25, 5  ;;  %v1186_v38 = vshll.u32 %v5511_v2, 16  ;;  %v1631_v43 = vrot.slane %v1629_v29, 5  ;;  %6388 = vmatprep.subr.msk.bf16.mxu0 %vm633_vm0, %v6930_v56  ;;  %v6952_v22 = vld [vmem:[%s6619_s23 + $0x44] sm:$0x1] }
  0x5e   : > { %v5518_v41 = vcombine.low %v1167_v32, %v1181_v33  ;;  %v1613_v42 = vrot.slane %v1612_v27, 4  ;;  %v1185_v17 = vrot.slane %v1183_v31, 4  ;;  %v1192_v39 = vshll.u32 %v6858_v50, 16 }
  0x5f   : > { %v1626_v46 = vor.u32 %v1625_v34, %v1622_v28  ;;  %v1188_v47 = vrot.slane %v1186_v38, 5  ;;  %v1197_v23 = vshrl.u32 %v5513_v30, 16  ;;  %v1200_v51 = vshll.u32 %v5513_v30, 16  ;;  %v5616_v28 = vld [vmem:[%s8252_s3 + $0x24] sm:$0xf] }
  0x60   : > { %6146 = vmatprep.mubr.msk.bf16.mxu0 %vm620_vm1, %v5518_v41  ;;  %v1618_v49 = vsel %vm6683_vm4, %v1613_v42, %v1617_v7  ;;  %v1206_v52 = vshll.u32 %v6863_v24, 16  ;;  %v1634_v55 = vshrl.u32 %v5570_v40, 16  ;;  %v1194_v60 = vrot.slane %v1192_v39, 5  ;;  %6389 = vmatprep.subr.msk.bf16.mxu1 %vm633_vm0, %v5616_v28  ;;  %v5580_v41 = vld [vmem:[%s6619_s23 + $0x48] sm:$0xf] }
  0x61   : > { %v1627_v50 = vrot.slane %v1626_v46, 4  ;;  %v1189_v57 = vor.u32 %v1188_v47, %v1185_v17  ;;  %v1199_v61 = vrot.slane %v1197_v23, 4  ;;  %v1202_v62 = vrot.slane %v1200_v51, 5 }
  0x62   : > { %v1208_v24 = vrot.slane %v1206_v52, 5  ;;  %v1636_v63 = vrot.slane %v1634_v55, 4  ;;  %v1637_v0 = vshll.u32 %v5570_v40, 16  ;;  %v1643_v6 = vshll.u32 %v6916_v44, 16  ;;  %v6971_v52 = vld [vmem:[%s6619_s23 + $0x4c] sm:$0x1] }
  0x63   : > { %v1632_v3 = vsel %vm6683_vm4, %v1627_v50, %v1631_v43  ;;  %v1190_v5 = vrot.slane %v1189_v57, 4  ;;  %v1648_v8 = vshrl.u32 %v5572_v48, 16  ;;  %v1203_v37 = vor.u32 %v1202_v62, %v1199_v61 }
  0x64   : > { %v5583_v36 = vcombine.low %v1618_v49, %v1632_v3  ;;  %v1639_v10 = vrot.slane %v1637_v0, 5  ;;  %v1651_v11 = vshll.u32 %v5572_v48, 16  ;;  %v1645_v45 = vrot.slane %v1643_v6, 5 }
  0x65   : > { %v1195_v12 = vsel %vm6683_vm4, %v1190_v5, %v1194_v60  ;;  %v1650_v13 = vrot.slane %v1648_v8, 4  ;;  %v1657_v1 = vshll.u32 %v6925_v53, 16  ;;  %v1204_v16 = vrot.slane %v1203_v37, 4  ;;  %v6462_v60 = vld [vmem:[%s6619_s23 + $0x20] ss:$8 sps:$4 sm:$0xff]  }
  0x66   : > { %6172 = vmatprep.mubr.msk.bf16.mxu1 %vm620_vm1, %v5583_v36  ;;  %v1640_v2 = vor.u32 %v1639_v10, %v1636_v63  ;;  %v1653_v18 = vrot.slane %v1651_v11, 5  ;;  %v1662_v4 = vshrl.u32 %v5574_v26, 16  ;;  %v1665_v7 = vshll.u32 %v5574_v26, 16  ;;  %v6463_v36 = vld [vmem:[%s6619_s23 + $0x30] ss:$8 sps:$4 sm:$0xff]  }
  0x67   : > { %v1659_v59 = vrot.slane %v1657_v1, 5  ;;  %v1671_v25 = vshll.u32 %v6939_v58, 16  ;;  %v1676_v27 = vshrl.u32 %v5576_v9, 16  ;;  %v1209_v29 = vsel %vm6683_vm4, %v1204_v16, %v1208_v24  ;;  %v5591_v1 = vld [vmem:[%s6619_s23 + $0x10] sm:$0xe] }
  0x68   : > { %v1641_v30 = vrot.slane %v1640_v2, 4  ;;  %v1654_v31 = vor.u32 %v1653_v18, %v1650_v13  ;;  %v1664_v32 = vrot.slane %v1662_v4, 4  ;;  %v5519_v33 = vcombine.low %v1195_v12, %v1209_v29  ;;  %v5592_v18 = vld [vmem:[%s6619_s23 + $0x18] sm:$0xe] }
  0x69   : > { %v1667_v34 = vrot.slane %v1665_v7, 5  ;;  %v1673_v38 = vrot.slane %v1671_v25, 5  ;;  %v1678_v40 = vrot.slane %v1676_v27, 4  ;;  %v1679_v17 = vshll.u32 %v5576_v9, 16  ;;  %v6464_v25 = vld [vmem:[%s6629_s16] ss:$8 sps:$4 sm:$0xff]  }
  0x6a   : > { %v1646_v42 = vsel %vm6683_vm4, %v1641_v30, %v1645_v45  ;;  %v1655_v43 = vrot.slane %v1654_v31, 4  ;;  %v1685_v46 = vshll.u32 %v6946_v14, 16  ;;  %6147 = vmatmul.mubr.msk.bf16.gmra.mxu0 %vm620_vm1, %v5519_v33  ;;  %v1690_v39 = vshrl.u32 %v5578_v20, 16  ;;  %v5594_v31 = vld [vmem:[%s6619_s23 + $0x28] sm:$0xe] }
  0x6b   : > { %v1668_v47 = vor.u32 %v1667_v34, %v1664_v32  ;;  %v1693_v23 = vshll.u32 %v5578_v20, 16  ;;  %v1699_v48 = vshll.u32 %v6952_v22, 16  ;;  %6162 = vmatprep.mubr.msk.bf16.mxu0 %vm620_vm1, %v6461_v19  ;;  %v1681_v51 = vrot.slane %v1679_v17, 5  ;;  %v5595_v17 = vld [vmem:[%s6619_s23 + $0x30] sm:$0xe] }
  0x6c   : > { %v1660_v49 = vsel %vm6683_vm4, %v1655_v43, %v1659_v59  ;;  %v1704_v55 = vshrl.u32 %v5580_v41, 16  ;;  %v1692_v61 = vrot.slane %v1690_v39, 4  ;;  %v1687_v63 = vrot.slane %v1685_v46, 5  ;;  %v5642_v43 = vld [vmem:[%s8252_s3 + $0x2c] sm:$0xf] }
  0x6d   : > { %v5584_v50 = vcombine.low %v1646_v42, %v1660_v49  ;;  %v1669_v57 = vrot.slane %v1668_v47, 4  ;;  %v1695_v62 = vrot.slane %v1693_v23, 5  ;;  %v1682_v24 = vor.u32 %v1681_v51, %v1678_v40  ;;  %v5596_v46 = vld [vmem:[%s6619_s23 + $0x38] sm:$0xe]  ;;  %v7032_v51 = vld [vmem:[%s6629_s16 + $0xc] sm:$0x1] }
  0x6e   : > { %v1706_v0 = vrot.slane %v1704_v55, 4  ;;  %v1707_v3 = vshll.u32 %v5580_v41, 16  ;;  %v1701_v8 = vrot.slane %v1699_v48, 5  ;;  %v1713_v26 = vshll.u32 %v6971_v52, 16  ;;  %v2096_v48 = vld [vmem:[%s6629_s16 + $0x4] sm:$0x1] }
  0x6f   : > { %6173 = vmatmul.mubr.msk.bf16.vlgmr.msra.gmra.mxu1 %vm620_vm1, %v5584_v50  ;;  %v1674_v5 = vsel %vm6683_vm4, %v1669_v57, %v1673_v38  ;;  %v1696_v6 = vor.u32 %v1695_v62, %v1692_v61  ;;  %v1683_v37 = vrot.slane %v1682_v24, 4  ;;  %v2020_v11 = vsel %vm633_vm0, %v5616_v28, 0  ;;  %v5593_v28 = vld [vmem:[%s6619_s23 + $0x20] sm:$0xe]  ;;  %v2326_v61 = vld [vmem:[%s6629_s16 + $0x8] sm:$0xe] }
  0x70   : > { %v1709_v10 = vrot.slane %v1707_v3, 5  ;;  %v1845_v9 = vrot.slane %v6895_v21, 5  ;;  %v1715_v45 = vrot.slane %v1713_v26, 5  ;;  %v1902_v13 = vsel %vm633_vm0, %v6930_v56, 0  ;;  %6191 = vmatpush3.bf16.msra.mxu1 %v2020_v11  ;;  %v2325_v55 = vld [vmem:[%s6629_s16] sm:$0xe] }
  0x71   : > { %v1697_v12 = vrot.slane %v1696_v6, 4  ;;  %v1688_v16 = vsel %vm6683_vm4, %v1683_v37, %v1687_v63  ;;  %v5599_v19 = vrot.slane %v5591_v1, 9  ;;  %v1849_v4 = vrot.slane %v6903_v15, 5  ;;  %v5625_v15 = vld [vmem:[%s8252_s3 + $0x28] sm:$0xf]  ;;  %6391 = vmatprep.subr.msk.bf16.mxu1 %vm633_vm0, %v5642_v43 }
  0x72   : > { %v1710_v2 = vor.u32 %v1709_v10, %v1706_v0  ;;  %v5585_v20 = vcombine.low %v1674_v5, %v1688_v16  ;;  %6163 = vmatmul.mubr.msk.bf16.vlgmr.msra.gmra.mxu0 %vm620_vm1, %v6462_v60  ;;  %v5600_v21 = vrot.slane %v5592_v18, 9  ;;  %v1853_v56 = vrot.slane %v6916_v44, 5  ;;  %v6465_v44 = vld [vmem:[%s6619_s23 + $0x40] ss:$8 sps:$4 sm:$0xff]   ;;  %v6466_v63 = vld [vmem:[%s6629_s16 + $0x10] ss:$8 sps:$4 sm:$0xff]  }
  0x73   : > { %v1702_v59 = vsel %vm6683_vm4, %v1697_v12, %v1701_v8  ;;  %6181 = vmatpush3.bf16.msra.mxu0 %v1902_v13  ;;  %6166 = vmatprep.mubr.msk.bf16.mxu0 %vm620_vm1, %v6463_v36  ;;  %v1846_v27 = vsel %vm6751_vm7, %v5599_v19, %v1845_v9  ;;  %v1857_v29 = vrot.slane %v6925_v53, 5  ;;  %v5601_v32 = vrot.slane %v5593_v28, 9  ;;  %v5598_v5 = vld [vmem:[%s6619_s23 + $0x48] sm:$0xe]  ;;  %v7060_v9 = vld [vmem:[%s6629_s16 + $0x14] sm:$0x1] }
  0x74   : > { %v1711_v7 = vrot.slane %v1710_v2, 4  ;;  %6176 = vmatprep.mubr.msk.bf16.mxu1 %vm620_vm1, %v5585_v20  ;;  %v1850_v30 = vsel %vm6751_vm7, %v5600_v21, %v1849_v4  ;;  %6390 = vmatprep.subr.msk.bf16.mxu0 %vm633_vm0, %v5625_v15  ;;  %v5602_v34 = vrot.slane %v5594_v31, 9  ;;  %v7010_v38 = vsel %vm633_vm0, %v5625_v15, 0  ;;  %v6467_v26 = vld [vmem:[%s6629_s16 + $0x20] ss:$8 sps:$4 sm:$0xff]  }
  0x75   : > { %v1861_v53 = vrot.slane %v6939_v58, 5  ;;  %v5608_v41 = vcombine.low %v1846_v27, %v1850_v30  ;;  %v7015_v42 = vsel %vm6751_vm7, %v5601_v32, %v1853_v56  ;;  %v2408_v58 = vsel %vm633_vm0, %v5642_v43, 0  ;;  %v7063_v12 = vld [vmem:[%s6629_s16 + $0x1c] sm:$0x1]  ;;  %v2327_v13 = vld [vmem:[%s6629_s16 + $0x10] sm:$0xe] }
  0x76   : > { %v1716_v33 = vsel %vm6683_vm4, %v1711_v7, %v1715_v45  ;;  %v7024_v47 = vsel %vm6751_vm7, %v5602_v34, %v1857_v29  ;;  %v5603_v39 = vrot.slane %v5595_v17, 9  ;;  %v5604_v23 = vrot.slane %v5596_v46, 9  ;;  %v2328_v1 = vld [vmem:[%s6629_s16 + $0x18] sm:$0xe]  ;;  %v2095_v20 = vld [vmem:[%s6629_s16] sm:$0xf] }
  0x77   : > { %v5586_v40 = vcombine.low %v1702_v59, %v1716_v33  ;;  %v1865_v49 = vrot.slane %v6946_v14, 5  ;;  %v2351_v50 = vrot.slane %v2096_v48, 5  ;;  %v5609_v57 = vcombine.low %v7015_v42, %v7024_v47  ;;  %v5597_v14 = vld [vmem:[%s6619_s23 + $0x40] sm:$0xe]  ;;  %v2097_v21 = vld [vmem:[%s6629_s16 + $0x8] sm:$0xf] }
  0x78   : > { %v7040_v60 = vsel %vm6751_vm7, %v5603_v39, %v1861_v53  ;;  %v5634_v62 = vrot.slane %v2325_v55, 9  ;;  %v2355_v24 = vrot.slane %v7032_v51, 5  ;;  %v5635_v3 = vrot.slane %v2326_v61, 9  ;;  %v7088_v27 = vld [vmem:[%s6629_s16 + $0x24] sm:$0x1] }
  0x79   : > { %6177 = vmatmul.mubr.msk.bf16.gmra.mxu1 %vm620_vm1, %v5586_v40  ;;  %v1866_v0 = vsel %vm6751_vm7, %v5604_v23, %v1865_v49  ;;  %v5605_v6 = vrot.slane %v5597_v14, 9  ;;  %v1869_v8 = vrot.slane %v6952_v22, 5  ;;  %v5606_v10 = vrot.slane %v5598_v5, 9  ;;  %v7099_v30 = vld [vmem:[%s6629_s16 + $0x2c] sm:$0x1] }
  0x7a   : > { %6192 = vmatprep.mubr.msk.bf16.mxu1 %vm620_vm1, %v6464_v25  ;;  %6167 = vmatmul.mubr.msk.bf16.gmra.mxu0 %vm620_vm1, %v6465_v44  ;;  %v5610_v36 = vcombine.low %v7040_v60, %v1866_v0  ;;  %v7056_v37 = vsel %vm6751_vm7, %v5634_v62, %v2351_v50  ;;  %v1873_v11 = vrot.slane %v6971_v52, 5  ;;  %v7067_v22 = vsel %vm6751_vm7, %v5635_v3, %v2355_v24  ;;  %v2329_v31 = vld [vmem:[%s6629_s16 + $0x20] sm:$0xe]  ;;  %v2330_v40 = vld [vmem:[%s6629_s16 + $0x28] sm:$0xe] }
  0x7b   : > { %6182 = vmatprep.mubr.msk.bf16.mxu0 %vm620_vm1, %v5608_v41  ;;  %v7071_v45 = vsel %vm6751_vm7, %v5605_v6, %v1869_v8  ;;  %v2359_v16 = vrot.slane %v7060_v9, 5  ;;  %v2363_v2 = vrot.slane %v7063_v12, 5  ;;  %v5643_v52 = vcombine.low %v7056_v37, %v7067_v22  ;;  %v5659_v46 = vld [vmem:[%s8252_s3 + $0x30] sm:$0xf]  ;;  %v2101_v50 = vld [vmem:[%s6629_s16 + $0x18] sm:$0xf] }
  0x7c   : > { %v7081_v18 = vsel %vm6751_vm7, %v5606_v10, %v1873_v11  ;;  %v5636_v19 = vrot.slane %v2327_v13, 9  ;;  %v5637_v4 = vrot.slane %v2328_v1, 9  ;;  %v2112_v59 = vshrl.u32 %v2095_v20, 16  ;;  %v6468_v47 = vld [vmem:[%s6629_s16 + $0x30] ss:$8 sps:$4 sm:$0xff]  }
  0x7d   : > { %v5611_v56 = vcombine.low %v7071_v45, %v7081_v18  ;;  %v2115_v7 = vshll.u32 %v2095_v20, 16  ;;  %v2121_v25 = vshll.u32 %v2096_v48, 16  ;;  %v2126_v29 = vshrl.u32 %v2097_v21, 16  ;;  %v2099_v49 = vld [vmem:[%s6629_s16 + $0x10] sm:$0xf] }
  0x7e   : > { %v7092_v15 = vsel %vm6751_vm7, %v5636_v19, %v2359_v16  ;;  %v7096_v28 = vsel %vm6751_vm7, %v5637_v4, %v2363_v2  ;;  %v2129_v44 = vshll.u32 %v2097_v21, 16  ;;  %v2114_v33 = vrot.slane %v2112_v59, 4  ;;  %v7130_v14 = vld [vmem:[%s6629_s16 + $0x34] sm:$0x1]  ;;  %v2331_v8 = vld [vmem:[%s6629_s16 + $0x30] sm:$0xe] }
  0x7f   : > { %v5644_v32 = vcombine.low %v7092_v15, %v7096_v28  ;;  %v2117_v34 = vrot.slane %v2115_v7, 5  ;;  %v2123_v53 = vrot.slane %v2121_v25, 5  ;;  %v2128_v41 = vrot.slane %v2126_v29, 4  ;;  %v2332_v13 = vld [vmem:[%s6629_s16 + $0x38] sm:$0xe] }
  0x80   : > { %v2131_v42 = vrot.slane %v2129_v44, 5  ;;  %v2135_v43 = vshll.u32 %v7032_v51, 16  ;;  %v5638_v17 = vrot.slane %v2329_v31, 9  ;;  %v2367_v23 = vrot.slane %v7088_v27, 5  ;;  %v5684_v19 = vld [vmem:[%s8252_s3 + $0x34] sm:$0xf] }
  0x81   : > { %6193 = vmatmul.mubr.msk.bf16.vlgmr.msra.gmra.mxu1 %vm620_vm1, %v6466_v63  ;;  %v2118_v39 = vor.u32 %v2117_v34, %v2114_v33  ;;  %v5639_v48 = vrot.slane %v2330_v40, 9  ;;  %v2140_v60 = vshrl.u32 %v2099_v49, 16  ;;  %v7133_v63 = vld [vmem:[%s6629_s16 + $0x3c] sm:$0x1]  ;;  %v2154_v10 = vshrl.u32 %v2101_v50, 16 }
  0x82   : > { %6196 = vmatprep.mubr.msk.bf16.mxu1 %vm620_vm1, %v6467_v26  ;;  %6211 = vmatpush3.bf16.msra.mxu1 %v2408_v58  ;;  %v2371_v58 = vrot.slane %v7099_v30, 5  ;;  %v2132_v51 = vor.u32 %v2131_v42, %v2128_v41  ;;  %v2137_v55 = vrot.slane %v2135_v43, 5  ;;  %v7121_v62 = vsel %vm6751_vm7, %v5638_v17, %v2367_v23  ;;  %v2103_v7 = vld [vmem:[%s6629_s16 + $0x20] sm:$0xf]  ;;  %v2105_v31 = vld [vmem:[%s6629_s16 + $0x28] sm:$0xf] }
  0x83   : > { %6183 = vmatmul.mubr.msk.bf16.vlgmr.msra.gmra.mxu0 %vm620_vm1, %v5609_v57  ;;  %v2143_v57 = vshll.u32 %v2099_v49, 16  ;;  %v2119_v61 = vrot.slane %v2118_v39, 4  ;;  %v2142_v5 = vrot.slane %v2140_v60, 4  ;;  %v2157_v11 = vshll.u32 %v2101_v50, 16  ;;  %6393 = vmatprep.subr.msk.bf16.mxu1 %vm633_vm0, %v5684_v19  ;;  %v7179_v17 = vld [vmem:[%s6629_s16 + $0xc] sm:$0x1] }
  0x84   : > { %6201 = vmatpush3.bf16.msra.mxu0 %v7010_v38  ;;  %6186 = vmatprep.mubr.msk.bf16.mxu0 %vm620_vm1, %v5610_v36  ;;  %v7125_v24 = vsel %vm6751_vm7, %v5639_v48, %v2371_v58  ;;  %v2149_v38 = vshll.u32 %v7060_v9, 16  ;;  %v2133_v0 = vrot.slane %v2132_v51, 4  ;;  %v2163_v16 = vshll.u32 %v7063_v12, 16  ;;  %v5670_v48 = vld [vmem:[%s6629_s16 + $0x10] sm:$0xf] }
  0x85   : > { %6392 = vmatprep.subr.msk.bf16.mxu0 %vm633_vm0, %v5659_v46  ;;  %v5645_v3 = vcombine.low %v7121_v62, %v7125_v24  ;;  %v2145_v6 = vrot.slane %v2143_v57, 5  ;;  %v2124_v26 = vsel %vm6683_vm4, %v2119_v61, %v2123_v53  ;;  %v5640_v2 = vrot.slane %v2331_v8, 9  ;;  %v5668_v53 = vld [vmem:[%s6629_s16 + $0x8] sm:$0xf] }
  0x86   : > { %v2151_v36 = vrot.slane %v2149_v38, 5  ;;  %v2138_v9 = vsel %vm6683_vm4, %v2133_v0, %v2137_v55  ;;  %v2156_v20 = vrot.slane %v2154_v10, 4  ;;  %v2159_v21 = vrot.slane %v2157_v11, 5  ;;  %v7186_v55 = vld [vmem:[%s6629_s16 + $0x14] sm:$0x1] }
  0x87   : > { %v2146_v1 = vor.u32 %v2145_v6, %v2142_v5  ;;  %v5626_v4 = vcombine.low %v2124_v26, %v2138_v9  ;;  %v2375_v59 = vrot.slane %v7130_v14, 5  ;;  %v2165_v25 = vrot.slane %v2163_v16, 5  ;;  %v2107_v38 = vld [vmem:[%s6629_s16 + $0x30] sm:$0xf]  ;;  %v2109_v11 = vld [vmem:[%s6629_s16 + $0x38] sm:$0xf] }
  0x88   : > { %v5641_v29 = vrot.slane %v2332_v13, 9  ;;  %v2379_v44 = vrot.slane %v7133_v63, 5  ;;  %v2160_v33 = vor.u32 %v2159_v21, %v2156_v20  ;;  %v2527_v37 = vsel %vm633_vm0, %v5659_v46, 0 }
  0x89   : > { %6197 = vmatmul.mubr.msk.bf16.gmra.mxu1 %vm620_vm1, %v6468_v47  ;;  %v2147_v12 = vrot.slane %v2146_v1, 4  ;;  %v7163_v34 = vsel %vm6751_vm7, %v5640_v2, %v2375_v59  ;;  %v2757_v22 = vsel %vm633_vm0, %v5684_v19, 0  ;;  %v2168_v18 = vshrl.u32 %v2103_v7, 16 }
  0x8a   : > { %6212 = vmatprep.mubr.msk.bf16.mxu1 %vm620_vm1, %v5643_v52  ;;  %v7172_v45 = vsel %vm6751_vm7, %v5641_v29, %v2379_v44  ;;  %v2161_v40 = vrot.slane %v2160_v33, 4  ;;  %v2177_v42 = vshll.u32 %v7088_v27, 16  ;;  %v2182_v43 = vshrl.u32 %v2105_v31, 16  ;;  %v7213_v33 = vld [vmem:[%s8252_s3 + $0x38] sm:$0xf] }
  0x8b   : > { %6187 = vmatmul.mubr.msk.bf16.gmra.mxu0 %vm620_vm1, %v5611_v56  ;;  %v2152_v52 = vsel %vm6683_vm4, %v2147_v12, %v2151_v36  ;;  %v2171_v56 = vshll.u32 %v2103_v7, 16  ;;  %v5646_v41 = vcombine.low %v7163_v34, %v7172_v45  ;;  %v2170_v46 = vrot.slane %v2168_v18, 4  ;;  %v5672_v7 = vld [vmem:[%s6629_s16 + $0x18] sm:$0xf]  ;;  %v7208_v12 = vld [vmem:[%s6629_s16 + $0x1c] sm:$0x1] }
  0x8c   : > { %6202 = vmatprep.mubr.msk.bf16.mxu0 %vm620_vm1, %v5626_v4  ;;  %v2185_v39 = vshll.u32 %v2105_v31, 16  ;;  %v2191_v23 = vshll.u32 %v7099_v30, 16  ;;  %v2166_v58 = vsel %vm6683_vm4, %v2161_v40, %v2165_v25  ;;  %v2179_v49 = vrot.slane %v2177_v42, 5  ;;  %v5674_v18 = vld [vmem:[%s6629_s16 + $0x20] sm:$0xf] }
  0x8d   : > { %v2173_v47 = vrot.slane %v2171_v56, 5  ;;  %v2184_v51 = vrot.slane %v2182_v43, 4  ;;  %v2619_v50 = vshrl.u32 %v5668_v53, 16  ;;  %v5627_v60 = vcombine.low %v2152_v52, %v2166_v58  ;;  %v7233_v58 = vld [vmem:[%s6629_s16 + $0x2c] sm:$0x1] }
  0x8e   : > { %v2187_v57 = vrot.slane %v2185_v39, 5  ;;  %v2193_v61 = vrot.slane %v2191_v23, 5  ;;  %v2622_v0 = vshll.u32 %v5668_v53, 16  ;;  %v2628_v5 = vshll.u32 %v7179_v17, 16 }
  0x8f   : > { %v2174_v27 = vor.u32 %v2173_v47, %v2170_v46  ;;  %v2621_v30 = vrot.slane %v2619_v50, 4  ;;  %v2633_v6 = vshrl.u32 %v5670_v48, 16  ;;  %v2636_v36 = vshll.u32 %v5670_v48, 16  ;;  %v5676_v46 = vld [vmem:[%s6629_s16 + $0x28] sm:$0xf] }
  0x90   : > { %v2188_v26 = vor.u32 %v2187_v57, %v2184_v51  ;;  %v2642_v10 = vshll.u32 %v7186_v55, 16  ;;  %v2624_v15 = vrot.slane %v2622_v0, 5  ;;  %v2630_v28 = vrot.slane %v2628_v5, 5  ;;  %v6469_v57 = vld [vmem:[%s6629_s16 + $0x8] ss:$8 sps:$4 sm:$0xff]  }
  0x91   : > { %6213 = vmatmul.mubr.msk.bf16.vlgmr.msra.gmra.mxu1 %vm620_vm1, %v5644_v32  ;;  %v2175_v8 = vrot.slane %v2174_v27, 4  ;;  %v2635_v32 = vrot.slane %v2633_v6, 4  ;;  %v2196_v13 = vshrl.u32 %v2107_v38, 16  ;;  %v2199_v2 = vshll.u32 %v2107_v38, 16  ;;  %v5680_v38 = vld [vmem:[%s6629_s16 + $0x38] sm:$0xf] }
  0x92   : > { %6216 = vmatprep.mubr.msk.bf16.mxu1 %vm620_vm1, %v5645_v3  ;;  %6231 = vmatpush3.bf16.msra.mxu1 %v2757_v22  ;;  %v2189_v24 = vrot.slane %v2188_v26, 4  ;;  %v2638_v3 = vrot.slane %v2636_v36, 5  ;;  %v2644_v9 = vrot.slane %v2642_v10, 5  ;;  %v2625_v1 = vor.u32 %v2624_v15, %v2621_v30 }
  0x93   : > { %6203 = vmatmul.mubr.msk.bf16.vlgmr.msra.gmra.mxu0 %vm620_vm1, %v5627_v60  ;;  %v2180_v62 = vsel %vm6683_vm4, %v2175_v8, %v2179_v49  ;;  %v2198_v16 = vrot.slane %v2196_v13, 4  ;;  %v2205_v19 = vshll.u32 %v7130_v14, 16  ;;  %v2210_v21 = vshrl.u32 %v2109_v11, 16  ;;  %v5678_v49 = vld [vmem:[%s6629_s16 + $0x30] sm:$0xf] }
  0x94   : > { %6221 = vmatpush3.bf16.msra.mxu0 %v2527_v37  ;;  %v2194_v4 = vsel %vm6683_vm4, %v2189_v24, %v2193_v61  ;;  %v2639_v20 = vor.u32 %v2638_v3, %v2635_v32  ;;  %v2213_v59 = vshll.u32 %v2109_v11, 16  ;;  %v2626_v29 = vrot.slane %v2625_v1, 4  ;;  %v7238_v61 = vld [vmem:[%s6629_s16 + $0x34] sm:$0x1]  ;;  %v5726_v8 = vld [vmem:[%s8252_s3 + $0x3c] sm:$0xf] }
  0x95   : > { %v5628_v25 = vcombine.low %v2180_v62, %v2194_v4  ;;  %v2201_v44 = vrot.slane %v2199_v2, 5  ;;  %v2207_v31 = vrot.slane %v2205_v19, 5  ;;  %v2212_v34 = vrot.slane %v2210_v21, 4  ;;  %6394 = vmatprep.subr.msk.bf16.mxu0 %vm633_vm0, %v7213_v33  ;;  %6395 = vmatprep.subr.msk.bf16.mxu1 %vm633_vm0, %v5726_v8  ;;  %v7253_v62 = vld [vmem:[%s6629_s16 + $0x3c] sm:$0x1] }
  0x96   : > { %v2640_v14 = vrot.slane %v2639_v20, 4  ;;  %v2215_v37 = vrot.slane %v2213_v59, 5  ;;  %v2219_v22 = vshll.u32 %v7133_v63, 16  ;;  %v2631_v52 = vsel %vm6683_vm4, %v2626_v29, %v2630_v28  ;;  %v5682_v24 = vld [vmem:[%s6629_s16 + $0x40] sm:$0xf] }
  0x97   : > { %6206 = vmatprep.mubr.msk.bf16.mxu0 %vm620_vm1, %v5628_v25  ;;  %v2202_v45 = vor.u32 %v2201_v44, %v2198_v16  ;;  %v2647_v56 = vshrl.u32 %v5672_v7, 16  ;;  %v2650_v53 = vshll.u32 %v5672_v7, 16  ;;  %v2656_v43 = vshll.u32 %v7208_v12, 16  ;;  %v7263_v29 = vld [vmem:[%s6629_s16 + $0x44] sm:$0x1] }
  0x98   : > { %v2645_v40 = vsel %vm6683_vm4, %v2640_v14, %v2644_v9  ;;  %v2216_v63 = vor.u32 %v2215_v37, %v2212_v34  ;;  %v2221_v42 = vrot.slane %v2219_v22, 5  ;;  %v2661_v60 = vshrl.u32 %v5674_v18, 16  ;;  %v6470_v14 = vld [vmem:[%s6629_s16 + $0x18] ss:$8 sps:$4 sm:$0xff]  }
  0x99   : > { %6217 = vmatmul.mubr.msk.bf16.gmra.mxu1 %vm620_vm1, %v5646_v41  ;;  %v7226_v41 = vld [vmem:[%s6629_s16 + $0x24] sm:$0x1]  ;;  %v7230_v47 = vcombine.low %v2631_v52, %v2645_v40  ;;  %v2203_v39 = vrot.slane %v2202_v45, 4  ;;  %v2649_v23 = vrot.slane %v2647_v56, 4  ;;  %v2652_v48 = vrot.slane %v2650_v53, 5 }
  0x9a   : > { %v2217_v51 = vrot.slane %v2216_v63, 4  ;;  %v2658_v50 = vrot.slane %v2656_v43, 5  ;;  %v2664_v27 = vshll.u32 %v5674_v18, 16  ;;  %v2670_v5 = vshll.u32 %v7226_v41, 16 }
  0x9b   : > { %6232 = vmatprep.mubr.msk.bf16.mxu1 %vm620_vm1, %v7230_v47  ;;  %v2208_v30 = vsel %vm6683_vm4, %v2203_v39, %v2207_v31  ;;  %v2653_v0 = vor.u32 %v2652_v48, %v2649_v23  ;;  %v2675_v6 = vshrl.u32 %v5676_v46, 16  ;;  %v2663_v36 = vrot.slane %v2661_v60, 4 }
  0x9c   : > { %v2222_v26 = vsel %vm6683_vm4, %v2217_v51, %v2221_v42  ;;  %v2666_v10 = vrot.slane %v2664_v27, 5  ;;  %v2678_v15 = vshll.u32 %v5676_v46, 16  ;;  %v2672_v11 = vrot.slane %v2670_v5, 5  ;;  %v6471_v42 = vld [vmem:[%s6629_s16 + $0x28] ss:$8 sps:$4 sm:$0xff]  }
  0x9d   : > { %v5629_v28 = vcombine.low %v2208_v30, %v2222_v26  ;;  %v2654_v32 = vrot.slane %v2653_v0, 4  ;;  %v2677_v13 = vrot.slane %v2675_v6, 4  ;;  %v2684_v1 = vshll.u32 %v7233_v58, 16 }
  0x9e   : > { %v2667_v3 = vor.u32 %v2666_v10, %v2663_v36  ;;  %v2680_v9 = vrot.slane %v2678_v15, 5  ;;  %v2689_v16 = vshrl.u32 %v5678_v49, 16  ;;  %v2692_v19 = vshll.u32 %v5678_v49, 16 }
  0x9f   : > { %6207 = vmatmul.mubr.msk.bf16.gmra.mxu0 %vm620_vm1, %v5629_v28  ;;  %v2659_v2 = vsel %vm6683_vm4, %v2654_v32, %v2658_v50  ;;  %v2698_v4 = vshll.u32 %v7238_v61, 16  ;;  %v2703_v20 = vshrl.u32 %v5680_v38, 16  ;;  %v2686_v7 = vrot.slane %v2684_v1, 5  ;;  %v6472_v28 = vld [vmem:[%s6629_s16 + $0x10] ss:$8 sps:$4 sm:$0xff]  }
  0xa0   : > { %v2668_v21 = vrot.slane %v2667_v3, 4  ;;  %6222 = vmatprep.mubr.msk.bf16.mxu0 %vm620_vm1, %v6469_v57  ;;  %v2681_v59 = vor.u32 %v2680_v9, %v2677_v13  ;;  %v2691_v25 = vrot.slane %v2689_v16, 4  ;;  %v2694_v44 = vrot.slane %v2692_v19, 5  ;;  %v5693_v57 = vld [vmem:[%s6629_s16 + $0x8] sm:$0xe] }
  0xa1   : > { %v2700_v31 = vrot.slane %v2698_v4, 5  ;;  %v2705_v34 = vrot.slane %v2703_v20, 4  ;;  %v2706_v37 = vshll.u32 %v5680_v38, 16  ;;  %v2712_v45 = vshll.u32 %v7253_v62, 16  ;;  %v5694_v38 = vld [vmem:[%s6629_s16 + $0x10] sm:$0xe] }
  0xa2   : > { %v2673_v22 = vsel %vm6683_vm4, %v2668_v21, %v2672_v11  ;;  %v2682_v52 = vrot.slane %v2681_v59, 4  ;;  %v2717_v18 = vshrl.u32 %v5682_v24, 16  ;;  %v2695_v53 = vor.u32 %v2694_v44, %v2691_v25  ;;  %v5751_v32 = vld [vmem:[%s8252_s3 + $0x40] sm:$0xf]  ;;  %v5695_v11 = vld [vmem:[%s6629_s16 + $0x18] sm:$0xe] }
  0xa3   : > { %v7269_v56 = vcombine.low %v2659_v2, %v2673_v22  ;;  %v2708_v40 = vrot.slane %v2706_v37, 5  ;;  %v2720_v63 = vshll.u32 %v5682_v24, 16  ;;  %v2714_v46 = vrot.slane %v2712_v45, 5  ;;  %v5696_v24 = vld [vmem:[%s6629_s16 + $0x20] sm:$0xe] }
  0xa4   : > { %v2687_v43 = vsel %vm6683_vm4, %v2682_v52, %v2686_v7  ;;  %v2719_v39 = vrot.slane %v2717_v18, 4  ;;  %v2726_v23 = vshll.u32 %v7263_v29, 16  ;;  %v2696_v48 = vrot.slane %v2695_v53, 4  ;;  %v5776_v4 = vld [vmem:[%s8252_s3 + $0x44] sm:$0xf] }
  0xa5   : > { %8278 = vst [vmem:[#allocation7_spill] sm:$0xff] %v7269_v56  ;;  %6233 = vmatmul.mubr.msk.bf16.vlgmr.msra.gmra.mxu1 %vm620_vm1, %v7269_v56  ;;  %v2709_v49 = vor.u32 %v2708_v40, %v2705_v34  ;;  %v2722_v51 = vrot.slane %v2720_v63, 5  ;;  %v2915_v50 = vsel %vm633_vm0, %v7213_v33, 0  ;;  %v3034_v27 = vsel %vm633_vm0, %v5726_v8, 0  ;;  %v5697_v20 = vld [vmem:[%s6629_s16 + $0x28] sm:$0xe] }
  0xa6   : > { %v2728_v60 = vrot.slane %v2726_v23, 5  ;;  %v2701_v30 = vsel %vm6683_vm4, %v2696_v48, %v2700_v31  ;;  %6251 = vmatpush3.bf16.msra.mxu1 %v3034_v27  ;;  %v5701_v6 = vrot.slane %v5693_v57, 9  ;;  %v2858_v33 = vrot.slane %v7179_v17, 5  ;;  %v5698_v21 = vld [vmem:[%s6629_s16 + $0x30] sm:$0xe] }
  0xa7   : > { %6223 = vmatmul.mubr.msk.bf16.vlgmr.msra.gmra.mxu0 %vm620_vm1, %v6470_v14  ;;  %v2710_v0 = vrot.slane %v2709_v49, 4  ;;  %v2723_v5 = vor.u32 %v2722_v51, %v2719_v39  ;;  %v7285_v26 = vcombine.low %v2687_v43, %v2701_v30  ;;  %v5702_v8 = vrot.slane %v5694_v38, 9  ;;  %6397 = vmatprep.subr.msk.bf16.mxu1 %vm633_vm0, %v5776_v4  ;;  %v5736_v44 = vld [vmem:[%s6629_s16 + $0x14] sm:$0x1]  ;;  %v7334_v22 = vld [vmem:[%s6629_s16 + $0x1c] sm:$0x1] }
  0xa8   : > { %6241 = vmatpush3.bf16.msra.mxu0 %v2915_v50  ;;  %6226 = vmatprep.mubr.msk.bf16.mxu0 %vm620_vm1, %v6471_v42  ;;  %v2862_v36 = vrot.slane %v7186_v55, 5  ;;  %v2866_v13 = vrot.slane %v7208_v12, 5  ;;  %v2859_v17 = vsel %vm6751_vm7, %v5701_v6, %v2858_v33  ;;  %v5703_v3 = vrot.slane %v5695_v11, 9  ;;  %v6473_v12 = vld [vmem:[%s6629_s16 + $0x38] ss:$8 sps:$4 sm:$0xff]  }
  0xa9   : > { %8279 = vst [vmem:[#allocation8_spill] sm:$0xff] %v7285_v26  ;;  %v2715_v10 = vsel %vm6683_vm4, %v2710_v0, %v2714_v46  ;;  %v2724_v15 = vrot.slane %v2723_v5, 4  ;;  %6236 = vmatprep.mubr.msk.bf16.mxu1 %vm620_vm1, %v7285_v26  ;;  %6396 = vmatprep.subr.msk.bf16.mxu0 %vm633_vm0, %v5751_v32  ;;  %v2870_v9 = vrot.slane %v7226_v41, 5  ;;  %v5704_v16 = vrot.slane %v5696_v24, 9  ;;  %v5761_v45 = vld [vmem:[%s6629_s16 + $0x18] sm:$0xe] }
  0xaa   : > { %v2863_v55 = vsel %vm6751_vm7, %v5702_v8, %v2862_v36  ;;  %v7318_v59 = vsel %vm633_vm0, %v5751_v32, 0  ;;  %v7322_v41 = vsel %vm633_vm0, %v5776_v4, 0  ;;  %v5705_v7 = vrot.slane %v5697_v20, 9  ;;  %v5699_v43 = vld [vmem:[%s6629_s16 + $0x38] sm:$0xe] }
  0xab   : > { %v2729_v1 = vsel %vm6683_vm4, %v2724_v15, %v2728_v60  ;;  %v5710_v19 = vcombine.low %v2859_v17, %v2863_v55  ;;  %v2874_v25 = vrot.slane %v7233_v58, 5  ;;  %v2867_v31 = vsel %vm6751_vm7, %v5703_v3, %v2866_v13  ;;  %v5760_v58 = vld [vmem:[%s6629_s16 + $0x10] sm:$0xe]  ;;  %v5700_v46 = vld [vmem:[%s6629_s16 + $0x40] sm:$0xe] }
  0xac   : > { %v7310_v2 = vcombine.low %v2715_v10, %v2729_v1  ;;  %v2871_v14 = vsel %vm6751_vm7, %v5704_v16, %v2870_v9  ;;  %v5706_v34 = vrot.slane %v5698_v21, 9  ;;  %v2878_v37 = vrot.slane %v7238_v61, 5  ;;  %v6474_v61 = vld [vmem:[%s6629_s16 + $0x20] ss:$8 sps:$4 sm:$0xff]   ;;  %v6475_v23 = vld [vmem:[%s6629_s16 + $0x30] ss:$8 sps:$4 sm:$0xff]  }
  0xad   : > { %v7341_v52 = vsel %vm6751_vm7, %v5705_v7, %v2874_v25  ;;  %v5768_v18 = vrot.slane %v5760_v58, 9  ;;  %v3365_v53 = vrot.slane %v5736_v44, 5  ;;  %v3369_v40 = vrot.slane %v7334_v22, 5  ;;  %v7358_v60 = vld [vmem:[%s6629_s16 + $0x24] sm:$0x1] }
  0xae   : > { %8280 = vst [vmem:[#allocation9_spill] sm:$0xff] %v7310_v2  ;;  %6237 = vmatmul.mubr.msk.bf16.gmra.mxu1 %vm620_vm1, %v7310_v2  ;;  %v2879_v63 = vsel %vm6751_vm7, %v5706_v34, %v2878_v37  ;;  %v5769_v42 = vrot.slane %v5761_v45, 9  ;;  %v2882_v39 = vrot.slane %v7253_v62, 5  ;;  %v5711_v48 = vcombine.low %v2867_v31, %v2871_v14  ;;  %v7361_v27 = vld [vmem:[%s6629_s16 + $0x2c] sm:$0x1] }
  0xaf   : > { %6252 = vmatprep.mubr.msk.bf16.mxu1 %vm620_vm1, %v6472_v28  ;;  %6227 = vmatmul.mubr.msk.bf16.gmra.mxu0 %vm620_vm1, %v6473_v12  ;;  %v7355_v49 = vsel %vm6751_vm7, %v5768_v18, %v3365_v53  ;;  %v5707_v51 = vrot.slane %v5699_v43, 9  ;;  %v5708_v50 = vrot.slane %v5700_v46, 9  ;;  %v5712_v57 = vcombine.low %v7341_v52, %v2879_v63  ;;  %v5762_v30 = vld [vmem:[%s6629_s16 + $0x20] sm:$0xe]  ;;  %v5763_v0 = vld [vmem:[%s6629_s16 + $0x28] sm:$0xe] }
  0xb0   : > { %6242 = vmatprep.mubr.msk.bf16.mxu0 %vm620_vm1, %v5710_v19  ;;  %v7366_v62 = vsel %vm6751_vm7, %v5769_v42, %v3369_v40  ;;  %v2886_v38 = vrot.slane %v7263_v29, 5  ;;  %v3373_v5 = vrot.slane %v7358_v60, 5  ;;  %v5770_v8 = vrot.slane %v5762_v30, 9  ;;  %v5735_v10 = vld [vmem:[%s6629_s16 + $0x10] sm:$0xf] }
  0xb1   : > { %v5777_v6 = vcombine.low %v7355_v49, %v7366_v62  ;;  %v7376_v33 = vsel %vm6751_vm7, %v5707_v51, %v2882_v39  ;;  %v5771_v36 = vrot.slane %v5763_v0, 9  ;;  %v5737_v15 = vld [vmem:[%s6629_s16 + $0x18] sm:$0xf]  ;;  %v3377_v28 = vrot.slane %v7361_v27, 5  ;;  %v7386_v13 = vld [vmem:[%s6629_s16 + $0x34] sm:$0x1] }
  0xb2   : > { %v7382_v29 = vsel %vm6751_vm7, %v5708_v50, %v2886_v38  ;;  %v3126_v32 = vshrl.u32 %v5735_v10, 16  ;;  %v3129_v11 = vshll.u32 %v5735_v10, 16  ;;  %v7392_v55 = vsel %vm6751_vm7, %v5770_v8, %v3373_v5  ;;  %v7395_v9 = vld [vmem:[%s6629_s16 + $0x3c] sm:$0x1]  ;;  %v5764_v1 = vld [vmem:[%s6629_s16 + $0x30] sm:$0xe] }
  0xb3   : > { %v5713_v17 = vcombine.low %v7376_v33, %v7382_v29  ;;  %v3135_v24 = vshll.u32 %v5736_v44, 16  ;;  %v3140_v3 = vshrl.u32 %v5737_v15, 16  ;;  %v7401_v12 = vsel %vm6751_vm7, %v5771_v36, %v3377_v28  ;;  %v5765_v20 = vld [vmem:[%s6629_s16 + $0x38] sm:$0xe]  ;;  %v5785_v31 = vld [vmem:[%s8252_s3 + $0x48] sm:$0xf] }
  0xb4   : > { %v3128_v16 = vrot.slane %v3126_v32, 4  ;;  %v3131_v19 = vrot.slane %v3129_v11, 5  ;;  %v3143_v4 = vshll.u32 %v5737_v15, 16  ;;  %v5778_v21 = vcombine.low %v7392_v55, %v7401_v12  ;;  %v5739_v52 = vld [vmem:[%s6629_s16 + $0x20] sm:$0xf] }
  0xb5   : > { %v3137_v7 = vrot.slane %v3135_v24, 5  ;;  %v3142_v25 = vrot.slane %v3140_v3, 4  ;;  %v3149_v44 = vshll.u32 %v7334_v22, 16  ;;  %v5772_v37 = vrot.slane %v5764_v1, 9  ;;  %v5741_v53 = vld [vmem:[%s6629_s16 + $0x28] sm:$0xf] }
  0xb6   : > { %6253 = vmatmul.mubr.msk.bf16.vlgmr.msra.gmra.mxu1 %vm620_vm1, %v6474_v61  ;;  %v3132_v14 = vor.u32 %v3131_v19, %v3128_v16  ;;  %v3145_v34 = vrot.slane %v3143_v4, 5  ;;  %v3381_v58 = vrot.slane %v7386_v13, 5  ;;  %v5773_v22 = vrot.slane %v5765_v20, 9  ;;  %v7426_v43 = vld [vmem:[%s6629_s16 + $0x44] sm:$0x1] }
  0xb7   : > { %6256 = vmatprep.mubr.msk.bf16.mxu1 %vm620_vm1, %v6475_v23  ;;  %6243 = vmatmul.mubr.msk.bf16.vlgmr.msra.gmra.mxu0 %vm620_vm1, %v5711_v48  ;;  %v3151_v45 = vrot.slane %v3149_v44, 5  ;;  %v3385_v18 = vrot.slane %v7395_v9, 5  ;;  %v3157_v42 = vshll.u32 %v5739_v52, 16  ;;  %v3163_v23 = vshll.u32 %v7358_v60, 16  ;;  %v5766_v51 = vld [vmem:[%s6629_s16 + $0x40] sm:$0xe] }
  0xb8   : > { %6261 = vmatpush3.bf16.msra.mxu0 %v7318_v59  ;;  %6271 = vmatpush3.bf16.msra.mxu1 %v7322_v41  ;;  %v3154_v59 = vshrl.u32 %v5739_v52, 16  ;;  %v6476_v41 = vld [vmem:[%s6629_s16 + $0x40] ss:$8 sps:$4 sm:$0xff]   ;;  %v3133_v40 = vrot.slane %v3132_v14, 4  ;;  %v3146_v61 = vor.u32 %v3145_v34, %v3142_v25  ;;  %v7423_v63 = vsel %vm6751_vm7, %v5772_v37, %v3381_v58  ;;  %v5794_v5 = vld [vmem:[%s8252_s3 + $0x4c] sm:$0xf] }
  0xb9   : > { %6246 = vmatprep.mubr.msk.bf16.mxu0 %vm620_vm1, %v5712_v57  ;;  %6398 = vmatprep.subr.msk.bf16.mxu0 %vm633_vm0, %v5785_v31  ;;  %v7430_v46 = vsel %vm6751_vm7, %v5773_v22, %v3385_v18  ;;  %v3168_v48 = vshrl.u32 %v5741_v53, 16  ;;  %v3159_v30 = vrot.slane %v3157_v42, 5  ;;  %v5767_v0 = vld [vmem:[%s6629_s16 + $0x48] sm:$0xe]  ;;  %v3165_v8 = vrot.slane %v3163_v23, 5 }
  0xba   : > { %v3156_v39 = vrot.slane %v3154_v59, 4  ;;  %v3138_v50 = vsel %vm6683_vm4, %v3133_v40, %v3137_v7  ;;  %v3147_v57 = vrot.slane %v3146_v61, 4  ;;  %v5779_v38 = vcombine.low %v7423_v63, %v7430_v46  ;;  %v7444_v15 = vld [vmem:[%s6629_s16 + $0x4c] sm:$0x1]  ;;  %6399 = vmatprep.subr.msk.bf16.mxu1 %vm633_vm0, %v5794_v5  ;;  %v5743_v3 = vld [vmem:[%s6629_s16 + $0x30] sm:$0xf] }
  0xbb   : > { %v3170_v36 = vrot.slane %v3168_v48, 4  ;;  %v3171_v10 = vshll.u32 %v5741_v53, 16  ;;  %v3177_v60 = vshll.u32 %v7361_v27, 16  ;;  %v5774_v11 = vrot.slane %v5766_v51, 9  ;;  %v5745_v4 = vld [vmem:[%s6629_s16 + $0x38] sm:$0xf] }
  0xbc   : > { %v3152_v28 = vsel %vm6683_vm4, %v3147_v57, %v3151_v45  ;;  %v3160_v32 = vor.u32 %v3159_v30, %v3156_v39  ;;  %v3389_v24 = vrot.slane %v7426_v43, 5  ;;  %v5775_v19 = vrot.slane %v5767_v0, 9  ;;  %v7480_v22 = vld [vmem:[%s6642_s29 + $0x4] sm:$0x1]  ;;  %v3617_v40 = vld [vmem:[%s6642_s29 + $0x8] sm:$0xf] }
  0xbd   : > { %v5752_v27 = vcombine.low %v3138_v50, %v3152_v28  ;;  %v3173_v1 = vrot.slane %v3171_v10, 5  ;;  %v3179_v16 = vrot.slane %v3177_v60, 5  ;;  %v3393_v49 = vrot.slane %v7444_v15, 5  ;;  %v7487_v63 = vld [vmem:[%s6642_s29 + $0xc] sm:$0x1] }
  0xbe   : > { %6257 = vmatmul.mubr.msk.bf16.gmra.mxu1 %vm620_vm1, %v6476_v41  ;;  %v3161_v20 = vrot.slane %v3160_v32, 4  ;;  %v7463_v7 = vsel %vm6751_vm7, %v5774_v11, %v3389_v24  ;;  %v3540_v62 = vsel %vm633_vm0, %v5785_v31, 0  ;;  %v3770_v33 = vsel %vm633_vm0, %v5794_v5, 0  ;;  %v3615_v31 = vld [vmem:[%s6642_s29] sm:$0xf] }
  0xbf   : > { %6272 = vmatprep.mubr.msk.bf16.mxu1 %vm620_vm1, %v5777_v6  ;;  %6247 = vmatmul.mubr.msk.bf16.gmra.mxu0 %vm620_vm1, %v5713_v17  ;;  %v3174_v6 = vor.u32 %v3173_v1, %v3170_v36  ;;  %v3182_v29 = vshrl.u32 %v5743_v3, 16  ;;  %v3185_v17 = vshll.u32 %v5743_v3, 16  ;;  %v7473_v44 = vsel %vm6751_vm7, %v5775_v19, %v3393_v49  ;;  %v5747_v39 = vld [vmem:[%s6629_s16 + $0x40] sm:$0xf]  ;;  %v3619_v3 = vld [vmem:[%s6642_s29 + $0x10] sm:$0xf] }
  0xc0   : > { %6262 = vmatprep.mubr.msk.bf16.mxu0 %vm620_vm1, %v5752_v27  ;;  %v3166_v25 = vsel %vm6683_vm4, %v3161_v20, %v3165_v8  ;;  %v3191_v14 = vshll.u32 %v7386_v13, 16  ;;  %v3196_v34 = vshrl.u32 %v5745_v4, 16  ;;  %v5780_v58 = vcombine.low %v7463_v7, %v7473_v44  ;;  %v5749_v8 = vld [vmem:[%s6629_s16 + $0x48] sm:$0xf]  ;;  %v7503_v27 = vld [vmem:[%s6642_s29 + $0x14] sm:$0x1] }
  0xc1   : > { %v3175_v37 = vrot.slane %v3174_v6, 4  ;;  %v3184_v52 = vrot.slane %v3182_v29, 4  ;;  %v3187_v45 = vrot.slane %v3185_v17, 5  ;;  %v3199_v59 = vshll.u32 %v5745_v4, 16  ;;  %v3621_v20 = vld [vmem:[%s6642_s29 + $0x18] sm:$0xf] }
  0xc2   : > { %v3193_v18 = vrot.slane %v3191_v14, 5  ;;  %v3198_v53 = vrot.slane %v3196_v34, 4  ;;  %v3205_v41 = vshll.u32 %v7395_v9, 16  ;;  %v3632_v42 = vshrl.u32 %v3615_v31, 16 }
  0xc3   : > { %v3180_v13 = vsel %vm6683_vm4, %v3175_v37, %v3179_v16  ;;  %v3188_v61 = vor.u32 %v3187_v45, %v3184_v52  ;;  %v3635_v46 = vshll.u32 %v3615_v31, 16  ;;  %v3201_v48 = vrot.slane %v3199_v59, 5  ;;  %v7521_v37 = vld [vmem:[%s6642_s29 + $0x1c] sm:$0x1]  ;;  %v3623_v59 = vld [vmem:[%s6642_s29 + $0x20] sm:$0xf] }
  0xc4   : > { %v5753_v23 = vcombine.low %v3166_v25, %v3180_v13  ;;  %v3207_v51 = vrot.slane %v3205_v41, 5  ;;  %v3641_v9 = vshll.u32 %v7480_v22, 16  ;;  %v3634_v57 = vrot.slane %v3632_v42, 4 }
  0xc5   : > { %v3189_v50 = vrot.slane %v3188_v61, 4  ;;  %v3637_v30 = vrot.slane %v3635_v46, 5  ;;  %v3646_v0 = vshrl.u32 %v3617_v40, 16  ;;  %v3202_v55 = vor.u32 %v3201_v48, %v3198_v53  ;;  %v3625_v61 = vld [vmem:[%s6642_s29 + $0x28] sm:$0xf] }
  0xc6   : > { %6273 = vmatmul.mubr.msk.bf16.vlgmr.msra.gmra.mxu1 %vm620_vm1, %v5778_v21  ;;  %v3643_v12 = vrot.slane %v3641_v9, 5  ;;  %v3649_v21 = vshll.u32 %v3617_v40, 16  ;;  %v3655_v5 = vshll.u32 %v7487_v63, 16  ;;  %v3210_v60 = vshrl.u32 %v5747_v39, 16  ;;  %v5828_v48 = vld [vmem:[%s8252_s3 + $0x54] sm:$0xf] }
  0xc7   : > { %6276 = vmatprep.mubr.msk.bf16.mxu1 %vm620_vm1, %v5779_v38  ;;  %6291 = vmatpush3.bf16.msra.mxu1 %v3770_v33  ;;  %v3194_v38 = vsel %vm6683_vm4, %v3189_v50, %v3193_v18  ;;  %v3638_v36 = vor.u32 %v3637_v30, %v3634_v57  ;;  %v3648_v10 = vrot.slane %v3646_v0, 4  ;;  %v3203_v28 = vrot.slane %v3202_v55, 4  ;;  %v7512_v33 = vld [vmem:[%s8252_s3 + $0x50] sm:$0xf]  ;;  %v6477_v30 = vld [vmem:[%s6642_s29] ss:$8 sps:$4 sm:$0xff]  }
  0xc8   : > { %6263 = vmatmul.mubr.msk.bf16.vlgmr.msra.gmra.mxu0 %vm620_vm1, %v5753_v23  ;;  %v3651_v32 = vrot.slane %v3649_v21, 5  ;;  %v3657_v11 = vrot.slane %v3655_v5, 5  ;;  %v3213_v24 = vshll.u32 %v5747_v39, 16  ;;  %v3212_v16 = vrot.slane %v3210_v60, 4  ;;  %v7539_v0 = vld [vmem:[%s6642_s29 + $0x2c] sm:$0x1]  ;;  %6401 = vmatprep.subr.msk.bf16.mxu1 %vm633_vm0, %v5828_v48 }
  0xc9   : > { %6281 = vmatpush3.bf16.msra.mxu0 %v3540_v62  ;;  %v3639_v1 = vrot.slane %v3638_v36, 4  ;;  %v3219_v19 = vshll.u32 %v7426_v43, 16  ;;  %v3224_v4 = vshrl.u32 %v5749_v8, 16  ;;  %v3208_v7 = vsel %vm6683_vm4, %v3203_v28, %v3207_v51  ;;  %v3627_v55 = vld [vmem:[%s6642_s29 + $0x30] sm:$0xf] }
  0xca   : > { %v3652_v49 = vor.u32 %v3651_v32, %v3648_v10  ;;  %v3215_v62 = vrot.slane %v3213_v24, 5  ;;  %v3227_v6 = vshll.u32 %v5749_v8, 16  ;;  %v5754_v29 = vcombine.low %v3194_v38, %v3208_v7  ;;  %6400 = vmatprep.subr.msk.bf16.mxu0 %vm633_vm0, %v7512_v33  ;;  %v7546_v38 = vld [vmem:[%s6642_s29 + $0x34] sm:$0x1]  ;;  %v3629_v32 = vld [vmem:[%s6642_s29 + $0x38] sm:$0xf] }
  0xcb   : > { %v3644_v17 = vsel %vm6683_vm4, %v3639_v1, %v3643_v12  ;;  %v3221_v43 = vrot.slane %v3219_v19, 5  ;;  %v3226_v25 = vrot.slane %v3224_v4, 4  ;;  %v3233_v31 = vshll.u32 %v7444_v15, 16  ;;  %v7529_v15 = vld [vmem:[%s6642_s29 + $0x24] sm:$0x1] }
  0xcc   : > { %v3653_v44 = vrot.slane %v3652_v49, 4  ;;  %v3216_v14 = vor.u32 %v3215_v62, %v3212_v16  ;;  %v3229_v34 = vrot.slane %v3227_v6, 5  ;;  %6266 = vmatprep.mubr.msk.bf16.mxu0 %vm620_vm1, %v5754_v29  ;;  %v3660_v52 = vshrl.u32 %v3619_v3, 16  ;;  %v7557_v6 = vld [vmem:[%s6642_s29 + $0x3c] sm:$0x1] }
  0xcd   : > { %v3663_v45 = vshll.u32 %v3619_v3, 16  ;;  %v3669_v18 = vshll.u32 %v7503_v27, 16  ;;  %v3674_v53 = vshrl.u32 %v3621_v20, 16  ;;  %v3235_v13 = vrot.slane %v3233_v31, 5 }
  0xce   : > { %6277 = vmatmul.mubr.msk.bf16.gmra.mxu1 %vm620_vm1, %v5780_v58  ;;  %v3658_v58 = vsel %vm6683_vm4, %v3653_v44, %v3657_v11  ;;  %v3217_v41 = vrot.slane %v3216_v14, 4  ;;  %v3230_v40 = vor.u32 %v3229_v34, %v3226_v25  ;;  %v3662_v46 = vrot.slane %v3660_v52, 4 }
  0xcf   : > { %v5795_v42 = vcombine.low %v3644_v17, %v3658_v58  ;;  %v3665_v39 = vrot.slane %v3663_v45, 5  ;;  %v3671_v23 = vrot.slane %v3669_v18, 5  ;;  %v3676_v50 = vrot.slane %v3674_v53, 4  ;;  %v6478_v53 = vld [vmem:[%s6642_s29 + $0x10] ss:$8 sps:$4 sm:$0xff]  }
  0xd0   : > { %v3222_v51 = vsel %vm6683_vm4, %v3217_v41, %v3221_v43  ;;  %v3231_v9 = vrot.slane %v3230_v40, 4  ;;  %v3677_v57 = vshll.u32 %v3621_v20, 16  ;;  %v3683_v21 = vshll.u32 %v7521_v37, 16 }
  0xd1   : > { %6292 = vmatprep.mubr.msk.bf16.mxu1 %vm620_vm1, %v5795_v42  ;;  %v3666_v12 = vor.u32 %v3665_v39, %v3662_v46  ;;  %v3688_v5 = vshrl.u32 %v3623_v59, 16  ;;  %v3691_v8 = vshll.u32 %v3623_v59, 16  ;;  %v3697_v60 = vshll.u32 %v7529_v15, 16 }
  0xd2   : > { %v3236_v36 = vsel %vm6683_vm4, %v3231_v9, %v3235_v13  ;;  %v3679_v10 = vrot.slane %v3677_v57, 5  ;;  %v3702_v28 = vshrl.u32 %v3625_v61, 16  ;;  %v3685_v3 = vrot.slane %v3683_v21, 5  ;;  %v3845_v9 = vld [vmem:[%s6642_s29] sm:$0xe] }
  0xd3   : > { %v5755_v11 = vcombine.low %v3222_v51, %v3236_v36  ;;  %v3667_v24 = vrot.slane %v3666_v12, 4  ;;  %v3690_v1 = vrot.slane %v3688_v5, 4  ;;  %v3693_v19 = vrot.slane %v3691_v8, 5  ;;  %v6479_v51 = vld [vmem:[%s6642_s29 + $0x20] ss:$8 sps:$4 sm:$0xff]  }
  0xd4   : > { %v3680_v16 = vor.u32 %v3679_v10, %v3676_v50  ;;  %v3699_v4 = vrot.slane %v3697_v60, 5  ;;  %v3704_v20 = vrot.slane %v3702_v28, 4  ;;  %v3705_v49 = vshll.u32 %v3625_v61, 16 }
  0xd5   : > { %6267 = vmatmul.mubr.msk.bf16.gmra.mxu0 %vm620_vm1, %v5755_v11  ;;  %v3672_v7 = vsel %vm6683_vm4, %v3667_v24, %v3671_v23  ;;  %v3711_v62 = vshll.u32 %v7539_v0, 16  ;;  %v3716_v29 = vshrl.u32 %v3627_v55, 16  ;;  %v3694_v43 = vor.u32 %v3693_v19, %v3690_v1  ;;  %v5853_v11 = vld [vmem:[%s8252_s3 + $0x58] sm:$0xf]  ;;  %v3847_v24 = vld [vmem:[%s6642_s29 + $0x10] sm:$0xe] }
  0xd6   : > { %v3681_v17 = vrot.slane %v3680_v16, 4  ;;  %6282 = vmatprep.mubr.msk.bf16.mxu0 %vm620_vm1, %v6477_v30  ;;  %v3719_v25 = vshll.u32 %v3627_v55, 16  ;;  %v3725_v44 = vshll.u32 %v7546_v38, 16  ;;  %v3707_v14 = vrot.slane %v3705_v49, 5  ;;  %v3846_v55 = vld [vmem:[%s6642_s29 + $0x8] sm:$0xe] }
  0xd7   : > { %v3713_v34 = vrot.slane %v3711_v62, 5  ;;  %v3718_v31 = vrot.slane %v3716_v29, 4  ;;  %v3730_v52 = vshrl.u32 %v3629_v32, 16  ;;  %v3695_v18 = vrot.slane %v3694_v43, 4  ;;  %v5878_v29 = vld [vmem:[%s8252_s3 + $0x5c] sm:$0xf] }
  0xd8   : > { %v3686_v45 = vsel %vm6683_vm4, %v3681_v17, %v3685_v3  ;;  %v3721_v59 = vrot.slane %v3719_v25, 5  ;;  %v3727_v58 = vrot.slane %v3725_v44, 5  ;;  %v3708_v40 = vor.u32 %v3707_v14, %v3704_v20  ;;  %v6480_v3 = vld [vmem:[%s6642_s29 + $0x8] ss:$8 sps:$4 sm:$0xff]   ;;  %v3849_v17 = vld [vmem:[%s6642_s29 + $0x20] sm:$0xe] }
  0xd9   : > { %v5796_v41 = vcombine.low %v3672_v7, %v3686_v45  ;;  %v3732_v13 = vrot.slane %v3730_v52, 4  ;;  %v3733_v61 = vshll.u32 %v3629_v32, 16  ;;  %v3700_v42 = vsel %vm6683_vm4, %v3695_v18, %v3699_v4  ;;  %v6481_v4 = vld [vmem:[%s6642_s29 + $0x30] ss:$8 sps:$4 sm:$0xff]   ;;  %v3850_v43 = vld [vmem:[%s6642_s29 + $0x28] sm:$0xe] }
  0xda   : > { %v3722_v46 = vor.u32 %v3721_v59, %v3718_v31  ;;  %v3739_v39 = vshll.u32 %v7557_v6, 16  ;;  %v3928_v23 = vsel %vm633_vm0, %v7512_v33, 0  ;;  %v3709_v50 = vrot.slane %v3708_v40, 4  ;;  %v7618_v31 = vld [vmem:[%s6642_s29 + $0x14] sm:$0x1] }
  0xdb   : > { %6293 = vmatmul.mubr.msk.bf16.vlgmr.msra.gmra.mxu1 %vm620_vm1, %v5796_v41  ;;  %v3735_v57 = vrot.slane %v3733_v61, 5  ;;  %v4047_v30 = vsel %vm633_vm0, %v5828_v48, 0  ;;  %v5803_v12 = vrot.slane %v3845_v9, 9  ;;  %v3871_v8 = vrot.slane %v7480_v22, 5  ;;  %v5862_v59 = vld [vmem:[%s6642_s29 + $0x8] sm:$0xe] }
  0xdc   : > { %v3723_v21 = vrot.slane %v3722_v46, 4  ;;  %v3741_v5 = vrot.slane %v3739_v39, 5  ;;  %6311 = vmatpush3.bf16.msra.mxu1 %v4047_v30  ;;  %v5804_v36 = vrot.slane %v3846_v55, 9  ;;  %v3714_v33 = vsel %vm6683_vm4, %v3709_v50, %v3713_v34  ;;  %v5838_v34 = vld [vmem:[%s6642_s29 + $0xc] sm:$0x1] }
  0xdd   : > { %6283 = vmatmul.mubr.msk.bf16.vlgmr.msra.gmra.mxu0 %vm620_vm1, %v6478_v53  ;;  %v3736_v10 = vor.u32 %v3735_v57, %v3732_v13  ;;  %v3875_v60 = vrot.slane %v7487_v63, 5  ;;  %v3879_v48 = vrot.slane %v7503_v27, 5  ;;  %v5797_v28 = vcombine.low %v3700_v42, %v3714_v33  ;;  %v3848_v63 = vld [vmem:[%s6642_s29 + $0x18] sm:$0xe]  ;;  %6403 = vmatprep.subr.msk.bf16.mxu1 %vm633_vm0, %v5878_v29  ;;  %v3851_v46 = vld [vmem:[%s6642_s29 + $0x30] sm:$0xe] }
  0xde   : > { %v3728_v32 = vsel %vm6683_vm4, %v3723_v21, %v3727_v58  ;;  %6301 = vmatpush3.bf16.msra.mxu0 %v3928_v23  ;;  %6286 = vmatprep.mubr.msk.bf16.mxu0 %vm620_vm1, %v6479_v51  ;;  %v3872_v22 = vsel %vm6751_vm7, %v5803_v12, %v3871_v8  ;;  %v5805_v16 = vrot.slane %v3847_v24, 9  ;;  %v5806_v19 = vrot.slane %v3848_v63, 9  ;;  %v5863_v58 = vld [vmem:[%s6642_s29 + $0x10] sm:$0xe]  ;;  %v3852_v39 = vld [vmem:[%s6642_s29 + $0x38] sm:$0xe] }
  0xdf   : > { %v3737_v27 = vrot.slane %v3736_v10, 4  ;;  %v3876_v1 = vsel %vm6751_vm7, %v5804_v36, %v3875_v60  ;;  %6402 = vmatprep.subr.msk.bf16.mxu0 %vm633_vm0, %v5853_v11  ;;  %6296 = vmatprep.mubr.msk.bf16.mxu1 %vm620_vm1, %v5797_v28  ;;  %v3883_v20 = vrot.slane %v7521_v37, 5  ;;  %v7598_v7 = vsel %vm633_vm0, %v5853_v11, 0  ;;  %v6482_v23 = vld [vmem:[%s6642_s29 + $0x18] ss:$8 sps:$4 sm:$0xff]  }
  0xe0   : > { %v5812_v62 = vcombine.low %v3872_v22, %v3876_v1  ;;  %v7609_v44 = vsel %vm6751_vm7, %v5805_v16, %v3879_v48  ;;  %v5807_v14 = vrot.slane %v3849_v17, 9  ;;  %v7621_v52 = vsel %vm633_vm0, %v5878_v29, 0  ;;  %v7650_v57 = vld [vmem:[%s6642_s29 + $0x1c] sm:$0x1]  ;;  %v7653_v30 = vld [vmem:[%s6642_s29 + $0x24] sm:$0x1] }
  0xe1   : > { %v3742_v49 = vsel %vm6683_vm4, %v3737_v27, %v3741_v5  ;;  %v7613_v37 = vsel %vm6751_vm7, %v5806_v19, %v3883_v20  ;;  %v3887_v45 = vrot.slane %v7529_v15, 5  ;;  %v5808_v18 = vrot.slane %v3850_v43, 9  ;;  %v6483_v55 = vld [vmem:[%s6642_s29 + $0x28] ss:$8 sps:$4 sm:$0xff]   ;;  %v5864_v21 = vld [vmem:[%s6642_s29 + $0x18] sm:$0xe] }
  0xe2   : > { %v5798_v25 = vcombine.low %v3728_v32, %v3742_v49  ;;  %v3891_v53 = vrot.slane %v7539_v0, 5  ;;  %v5870_v41 = vrot.slane %v5862_v59, 9  ;;  %v4378_v40 = vrot.slane %v5838_v34, 5  ;;  %v5865_v5 = vld [vmem:[%s6642_s29 + $0x20] sm:$0xe] }
  0xe3   : > { %v4382_v13 = vrot.slane %v7618_v31, 5  ;;  %v3895_v61 = vrot.slane %v7546_v38, 5  ;;  %v7634_v15 = vsel %vm6751_vm7, %v5807_v14, %v3887_v45  ;;  %v5871_v42 = vrot.slane %v5863_v58, 9  ;;  %v5837_v28 = vld [vmem:[%s6642_s29 + $0x8] sm:$0xf] }
  0xe4   : > { %6297 = vmatmul.mubr.msk.bf16.gmra.mxu1 %vm620_vm1, %v5798_v25  ;;  %v7638_v0 = vsel %vm6751_vm7, %v5808_v18, %v3891_v53  ;;  %v3899_v38 = vrot.slane %v7557_v6, 5  ;;  %v7647_v51 = vsel %vm6751_vm7, %v5870_v41, %v4378_v40  ;;  %v5809_v9 = vrot.slane %v3851_v46, 9  ;;  %v5839_v32 = vld [vmem:[%s6642_s29 + $0x10] sm:$0xf]  ;;  %v7690_v20 = vld [vmem:[%s6642_s29 + $0x34] sm:$0x1] }
  0xe5   : > { %6312 = vmatprep.mubr.msk.bf16.mxu1 %vm620_vm1, %v6480_v3  ;;  %6287 = vmatmul.mubr.msk.bf16.gmra.mxu0 %vm620_vm1, %v6481_v4  ;;  %v5810_v50 = vrot.slane %v3852_v39, 9  ;;  %v5813_v12 = vcombine.low %v7609_v44, %v7613_v37  ;;  %v7660_v6 = vsel %vm6751_vm7, %v5871_v42, %v4382_v13  ;;  %v4386_v8 = vrot.slane %v7650_v57, 5  ;;  %v7683_v3 = vld [vmem:[%s6642_s29 + $0x2c] sm:$0x1]  ;;  %v5866_v25 = vld [vmem:[%s6642_s29 + $0x28] sm:$0xe] }
  0xe6   : > { %6302 = vmatprep.mubr.msk.bf16.mxu0 %vm620_vm1, %v5812_v62  ;;  %v4390_v36 = vrot.slane %v7653_v30, 5  ;;  %v5814_v33 = vcombine.low %v7634_v15, %v7638_v0  ;;  %v5879_v10 = vcombine.low %v7647_v51, %v7660_v6  ;;  %v7672_v60 = vsel %vm6751_vm7, %v5809_v9, %v3895_v61  ;;  %v5867_v45 = vld [vmem:[%s6642_s29 + $0x30] sm:$0xe]  ;;  %v5895_v41 = vld [vmem:[%s8252_s3 + $0x60] sm:$0xf] }
  0xe7   : > { %v5872_v48 = vrot.slane %v5864_v21, 9  ;;  %v7680_v11 = vsel %vm6751_vm7, %v5810_v50, %v3899_v38  ;;  %v5873_v24 = vrot.slane %v5865_v5, 9  ;;  %v4139_v63 = vshrl.u32 %v5837_v28, 16  ;;  %v6484_v40 = vld [vmem:[%s6642_s29 + $0x38] ss:$8 sps:$4 sm:$0xff]  }
  0xe8   : > { %v4142_v27 = vshll.u32 %v5837_v28, 16  ;;  %v4148_v16 = vshll.u32 %v5838_v34, 16  ;;  %v4153_v19 = vshrl.u32 %v5839_v32, 16  ;;  %v4156_v4 = vshll.u32 %v5839_v32, 16  ;;  %v5841_v42 = vld [vmem:[%s6642_s29 + $0x18] sm:$0xf] }
  0xe9   : > { %v7687_v1 = vsel %vm6751_vm7, %v5872_v48, %v4386_v8  ;;  %v7696_v62 = vsel %vm6751_vm7, %v5873_v24, %v4390_v36  ;;  %v4141_v29 = vrot.slane %v4139_v63, 4  ;;  %v4162_v43 = vshll.u32 %v7618_v31, 16  ;;  %v5843_v46 = vld [vmem:[%s6642_s29 + $0x20] sm:$0xf]  ;;  %v7737_v5 = vld [vmem:[%s6642_s29 + $0x44] sm:$0x1] }
  0xea   : > { %v4144_v17 = vrot.slane %v4142_v27, 5  ;;  %v5815_v44 = vcombine.low %v7672_v60, %v7680_v11  ;;  %v4150_v37 = vrot.slane %v4148_v16, 5  ;;  %v4155_v14 = vrot.slane %v4153_v19, 4  ;;  %v5868_v48 = vld [vmem:[%s6642_s29 + $0x38] sm:$0xe] }
  0xeb   : > { %v4158_v34 = vrot.slane %v4156_v4, 5  ;;  %v4164_v53 = vrot.slane %v4162_v43, 5  ;;  %v5874_v59 = vrot.slane %v5866_v25, 9  ;;  %v4394_v58 = vrot.slane %v7683_v3, 5  ;;  %v5869_v28 = vld [vmem:[%s6642_s29 + $0x40] sm:$0xe] }
  0xec   : > { %6313 = vmatmul.mubr.msk.bf16.vlgmr.msra.gmra.mxu1 %vm620_vm1, %v6482_v23  ;;  %v4145_v31 = vor.u32 %v4144_v17, %v4141_v29  ;;  %v5880_v13 = vcombine.low %v7687_v1, %v7696_v62  ;;  %v5875_v15 = vrot.slane %v5867_v45, 9  ;;  %v4398_v0 = vrot.slane %v7690_v20, 5  ;;  %v7727_v23 = vld [vmem:[%s6642_s29 + $0x3c] sm:$0x1]  ;;  %v5920_v63 = vld [vmem:[%s8252_s3 + $0x64] sm:$0xf] }
  0xed   : > { %v7676_v22 = vpop.f32.mrf.mxu1  ;;  %6316 = vmatprep.mubr.msk.bf16.mxu1 %vm620_vm1, %v6483_v55  ;;  %6303 = vmatmul.mubr.msk.bf16.vlgmr.msra.gmra.mxu0 %vm620_vm1, %v5813_v12  ;;  %v4159_v61 = vor.u32 %v4158_v34, %v4155_v14  ;;  %v7723_v38 = vsel %vm6751_vm7, %v5874_v59, %v4394_v58  ;;  %v4176_v12 = vshll.u32 %v7650_v57, 16  ;;  %v4181_v21 = vshrl.u32 %v5843_v46, 16  ;;  %v5845_v29 = vld [vmem:[%s6642_s29 + $0x28] sm:$0xf] }
  0xee   : > { %6321 = vmatpush3.bf16.msra.mxu0 %v7598_v7  ;;  %6331 = vmatpush3.bf16.msra.mxu1 %v7621_v52  ;;  %v4146_v39 = vrot.slane %v4145_v31, 4  ;;  %v4167_v7 = vshrl.u32 %v5841_v42, 16  ;;  %v4170_v52 = vshll.u32 %v5841_v42, 16  ;;  %v7733_v55 = vsel %vm6751_vm7, %v5875_v15, %v4398_v0  ;;  %v7786_v42 = vld [vmem:[%s6642_s29 + $0x14] sm:$0x1] }
  0xef   : > { %v7692_v49 = vpop.f32.mrf.mxu1  ;;  %6306 = vmatprep.mubr.msk.bf16.mxu0 %vm620_vm1, %v5814_v33  ;;  %6404 = vmatprep.subr.msk.bf16.mxu0 %vm633_vm0, %v5895_v41  ;;  %v4160_v50 = vrot.slane %v4159_v61, 4  ;;  %v5881_v36 = vcombine.low %v7723_v38, %v7733_v55  ;;  %v4178_v11 = vrot.slane %v4176_v12, 5  ;;  %v4183_v24 = vrot.slane %v4181_v21, 4  ;;  %v5906_v21 = vld [vmem:[%s6642_s29 + $0x18] sm:$0xf] }
  0xf0   : > { %v4151_v8 = vsel %vm6683_vm4, %v4146_v39, %v4150_v37  ;;  %v4169_v33 = vrot.slane %v4167_v7, 4  ;;  %v4172_v60 = vrot.slane %v4170_v52, 5  ;;  %v4184_v57 = vshll.u32 %v5843_v46, 16  ;;  %6405 = vmatprep.subr.msk.bf16.mxu1 %vm633_vm0, %v5920_v63 }
  0xf1   : > { %v7704_v18 = vpop.f32.mrf.mxu1  ;;  %v4165_v32 = vsel %vm6683_vm4, %v4160_v50, %v4164_v53  ;;  %v4190_v19 = vshll.u32 %v7653_v30, 16  ;;  %v5876_v4 = vrot.slane %v5868_v48, 9  ;;  %v4402_v25 = vrot.slane %v7727_v23, 5  ;;  %v5847_v53 = vld [vmem:[%s6642_s29 + $0x30] sm:$0xf] }
  0xf2   : > { %v5854_v27 = vcombine.low %v4151_v8, %v4165_v32  ;;  %v4173_v16 = vor.u32 %v4172_v60, %v4169_v33  ;;  %v4186_v43 = vrot.slane %v4184_v57, 5  ;;  %v5877_v37 = vrot.slane %v5869_v28, 9  ;;  %v7795_v48 = vld [vmem:[%s6642_s29 + $0x1c] sm:$0x1] }
  0xf3   : > { %v7729_v9 = vpop.f32.mrf.mxu1  ;;  %v4406_v14 = vrot.slane %v7737_v5, 5  ;;  %v4192_v34 = vrot.slane %v4190_v19, 5  ;;  %v4554_v45 = vsel %vm633_vm0, %v5895_v41, 0  ;;  %v4784_v31 = vsel %vm633_vm0, %v5920_v63, 0 }
  0xf4   : > { %6317 = vmatmul.mubr.msk.bf16.gmra.mxu1 %vm620_vm1, %v6484_v40  ;;  %v4174_v30 = vrot.slane %v4173_v16, 4  ;;  %v4187_v40 = vor.u32 %v4186_v43, %v4183_v24  ;;  %v7773_v51 = vsel %vm6751_vm7, %v5876_v4, %v4402_v25  ;;  %v4198_v15 = vshll.u32 %v5845_v29, 16 }
  0xf5   : > { %6332 = vmatprep.mubr.msk.bf16.mxu1 %vm620_vm1, %v5879_v10  ;;  %6307 = vmatmul.mubr.msk.bf16.gmra.mxu0 %vm620_vm1, %v5815_v44  ;;  %v7777_v6 = vsel %vm6751_vm7, %v5877_v37, %v4406_v14  ;;  %v4195_v10 = vshrl.u32 %v5845_v29, 16  ;;  %v5904_v44 = vld [vmem:[%s6642_s29 + $0x10] sm:$0xf]  ;;  %v4204_v0 = vshll.u32 %v7683_v3, 16  ;;  %v4209_v50 = vshrl.u32 %v5847_v53, 16 }
  0xf6   : > { %6322 = vmatprep.mubr.msk.bf16.mxu0 %vm620_vm1, %v5854_v27  ;;  %v4179_v41 = vsel %vm6683_vm4, %v4174_v30, %v4178_v11  ;;  %v5882_v61 = vcombine.low %v7773_v51, %v7777_v6  ;;  %v4188_v7 = vrot.slane %v4187_v40, 4  ;;  %v4212_v12 = vshll.u32 %v5847_v53, 16  ;;  %v5849_v27 = vld [vmem:[%s6642_s29 + $0x38] sm:$0xf]  ;;  %v7869_v51 = vld [vmem:[%s6642_s29 + $0x34] sm:$0x1] }
  0xf7   : > { %v4197_v52 = vrot.slane %v4195_v10, 4  ;;  %v4200_v8 = vrot.slane %v4198_v15, 5  ;;  %v4206_v33 = vrot.slane %v4204_v0, 5  ;;  %v4218_v60 = vshll.u32 %v7690_v20, 16 }
  0xf8   : > { %v7753_v17 = vpop.f32.mrf.mxu1  ;;  %v4646_v28 = vshrl.u32 %v5904_v44, 16  ;;  %v4193_v11 = vsel %vm6683_vm4, %v4188_v7, %v4192_v34  ;;  %v4211_v24 = vrot.slane %v4209_v50, 4  ;;  %v4214_v57 = vrot.slane %v4212_v12, 5 }
  0xf9   : > { %v4649_v63 = vshll.u32 %v5904_v44, 16  ;;  %v5855_v16 = vcombine.low %v4179_v41, %v4193_v11  ;;  %v4201_v19 = vor.u32 %v4200_v8, %v4197_v52  ;;  %v4220_v4 = vrot.slane %v4218_v60, 5  ;;  %v5908_v52 = vld [vmem:[%s6642_s29 + $0x20] sm:$0xf]  ;;  %v7835_v60 = vld [vmem:[%s6642_s29 + $0x24] sm:$0x1] }
  0xfa   : > { %v7766_v59 = vpop.f32.mrf.mxu0  ;;  %v7768_v58 = vpop.f32.mrf.mxu1  ;;  %v4648_v29 = vrot.slane %v4646_v28, 4  ;;  %v4215_v25 = vor.u32 %v4214_v57, %v4211_v24  ;;  %v4655_v14 = vshll.u32 %v7786_v42, 16  ;;  %v4660_v30 = vshrl.u32 %v5906_v21, 16  ;;  %v5910_v57 = vld [vmem:[%s6642_s29 + $0x28] sm:$0xf] }
  0xfb   : > { %v4651_v37 = vrot.slane %v4649_v63, 5  ;;  %v4202_v34 = vrot.slane %v4201_v19, 4  ;;  %v4663_v53 = vshll.u32 %v5906_v21, 16  ;;  %v4669_v1 = vshll.u32 %v7795_v48, 16  ;;  %v7841_v63 = vld [vmem:[%s8252_s3 + $0x68] sm:$0xf] }
  0xfc   : > { %v7788_v46 = vpop.f32.mrf.mxu0  ;;  %v7790_v39 = vpop.f32.mrf.mxu1  ;;  %6333 = vmatmul.mubr.msk.bf16.vlgmr.msra.gmra.mxu1 %vm620_vm1, %v5880_v13  ;;  %v4223_v62 = vshrl.u32 %v5849_v27, 16  ;;  %v4216_v10 = vrot.slane %v4215_v25, 4  ;;  %v4657_v38 = vrot.slane %v4655_v14, 5  ;;  %v4662_v55 = vrot.slane %v4660_v30, 4 }
  0xfd   : > { %6336 = vmatprep.mubr.msk.bf16.mxu1 %vm620_vm1, %v5881_v36  ;;  %6323 = vmatmul.mubr.msk.bf16.vlgmr.msra.gmra.mxu0 %vm620_vm1, %v5855_v16  ;;  %v4652_v44 = vor.u32 %v4651_v37, %v4648_v29  ;;  %v5851_v36 = vld [vmem:[%s6642_s29 + $0x40] sm:$0xf]  ;;  %v4207_v41 = vsel %vm6683_vm4, %v4202_v34, %v4206_v33  ;;  %v4665_v15 = vrot.slane %v4663_v53, 5  ;;  %v4671_v0 = vrot.slane %v4669_v1, 5 }
  0xfe   : > { %v7797_v3 = vpop.f32.mrf.mxu0  ;;  %v7799_v32 = vpop.f32.mrf.mxu1  ;;  %6341 = vmatpush3.bf16.msra.mxu0 %v4554_v45  ;;  %6351 = vmatpush3.bf16.msra.mxu1 %v4784_v31  ;;  %v4225_v7 = vrot.slane %v4223_v62, 4  ;;  %v4221_v45 = vsel %vm6683_vm4, %v4216_v10, %v4220_v4  ;;  %v4226_v21 = vshll.u32 %v5849_v27, 16  ;;  %v4232_v8 = vshll.u32 %v7727_v23, 16  ;;  %v7862_v62 = vld [vmem:[%s6642_s29 + $0x2c] sm:$0x1] }
  0xff   : > { %v4653_v31 = vrot.slane %v4652_v44, 4  ;;  %v5856_v28 = vcombine.low %v4207_v41, %v4221_v45  ;;  %v4666_v33 = vor.u32 %v4665_v15, %v4662_v55  ;;  %v4237_v11 = vshrl.u32 %v5851_v36, 16  ;;  %6406 = vmatprep.subr.msk.bf16.mxu0 %vm633_vm0, %v7841_v63  ;;  %v5912_v15 = vld [vmem:[%s6642_s29 + $0x30] sm:$0xf] }
 0x100   : > { %v7804_v43 = vpop.f32.mrf.mxu0  ;;  %v7806_v20 = vpop.f32.mrf.mxu1  ;;  %v4240_v24 = vshll.u32 %v5851_v36, 16  ;;  %v4228_v27 = vrot.slane %v4226_v21, 5  ;;  %v4234_v4 = vrot.slane %v4232_v8, 5  ;;  %v4246_v29 = vshll.u32 %v7737_v5, 16  ;;  %v5914_v21 = vld [vmem:[%s6642_s29 + $0x38] sm:$0xf] }
 0x101   : > { %v4658_v23 = vsel %vm6683_vm4, %v4653_v31, %v4657_v38  ;;  %6326 = vmatprep.mubr.msk.bf16.mxu0 %vm620_vm1, %v5856_v28  ;;  %v4667_v25 = vrot.slane %v4666_v33, 4  ;;  %v4239_v37 = vrot.slane %v4237_v11, 4  ;;  %v4674_v30 = vshrl.u32 %v5908_v52, 16  ;;  %v6485_v11 = vld [vmem:[%s6642_s29 + $0x10] ss:$8 sps:$4 sm:$0xff]  }
 0x102   : > { %v7819_v13 = vpop.f32.mrf.mxu0  ;;  %v7821_v40 = vpop.f32.mrf.mxu1  ;;  %v4242_v14 = vrot.slane %v4240_v24, 5  ;;  %v4229_v5 = vor.u32 %v4228_v27, %v4225_v7  ;;  %v4248_v1 = vrot.slane %v4246_v29, 5  ;;  %v4677_v10 = vshll.u32 %v5908_v52, 16  ;;  %v7879_v24 = vld [vmem:[%s6642_s29 + $0x3c] sm:$0x1] }
 0x103   : > { %v4683_v44 = vshll.u32 %v7835_v60, 16  ;;  %v4672_v38 = vsel %vm6683_vm4, %v4667_v25, %v4671_v0  ;;  %v4676_v36 = vrot.slane %v4674_v30, 4  ;;  %v4688_v41 = vshrl.u32 %v5910_v57, 16  ;;  %v5916_v30 = vld [vmem:[%s6642_s29 + $0x40] sm:$0xf] }
 0x104   : > { %v7827_v50 = vpop.f32.mrf.mxu0  ;;  %v7829_v12 = vpop.f32.mrf.mxu1  ;;  %6337 = vmatmul.mubr.msk.bf16.gmra.mxu1 %vm620_vm1, %v5882_v61  ;;  %v4243_v55 = vor.u32 %v4242_v14, %v4239_v37  ;;  %v5921_v7 = vcombine.low %v4658_v23, %v4672_v38  ;;  %v4230_v45 = vrot.slane %v4229_v5, 4  ;;  %v4679_v52 = vrot.slane %v4677_v10, 5 }
 0x105   : > { %v4685_v31 = vrot.slane %v4683_v44, 5  ;;  %v4690_v0 = vrot.slane %v4688_v41, 4  ;;  %v4691_v28 = vshll.u32 %v5910_v57, 16  ;;  %v4697_v33 = vshll.u32 %v7862_v62, 16  ;;  %v5017_v57 = vld [vmem:[%s8253_s4] sm:$0xf] }
 0x106   : > { %v7843_v16 = vpop.f32.mrf.mxu0  ;;  %v7845_v19 = vpop.f32.mrf.mxu1  ;;  %v4244_v8 = vrot.slane %v4243_v55, 4  ;;  %6352 = vmatprep.mubr.msk.bf16.mxu1 %vm620_vm1, %v5921_v7  ;;  %v4235_v23 = vsel %vm6683_vm4, %v4230_v45, %v4234_v4  ;;  %v4680_v25 = vor.u32 %v4679_v52, %v4676_v36  ;;  %v4702_v37 = vshrl.u32 %v5912_v15, 16  ;;  %6407 = vmatprep.subr.msk.bf16.mxu1 %vm633_vm0, %v5017_v57  ;;  %v7901_v45 = vld [vmem:[%s6642_s29 + $0x44] sm:$0x1] }
 0x107   : > { %v4705_v14 = vshll.u32 %v5912_v15, 16  ;;  %v4693_v10 = vrot.slane %v4691_v28, 5  ;;  %v4699_v44 = vrot.slane %v4697_v33, 5  ;;  %v4711_v38 = vshll.u32 %v7869_v51, 16 }
 0x108   : > { %v7853_v34 = vpop.f32.mrf.mxu0  ;;  %v7855_v53 = vpop.f32.mrf.mxu1  ;;  %v4249_v5 = vsel %vm6683_vm4, %v4244_v8, %v4248_v1  ;;  %v4681_v41 = vrot.slane %v4680_v25, 4  ;;  %v4704_v15 = vrot.slane %v4702_v37, 4  ;;  %v4716_v1 = vshrl.u32 %v5914_v21, 16 }
 0x109   : > { %v5857_v36 = vcombine.low %v4235_v23, %v4249_v5  ;;  %v4707_v7 = vrot.slane %v4705_v14, 5  ;;  %v4694_v52 = vor.u32 %v4693_v10, %v4690_v0  ;;  %v4713_v2 = vrot.slane %v4711_v38, 5  ;;  %v5918_v0 = vld [vmem:[%s6642_s29 + $0x48] sm:$0xf] }
 0x10a   : > { %v7871_v6 = vpop.f32.mrf.mxu0  ;;  %v7873_v61 = vpop.f32.mrf.mxu1  ;;  %v4719_v8 = vshll.u32 %v5914_v21, 16  ;;  %v4686_v23 = vsel %vm6683_vm4, %v4681_v41, %v4685_v31  ;;  %v4725_v25 = vshll.u32 %v7879_v24, 16  ;;  %v7913_v37 = vadd.f32 %v7676_v22, %v7766_v59  ;;  %v7920_v31 = vld [vmem:[%s6642_s29 + $0x4c] sm:$0x1] }
 0x10b   : > { %8281 = vst [vmem:[#allocation10_spill] sm:$0xff] %v7873_v61  ;;  %6327 = vmatmul.mubr.msk.bf16.gmra.mxu0 %vm620_vm1, %v5857_v36  ;;  %v4708_v5 = vor.u32 %v4707_v7, %v4704_v15  ;;  %v4695_v14 = vrot.slane %v4694_v52, 4  ;;  %v4718_v21 = vrot.slane %v4716_v1, 4  ;;  %v4730_v38 = vshrl.u32 %v5916_v30, 16 }
 0x10c   : > { %v7881_v27 = vpop.f32.mrf.mxu0  ;;  %v7883_v29 = vpop.f32.mrf.mxu1  ;;  %6342 = vmatprep.mubr.msk.bf16.mxu0 %vm620_vm1, %v6485_v11  ;;  %v4721_v10 = vrot.slane %v4719_v8, 5  ;;  %v4727_v56 = vrot.slane %v4725_v25, 5  ;;  %v4733_v41 = vshll.u32 %v5916_v30, 16  ;;  %v4739_v15 = vshll.u32 %v7901_v45, 16  ;;  %v6486_v25 = vld [vmem:[%s6642_s29 + $0x20] ss:$8 sps:$4 sm:$0xff]  }
 0x10d   : > { %8282 = vst [vmem:[#allocation11_spill] sm:$0xff] %v7883_v29  ;;  %v4709_v36 = vrot.slane %v4708_v5, 4  ;;  %v4700_v22 = vsel %vm6683_vm4, %v4695_v14, %v4699_v44  ;;  %v4732_v7 = vrot.slane %v4730_v38, 4  ;;  %v4744_v11 = vshrl.u32 %v5918_v0, 16  ;;  %v6487_v14 = vld [vmem:[%s6642_s29 + $0x30] ss:$8 sps:$4 sm:$0xff]  }
 0x10e   : > { %v7896_v55 = vpop.f32.mrf.mxu0  ;;  %v7898_v4 = vpop.f32.mrf.mxu1  ;;  %v4722_v59 = vor.u32 %v4721_v10, %v4718_v21  ;;  %v5922_v8 = vcombine.low %v4686_v23, %v4700_v22  ;;  %v4735_v30 = vrot.slane %v4733_v41, 5  ;;  %v4747_v61 = vshll.u32 %v5918_v0, 16 }
 0x10f   : > { %8283 = vst [vmem:[#allocation12_spill] sm:$0xff] %v7898_v4  ;;  %v4714_v5 = vsel %vm6683_vm4, %v4709_v36, %v4713_v2  ;;  %v4746_v29 = vrot.slane %v4744_v11, 4  ;;  %v4753_v44 = vshll.u32 %v7920_v31, 16  ;;  %v4942_v23 = vsel %vm633_vm0, %v7841_v63, 0  ;;  %v5929_v36 = vld [vmem:[%s6642_s29 + $0x10] sm:$0xe] }
 0x110   : > { %v7903_v28 = vpop.f32.mrf.mxu0  ;;  %v7905_v33 = vpop.f32.mrf.mxu1  ;;  %v4723_v4 = vrot.slane %v4722_v59, 4  ;;  %6353 = vmatmul.mubr.msk.bf16.vlgmr.msra.gmra.mxu1 %vm620_vm1, %v5922_v8  ;;  %v4736_v10 = vor.u32 %v4735_v30, %v4732_v7  ;;  %v772_v2 = vadd.f32 %v7692_v49, %v7788_v46  ;;  %v5019_v38 = vsel %vm633_vm0, %v5017_v57, 0  ;;  %v5930_v59 = vld [vmem:[%s6642_s29 + $0x18] sm:$0xe]  ;;  %v5932_v8 = vld [vmem:[%s6642_s29 + $0x28] sm:$0xe] }
 0x111   : > { %8284 = vst [vmem:[#allocation13_spill] sm:$0xff] %v7905_v33  ;;  %v4741_v33 = vrot.slane %v4739_v15, 5  ;;  %v4749_v41 = vrot.slane %v4747_v61, 5  ;;  %v4755_v15 = vrot.slane %v4753_v44, 5  ;;  %6371 = vmatpush3.bf16.msra.mxu1 %v5019_v38  ;;  %v783_v22 = vadd.f32 %v7704_v18, %v7797_v3  ;;  %v5931_v61 = vld [vmem:[%s6642_s29 + $0x20] sm:$0xe] }
 0x112   : > { %v7917_v26 = vpop.f32.mrf.mxu0  ;;  %v7927_v1 = vpop.f32.mrf.mxu1  ;;  %v4728_v0 = vsel %vm6683_vm4, %v4723_v4, %v4727_v56  ;;  %v4737_v49 = vrot.slane %v4736_v10, 4  ;;  %v775_v46 = vadd.f32 %v7729_v9, %v7804_v43  ;;  %v796_v56 = vadd.f32 %v7753_v17, %v7819_v13  ;;  %v5933_v30 = vld [vmem:[%s6642_s29 + $0x30] sm:$0xe] }
 0x113   : > { %v5923_v11 = vcombine.low %v4714_v5, %v4728_v0  ;;  %6343 = vmatmul.mubr.msk.bf16.vlgmr.msra.gmra.mxu0 %vm620_vm1, %v6486_v25  ;;  %v4750_v57 = vor.u32 %v4749_v41, %v4746_v29  ;;  %v788_v18 = vadd.f32 %v7768_v58, %v7827_v50  ;;  %v799_v3 = vadd.f32 %v7790_v39, %v7843_v16  ;;  %v6488_v58 = vld [vmem:[%s6642_s29 + $0x40] ss:$8 sps:$4 sm:$0xff]  }
 0x114   : > { %v7925_v52 = vpop.f32.mrf.mxu0  ;;  %v7948_v7 = vpop.f32.mrf.mxu1  ;;  %6361 = vmatpush3.bf16.msra.mxu0 %v4942_v23  ;;  %6346 = vmatprep.mubr.msk.bf16.mxu0 %vm620_vm1, %v6487_v14  ;;  %v5937_v4 = vrot.slane %v5929_v36, 9  ;;  %v4742_v9 = vsel %vm6683_vm4, %v4737_v49, %v4741_v33  ;;  %v791_v17 = vadd.f32 %v7799_v32, %v7853_v34  ;;  %v4885_v43 = vrot.slane %v7786_v42, 5  ;;  %v5934_v14 = vld [vmem:[%s6642_s29 + $0x38] sm:$0xe] }
 0x115   : > { %6356 = vmatprep.mubr.msk.bf16.mxu1 %vm620_vm1, %v5923_v11  ;;  %v5938_v13 = vrot.slane %v5930_v59, 9  ;;  %v4751_v29 = vrot.slane %v4750_v57, 4  ;;  %v4889_v50 = vrot.slane %v7795_v48, 5  ;;  %v957_v39 = vadd.f32 %v7871_v6, %v7913_v37  ;;  %v5936_v59 = vld [vmem:[%s6642_s29 + $0x48] sm:$0xe] }
 0x116   : > { %v7934_v21 = vpop.f32.mrf.mxu0  ;;  %v5939_v16 = vrot.slane %v5931_v61, 9  ;;  %v1434_v5 = vpop.f32.mrf.mxu1  ;;  %v4886_v33 = vsel %vm6751_vm7, %v5937_v4, %v4885_v43  ;;  %v4893_v32 = vrot.slane %v7835_v60, 5  ;;  %v5940_v34 = vrot.slane %v5932_v8, 9 }
 0x117   : > { %v4897_v42 = vrot.slane %v7862_v62, 5  ;;  %v4756_v44 = vsel %vm6683_vm4, %v4751_v29, %v4755_v15  ;;  %v4890_v48 = vsel %vm6751_vm7, %v5938_v13, %v4889_v50  ;;  %v955_v6 = vadd.f32 %v7881_v27, %v772_v2 }
 0x118   : > { %v943_v63 = vpop.f32.mrf.mxu0  ;;  %v958_v37 = vadd.f32 %v7896_v55, %v783_v22  ;;  %v5924_v23 = vcombine.low %v4742_v9, %v4756_v44  ;;  %v5946_v38 = vcombine.low %v4886_v33, %v4890_v48  ;;  %v4894_v60 = vsel %vm6751_vm7, %v5939_v16, %v4893_v32  ;;  %v6158_v27 = vpop.f32.mrf.mxu1  ;;  %v8288_v16 = vld [vmem:[#allocation13_spill] sm:$0xff] }
 0x119   : > { %v4898_v62 = vsel %vm6751_vm7, %v5940_v34, %v4897_v42  ;;  %v956_v36 = vadd.f32 %v7903_v28, %v775_v46  ;;  %v5941_v0 = vrot.slane %v5933_v30, 9  ;;  %v4901_v41 = vrot.slane %v7869_v51, 5 }
 0x11a   : > { %6357 = vmatmul.mubr.msk.bf16.gmra.mxu1 %vm620_vm1, %v5924_v23  ;;  %v5942_v55 = vrot.slane %v5934_v14, 9  ;;  %v4905_v15 = vrot.slane %v7879_v24, 5  ;;  %v961_v22 = vadd.f32 %v7917_v26, %v796_v56  ;;  %v5947_v28 = vcombine.low %v4894_v60, %v4898_v62  ;;  %v1447_v4 = vpop.f32.mrf.mxu1  ;;  %v8291_v14 = vld [vmem:[#allocation9_spill] sm:$0xff] }
 0x11b   : > { %v6144_v25 = vpop.f32.mrf.mxu0  ;;  %6347 = vmatmul.mubr.msk.bf16.gmra.mxu0 %vm620_vm1, %v6488_v58  ;;  %6372 = vmatprep.mubr.msk.bf16.mxu1 %vm620_vm1, %v7230_v47  ;;  %v4902_v51 = vsel %vm6751_vm7, %v5941_v0, %v4901_v41  ;;  %v5943_v11 = vrot.slane %v5935_v35, 9  ;;  %v959_v46 = vadd.f32 %v7925_v52, %v788_v18  ;;  %v962_v24 = vadd.f32 %v7934_v21, %v799_v3 }
 0x11c   : > { %6362 = vmatprep.mubr.msk.bf16.mxu0 %vm620_vm1, %v5946_v38  ;;  %v4906_v49 = vsel %vm6751_vm7, %v5942_v55, %v4905_v15  ;;  %v960_v61 = vadd.f32 %v943_v63, %v791_v17  ;;  %v4909_v26 = vrot.slane %v7901_v45, 5  ;;  %v5944_v56 = vrot.slane %v5936_v59, 9  ;;  %v8285_v63 = vld [vmem:[#allocation10_spill] sm:$0xff]  ;;  %v8286_v45 = vld [vmem:[#allocation11_spill] sm:$0xff] }
 0x11d   : > { %v1273_v10 = vpop.f32.mrf.mxu0  ;;  %v4913_v47 = vrot.slane %v7920_v31, 5  ;;  %v1076_v57 = vadd.f32 %v7806_v20, %v957_v39  ;;  %v5948_v9 = vcombine.low %v4902_v51, %v4906_v49  ;;  %v1074_v43 = vadd.f32 %v7821_v40, %v955_v6  ;;  %v8287_v20 = vld [vmem:[#allocation12_spill] sm:$0xff]  ;;  %v6159_v39 = vpop.f32.mrf.mxu1  ;;  %v8289_v40 = vld [vmem:[#allocation7_spill] sm:$0xff] }
 0x11e   : > { %v1077_v13 = vadd.f32 %v7829_v12, %v958_v37  ;;  %v1075_v29 = vadd.f32 %v7845_v19, %v956_v36  ;;  %v1080_v21 = vadd.f32 %v7855_v53, %v961_v22  ;;  %v1078_v18 = vadd.f32 %v8285_v63, %v959_v46 }
 0x11f   : > { %v6145_v2 = vpop.f32.mrf.mxu0  ;;  %v1306_v52 = vadd.f32 %v6144_v25, %v1076_v57  ;;  %v1081_v3 = vadd.f32 %v8286_v45, %v962_v24  ;;  %v1304_v17 = vadd.f32 %v1273_v10, %v1074_v43  ;;  %v1079_v50 = vadd.f32 %v8287_v20, %v960_v61  ;;  %v8290_v25 = vld [vmem:[#allocation8_spill] sm:$0xff]  ;;  %v1450_v42 = vpop.f32.mrf.mxu1 }
 0x120   : > { %v1307_v31 = vadd.f32 %v6145_v2, %v1077_v13  ;;  %v4910_v32 = vsel %vm6751_vm7, %v5943_v11, %v4909_v26  ;;  %v4914_v34 = vsel %vm6751_vm7, %v5944_v56, %v4913_v47  ;;  %vm5137_vm8 = vcmask 1040384  }
 0x121   : > { %v1276_v8 = vpop.f32.mrf.mxu0  ;;  %v1464_v33 = vadd.f32 %v8288_v16, %v1306_v52  ;;  %v1462_v12 = vadd.f32 %v7927_v1, %v1304_v17  ;;  %v5949_v44 = vcombine.low %v4910_v32, %v4914_v34 }
 0x122   : > { %v1305_v58 = vadd.f32 %v1276_v8, %v1075_v29  ;;  %6373 = vmatmul.mubr.msk.bf16.vlgmr.msra.gmra.mxu1 %vm620_vm1, %v8289_v40  ;;  %v1465_v19 = vadd.f32 %v7948_v7, %v1307_v31 }
 0x123   : > { %6363 = vmatmul.mubr.msk.bf16.vlgmr.msra.gmra.mxu0 %vm620_vm1, %v5947_v28  ;;  %6376 = vmatprep.mubr.msk.bf16.mxu1 %vm620_vm1, %v8290_v25 }
 0x124   : > { %v1463_v53 = vadd.f32 %v1434_v5, %v1305_v58  ;;  %6366 = vmatprep.mubr.msk.bf16.mxu0 %vm620_vm1, %v5948_v9 }
 0x12a   : > { %v6148_v30 = vpop.f32.mrf.mxu0  ;;  %6377 = vmatmul.mubr.msk.bf16.gmra.mxu1 %vm620_vm1, %v8291_v14 }
 0x12b   : > { %v1310_v48 = vadd.f32 %v6148_v30, %v1080_v21  ;;  %6367 = vmatmul.mubr.msk.bf16.gmra.mxu0 %vm620_vm1, %v5949_v44 }
 0x12c   : > { %v1289_v6 = vpop.f32.mrf.mxu0 }
 0x12d   : > { %v1308_v1 = vadd.f32 %v1289_v6, %v1078_v18  ;;  %v1468_v37 = vadd.f32 %v6158_v27, %v1310_v48 }
 0x12e   : > { %v6149_v5 = vpop.f32.mrf.mxu0 }
 0x12f   : > { %v6174_v7 = vpop.f32.mrf.mxu1  ;;  %v1311_v10 = vadd.f32 %v6149_v5, %v1081_v3  ;;  %v1466_v23 = vadd.f32 %v1447_v4, %v1308_v1 }
 0x130   : > { %v1292_v60 = vpop.f32.mrf.mxu0 }
 0x131   : > { %v1780_v38 = vpop.f32.mrf.mxu1  ;;  %v1309_v54 = vadd.f32 %v1292_v60, %v1079_v50  ;;  %v1469_v62 = vadd.f32 %v6159_v39, %v1311_v10 }
 0x132   : > { %v6164_v36 = vpop.f32.mrf.mxu0 }
 0x133   : > { %v6175_v35 = vpop.f32.mrf.mxu1  ;;  %v1583_v0 = vadd.f32 %v6164_v36, %v1464_v33  ;;  %v1467_v41 = vadd.f32 %v1450_v42, %v1309_v54 }
 0x134   : > { %v1550_v55 = vpop.f32.mrf.mxu0 }
 0x135   : > { %v1783_v2 = vpop.f32.mrf.mxu1  ;;  %v1581_v27 = vadd.f32 %v1550_v55, %v1462_v12  ;;  %v1813_v15 = vadd.f32 %v6174_v7, %v1583_v0 }
 0x136   : > { %v6165_v22 = vpop.f32.mrf.mxu0 }
 0x137   : > { %v1584_v59 = vadd.f32 %v6165_v22, %v1465_v19  ;;  %v1811_v28 = vadd.f32 %v1780_v38, %v1581_v27 }
 0x138   : > { %v1553_v11 = vpop.f32.mrf.mxu0 }
 0x139   : > { %v6178_v51 = vpop.f32.mrf.mxu1  ;;  %v1582_v49 = vadd.f32 %v1553_v11, %v1463_v53  ;;  %v1814_v46 = vadd.f32 %v6175_v35, %v1584_v59 }
 0x13a   : > { %v6168_v61 = vpop.f32.mrf.mxu0 }
 0x13b   : > { %v1796_v24 = vpop.f32.mrf.mxu1  ;;  %v1587_v26 = vadd.f32 %v6168_v61, %v1468_v37  ;;  %v1812_v56 = vadd.f32 %v1783_v2, %v1582_v49 }
 0x13c   : > { %v1566_v57 = vpop.f32.mrf.mxu0 }
 0x13d   : > { %v6179_v47 = vpop.f32.mrf.mxu1  ;;  %v1585_v4 = vadd.f32 %v1566_v57, %v1466_v23  ;;  %v1817_v8 = vadd.f32 %v6178_v51, %v1587_v26 }
 0x13e   : > { %v6169_v43 = vpop.f32.mrf.mxu0 }
 0x13f   : > { %v1799_v9 = vpop.f32.mrf.mxu1  ;;  %v1588_v13 = vadd.f32 %v6169_v43, %v1469_v62  ;;  %v1815_v29 = vadd.f32 %v1796_v24, %v1585_v4 }
 0x140   : > { %v1569_v21 = vpop.f32.mrf.mxu0 }
 0x141   : > { %v6194_v52 = vpop.f32.mrf.mxu1  ;;  %v1586_v63 = vadd.f32 %v1569_v21, %v1467_v41  ;;  %v1818_v18 = vadd.f32 %v6179_v47, %v1588_v13 }
 0x143   : > { %v2056_v45 = vpop.f32.mrf.mxu1  ;;  %v6184_v3 = vpop.f32.mrf.mxu0  ;;  %v1816_v31 = vadd.f32 %v1799_v9, %v1586_v63 }
 0x144   : > { %v1971_v17 = vadd.f32 %v6184_v3, %v1813_v15 }
 0x145   : > { %v6195_v58 = vpop.f32.mrf.mxu1  ;;  %v1938_v20 = vpop.f32.mrf.mxu0 }
 0x146   : > { %v1969_v50 = vadd.f32 %v1938_v20, %v1811_v28  ;;  %v2089_v39 = vadd.f32 %v6194_v52, %v1971_v17 }
 0x147   : > { %v2059_v16 = vpop.f32.mrf.mxu1  ;;  %v6185_v33 = vpop.f32.mrf.mxu0 }
 0x148   : > { %v1972_v40 = vadd.f32 %v6185_v33, %v1814_v46  ;;  %v2087_v12 = vadd.f32 %v2056_v45, %v1969_v50 }
 0x149   : > { %v6198_v19 = vpop.f32.mrf.mxu1  ;;  %v1941_v53 = vpop.f32.mrf.mxu0 }
 0x14a   : > { %v1970_v25 = vadd.f32 %v1941_v53, %v1812_v56  ;;  %v2090_v32 = vadd.f32 %v6195_v58, %v1972_v40 }
 0x14b   : > { %v2072_v34 = vpop.f32.mrf.mxu1  ;;  %v6188_v42 = vpop.f32.mrf.mxu0 }
 0x14c   : > { %v1975_v30 = vadd.f32 %v6188_v42, %v1817_v8  ;;  %v2088_v44 = vadd.f32 %v2059_v16, %v1970_v25 }
 0x14d   : > { %v6199_v48 = vpop.f32.mrf.mxu1  ;;  %v1954_v6 = vpop.f32.mrf.mxu0 }
 0x14e   : > { %v1973_v1 = vadd.f32 %v1954_v6, %v1815_v29  ;;  %v2093_v37 = vadd.f32 %v6198_v19, %v1975_v30 }
 0x14f   : > { %v2075_v7 = vpop.f32.mrf.mxu1  ;;  %v6189_v5 = vpop.f32.mrf.mxu0 }
 0x150   : > { %v1976_v14 = vadd.f32 %v6189_v5, %v1818_v18  ;;  %v2091_v10 = vadd.f32 %v2072_v34, %v1973_v1 }
 0x151   : > { %v6214_v23 = vpop.f32.mrf.mxu1  ;;  %v1957_v38 = vpop.f32.mrf.mxu0 }
 0x152   : > { %v1974_v60 = vadd.f32 %v1957_v38, %v1816_v31  ;;  %v2094_v54 = vadd.f32 %v6199_v48, %v1976_v14 }
 0x153   : > { %v2444_v62 = vpop.f32.mrf.mxu1  ;;  %v6204_v35 = vpop.f32.mrf.mxu0 }
 0x154   : > { %v2319_v36 = vadd.f32 %v6204_v35, %v2089_v39  ;;  %v2092_v0 = vadd.f32 %v2075_v7, %v1974_v60 }
 0x155   : > { %v6215_v41 = vpop.f32.mrf.mxu1  ;;  %v2286_v2 = vpop.f32.mrf.mxu0 }
 0x156   : > { %v2317_v55 = vadd.f32 %v2286_v2, %v2087_v12  ;;  %v2477_v27 = vadd.f32 %v6214_v23, %v2319_v36 }
 0x157   : > { %v2447_v15 = vpop.f32.mrf.mxu1  ;;  %v6205_v22 = vpop.f32.mrf.mxu0 }
 0x158   : > { %v2320_v59 = vadd.f32 %v6205_v22, %v2090_v32  ;;  %v2475_v28 = vadd.f32 %v2444_v62, %v2317_v55 }
 0x159   : > { %v6218_v51 = vpop.f32.mrf.mxu1  ;;  %v2289_v11 = vpop.f32.mrf.mxu0 }
 0x15a   : > { %v2318_v49 = vadd.f32 %v2289_v11, %v2088_v44  ;;  %v2478_v46 = vadd.f32 %v6215_v41, %v2320_v59 }
 0x15b   : > { %v2460_v24 = vpop.f32.mrf.mxu1 }
 0x15c   : > { %v2476_v61 = vadd.f32 %v2447_v15, %v2318_v49 }
 0x15d   : > { %v6219_v26 = vpop.f32.mrf.mxu1 }
 0x15f   : > { %v6208_v56 = vpop.f32.mrf.mxu0  ;;  %v2463_v57 = vpop.f32.mrf.mxu1 }
 0x160   : > { %v2323_v47 = vadd.f32 %v6208_v56, %v2093_v37 }
 0x161   : > { %v2302_v4 = vpop.f32.mrf.mxu0 }
 0x162   : > { %v2321_v8 = vadd.f32 %v2302_v4, %v2091_v10  ;;  %v2481_v9 = vadd.f32 %v6218_v51, %v2323_v47 }
 0x163   : > { %v6209_v43 = vpop.f32.mrf.mxu0 }
 0x164   : > { %v2324_v13 = vadd.f32 %v6209_v43, %v2094_v54  ;;  %v2479_v29 = vadd.f32 %v2460_v24, %v2321_v8 }
 0x165   : > { %v6234_v52 = vpop.f32.mrf.mxu1  ;;  %v2305_v21 = vpop.f32.mrf.mxu0 }
 0x166   : > { %v2322_v63 = vadd.f32 %v2305_v21, %v2092_v0  ;;  %v2482_v18 = vadd.f32 %v6219_v26, %v2324_v13 }
 0x167   : > { %v2793_v45 = vpop.f32.mrf.mxu1  ;;  %v6224_v3 = vpop.f32.mrf.mxu0 }
 0x168   : > { %v2596_v17 = vadd.f32 %v6224_v3, %v2477_v27  ;;  %v2480_v31 = vadd.f32 %v2463_v57, %v2322_v63 }
 0x169   : > { %v6235_v58 = vpop.f32.mrf.mxu1  ;;  %v2563_v20 = vpop.f32.mrf.mxu0 }
 0x16a   : > { %v2594_v50 = vadd.f32 %v2563_v20, %v2475_v28  ;;  %v2826_v39 = vadd.f32 %v6234_v52, %v2596_v17 }
 0x16b   : > { %v2796_v16 = vpop.f32.mrf.mxu1  ;;  %v6225_v33 = vpop.f32.mrf.mxu0 }
 0x16c   : > { %v2597_v40 = vadd.f32 %v6225_v33, %v2478_v46  ;;  %v2824_v12 = vadd.f32 %v2793_v45, %v2594_v50 }
 0x16d   : > { %v2566_v19 = vpop.f32.mrf.mxu0 }
 0x16e   : > { %v6238_v53 = vpop.f32.mrf.mxu1  ;;  %v2595_v25 = vadd.f32 %v2566_v19, %v2476_v61  ;;  %v2827_v32 = vadd.f32 %v6235_v58, %v2597_v40 }
 0x16f   : > { %v6228_v34 = vpop.f32.mrf.mxu0 }
 0x170   : > { %v2809_v42 = vpop.f32.mrf.mxu1  ;;  %v2600_v30 = vadd.f32 %v6228_v34, %v2481_v9  ;;  %v2825_v44 = vadd.f32 %v2796_v16, %v2595_v25 }
 0x171   : > { %v2579_v48 = vpop.f32.mrf.mxu0 }
 0x172   : > { %v6239_v6 = vpop.f32.mrf.mxu1  ;;  %v2598_v1 = vadd.f32 %v2579_v48, %v2479_v29  ;;  %v2830_v37 = vadd.f32 %v6238_v53, %v2600_v30 }
 0x173   : > { %v6229_v7 = vpop.f32.mrf.mxu0 }
 0x174   : > { %v2812_v5 = vpop.f32.mrf.mxu1  ;;  %v2601_v14 = vadd.f32 %v6229_v7, %v2482_v18  ;;  %v2828_v10 = vadd.f32 %v2809_v42, %v2598_v1 }
 0x175   : > { %v2582_v23 = vpop.f32.mrf.mxu0 }
 0x176   : > { %v6254_v38 = vpop.f32.mrf.mxu1  ;;  %v2599_v60 = vadd.f32 %v2582_v23, %v2480_v31  ;;  %v2831_v54 = vadd.f32 %v6239_v6, %v2601_v14 }
 0x177   : > { %v6244_v62 = vpop.f32.mrf.mxu0 }
 0x178   : > { %v3070_v35 = vpop.f32.mrf.mxu1  ;;  %v2984_v36 = vadd.f32 %v6244_v62, %v2826_v39  ;;  %v2829_v0 = vadd.f32 %v2812_v5, %v2599_v60 }
 0x179   : > { %v2951_v41 = vpop.f32.mrf.mxu0 }
 0x17a   : > { %v6255_v2 = vpop.f32.mrf.mxu1  ;;  %v2982_v55 = vadd.f32 %v2951_v41, %v2824_v12  ;;  %v8031_v27 = vadd.f32 %v6254_v38, %v2984_v36 }
 0x17b   : > { %v6245_v15 = vpop.f32.mrf.mxu0 }
 0x17c   : > { %v3073_v22 = vpop.f32.mrf.mxu1  ;;  %v2985_v59 = vadd.f32 %v6245_v15, %v2827_v32  ;;  %v8033_v28 = vadd.f32 %v3070_v35, %v2982_v55 }
 0x17d   : > { %v2954_v51 = vpop.f32.mrf.mxu0 }
 0x17e   : > { %v6258_v11 = vpop.f32.mrf.mxu1  ;;  %v2983_v49 = vadd.f32 %v2954_v51, %v2825_v44  ;;  %v8035_v46 = vadd.f32 %v6255_v2, %v2985_v59 }
 0x17f   : > { %v6248_v24 = vpop.f32.mrf.mxu0 }
 0x180   : > { %v3086_v61 = vpop.f32.mrf.mxu1  ;;  %v2988_v26 = vadd.f32 %v6248_v24, %v2830_v37  ;;  %v8037_v56 = vadd.f32 %v3073_v22, %v2983_v49 }
 0x181   : > { %v2967_v47 = vpop.f32.mrf.mxu0 }
 0x182   : > { %v6259_v57 = vpop.f32.mrf.mxu1  ;;  %v2986_v4 = vadd.f32 %v2967_v47, %v2828_v10  ;;  %v8039_v8 = vadd.f32 %v6258_v11, %v2988_v26 }
 0x183   : > { %v6249_v9 = vpop.f32.mrf.mxu0 }
 0x184   : > { %v3089_v43 = vpop.f32.mrf.mxu1  ;;  %v2989_v13 = vadd.f32 %v6249_v9, %v2831_v54  ;;  %v8041_v29 = vadd.f32 %v3086_v61, %v2986_v4 }
 0x185   : > { %v2970_v52 = vpop.f32.mrf.mxu0 }
 0x186   : > { %v8043_v21 = vpop.f32.mrf.mxu1  ;;  %v2987_v63 = vadd.f32 %v2970_v52, %v2829_v0  ;;  %v8045_v18 = vadd.f32 %v6259_v57, %v2989_v13 }
 0x188   : > { %v8047_v45 = vpop.f32.mrf.mxu1  ;;  %v6264_v3 = vpop.f32.mrf.mxu0  ;;  %v8049_v17 = vadd.f32 %v3089_v43, %v2987_v63 }
 0x18a   : > { %v8051_v31 = vpop.f32.mrf.mxu1  ;;  %v3300_v58 = vpop.f32.mrf.mxu0 }
 0x18c   : > { %v8053_v20 = vpop.f32.mrf.mxu1  ;;  %v6265_v39 = vpop.f32.mrf.mxu0 }
 0x18e   : > { %v8055_v50 = vpop.f32.mrf.mxu1  ;;  %v3303_v33 = vpop.f32.mrf.mxu0 }
 0x190   : > { %v8057_v16 = vpop.f32.mrf.mxu1 }
 0x192   : > { %v8059_v40 = vpop.f32.mrf.mxu1 }
 0x194   : > { %v8061_v19 = vpop.f32.mrf.mxu1 }
 0x195   : > { %v6268_v12 = vpop.f32.mrf.mxu0 }
 0x197   : > { %v8063_v53 = vpop.f32.mrf.mxu0 }
 0x199   : > { %v8065_v25 = vpop.f32.mrf.mxu0 }
 0x19b   : > { %v6294_v32 = vpop.f32.mrf.mxu1  ;;  %v8067_v34 = vpop.f32.mrf.mxu0 }
 0x19d   : > { %v8069_v42 = vpop.f32.mrf.mxu1  ;;  %v6284_v30 = vpop.f32.mrf.mxu0 }
 0x19f   : > { %v8071_v44 = vpop.f32.mrf.mxu1  ;;  %v3576_v48 = vpop.f32.mrf.mxu0 }
 0x1a1   : > { %v8073_v6 = vpop.f32.mrf.mxu1  ;;  %v6285_v1 = vpop.f32.mrf.mxu0 }
 0x1a3   : > { %v3579_v37 = vpop.f32.mrf.mxu0 }
 0x1a4   : > { %v8075_v7 = vpop.f32.mrf.mxu1 }
 0x1a5   : > { %v8077_v5 = vpop.f32.mrf.mxu0 }
 0x1a6   : > { %v8079_v14 = vpop.f32.mrf.mxu1 }
 0x1a7   : > { %v8081_v10 = vpop.f32.mrf.mxu0 }
 0x1a8   : > { %v8083_v23 = vpop.f32.mrf.mxu1 }
 0x1a9   : > { %v8085_v38 = vpop.f32.mrf.mxu0 }
 0x1aa   : > { %v8087_v60 = vpop.f32.mrf.mxu1 }
 0x1ab   : > { %8292 = vst [vmem:[#allocation10_spill] sm:$0xff] %v8087_v60  ;;  %v8089_v54 = vpop.f32.mrf.mxu0 }
 0x1ac   : > { %v8091_v62 = vpop.f32.mrf.mxu1 }
 0x1ad   : > { %v6304_v35 = vpop.f32.mrf.mxu0 }
 0x1ae   : > { %v8093_v36 = vpop.f32.mrf.mxu1 }
 0x1af   : > { %v3964_v0 = vpop.f32.mrf.mxu0 }
 0x1b0   : > { %v8095_v41 = vpop.f32.mrf.mxu1 }
 0x1b1   : > { %v6305_v2 = vpop.f32.mrf.mxu0 }
 0x1b2   : > { %v8097_v55 = vpop.f32.mrf.mxu1 }
 0x1b3   : > { %v3967_v15 = vpop.f32.mrf.mxu0 }
 0x1b4   : > { %v8099_v22 = vpop.f32.mrf.mxu1 }
 0x1b5   : > { %8293 = vst [vmem:[#allocation11_spill] sm:$0xff] %v8099_v22  ;;  %v8101_v59 = vpop.f32.mrf.mxu0  ;;  %v3331_v22 = vadd.f32 %v3300_v58, %v8033_v28  ;;  %v3337_v58 = vadd.f32 %v6268_v12, %v8039_v8  ;;  %v3336_v8 = vadd.f32 %v8067_v34, %v8049_v17 }
 0x1b6   : > { %v8103_v51 = vpop.f32.mrf.mxu1 }
 0x1b7   : > { %8294 = vst [vmem:[#allocation12_spill] sm:$0xff] %v8103_v51  ;;  %v8105_v11 = vpop.f32.mrf.mxu0  ;;  %v3333_v51 = vadd.f32 %v6264_v3, %v8031_v27  ;;  %v3489_v60 = vadd.f32 %v8047_v45, %v3331_v22  ;;  %v3495_v12 = vadd.f32 %v8055_v50, %v3337_v58  ;;  %v3494_v34 = vadd.f32 %v8061_v19, %v3336_v8 }
 0x1b8   : > { %v8107_v49 = vpop.f32.mrf.mxu1 }
 0x1b9   : > { %8295 = vst [vmem:[#allocation13_spill] sm:$0xff] %v8107_v49  ;;  %v8109_v24 = vpop.f32.mrf.mxu0  ;;  %v3607_v3 = vadd.f32 %v3576_v48, %v3489_v60 }
 0x1ba   : > { %8296 = vst [vmem:[#allocation7_spill] sm:$0xff] %v8109_v24  ;;  %v8111_v61 = vpop.f32.mrf.mxu1  ;;  %v3334_v24 = vadd.f32 %v6265_v39, %v8035_v46 }
 0x1bb   : > { %8297 = vst [vmem:[#allocation8_spill] sm:$0xff] %v8111_v61  ;;  %v8113_v26 = vpop.f32.mrf.mxu0  ;;  %v3837_v48 = vadd.f32 %v8069_v42, %v3607_v3 }
 0x1bc   : > { %8298 = vst [vmem:[#allocation9_spill] sm:$0xff] %v8113_v26  ;;  %v8115_v47 = vpop.f32.mrf.mxu1  ;;  %v3492_v28 = vadd.f32 %v8051_v31, %v3334_v24  ;;  %v3338_v31 = vadd.f32 %v8065_v25, %v8045_v18 }
 0x1bd   : > { %v6324_v57 = vpop.f32.mrf.mxu0 }
 0x1be   : > { %v8117_v4 = vpop.f32.mrf.mxu1  ;;  %v3610_v46 = vadd.f32 %v6285_v1, %v3492_v28  ;;  %v3995_v1 = vadd.f32 %v3964_v0, %v3837_v48  ;;  %v3496_v50 = vadd.f32 %v8059_v40, %v3338_v31  ;;  %v8311_v31 = vld [vmem:[#allocation12_spill] sm:$0xff] }
 0x1bf   : > { %8299 = vst [vmem:[#allocation14_spill] sm:$0xff] %v8117_v4  ;;  %v4313_v43 = vpop.f32.mrf.mxu0 }
 0x1c0   : > { %v8119_v9 = vpop.f32.mrf.mxu1  ;;  %v3614_v24 = vadd.f32 %v8085_v38, %v3496_v50 }
 0x1c1   : > { %8300 = vst [vmem:[#allocation15_spill] sm:$0xff] %v8119_v9  ;;  %v6325_v63 = vpop.f32.mrf.mxu0  ;;  %v3491_v9 = vadd.f32 %v8043_v21, %v3333_v51 }
 0x1c2   : > { %v8121_v13 = vpop.f32.mrf.mxu1 }
 0x1c3   : > { %8301 = vst [vmem:[#allocation16_spill] sm:$0xff] %v8121_v13  ;;  %v8128_v61 = vpop.f32.mrf.mxu0  ;;  %v3332_v13 = vadd.f32 %v3303_v33, %v8037_v56  ;;  %v3335_v56 = vadd.f32 %v8063_v53, %v8041_v29  ;;  %v3840_v29 = vadd.f32 %v8071_v44, %v3610_v46  ;;  %v3613_v53 = vadd.f32 %v8077_v5, %v3495_v12  ;;  %v8307_v46 = vld [vmem:[#allocation7_spill] sm:$0xff] }
 0x1c4   : > { %v8123_v52 = vpop.f32.mrf.mxu1 }
 0x1c5   : > { %8302 = vst [vmem:[#allocation17_spill] sm:$0xff] %v8123_v52  ;;  %v3609_v52 = vadd.f32 %v6284_v30, %v3491_v9  ;;  %v3490_v21 = vadd.f32 %v8053_v20, %v3332_v13 }
 0x1c6   : > { %v8125_v49 = vpop.f32.mrf.mxu1  ;;  %v8306_v28 = vld [vmem:[#allocation14_spill] sm:$0xff] }
 0x1c7   : > { %8303 = vst [vmem:[#allocation18_spill] sm:$0xff] %v8125_v49  ;;  %v3839_v39 = vadd.f32 %v6294_v32, %v3609_v52  ;;  %v3608_v30 = vadd.f32 %v3579_v37, %v3490_v21  ;;  %v3493_v37 = vadd.f32 %v8057_v16, %v3335_v56  ;;  %v4114_v16 = vadd.f32 %v8093_v36, %v3995_v1  ;;  %v8305_v52 = vld [vmem:[#allocation10_spill] sm:$0xff]  ;;  %v8308_v21 = vld [vmem:[#allocation9_spill] sm:$0xff] }
 0x1c8   : > { %v8131_v26 = vpop.f32.mrf.mxu1 }
 0x1c9   : > { %8304 = vst [vmem:[#allocation19_spill] sm:$0xff] %v8131_v26  ;;  %v3997_v22 = vadd.f32 %v6304_v35, %v3839_v39  ;;  %v3998_v35 = vadd.f32 %v6305_v2, %v3840_v29  ;;  %v3838_v18 = vadd.f32 %v8073_v6, %v3608_v30  ;;  %v3611_v17 = vadd.f32 %v8081_v10, %v3493_v37  ;;  %v8309_v39 = vld [vmem:[#allocation11_spill] sm:$0xff] }
 0x1ca   : > { %v8139_v49 = vpop.f32.mrf.mxu1  ;;  %v3612_v2 = vadd.f32 %v8089_v54, %v3494_v34  ;;  %v3843_v6 = vadd.f32 %v8075_v7, %v3613_v53  ;;  %v4344_v9 = vadd.f32 %v4313_v43, %v4114_v16  ;;  %v3844_v7 = vadd.f32 %v8083_v23, %v3614_v24  ;;  %v8310_v30 = vld [vmem:[#allocation15_spill] sm:$0xff]  ;;  %v8312_v1 = vld [vmem:[#allocation16_spill] sm:$0xff] }
 0x1cb   : > { %v8135_v4 = vpop.f32.mrf.mxu0  ;;  %v4116_v25 = vadd.f32 %v8091_v62, %v3997_v22  ;;  %v3996_v5 = vadd.f32 %v3967_v15, %v3838_v18  ;;  %v4117_v10 = vadd.f32 %v8095_v41, %v3998_v35  ;;  %v3841_v19 = vadd.f32 %v8079_v14, %v3611_v17  ;;  %v8313_v35 = vld [vmem:[#allocation13_spill] sm:$0xff] }
 0x1cc   : > { %v4001_v40 = vadd.f32 %v8101_v59, %v3843_v6  ;;  %v3842_v43 = vadd.f32 %v8305_v52, %v3612_v2  ;;  %v4502_v58 = vadd.f32 %v8306_v28, %v4344_v9 }
 0x1cd   : > { %v8141_v27 = vpop.f32.mrf.mxu0  ;;  %v4346_v51 = vadd.f32 %v6324_v57, %v4116_v25  ;;  %v4347_v57 = vadd.f32 %v6325_v63, %v4117_v10  ;;  %v4115_v36 = vadd.f32 %v8097_v55, %v3996_v5  ;;  %v3999_v54 = vadd.f32 %v8105_v11, %v3841_v19 }
 0x1ce   : > { %v4002_v63 = vadd.f32 %v8307_v46, %v3844_v7  ;;  %v4000_v55 = vadd.f32 %v8308_v21, %v3842_v43  ;;  %v8316_v9 = vld [vmem:[#allocation18_spill] sm:$0xff] }
 0x1cf   : > { %v8145_v26 = vpop.f32.mrf.mxu0  ;;  %v4504_v38 = vadd.f32 %v8115_v47, %v4346_v51  ;;  %v4345_v59 = vadd.f32 %v8128_v61, %v4115_v36  ;;  %v4120_v47 = vadd.f32 %v8309_v39, %v4001_v40  ;;  %v4505_v22 = vadd.f32 %v8310_v30, %v4347_v57 }
 0x1d0   : > { %v6354_v33 = vpop.f32.mrf.mxu1  ;;  %v4118_v61 = vadd.f32 %v8311_v31, %v3999_v54  ;;  %v4121_v18 = vadd.f32 %v8313_v35, %v4002_v63  ;;  %v8317_v36 = vld [vmem:[#allocation19_spill] sm:$0xff] }
 0x1d1   : > { %v8150_v45 = vpop.f32.mrf.mxu0  ;;  %v4350_v48 = vadd.f32 %v8135_v4, %v4120_v47  ;;  %v4503_v29 = vadd.f32 %v8312_v1, %v4345_v59 }
 0x1d2   : > { %v4820_v20 = vpop.f32.mrf.mxu1  ;;  %v4348_v37 = vadd.f32 %v8141_v27, %v4118_v61 }
 0x1d3   : > { %v6344_v32 = vpop.f32.mrf.mxu0 }
 0x1d4   : > { %v8161_v60 = vpop.f32.mrf.mxu1  ;;  %v4623_v14 = vadd.f32 %v6344_v32, %v4504_v38  ;;  %v4506_v10 = vadd.f32 %v8316_v9, %v4348_v37 }
 0x1d5   : > { %v4590_v42 = vpop.f32.mrf.mxu0 }
 0x1d6   : > { %v8168_v0 = vpop.f32.mrf.mxu1  ;;  %v4621_v23 = vadd.f32 %v4590_v42, %v4502_v58  ;;  %v4853_v53 = vadd.f32 %v6354_v33, %v4623_v14  ;;  %v8314_v42 = vld [vmem:[#allocation8_spill] sm:$0xff]  ;;  %v8315_v33 = vld [vmem:[#allocation17_spill] sm:$0xff] }
 0x1d7   : > { %v6345_v44 = vpop.f32.mrf.mxu0  ;;  %v4119_v25 = vadd.f32 %v8314_v42, %v4000_v55  ;;  %v4508_v16 = vadd.f32 %v8315_v33, %v4350_v48 }
 0x1d8   : > { %v4624_v32 = vadd.f32 %v6345_v44, %v4505_v22  ;;  %v4851_v5 = vadd.f32 %v4820_v20, %v4621_v23  ;;  %v4351_v44 = vadd.f32 %v8145_v26, %v4121_v18 }
 0x1d9   : > { %v4593_v62 = vpop.f32.mrf.mxu0  ;;  %v4349_v51 = vadd.f32 %v8150_v45, %v4119_v25 }
 0x1da   : > { %v8177_v13 = vpop.f32.mrf.mxu1  ;;  %v4622_v4 = vadd.f32 %v4593_v62, %v4503_v29  ;;  %v4854_v6 = vadd.f32 %v8161_v60, %v4624_v32  ;;  %v4509_v38 = vadd.f32 %v8317_v36, %v4351_v44 }
 0x1db   : > { %v6348_v15 = vpop.f32.mrf.mxu0  ;;  %v4507_v54 = vadd.f32 %v8139_v49, %v4349_v51 }
 0x1dc   : > { %v8184_v3 = vpop.f32.mrf.mxu1  ;;  %v4627_v62 = vadd.f32 %v6348_v15, %v4508_v16  ;;  %v4852_v45 = vadd.f32 %v8168_v0, %v4622_v4 }
 0x1dd   : > { %v4606_v41 = vpop.f32.mrf.mxu0 }
 0x1de   : > { %v8191_v56 = vpop.f32.mrf.mxu1  ;;  %v4625_v57 = vadd.f32 %v4606_v41, %v4506_v10  ;;  %v4857_v0 = vadd.f32 %v8177_v13, %v4627_v62 }
 0x1df   : > { %v6349_v11 = vpop.f32.mrf.mxu0 }
 0x1e0   : > { %v8196_v8 = vpop.f32.mrf.mxu1  ;;  %v4628_v14 = vadd.f32 %v6349_v11, %v4509_v38  ;;  %v4855_v30 = vadd.f32 %v8184_v3, %v4625_v57 }
 0x1e1   : > { %v4609_v12 = vpop.f32.mrf.mxu0 }
 0x1e2   : > { %v6374_v17 = vpop.f32.mrf.mxu1  ;;  %v4626_v28 = vadd.f32 %v4609_v12, %v4507_v54  ;;  %v4858_v29 = vadd.f32 %v8191_v56, %v4628_v14 }
 0x1e3   : > { %v6364_v50 = vpop.f32.mrf.mxu0  ;;  %5096 = vst [vmem:[%s6652_s18 + $0x10] sm:$0xff] %v6374_v17  ;;  %v5157_v15 = vmul.f32 %v6374_v17, %v6374_v17 }
 0x1e4   : > { %v5011_v34 = vadd.f32 %v6364_v50, %v4853_v53  ;;  %v5055_v24 = vpop.f32.mrf.mxu1  ;;  %v4856_v18 = vadd.f32 %v8196_v8, %v4626_v28 }
 0x1e5   : > { %v4978_v27 = vpop.f32.mrf.mxu0  ;;  %5094 = vst [vmem:[%s6652_s18] sm:$0xff] %v5055_v24  ;;  %v5155_v19 = vmul.f32 %v5055_v24, %v5055_v24 }
 0x1e6   : > { %5088 = vst [vmem:[%s6647_s12 + $0x10] sm:$0xff] %v5011_v34  ;;  %v5009_v2 = vadd.f32 %v4978_v27, %v4851_v5  ;;  %v6375_v40 = vpop.f32.mrf.mxu1  ;;  %v5118_v61 = vmul.f32 %v5011_v34, %v5011_v34 }
 0x1e7   : > { %v6365_v20 = vpop.f32.mrf.mxu0  ;;  %5097 = vst [vmem:[%s6652_s18 + $0x18] sm:$0xff] %v6375_v40  ;;  %v5158_v46 = vmul.f32 %v6375_v40, %v6375_v40 }
 0x1e8   : > { %5086 = vst [vmem:[%s6647_s12] sm:$0xff] %v5009_v2  ;;  %v5012_v26 = vadd.f32 %v6365_v20, %v4854_v6  ;;  %v5058_v7 = vpop.f32.mrf.mxu1  ;;  %v5116_v55 = vmul.f32 %v5009_v2, %v5009_v2 }
 0x1e9   : > { %v4981_v60 = vpop.f32.mrf.mxu0  ;;  %5095 = vst [vmem:[%s6652_s18 + $0x8] sm:$0xff] %v5058_v7  ;;  %v5142_v52 = vadd.f32 %v5058_v7, %v5055_v24  ;;  %v5156_v43 = vmul.f32 %v5058_v7, %v5058_v7 }
 0x1ea   : > { %5089 = vst [vmem:[%s6647_s12 + $0x18] sm:$0xff] %v5012_v26  ;;  %v5010_v59 = vadd.f32 %v4981_v60, %v4852_v45  ;;  %v6378_v58 = vpop.f32.mrf.mxu1  ;;  %v5119_v25 = vmul.f32 %v5012_v26, %v5012_v26 }
 0x1eb   : > { %v6368_v41 = vpop.f32.mrf.mxu0  ;;  %v5143_v63 = vadd.f32 %v6374_v17, %v5142_v52  ;;  %v5163_v49 = vadd.f32 %v5156_v43, %v5155_v19  ;;  %5100 = vst [vmem:[%s6652_s18 + $0x30] sm:$0xff] %v6378_v58  ;;  %v5161_v42 = vmul.f32 %v6378_v58, %v6378_v58 }
 0x1ec   : > { %5087 = vst [vmem:[%s6647_s12 + $0x8] sm:$0xff] %v5010_v59  ;;  %v5103_v21 = vadd.f32 %v5010_v59, %v5009_v2  ;;  %v5071_v39 = vpop.f32.mrf.mxu1  ;;  %v5117_v47 = vmul.f32 %v5010_v59, %v5010_v59  ;;  %v5015_v23 = vadd.f32 %v6368_v41, %v4857_v0 }
 0x1ed   : > { %v4994_v11 = vpop.f32.mrf.mxu0  ;;  %v5164_v22 = vadd.f32 %v5163_v49, %v5157_v15  ;;  %5098 = vst [vmem:[%s6652_s18 + $0x20] sm:$0xff] %v5071_v39  ;;  %v5144_v48 = vadd.f32 %v6375_v40, %v5143_v63  ;;  %v5159_v13 = vmul.f32 %v5071_v39, %v5071_v39 }
 0x1ee   : > { %v5104_v31 = vadd.f32 %v5103_v21, %v5011_v34  ;;  %v6379_v12 = vpop.f32.mrf.mxu1  ;;  %v5124_v32 = vadd.f32 %v5117_v47, %v5116_v55  ;;  %5092 = vst [vmem:[%s6647_s12 + $0x30] sm:$0xff] %v5015_v23  ;;  %v5013_v1 = vadd.f32 %v4994_v11, %v4855_v30  ;;  %v5122_v20 = vmul.f32 %v5015_v23, %v5015_v23  ;;  %v5141_v30 = vld [vmem:[%s6634_s21] sm:$0x3] }
 0x1ef   : > { %v6369_v53 = vpop.f32.mrf.mxu0  ;;  %v5145_v37 = vadd.f32 %v5144_v48, %v5071_v39  ;;  %v5165_v35 = vadd.f32 %v5164_v22, %v5158_v46  ;;  %5101 = vst [vmem:[%s6652_s18 + $0x38] sm:$0xff] %v6379_v12  ;;  %v5162_v27 = vmul.f32 %v6379_v12, %v6379_v12 }
 0x1f0   : > { %v5105_v3 = vadd.f32 %v5104_v31, %v5012_v26  ;;  %v5125_v17 = vadd.f32 %v5124_v32, %v5118_v61  ;;  %v5074_v50 = vpop.f32.mrf.mxu1  ;;  %5090 = vst [vmem:[%s6647_s12 + $0x20] sm:$0xff] %v5013_v1  ;;  %v5016_v4 = vadd.f32 %v6369_v53, %v4858_v29  ;;  %v5120_v33 = vmul.f32 %v5013_v1, %v5013_v1  ;;  %v5102_v61 = vld [vmem:[%s6624_s30] sm:$0x3] }
 0x1f1   : > { %v4997_v34 = vpop.f32.mrf.mxu0  ;;  %v5166_v5 = vadd.f32 %v5165_v35, %v5159_v13  ;;  %5099 = vst [vmem:[%s6652_s18 + $0x28] sm:$0xff] %v5074_v50  ;;  %v5146_v44 = vadd.f32 %v5145_v37, %v5074_v50  ;;  %v5160_v56 = vmul.f32 %v5074_v50, %v5074_v50 }
 0x1f2   : > { %v5106_v51 = vadd.f32 %v5105_v3, %v5013_v1  ;;  %v5126_v16 = vadd.f32 %v5125_v17, %v5119_v25  ;;  %5093 = vst [vmem:[%s6647_s12 + $0x38] sm:$0xff] %v5016_v4  ;;  %v5014_v24 = vadd.f32 %v4997_v34, %v4856_v18  ;;  %v5123_v36 = vmul.f32 %v5016_v4, %v5016_v4 }
 0x1f3   : > { %v5147_v2 = vadd.f32 %v6378_v58, %v5146_v44  ;;  %v5167_v8 = vadd.f32 %v5166_v5, %v5160_v56 }
 0x1f4   : > { %v5127_v6 = vadd.f32 %v5126_v16, %v5120_v33  ;;  %5091 = vst [vmem:[%s6647_s12 + $0x28] sm:$0xff] %v5014_v24  ;;  %v5107_v62 = vadd.f32 %v5106_v51, %v5014_v24  ;;  %v5121_v9 = vmul.f32 %v5014_v24, %v5014_v24 }
 0x1f5   : > { %v5148_v10 = vadd.f32 %v6379_v12, %v5147_v2  ;;  %v5168_v40 = vadd.f32 %v5167_v8, %v5161_v42 }
 0x1f6   : > { %v5108_v19 = vadd.f32 %v5107_v62, %v5015_v23  ;;  %v5128_v26 = vadd.f32 %v5127_v6, %v5121_v9 }
 0x1f7   : > { %v5149_v45 = vrot.slane %v5148_v10, 4  ;;  %v5169_v57 = vadd.f32 %v5168_v40, %v5162_v27 }
 0x1f8   : > { %v5109_v38 = vadd.f32 %v5108_v19, %v5016_v4  ;;  %v5129_v54 = vadd.f32 %v5128_v26, %v5122_v20 }
 0x1f9   : > { %v5150_v7 = vadd.f32 %v5149_v45, %v5148_v10  ;;  %v5170_v60 = vrot.slane %v5169_v57, 4 }
 0x1fa   : > { %v5110_v15 = vrot.slane %v5109_v38, 4  ;;  %v5130_v52 = vadd.f32 %v5129_v54, %v5123_v36 }
 0x1fb   : > { %v5151_v43 = vrot.slane %v5150_v7, 2  ;;  %v5171_v59 = vadd.f32 %v5170_v60, %v5169_v57 }
 0x1fc   : > { %v5111_v14 = vadd.f32 %v5110_v15, %v5109_v38  ;;  %v5131_v28 = vrot.slane %v5130_v52, 4 }
 0x1fd   : > { %v5152_v58 = vadd.f32 %v5151_v43, %v5150_v7  ;;  %v5172_v0 = vrot.slane %v5171_v59, 2 }
 0x1fe   : > { %v5112_v41 = vrot.slane %v5111_v14, 2  ;;  %v5132_v46 = vadd.f32 %v5131_v28, %v5130_v52 }
 0x1ff   : > { %v5153_v63 = vrot.slane %v5152_v58, 1  ;;  %v5173_v49 = vadd.f32 %v5172_v0, %v5171_v59 }
 0x200   : > { %v5113_v21 = vadd.f32 %v5112_v41, %v5111_v14  ;;  %v5133_v55 = vrot.slane %v5132_v46, 2 }
 0x201   : > { %v5174_v39 = vrot.slane %v5173_v49, 1  ;;  %v5154_v11 = vadd.f32 %v5153_v63, %v5152_v58 }
 0x202   : > { %v5114_v47 = vrot.slane %v5113_v21, 1  ;;  %v5134_v23 = vadd.f32 %v5133_v55, %v5132_v46 }
 0x203   : > { %v5175_v22 = vadd.f32 %v5174_v39, %v5173_v49 }
 0x204   : > { %v5135_v48 = vrot.slane %v5134_v23, 1  ;;  %v5115_v12 = vadd.f32 %v5114_v47, %v5113_v21 }
 0x205   : > { %v5176_v13 = vsel %vm5137_vm8, %v5154_v11, %v5175_v22 }
 0x206   : > { %v5177_v31 = vadd.f32 %v5176_v13, %v5141_v30  ;;  %v5136_v32 = vadd.f32 %v5135_v48, %v5134_v23 }
 0x208   : > { %5178 = vst [vmem:[%s6634_s21] sm:$0x3] %v5177_v31  ;;  %v5138_v1 = vsel %vm5137_vm8, %v5115_v12, %v5136_v32 }
 0x209   : > { %v5139_v29 = vadd.f32 %v5138_v1, %v5102_v61 }
 0x20b   : > { %5140 = vst [vmem:[%s6624_s30] sm:$0x3] %v5139_v29 }
 0x20c PF: > { %s8318_s29 = sld [smem:[#allocation4_spill]] }
 0x20d   : > { %s8319_s27 = sld [smem:[#allocation2_spill]] }
 0x20e   : > { %s8320_s28 = sld [smem:[#allocation3_spill]] }
 0x20f   : > { %s8322_s30 = sld [smem:[#allocation6_spill]] }
 0x212   : > { %s19_s9 = sadd.s32 1, %s8318_s29   ;;  %s8321_s29 = sld [smem:[#allocation5_spill]] }
 0x213   : > { %p16_p11 = scmp.ge.s32.totalorder %s19_s9, 18  }
 0x215   :  { %18 = sbr.rel (!%p16_p11) target bundleno = 4 (0x4), region = 148 }

// kernel: unet_block_forward.6
= control target key start
LH: loop header
LB: loop body
LE: loop exit
PB: predicated region body
PF: predicated region fallthrough
CT: control target
= control target key end

     0   :  { %s8895_s18 = smov 0   ;;  %s8897_s19 = smov 0   ;;  %s11005_s0 = inlined_call_operand.vmem [shape: bf16[2,10,10,10,128], index: 0, kind: input, shape index: {}, may-alias: {0,1,2}]   ;;  %s11006_s1 = inlined_call_operand.vmem [shape: bf16[2,10,10,10,128], index: 1, kind: input, shape index: {}, may-alias: {0,1,2}]   ;;  %s11007_s2 = inlined_call_operand.vmem [shape: bf16[2,10,10,10,128], index: 2, kind: input, shape index: {}, may-alias: {0,1,2}]   ;;  %s11008_s3 = inlined_call_operand.vmem [shape: bf16[27,128,128], index: 3, kind: input, shape index: {}]   ;;  %s11009_s4 = inlined_call_operand.vmem [shape: f32[2,8,64,128], index: 4, kind: output, shape index: {0}]   ;;  %s11010_s5 = inlined_call_operand.vmem [shape: f32[2,2,128], index: 5, kind: output, shape index: {1}]  }
   0x1   :  { %11011 = sst [smem:[#allocation22_spill]] %s11005_s0  ;;  %s8899_s20 = smov 0  }
   0x2   :  { %s8901_s21 = smov 0   ;;  %s8903_s22 = smov 0  }
   0x3 LB: > { %s25_s23 = sadd.s32 1, %s8854_s20  ;;  %s28_s24 = sadd.s32 1, %s8858_s21  ;;  %s8862_s22 = sphi %s8903_s22, %s16_s22   ;;  %s8858_s21 = sphi %s8901_s21, %s11060_s21   ;;  %s8854_s20 = sphi %s8899_s20, %s11059_s20   ;;  %s8850_s19 = sphi %s8897_s19, %s11058_s19   ;;  %s8846_s18 = sphi %s8895_s18, %s11057_s18  }
   0x4   : > { %p26_p0 = scmp.ge.s32.totalorder %s25_s23, 8  ;;  %p6524_p1 = scmp.ge.s32.totalorder %s8862_s22, 1 }
   0x5   : > { %p250_p2 = scmp.lt.s32.totalorder %s8862_s22, 17 }
   0x6   : > { %s11062_s23 = smov (%p26_p0, %s25_s23), 0  ;;  %s11064_s24 = smov (!%p26_p0, %s28_s24), %s8858_s21 }
   0x7   : > { %11012 = sst [smem:[#allocation2_spill]] %s11062_s23  ;;  %p251_p3 = pnand %p6524_p1, %p250_p2 }
   0x8   : > { %p30_p4 = scmp.ge.s32.totalorder %s11064_s24, 2 }
   0x9   : > { %254 = sbr.rel (%p251_p3) target bundleno = 720 (0x2d0), region = 36 }
   0xa   : > { %s11066_s24 = smov (%p30_p4, %s11064_s24), 0 }
   0xb   : > { %11013 = sst [smem:[#allocation3_spill]] %s11066_s24 }
   0xe   : > { %p310_p5 = scmp.lt.s32.totalorder %s8850_s19, 1  ;;  %p312_p6 = scmp.lt.s32.totalorder %s8846_s18, 9 }
   0xf   : > { %s319_s25 = sadd.s32 1, %s8846_s18  ;;  %s330_s26 = sadd.s32 2, %s8846_s18 }
  0x10   : > { %s11068_s19 = smov (!%p310_p5, %s8850_s19), 1  ;;  %p322_p7 = scmp.lt.s32.totalorder %s319_s25, 9 }
  0x11   : > { %s313_s27 = scalar_select %p312_p6, %s8846_s18, 9 }
  0x12   : > { %s8528_s28 = smul.u32 200, %s11068_s19  ;;  %s11070_s25 = smov (!%p322_p7, %s319_s25), 9 }
  0x13   : > { %s8527_s29 = smul.u32 20, %s313_s27  ;;  %p333_p8 = scmp.lt.s32.totalorder %s330_s26, 9 }
  0x14   : > { %s8529_s7 = smul.u32 20, %s11070_s25  ;;  %s11014_s0 = sld [smem:[#allocation22_spill]] }
  0x15   : > { %s316_s30 = sadd.s32 %s8528_s28, %s8527_s29  ;;  %p343_p9 = scmp.lt.s32.totalorder %s8846_s18, 7 }
  0x16   : > { %s6525_s6 = sshll.u32 %s316_s30, 2  ;;  %s326_s11 = sadd.s32 %s8529_s7, %s8528_s28 }
  0x17   : > { %s6531_s12 = sshll.u32 %s11068_s19, 1  ;;  %s6526_s13 = sshll.u32 %s326_s11, 2 }
  0x18   : > { %s8940_s16 = scalar_lea.vmem %s11010_s5, %s6531_s12  ;;  %s8945_s29 = scalar_lea.vmem %s11006_s1, %s6526_s13 }
  0x19   : > { %s6529_s25 = sshll.u32 %s11068_s19, 6  ;;  %s11072_s26 = smov (!%p333_p8, %s330_s26), 9 }
  0x1a   : > { %s8934_s10 = scalar_lea.vmem %s11014_s0, %s6525_s6  ;;  %s8530_s8 = smul.u32 20, %s11072_s26 }
  0x1b   : > { %s344_s30 = scalar_select %p343_p9, %s8846_s18, 7 }
  0x1c   : > { %s337_s9 = sadd.s32 %s8530_s8, %s8528_s28  ;;  %p6532_p10 = scmp.ne.s32.totalorder %s8846_s18, 0 }
  0x1d   : > { %s6528_s6 = sshll.u32 %s344_s30, 3  ;;  %s6527_s7 = sshll.u32 %s337_s9, 2 }
  0x1e   : > { %s347_s0 = sadd.s32 %s6529_s25, %s6528_s6  ;;  %s8951_s14 = scalar_lea.vmem %s11007_s2, %s6527_s7 }
  0x1f   : > { %s6530_s24 = sshll.u32 %s347_s0, 3  ;;  %358 = sbr.rel (%p6532_p10) target bundleno = 38 (0x26), region = 40 }
  0x20   : > { %s8956_s17 = scalar_lea.vmem %s11009_s4, %s6530_s24 }
  0x24   : > { %v8864_v0 = vmov 0.0  }
  0x25   : > { %359 = vst [vmem:[%s8940_s16] sm:$0x3] %v8864_v0 }
  0x26 PF: > { %v8572_v1 = vld [vmem:[%s11008_s3 + $0x78] sm:$0xff]   ;;  %v8574_v3 = vld [vmem:[%s11008_s3 + $0x70] sm:$0xff]   ;;  %v8576_v5 = vld [vmem:[%s11008_s3 + $0x68] sm:$0xff]   ;;  %vm392_vm0 = vsmask.f32 3328  ;;  %vm814_vm3 = vcmask 1042432  }
  0x27   : > { %v8573_v2 = vld [vmem:[%s11008_s3 + $0x38] sm:$0xff]   ;;  %7863 = vmatprep.subr.bf16.mxu0 %v8572_v1  ;;  %v8575_v4 = vld [vmem:[%s11008_s3 + $0x30] sm:$0xff]   ;;  %v8577_v6 = vld [vmem:[%s11008_s3 + $0x28] sm:$0xff]   ;;  %vm393_vm1 = vsmask.f32 7440  ;;  %vm815_vm4 = vcmask 1046532  }
  0x28   : > { %7887 = vmatprep.subr.bf16.mxu1 %v8573_v2  ;;  %7864 = vmatpush3.bf16.msra.mxu0 %v8572_v1  ;;  %v8578_v7 = vld [vmem:[%s11008_s3 + $0x60] sm:$0xff]   ;;  %v8580_v9 = vld [vmem:[%s11008_s3 + $0x58] sm:$0xff]   ;;  %v8582_v11 = vld [vmem:[%s11008_s3 + $0x50] sm:$0xff]   ;;  %vm6348_vm6 = vcmask 1040384  }
  0x29   : > { %7888 = vmatpush3.bf16.msra.mxu1 %v8573_v2  ;;  %7865 = vmatprep.subr.bf16.mxu0 %v8574_v3  ;;  %v8579_v8 = vld [vmem:[%s11008_s3 + $0x20] sm:$0xff]   ;;  %v8581_v10 = vld [vmem:[%s11008_s3 + $0x18] sm:$0xff]   ;;  %v361_v13 = vld [vmem:[%s8934_s10 + $0x8] sm:$0xf] }
  0x2a   : > { %7889 = vmatprep.subr.bf16.mxu1 %v8575_v4  ;;  %v360_v12 = vld [vmem:[%s8934_s10] sm:$0xf]  ;;  %v8996_v14 = vld [vmem:[%s8934_s10 + $0x4] sm:$0x1]  ;;  %v8583_v15 = vld [vmem:[%s11008_s3 + $0x10] sm:$0xff]   ;;  %v410_v22 = vshrl.u32 %v361_v13, 16 }
  0x2b   : > { %v9002_v16 = vld [vmem:[%s8934_s10 + $0xc] sm:$0x1]  ;;  %v6561_v17 = vcombine.low %v360_v12, %v361_v13  ;;  %v396_v19 = vshrl.u32 %v360_v12, 16  ;;  %v399_v20 = vshll.u32 %v360_v12, 16  ;;  %v405_v21 = vshll.u32 %v8996_v14, 16  ;;  %vm9031_vm2 = vmor %vm392_vm0, %vm393_vm1  ;;  %v8586_v47 = vld [vmem:[%s11008_s3 + $0x40] sm:$0xff]  }
  0x2c   : > { %7866 = vmatpush3.bf16.msra.mxu0 %v8574_v3  ;;  %v8584_v18 = vld [vmem:[%s11008_s3 + $0x48] sm:$0xff]   ;;  %v9009_v23 = vld [vmem:[%s8934_s10 + $0x10] sm:$0xf]  ;;  %v413_v25 = vshll.u32 %v361_v13, 16  ;;  %v419_v26 = vshll.u32 %v9002_v16, 16  ;;  %v412_v31 = vrot.slane %v410_v22, 4  ;;  %vm9114_vm5 = vmor %vm814_vm3, %vm815_vm4 }
  0x2d   : > { %7890 = vmatpush3.bf16.msra.mxu1 %v8575_v4  ;;  %7867 = vmatprep.subr.bf16.mxu0 %v8576_v5  ;;  %v8585_v24 = vld [vmem:[%s11008_s3 + $0x8] sm:$0xff]   ;;  %v9016_v27 = vld [vmem:[%s8934_s10 + $0x18] sm:$0xf]  ;;  %v398_v28 = vrot.slane %v396_v19, 4  ;;  %v401_v29 = vrot.slane %v399_v20, 5  ;;  %v407_v30 = vrot.slane %v405_v21, 5 }
  0x2e   : > { %7891 = vmatprep.subr.bf16.mxu1 %v8577_v6  ;;  %7903 = vmatprep.mubr.bf16.mxu1 %v6561_v17  ;;  %v9019_v32 = vld [vmem:[%s8934_s10 + $0x14] sm:$0x1]  ;;  %v415_v33 = vrot.slane %v413_v25, 5  ;;  %v421_v34 = vrot.slane %v419_v26, 5  ;;  %v9022_v35 = vld [vmem:[%s8934_s10 + $0x1c] sm:$0x1]  ;;  %v6562_v3 = vcombine.low %v9009_v23, %v9016_v27 }
  0x2f   : > { %v424_v36 = vshrl.u32 %v9009_v23, 16  ;;  %v427_v37 = vshll.u32 %v9009_v23, 16  ;;  %v402_v38 = vor.u32 %v401_v29, %v398_v28  ;;  %v433_v39 = vshll.u32 %v9019_v32, 16  ;;  %v8587_v51 = vld [vmem:[%s11008_s3] sm:$0xff]   ;;  %v8590_v60 = vld [vmem:[%s11008_s3 + $0xb8] sm:$0xff]   ;;  %v8592_v4 = vld [vmem:[%s11008_s3 + $0xb0] sm:$0xff]  }
  0x30   : > { %7868 = vmatpush3.bf16.msra.mxu0 %v8576_v5  ;;  %v438_v40 = vshrl.u32 %v9016_v27, 16  ;;  %v441_v41 = vshll.u32 %v9016_v27, 16  ;;  %v416_v43 = vor.u32 %v415_v33, %v412_v31  ;;  %v447_v46 = vshll.u32 %v9022_v35, 16  ;;  %v8591_v63 = vld [vmem:[%s11008_s3 + $0xf8] sm:$0xff]   ;;  %v8595_v12 = vld [vmem:[%s11008_s3 + $0xe8] sm:$0xff]  }
  0x31   : > { %7892 = vmatpush3.bf16.msra.mxu1 %v8577_v6  ;;  %7869 = vmatprep.subr.bf16.mxu0 %v8578_v7  ;;  %v426_v44 = vrot.slane %v424_v36, 4  ;;  %v429_v45 = vrot.slane %v427_v37, 5  ;;  %v403_v48 = vrot.slane %v402_v38, 4  ;;  %v435_v54 = vrot.slane %v433_v39, 5  ;;  %v8593_v6 = vld [vmem:[%s11008_s3 + $0xf0] sm:$0xff]  }
  0x32   : > { %7893 = vmatprep.subr.bf16.mxu1 %v8579_v8  ;;  %v440_v49 = vrot.slane %v438_v40, 4  ;;  %v443_v50 = vrot.slane %v441_v41, 5  ;;  %v417_v52 = vrot.slane %v416_v43, 4  ;;  %v449_v57 = vrot.slane %v447_v46, 5  ;;  %v366_v19 = vld [vmem:[%s8934_s10 + $0x30] sm:$0xf] }
  0x33   : > { %v430_v53 = vor.u32 %v429_v45, %v426_v44  ;;  %v408_v55 = vsel %vm9031_vm2, %v403_v48, %v407_v30  ;;  %v819_v5 = vrot.slane %v8996_v14, 5  ;;  %v367_v23 = vld [vmem:[%s8934_s10 + $0x38] sm:$0xf]  ;;  %v9087_v29 = vld [vmem:[%s8934_s10 + $0x3c] sm:$0x1]  ;;  %v480_v33 = vshrl.u32 %v366_v19, 16 }
  0x34   : > { %7870 = vmatpush3.bf16.msra.mxu0 %v8578_v7  ;;  %v444_v56 = vor.u32 %v443_v50, %v440_v49  ;;  %v422_v58 = vsel %vm9031_vm2, %v417_v52, %v421_v34  ;;  %v364_v7 = vld [vmem:[%s8934_s10 + $0x20] sm:$0xf]  ;;  %v483_v34 = vshll.u32 %v366_v19, 16  ;;  %v494_v38 = vshrl.u32 %v367_v23, 16  ;;  %v793_v14 = vld [vmem:[%s8934_s10 + $0x18] sm:$0xe] }
  0x35   : > { %7894 = vmatpush3.bf16.msra.mxu1 %v8579_v8  ;;  %7871 = vmatprep.subr.bf16.mxu0 %v8580_v9  ;;  %v431_v59 = vrot.slane %v430_v53, 4  ;;  %v6549_v61 = vcombine.low %v408_v55, %v422_v58  ;;  %v8594_v8 = vld [vmem:[%s11008_s3 + $0xa8] sm:$0xff]   ;;  %v452_v13 = vshrl.u32 %v364_v7, 16  ;;  %v497_v39 = vshll.u32 %v367_v23, 16  ;;  %v8596_v40 = vld [vmem:[%s11008_s3 + $0xa0] sm:$0xff]   ;;  %v8598_v58 = vld [vmem:[%s11008_s3 + $0x98] sm:$0xff]  }
  0x36   : > { %7895 = vmatprep.subr.bf16.mxu1 %v8581_v10  ;;  %v445_v62 = vrot.slane %v444_v56, 4  ;;  %v482_v43 = vrot.slane %v480_v33, 4  ;;  %v485_v44 = vrot.slane %v483_v34, 5  ;;  %v503_v45 = vshll.u32 %v9087_v29, 16  ;;  %v8597_v46 = vld [vmem:[%s11008_s3 + $0xe0] sm:$0xff]  }
  0x37   : > { %v436_v0 = vsel %vm9031_vm2, %v431_v59, %v435_v54  ;;  %7879 = vmatprep.mubr.bf16.mxu0 %v6549_v61  ;;  %v454_v25 = vrot.slane %v452_v13, 4  ;;  %v496_v48 = vrot.slane %v494_v38, 4  ;;  %v499_v49 = vrot.slane %v497_v39, 5 }
  0x38   : > { %7872 = vmatpush3.bf16.msra.mxu0 %v8580_v9  ;;  %v450_v1 = vsel %vm9031_vm2, %v445_v62, %v449_v57  ;;  %v365_v9 = vld [vmem:[%s8934_s10 + $0x28] sm:$0xf]  ;;  %v6564_v53 = vcombine.low %v366_v19, %v367_v23  ;;  %v823_v54 = vrot.slane %v9002_v16, 5  ;;  %v505_v57 = vrot.slane %v503_v45, 5  ;;  %v8599_v16 = vld [vmem:[%s11008_s3 + $0xd8] sm:$0xff]  }
  0x39   : > { %7896 = vmatpush3.bf16.msra.mxu1 %v8581_v10  ;;  %7873 = vmatprep.subr.bf16.mxu0 %v8582_v11  ;;  %v6550_v2 = vcombine.low %v436_v0, %v450_v1  ;;  %v9071_v10 = vld [vmem:[%s8934_s10 + $0x24] sm:$0x1]  ;;  %v469_v20 = vshll.u32 %v365_v9, 16  ;;  %v6563_v22 = vcombine.low %v364_v7, %v365_v9  ;;  %v500_v56 = vor.u32 %v499_v49, %v496_v48  ;;  %v790_v0 = vld [vmem:[%s8934_s10] sm:$0xe] }
  0x3a   : > { %7897 = vmatprep.subr.bf16.mxu1 %v8583_v15  ;;  %v461_v17 = vshll.u32 %v9071_v10, 16  ;;  %v791_v1 = vld [vmem:[%s8934_s10 + $0x8] sm:$0xe]  ;;  %v792_v19 = vld [vmem:[%s8934_s10 + $0x10] sm:$0xe]  ;;  %v847_v38 = vrot.slane %v9087_v29, 5 }
  0x3b   : > { %v471_v30 = vrot.slane %v469_v20, 5  ;;  %v501_v62 = vrot.slane %v500_v56, 4  ;;  %v827_v20 = vrot.slane %v9019_v32, 5  ;;  %v6575_v23 = vrot.slane %v792_v19, 9  ;;  %v8613_v29 = vld [vmem:[%s11008_s3 + $0x170] sm:$0xff]  }
  0x3c   : > { %7874 = vmatpush3.bf16.msra.mxu0 %v8582_v11  ;;  %v9074_v11 = vld [vmem:[%s8934_s10 + $0x2c] sm:$0x1]  ;;  %v463_v27 = vrot.slane %v461_v17, 5  ;;  %v835_v32 = vrot.slane %v9071_v10, 5  ;;  %v796_v10 = vld [vmem:[%s8934_s10 + $0x30] sm:$0xe] }
  0x3d   : > { %7898 = vmatpush3.bf16.msra.mxu1 %v8583_v15  ;;  %7875 = vmatprep.subr.bf16.mxu0 %v8584_v18  ;;  %v455_v15 = vshll.u32 %v364_v7, 16  ;;  %v475_v21 = vshll.u32 %v9074_v11, 16  ;;  %v6574_v7 = vrot.slane %v791_v1, 9  ;;  %v8604_v17 = vld [vmem:[%s11008_s3 + $0x88] sm:$0xff]  }
  0x3e   : > { %7899 = vmatprep.subr.bf16.mxu1 %v8585_v24  ;;  %v8616_v48 = vld [vmem:[%s8934_s10 + $0x28] ss:$8 sps:$4 sm:$0xff]  }
  0x3f   : > { %v457_v26 = vrot.slane %v455_v15, 5  ;;  %v477_v31 = vrot.slane %v475_v21, 5  ;;  %v824_v13 = vsel %vm9114_vm5, %v6574_v7, %v823_v54  ;;  %v8608_v15 = vld [vmem:[%s8934_s10 + $0x8] ss:$8 sps:$4 sm:$0xff]   ;;  %v831_v21 = vrot.slane %v9022_v35, 5 }
  0x40   : > { %7876 = vmatpush3.bf16.msra.mxu0 %v8584_v18  ;;  %v466_v18 = vshrl.u32 %v365_v9, 16  ;;  %v8603_v9 = vld [vmem:[%s11008_s3 + $0xd0] sm:$0xff]   ;;  %v839_v35 = vrot.slane %v9074_v11, 5  ;;  %v797_v11 = vld [vmem:[%s8934_s10 + $0x38] sm:$0xe] }
  0x41   : > { %7900 = vmatpush3.bf16.msra.mxu1 %v8585_v24  ;;  %7877 = vmatprep.subr.bf16.mxu0 %v8586_v47  ;;  %v9084_v24 = vld [vmem:[%s8934_s10 + $0x34] sm:$0x1]  ;;  %v458_v36 = vor.u32 %v457_v26, %v454_v25  ;;  %v6576_v25 = vrot.slane %v793_v14, 9  ;;  %v794_v26 = vld [vmem:[%s8934_s10 + $0x20] sm:$0xe]  ;;  %v6580_v45 = vrot.slane %v797_v11, 9 }
  0x42   : > { %7901 = vmatprep.subr.bf16.mxu1 %v8587_v51  ;;  %v468_v28 = vrot.slane %v466_v18, 4  ;;  %v489_v37 = vshll.u32 %v9084_v24, 16  ;;  %v6577_v33 = vrot.slane %v794_v26, 9  ;;  %v6645_v56 = vld [vmem:[%s8934_s10 + $0x8] sm:$0xf]  ;;  %v8623_v11 = vld [vmem:[%s11008_s3 + $0x150] sm:$0xff]  }
  0x43   : > { %v9208_v7 = vld [vmem:[%s8934_s10 + $0x1c] sm:$0x1] }
  0x44   : > { %7878 = vmatpush3.bf16.msra.mxu0 %v8586_v47  ;;  %v472_v41 = vor.u32 %v471_v30, %v468_v28  ;;  %v459_v47 = vrot.slane %v458_v36, 4  ;;  %v491_v52 = vrot.slane %v489_v37, 5  ;;  %v8607_v28 = vld [vmem:[%s11008_s3 + $0xc0] sm:$0xff]   ;;  %v843_v30 = vrot.slane %v9084_v24, 5  ;;  %v8610_v24 = vld [vmem:[%s11008_s3 + $0x178] sm:$0xff]  }
  0x45   : > { %7902 = vmatpush3.bf16.msra.mxu1 %v8587_v51  ;;  %7911 = vmatprep.subr.bf16.mxu0 %v8590_v60  ;;  %v486_v51 = vor.u32 %v485_v44, %v482_v43  ;;  %v828_v36 = vsel %vm9114_vm5, %v6575_v23, %v827_v20  ;;  %v832_v37 = vsel %vm9114_vm5, %v6576_v25, %v831_v21  ;;  %v6579_v44 = vrot.slane %v796_v10, 9  ;;  %v6689_v21 = vld [vmem:[%s8934_s10 + $0x8] sm:$0xe] }
  0x46   : > { %7935 = vmatprep.subr.bf16.mxu1 %v8591_v63  ;;  %v473_v50 = vrot.slane %v472_v41, 4  ;;  %v464_v55 = vsel %vm9031_vm2, %v459_v47, %v463_v27  ;;  %v795_v27 = vld [vmem:[%s8934_s10 + $0x28] sm:$0xe]  ;;  %v6598_v39 = vcombine.low %v828_v36, %v832_v37  ;;  %v836_v41 = vsel %vm9114_vm5, %v6577_v33, %v835_v32  ;;  %v8622_v33 = vld [vmem:[%s11008_s3 + $0x110] sm:$0xff]  }
  0x47   : > { %7880 = vmatmul.mubr.bf16.vlgmr.msra.gmra.mxu0 %v6550_v2  ;;  %v6578_v34 = vrot.slane %v795_v27, 9  ;;  %v844_v49 = vsel %vm9114_vm5, %v6579_v44, %v843_v30  ;;  %v1228_v20 = vshll.u32 %v9208_v7, 16 }
  0x48   : > { %7904 = vmatmul.mubr.bf16.vlgmr.msra.gmra.mxu1 %v6562_v3  ;;  %7912 = vmatpush3.bf16.msra.mxu0 %v8590_v60  ;;  %v478_v59 = vsel %vm9031_vm2, %v473_v50, %v477_v31  ;;  %v487_v60 = vrot.slane %v486_v51, 4  ;;  %v506_v3 = vsel %vm9031_vm2, %v501_v62, %v505_v57  ;;  %v8609_v31 = vld [vmem:[%s11008_s3 + $0x138] sm:$0xff]   ;;  %v848_v50 = vsel %vm9114_vm5, %v6580_v45, %v847_v38  ;;  %v8614_v51 = vld [vmem:[%s11008_s3 + $0x128] sm:$0xff]  }
  0x49   : > { %7936 = vmatpush3.bf16.msra.mxu1 %v8591_v63  ;;  %7913 = vmatprep.subr.bf16.mxu0 %v8592_v4  ;;  %v6551_v61 = vcombine.low %v464_v55, %v478_v59  ;;  %v840_v43 = vsel %vm9114_vm5, %v6578_v34, %v839_v35  ;;  %v6600_v54 = vcombine.low %v844_v49, %v848_v50  ;;  %v8618_v55 = vld [vmem:[%s11008_s3 + $0x120] sm:$0xff]   ;;  %v9195_v57 = vld [vmem:[%s8934_s10 + $0xc] sm:$0x1]  ;;  %v6647_v59 = vld [vmem:[%s8934_s10 + $0x10] sm:$0xf] }
  0x4a   : > { %7937 = vmatprep.subr.bf16.mxu1 %v8593_v6  ;;  %7907 = vmatprep.mubr.bf16.mxu1 %v6563_v22  ;;  %v492_v63 = vsel %vm9031_vm2, %v487_v60, %v491_v52  ;;  %v8606_v22 = vld [vmem:[%s11008_s3 + $0x80] sm:$0xff]   ;;  %v6599_v47 = vcombine.low %v836_v41, %v840_v43  ;;  %v8615_v52 = vld [vmem:[%s11008_s3 + $0x168] sm:$0xff]   ;;  %v9202_v60 = vld [vmem:[%s8934_s10 + $0x14] sm:$0x1]  ;;  %v1200_v62 = vshll.u32 %v9195_v57, 16 }
  0x4b   : > { %7883 = vmatprep.mubr.bf16.mxu0 %v6551_v61  ;;  %v1194_v61 = vshll.u32 %v6645_v56, 16  ;;  %v1214_v1 = vshll.u32 %v9202_v60, 16  ;;  %v1486_v45 = vrot.slane %v9202_v60, 5  ;;  %v6653_v60 = vld [vmem:[%s8934_s10 + $0x28] sm:$0xf] }
  0x4c   : > { %7914 = vmatpush3.bf16.msra.mxu0 %v8592_v4  ;;  %v8602_v4 = vld [vmem:[%s11008_s3 + $0x90] sm:$0xff]  }
  0x4d   : > { %7938 = vmatpush3.bf16.msra.mxu1 %v8593_v6  ;;  %7915 = vmatprep.subr.bf16.mxu0 %v8594_v8  ;;  %v6573_v6 = vrot.slane %v790_v0, 9  ;;  %v1208_v0 = vshll.u32 %v6647_v59, 16 }
  0x4e   : > { %7939 = vmatprep.subr.bf16.mxu1 %v8595_v12 }
  0x50   : > { %7916 = vmatpush3.bf16.msra.mxu0 %v8594_v8  ;;  %7908 = vmatmul.mubr.bf16.gmra.mxu1 %v6564_v53  ;;  %v6552_v8 = vcombine.low %v492_v63, %v506_v3  ;;  %v8617_v53 = vld [vmem:[%s8934_s10 + $0x38] ss:$8 sps:$4 sm:$0xff]   ;;  %v1205_v63 = vshrl.u32 %v6647_v59, 16 }
  0x51   : > { %7940 = vmatpush3.bf16.msra.mxu1 %v8595_v12  ;;  %7917 = vmatprep.subr.bf16.mxu0 %v8596_v40  ;;  %v820_v12 = vsel %vm9114_vm5, %v6573_v6, %v819_v5  ;;  %v8605_v5 = vld [vmem:[%s11008_s3 + $0xc8] sm:$0xff]   ;;  %v6649_v3 = vld [vmem:[%s8934_s10 + $0x18] sm:$0xf]  ;;  %v1196_v6 = vrot.slane %v1194_v61, 5 }
  0x52   : > { %7941 = vmatprep.subr.bf16.mxu1 %v8597_v46  ;;  %7884 = vmatmul.mubr.bf16.gmra.mxu0 %v6552_v8  ;;  %v6597_v18 = vcombine.low %v820_v12, %v824_v13  ;;  %v6651_v8 = vld [vmem:[%s8934_s10 + $0x20] sm:$0xf]  ;;  %v1207_v12 = vrot.slane %v1205_v63, 4  ;;  %v1210_v13 = vrot.slane %v1208_v0, 5  ;;  %v1219_v14 = vshrl.u32 %v6649_v3, 16 }
  0x53   : > { %7951 = vmatprep.mubr.bf16.mxu1 %v8608_v15  ;;  %v1216_v15 = vrot.slane %v1214_v1, 5  ;;  %v1233_v25 = vshrl.u32 %v6651_v8, 16  ;;  %v1236_v26 = vshll.u32 %v6651_v8, 16  ;;  %v9256_v61 = vld [vmem:[%s8934_s10 + $0x2c] sm:$0x1]  ;;  %v8626_v8 = vld [vmem:[%s11008_s3 + $0x100] sm:$0xff]  }
  0x54   : > { %7918 = vmatpush3.bf16.msra.mxu0 %v8596_v40  ;;  %7927 = vmatprep.mubr.bf16.mxu0 %v6597_v18  ;;  %v8611_v40 = vld [vmem:[%s8934_s10 + $0x18] ss:$8 sps:$4 sm:$0xff]   ;;  %v1211_v23 = vor.u32 %v1210_v13, %v1207_v12  ;;  %v1221_v35 = vrot.slane %v1219_v14, 4  ;;  %v9260_v63 = vld [vmem:[%s8934_s10 + $0x34] sm:$0x1]  ;;  %v1256_v12 = vshll.u32 %v9256_v61, 16 }
  0x55   : > { %7942 = vmatpush3.bf16.msra.mxu1 %v8597_v46  ;;  %7919 = vmatprep.subr.bf16.mxu0 %v8598_v58  ;;  %v8612_v46 = vld [vmem:[%s11008_s3 + $0x130] sm:$0xff]   ;;  %v8620_v18 = vld [vmem:[%s11008_s3 + $0x118] sm:$0xff]   ;;  %v1235_v36 = vrot.slane %v1233_v25, 4  ;;  %v1238_v37 = vrot.slane %v1236_v26, 5  ;;  %v1270_v14 = vshll.u32 %v9260_v63, 16  ;;  %v8627_v26 = vld [vmem:[%s11008_s3 + $0x140] sm:$0xff]  }
  0x56   : > { %7943 = vmatprep.subr.bf16.mxu1 %v8599_v16  ;;  %v1212_v34 = vrot.slane %v1211_v23, 4 }
  0x57   : > { %v1239_v43 = vor.u32 %v1238_v37, %v1235_v36 }
  0x58   : > { %7920 = vmatpush3.bf16.msra.mxu0 %v8598_v58  ;;  %v8619_v58 = vld [vmem:[%s11008_s3 + $0x160] sm:$0xff]   ;;  %v1217_v41 = vsel %vm9031_vm2, %v1212_v34, %v1216_v15 }
  0x59   : > { %7944 = vmatpush3.bf16.msra.mxu1 %v8599_v16  ;;  %7921 = vmatprep.subr.bf16.mxu0 %v8602_v4  ;;  %v1191_v16 = vshrl.u32 %v6645_v56, 16  ;;  %v8625_v56 = vld [vmem:[%s11008_s3 + $0x148] sm:$0xff]  }
  0x5a   : > { %7945 = vmatprep.subr.bf16.mxu1 %v8603_v9 }
  0x5c   : > { %7922 = vmatpush3.bf16.msra.mxu0 %v8602_v4  ;;  %v1193_v4 = vrot.slane %v1191_v16, 4 }
  0x5d   : > { %7946 = vmatpush3.bf16.msra.mxu1 %v8603_v9  ;;  %7923 = vmatprep.subr.bf16.mxu0 %v8604_v17  ;;  %v1202_v9 = vrot.slane %v1200_v62, 5  ;;  %v6655_v62 = vld [vmem:[%s8934_s10 + $0x30] sm:$0xf] }
  0x5e   : > { %7947 = vmatprep.subr.bf16.mxu1 %v8605_v5  ;;  %v1197_v19 = vor.u32 %v1196_v6, %v1193_v4  ;;  %v1250_v4 = vshll.u32 %v6653_v60, 16  ;;  %v6657_v6 = vld [vmem:[%s8934_s10 + $0x38] sm:$0xf]  ;;  %v1261_v13 = vshrl.u32 %v6655_v62, 16  ;;  %v1264_v15 = vshll.u32 %v6655_v62, 16  ;;  %v8631_v62 = vld [vmem:[%s11008_s3 + $0x1f0] sm:$0xff]  }
  0x5f   : > { %v1278_v25 = vshll.u32 %v6657_v6, 16 }
  0x60   : > { %7924 = vmatpush3.bf16.msra.mxu0 %v8604_v17  ;;  %v9212_v17 = vld [vmem:[%s8934_s10 + $0x24] sm:$0x1]  ;;  %v1198_v32 = vrot.slane %v1197_v19, 4  ;;  %v1252_v19 = vrot.slane %v1250_v4, 5  ;;  %v1266_v23 = vrot.slane %v1264_v15, 5 }
  0x61   : > { %7948 = vmatpush3.bf16.msra.mxu1 %v8605_v5  ;;  %7925 = vmatprep.subr.bf16.mxu0 %v8606_v22  ;;  %v1222_v5 = vshll.u32 %v6649_v3, 16  ;;  %v1242_v27 = vshll.u32 %v9212_v17, 16  ;;  %v1494_v59 = vrot.slane %v9212_v17, 5  ;;  %v1247_v3 = vshrl.u32 %v6653_v60, 16  ;;  %v6659_v17 = vld [vmem:[%s8934_s10 + $0x40] sm:$0xf] }
  0x62   : > { %7949 = vmatprep.subr.bf16.mxu1 %v8607_v28  ;;  %v1292_v34 = vshll.u32 %v6659_v17, 16  ;;  %v8634_v15 = vld [vmem:[%s11008_s3 + $0x1a0] sm:$0xff]  }
  0x63   : > { %v1224_v30 = vrot.slane %v1222_v5, 5  ;;  %v1244_v10 = vrot.slane %v1242_v27, 5  ;;  %v9283_v5 = vld [vmem:[%s8934_s10 + $0x44] sm:$0x1] }
  0x64   : > { %7926 = vmatpush3.bf16.msra.mxu0 %v8606_v22  ;;  %v8621_v22 = vld [vmem:[%s11008_s3 + $0x158] sm:$0xff]  }
  0x65   : > { %7950 = vmatpush3.bf16.msra.mxu1 %v8607_v28  ;;  %7959 = vmatprep.subr.bf16.mxu0 %v8609_v31  ;;  %v6690_v28 = vld [vmem:[%s8934_s10 + $0x10] sm:$0xe]  ;;  %v1225_v38 = vor.u32 %v1224_v30, %v1221_v35 }
  0x66   : > { %7983 = vmatprep.subr.bf16.mxu1 %v8610_v24  ;;  %v6698_v44 = vrot.slane %v6690_v28, 9  ;;  %v1272_v28 = vrot.slane %v1270_v14, 5  ;;  %v6769_v14 = vld [vmem:[%s8934_s10 + $0x10] sm:$0xf] }
  0x67   : > { %7928 = vmatmul.mubr.bf16.vlgmr.msra.gmra.mxu0 %v6598_v39  ;;  %v6697_v39 = vrot.slane %v6689_v21, 9  ;;  %v1258_v21 = vrot.slane %v1256_v12, 5 }
  0x68   : > { %7952 = vmatmul.mubr.bf16.vlgmr.msra.gmra.mxu1 %v8611_v40  ;;  %7960 = vmatpush3.bf16.msra.mxu0 %v8609_v31  ;;  %v1230_v31 = vrot.slane %v1228_v20, 5  ;;  %v1482_v40 = vrot.slane %v9195_v57, 5  ;;  %v1275_v20 = vshrl.u32 %v6657_v6, 16 }
  0x69   : > { %7984 = vmatpush3.bf16.msra.mxu1 %v8610_v24  ;;  %7961 = vmatprep.subr.bf16.mxu0 %v8612_v46  ;;  %v1203_v24 = vsel %vm9031_vm2, %v1198_v32, %v1202_v9 }
  0x6a   : > { %7985 = vmatprep.subr.bf16.mxu1 %v8613_v29  ;;  %7931 = vmatprep.mubr.bf16.mxu0 %v6599_v47  ;;  %v6677_v47 = vcombine.low %v1203_v24, %v1217_v41  ;;  %v1483_v49 = vsel %vm9114_vm5, %v6697_v39, %v1482_v40  ;;  %v1277_v32 = vrot.slane %v1275_v20, 4  ;;  %v8628_v24 = vld [vmem:[%s11008_s3 + $0x1b8] sm:$0xff]   ;;  %v1294_v41 = vrot.slane %v1292_v34, 5 }
  0x6b   : > { %7955 = vmatprep.mubr.bf16.mxu1 %v8616_v48  ;;  %v1226_v48 = vrot.slane %v1225_v38, 4  ;;  %v6771_v20 = vld [vmem:[%s8934_s10 + $0x18] sm:$0xf] }
  0x6c   : > { %7962 = vmatpush3.bf16.msra.mxu0 %v8612_v46  ;;  %v6691_v46 = vld [vmem:[%s8934_s10 + $0x18] sm:$0xe] }
  0x6d   : > { %7986 = vmatpush3.bf16.msra.mxu1 %v8613_v29  ;;  %7963 = vmatprep.subr.bf16.mxu0 %v8614_v51  ;;  %v6692_v29 = vld [vmem:[%s8934_s10 + $0x20] sm:$0xe]  ;;  %v6699_v50 = vrot.slane %v6691_v46, 9  ;;  %v1231_v57 = vsel %vm9031_vm2, %v1226_v48, %v1230_v31  ;;  %v1280_v31 = vrot.slane %v1278_v25, 5  ;;  %v1502_v48 = vrot.slane %v9260_v63, 5 }
  0x6e   : > { %7987 = vmatprep.subr.bf16.mxu1 %v8615_v52 }
  0x6f   : > { %7932 = vmatmul.mubr.bf16.gmra.mxu0 %v6600_v54  ;;  %v1490_v54 = vrot.slane %v9208_v7, 5  ;;  %v9270_v7 = vld [vmem:[%s8934_s10 + $0x3c] sm:$0x1]  ;;  %v1281_v39 = vor.u32 %v1280_v31, %v1277_v32 }
  0x70   : > { %7964 = vmatpush3.bf16.msra.mxu0 %v8614_v51  ;;  %7956 = vmatmul.mubr.bf16.gmra.mxu1 %v8617_v53  ;;  %v8624_v51 = vld [vmem:[%s11008_s3 + $0x108] sm:$0xff]   ;;  %v1487_v53 = vsel %vm9114_vm5, %v6698_v44, %v1486_v45  ;;  %v1284_v35 = vshll.u32 %v9270_v7, 16  ;;  %v8629_v44 = vld [vmem:[%s11008_s3 + $0x1f8] sm:$0xff]  }
  0x71   : > { %7988 = vmatpush3.bf16.msra.mxu1 %v8615_v52  ;;  %7965 = vmatprep.subr.bf16.mxu0 %v8618_v55  ;;  %v1240_v52 = vrot.slane %v1239_v43, 4  ;;  %v9266_v1 = vsel %vm9114_vm5, %v6699_v50, %v1490_v54  ;;  %v6693_v43 = vld [vmem:[%s8934_s10 + $0x28] sm:$0xe]  ;;  %v6695_v54 = vld [vmem:[%s8934_s10 + $0x38] sm:$0xe] }
  0x72   : > { %7989 = vmatprep.subr.bf16.mxu1 %v8619_v58  ;;  %7975 = vmatprep.mubr.bf16.mxu0 %v6677_v47  ;;  %v1286_v37 = vrot.slane %v1284_v35, 5  ;;  %v6701_v47 = vrot.slane %v6693_v43, 9  ;;  %v8638_v35 = vld [vmem:[%s11008_s3 + $0x190] sm:$0xff]  }
  0x73   : > { %v1245_v16 = vsel %vm9031_vm2, %v1240_v52, %v1244_v10  ;;  %v1298_v10 = vshll.u32 %v9283_v5, 16 }
  0x74   : > { %7966 = vmatpush3.bf16.msra.mxu0 %v8618_v55  ;;  %v6700_v55 = vrot.slane %v6692_v29, 9  ;;  %v9262_v0 = vcombine.low %v1231_v57, %v1245_v16  ;;  %v6694_v29 = vld [vmem:[%s8934_s10 + $0x30] sm:$0xe] }
  0x75   : > { %7990 = vmatpush3.bf16.msra.mxu1 %v8619_v58  ;;  %7967 = vmatprep.subr.bf16.mxu0 %v8620_v18  ;;  %v6721_v58 = vcombine.low %v1483_v49, %v1487_v53  ;;  %v1300_v46 = vrot.slane %v1298_v10, 5  ;;  %v8630_v49 = vld [vmem:[%s11008_s3 + $0x1b0] sm:$0xff]   ;;  %v6702_v53 = vrot.slane %v6694_v29, 9  ;;  %v6773_v10 = vld [vmem:[%s8934_s10 + $0x20] sm:$0xf] }
  0x76   : > { %7991 = vmatprep.subr.bf16.mxu1 %v8621_v22  ;;  %v9277_v9 = vsel %vm9114_vm5, %v6700_v55, %v1494_v59  ;;  %v6696_v55 = vld [vmem:[%s8934_s10 + $0x40] sm:$0xe]  ;;  %v1506_v59 = vrot.slane %v9270_v7, 5  ;;  %v8632_v7 = vld [vmem:[%s11008_s3 + $0x1a8] sm:$0xff]   ;;  %v1882_v43 = vshrl.u32 %v6773_v10, 16 }
  0x77   : > { %7999 = vmatprep.mubr.bf16.mxu1 %v6721_v58  ;;  %v6703_v58 = vrot.slane %v6695_v54, 9  ;;  %v1503_v16 = vsel %vm9114_vm5, %v6702_v53, %v1502_v48 }
  0x78   : > { %7968 = vmatpush3.bf16.msra.mxu0 %v8620_v18  ;;  %v1249_v18 = vrot.slane %v1247_v3, 4 }
  0x79   : > { %7992 = vmatpush3.bf16.msra.mxu1 %v8621_v22  ;;  %7969 = vmatprep.subr.bf16.mxu0 %v8622_v33  ;;  %v1263_v22 = vrot.slane %v1261_v13, 4 }
  0x7a   : > { %7993 = vmatprep.subr.bf16.mxu1 %v8623_v11  ;;  %v1253_v27 = vor.u32 %v1252_v19, %v1249_v18  ;;  %v8644_v18 = vld [vmem:[%s8934_s10 + $0x10] ss:$8 sps:$4 sm:$0xff]  }
  0x7b   : > { %v1267_v30 = vor.u32 %v1266_v23, %v1263_v22  ;;  %v8636_v19 = vld [vmem:[%s11008_s3 + $0x198] sm:$0xff]   ;;  %v1854_v22 = vshrl.u32 %v6769_v14, 16  ;;  %v1857_v23 = vshll.u32 %v6769_v14, 16 }
  0x7c   : > { %7970 = vmatpush3.bf16.msra.mxu0 %v8622_v33  ;;  %v1289_v33 = vshrl.u32 %v6659_v17, 16  ;;  %v1254_v36 = vrot.slane %v1253_v27, 4  ;;  %v8635_v17 = vld [vmem:[%s11008_s3 + $0x1e0] sm:$0xff]   ;;  %v8637_v27 = vld [vmem:[%s11008_s3 + $0x1d8] sm:$0xff]  }
  0x7d   : > { %7994 = vmatpush3.bf16.msra.mxu1 %v8623_v11  ;;  %7971 = vmatprep.subr.bf16.mxu0 %v8624_v51  ;;  %v1498_v11 = vrot.slane %v9256_v61, 5  ;;  %v1268_v38 = vrot.slane %v1267_v30, 4  ;;  %v6704_v61 = vrot.slane %v6696_v55, 9  ;;  %v1856_v30 = vrot.slane %v1854_v22, 4 }
  0x7e   : > { %7995 = vmatprep.subr.bf16.mxu1 %v8625_v56  ;;  %v1291_v40 = vrot.slane %v1289_v33, 4  ;;  %v1259_v45 = vsel %vm9031_vm2, %v1254_v36, %v1258_v21  ;;  %v9351_v21 = vld [vmem:[%s8934_s10 + $0x1c] sm:$0x1]  ;;  %v1859_v31 = vrot.slane %v1857_v23, 5  ;;  %v6781_v23 = vld [vmem:[%s8934_s10 + $0x40] sm:$0xf] }
  0x7f   : > { %v1273_v50 = vsel %vm9031_vm2, %v1268_v38, %v1272_v28  ;;  %v1499_v57 = vsel %vm9114_vm5, %v6701_v47, %v1498_v11  ;;  %v1871_v28 = vshll.u32 %v6771_v20, 16  ;;  %v1877_v32 = vshll.u32 %v9351_v21, 16  ;;  %v6775_v38 = vld [vmem:[%s8934_s10 + $0x28] sm:$0xf] }
  0x80   : > { %7972 = vmatpush3.bf16.msra.mxu0 %v8624_v51  ;;  %v1282_v51 = vrot.slane %v1281_v39, 4  ;;  %v1295_v52 = vor.u32 %v1294_v41, %v1291_v40  ;;  %v6679_v63 = vcombine.low %v1259_v45, %v1273_v50  ;;  %v6723_v3 = vcombine.low %v1499_v57, %v1503_v16  ;;  %v9367_v39 = vld [vmem:[%s8934_s10 + $0x2c] sm:$0x1]  ;;  %v8639_v40 = vld [vmem:[%s11008_s3 + $0x1d0] sm:$0xff]  }
  0x81   : > { %7996 = vmatpush3.bf16.msra.mxu1 %v8625_v56  ;;  %7973 = vmatprep.subr.bf16.mxu0 %v8626_v8  ;;  %v6722_v56 = vcombine.low %v9266_v1, %v9277_v9  ;;  %v1510_v1 = vrot.slane %v9283_v5, 5  ;;  %v8633_v9 = vld [vmem:[%s11008_s3 + $0x1e8] sm:$0xff]   ;;  %v9347_v5 = vld [vmem:[%s8934_s10 + $0x14] sm:$0x1]  ;;  %v1873_v36 = vrot.slane %v1871_v28, 5  ;;  %v1860_v11 = vor.u32 %v1859_v31, %v1856_v30 }
  0x82   : > { %7997 = vmatprep.subr.bf16.mxu1 %v8627_v26  ;;  %v1296_v60 = vrot.slane %v1295_v52, 4  ;;  %v1287_v4 = vsel %vm9031_vm2, %v1282_v51, %v1286_v37  ;;  %v1863_v25 = vshll.u32 %v9347_v5, 16  ;;  %v1879_v37 = vrot.slane %v1877_v32, 5  ;;  %v8640_v52 = vld [vmem:[%s11008_s3 + $0x188] sm:$0xff]   ;;  %v9413_v32 = vld [vmem:[%s8934_s10 + $0x44] sm:$0x1] }
  0x83   : > { %v1896_v29 = vshrl.u32 %v6775_v38, 16  ;;  %v1899_v47 = vshll.u32 %v6775_v38, 16  ;;  %v1905_v48 = vshll.u32 %v9367_v39, 16  ;;  %v1884_v50 = vrot.slane %v1882_v43, 4 }
  0x84   : > { %7974 = vmatpush3.bf16.msra.mxu0 %v8626_v8  ;;  %v1301_v6 = vsel %vm9031_vm2, %v1296_v60, %v1300_v46  ;;  %v1507_v8 = vsel %vm9114_vm5, %v6703_v58, %v1506_v59  ;;  %v1865_v33 = vrot.slane %v1863_v25, 5  ;;  %v1861_v46 = vrot.slane %v1860_v11, 4  ;;  %v8645_v25 = vld [vmem:[%s8934_s10 + $0x20] ss:$8 sps:$4 sm:$0xff]  }
  0x85   : > { %7998 = vmatpush3.bf16.msra.mxu1 %v8627_v26  ;;  %8007 = vmatprep.subr.bf16.mxu0 %v8628_v24  ;;  %v6680_v12 = vcombine.low %v1287_v4, %v1301_v6  ;;  %v1868_v26 = vshrl.u32 %v6771_v20, 16  ;;  %v1898_v54 = vrot.slane %v1896_v29, 4  ;;  %v1901_v55 = vrot.slane %v1899_v47, 5  ;;  %v6777_v6 = vld [vmem:[%s8934_s10 + $0x30] sm:$0xf] }
  0x86   : > { %8031 = vmatprep.subr.bf16.mxu1 %v8629_v44  ;;  %v1866_v53 = vsel %vm9031_vm2, %v1861_v46, %v1865_v33  ;;  %v1947_v38 = vshll.u32 %v9413_v32, 16  ;;  %v8650_v29 = vld [vmem:[%s8934_s10 + $0x30] ss:$8 sps:$4 sm:$0xff]  }
  0x87   : > { %7976 = vmatmul.mubr.bf16.vlgmr.msra.gmra.mxu0 %v9262_v0  ;;  %v1511_v0 = vsel %vm9114_vm5, %v6704_v61, %v1510_v1  ;;  %v1870_v34 = vrot.slane %v1868_v26, 4  ;;  %v1902_v16 = vor.u32 %v1901_v55, %v1898_v54  ;;  %v1907_v61 = vrot.slane %v1905_v48, 5  ;;  %v8643_v1 = vld [vmem:[%s11008_s3 + $0x1c0] sm:$0xff]   ;;  %v8652_v54 = vld [vmem:[%s11008_s3 + $0x228] sm:$0xff]  }
  0x88   : > { %8000 = vmatmul.mubr.bf16.vlgmr.msra.gmra.mxu1 %v6722_v56  ;;  %8008 = vmatpush3.bf16.msra.mxu0 %v8628_v24  ;;  %v6724_v13 = vcombine.low %v1507_v8, %v1511_v0  ;;  %v9363_v24 = vld [vmem:[%s8934_s10 + $0x24] sm:$0x1]  ;;  %v8641_v56 = vld [vmem:[%s11008_s3 + $0x1c8] sm:$0xff]   ;;  %v6779_v8 = vld [vmem:[%s8934_s10 + $0x38] sm:$0xf] }
  0x89   : > { %8032 = vmatpush3.bf16.msra.mxu1 %v8629_v44  ;;  %8009 = vmatprep.subr.bf16.mxu0 %v8630_v49  ;;  %v1874_v41 = vor.u32 %v1873_v36, %v1870_v34  ;;  %v1885_v44 = vshll.u32 %v6773_v10, 16  ;;  %v1891_v45 = vshll.u32 %v9363_v24, 16  ;;  %v8646_v0 = vld [vmem:[%s11008_s3 + $0x238] sm:$0xff]   ;;  %v1924_v14 = vshrl.u32 %v6779_v8, 16  ;;  %v6783_v34 = vld [vmem:[%s8934_s10 + $0x48] sm:$0xf] }
  0x8a   : > { %8033 = vmatprep.subr.bf16.mxu1 %v8631_v62  ;;  %7979 = vmatprep.mubr.bf16.mxu0 %v6679_v63  ;;  %v1927_v20 = vshll.u32 %v6779_v8, 16  ;;  %v1941_v36 = vshll.u32 %v6781_v23, 16  ;;  %v9417_v10 = vld [vmem:[%s8934_s10 + $0x4c] sm:$0x1]  ;;  %v2149_v8 = vrot.slane %v9351_v21, 5 }
  0x8b   : > { %8003 = vmatprep.mubr.bf16.mxu1 %v6723_v3  ;;  %v1887_v51 = vrot.slane %v1885_v44, 5  ;;  %v1893_v59 = vrot.slane %v1891_v45, 5  ;;  %v1903_v3 = vrot.slane %v1902_v16, 4  ;;  %v1926_v30 = vrot.slane %v1924_v14, 4  ;;  %v8657_v14 = vld [vmem:[%s11008_s3 + $0x258] sm:$0xff]  }
  0x8c   : > { %8010 = vmatpush3.bf16.msra.mxu0 %v8630_v49  ;;  %v1875_v49 = vrot.slane %v1874_v41, 4  ;;  %v1929_v31 = vrot.slane %v1927_v20, 5  ;;  %v8648_v41 = vld [vmem:[%s11008_s3 + $0x230] sm:$0xff]   ;;  %v1943_v44 = vrot.slane %v1941_v36, 5  ;;  %v1955_v45 = vshll.u32 %v6783_v34, 16  ;;  %v8662_v36 = vld [vmem:[%s11008_s3 + $0x200] sm:$0xff]  }
  0x8d   : > { %8034 = vmatpush3.bf16.msra.mxu1 %v8631_v62  ;;  %8011 = vmatprep.subr.bf16.mxu0 %v8632_v7  ;;  %v1888_v58 = vor.u32 %v1887_v51, %v1884_v50  ;;  %v8642_v62 = vld [vmem:[%s11008_s3 + $0x180] sm:$0xff]   ;;  %v1961_v46 = vshll.u32 %v9417_v10, 16 }
  0x8e   : > { %8035 = vmatprep.subr.bf16.mxu1 %v8633_v9  ;;  %v1880_v57 = vsel %vm9031_vm2, %v1875_v49, %v1879_v37  ;;  %v1930_v43 = vor.u32 %v1929_v31, %v1926_v30  ;;  %v8649_v49 = vld [vmem:[%s11008_s3 + $0x270] sm:$0xff]   ;;  %v2153_v30 = vrot.slane %v9363_v24, 5 }
  0x8f   : > { %7980 = vmatmul.mubr.bf16.gmra.mxu0 %v6680_v12  ;;  %v6801_v60 = vcombine.low %v1866_v53, %v1880_v57  ;;  %v1889_v63 = vrot.slane %v1888_v58, 4  ;;  %v9403_v12 = vld [vmem:[%s8934_s10 + $0x3c] sm:$0x1]  ;;  %v1957_v53 = vrot.slane %v1955_v45, 5  ;;  %v6819_v45 = vld [vmem:[%s8934_s10 + $0x40] sm:$0xe] }
  0x90   : > { %8012 = vmatpush3.bf16.msra.mxu0 %v8632_v7  ;;  %8004 = vmatmul.mubr.bf16.gmra.mxu1 %v6724_v13  ;;  %v9394_v7 = vld [vmem:[%s8934_s10 + $0x34] sm:$0x1]  ;;  %v1910_v13 = vshrl.u32 %v6777_v6, 16  ;;  %v1933_v22 = vshll.u32 %v9403_v12, 16  ;;  %v1931_v50 = vrot.slane %v1930_v43, 4 }
  0x91   : > { %8036 = vmatpush3.bf16.msra.mxu1 %v8633_v9  ;;  %8013 = vmatprep.subr.bf16.mxu0 %v8634_v15  ;;  %v1894_v4 = vsel %vm9031_vm2, %v1889_v63, %v1893_v59  ;;  %v1908_v9 = vsel %vm9031_vm2, %v1903_v3, %v1907_v61  ;;  %v1963_v59 = vrot.slane %v1961_v46, 5  ;;  %v8653_v61 = vld [vmem:[%s11008_s3 + $0x268] sm:$0xff]   ;;  %v8654_v3 = vld [vmem:[%s11008_s3 + $0x220] sm:$0xff]   ;;  %v2161_v24 = vrot.slane %v9394_v7, 5 }
  0x92   : > { %8037 = vmatprep.subr.bf16.mxu1 %v8635_v17  ;;  %8023 = vmatprep.mubr.bf16.mxu0 %v8644_v18  ;;  %v8647_v18 = vld [vmem:[%s11008_s3 + $0x278] sm:$0xff]   ;;  %v1912_v26 = vrot.slane %v1910_v13, 4  ;;  %v1935_v33 = vrot.slane %v1933_v22, 5  ;;  %v8658_v22 = vld [vmem:[%s11008_s3 + $0x210] sm:$0xff]   ;;  %v6820_v46 = vld [vmem:[%s8934_s10 + $0x48] sm:$0xe] }
  0x93   : > { %8047 = vmatprep.mubr.bf16.mxu1 %v6801_v60  ;;  %v8651_v60 = vld [vmem:[%s8934_s10 + $0x40] ss:$8 sps:$4 sm:$0xff]   ;;  %v6814_v13 = vld [vmem:[%s8934_s10 + $0x18] sm:$0xe] }
  0x94   : > { %8014 = vmatpush3.bf16.msra.mxu0 %v8634_v15  ;;  %v1913_v15 = vshll.u32 %v6777_v6, 16  ;;  %v2145_v6 = vrot.slane %v9347_v5, 5  ;;  %v8656_v5 = vld [vmem:[%s11008_s3 + $0x218] sm:$0xff]  }
  0x95   : > { %8038 = vmatpush3.bf16.msra.mxu1 %v8635_v17  ;;  %8015 = vmatprep.subr.bf16.mxu0 %v8636_v19  ;;  %v1919_v17 = vshll.u32 %v9394_v7, 16  ;;  %v8666_v7 = vld [vmem:[%s11008_s3 + $0x2f8] sm:$0xff]  }
  0x96   : > { %8039 = vmatprep.subr.bf16.mxu1 %v8637_v27 }
  0x97   : > { %v1921_v28 = vrot.slane %v1919_v17, 5  ;;  %v6822_v17 = vrot.slane %v6814_v13, 9 }
  0x98   : > { %8016 = vmatpush3.bf16.msra.mxu0 %v8636_v19  ;;  %v6802_v19 = vcombine.low %v1894_v4, %v1908_v9  ;;  %v6813_v9 = vld [vmem:[%s8934_s10 + $0x10] sm:$0xe] }
  0x99   : > { %8040 = vmatpush3.bf16.msra.mxu1 %v8637_v27  ;;  %8017 = vmatprep.subr.bf16.mxu0 %v8638_v35  ;;  %v1915_v27 = vrot.slane %v1913_v15, 5  ;;  %v6821_v15 = vrot.slane %v6813_v9, 9  ;;  %v2505_v9 = vld [vmem:[%s8945_s29 + $0x18] sm:$0xf] }
  0x9a   : > { %8041 = vmatprep.subr.bf16.mxu1 %v8639_v40 }
  0x9b   : > { %v1916_v37 = vor.u32 %v1915_v27, %v1912_v26  ;;  %v2146_v21 = vsel %vm9114_vm5, %v6821_v15, %v2145_v6  ;;  %v6816_v26 = vld [vmem:[%s8934_s10 + $0x28] sm:$0xe] }
  0x9c   : > { %8018 = vmatpush3.bf16.msra.mxu0 %v8638_v35  ;;  %v1938_v35 = vshrl.u32 %v6781_v23, 16  ;;  %v6815_v23 = vld [vmem:[%s8934_s10 + $0x20] sm:$0xe]  ;;  %v8660_v27 = vld [vmem:[%s11008_s3 + $0x208] sm:$0xff]   ;;  %v6824_v31 = vrot.slane %v6816_v26, 9 }
  0x9d   : > { %8042 = vmatpush3.bf16.msra.mxu1 %v8639_v40  ;;  %8019 = vmatprep.subr.bf16.mxu0 %v8640_v52  ;;  %v1952_v40 = vshrl.u32 %v6783_v34, 16  ;;  %v1917_v47 = vrot.slane %v1916_v37, 4  ;;  %v6817_v34 = vld [vmem:[%s8934_s10 + $0x30] sm:$0xe]  ;;  %v6818_v37 = vld [vmem:[%s8934_s10 + $0x38] sm:$0xe] }
  0x9e   : > { %8043 = vmatprep.subr.bf16.mxu1 %v8641_v56  ;;  %v1940_v11 = vrot.slane %v1938_v35, 4  ;;  %v6823_v35 = vrot.slane %v6815_v23, 9  ;;  %v8670_v6 = vld [vmem:[%s11008_s3 + $0x2a8] sm:$0xff]   ;;  %v9546_v23 = vld [vmem:[%s8945_s29 + $0x1c] sm:$0x1] }
  0x9f   : > { %v1954_v48 = vrot.slane %v1952_v40, 4  ;;  %v1922_v55 = vsel %vm9031_vm2, %v1917_v47, %v1921_v28  ;;  %v8661_v28 = vld [vmem:[%s11008_s3 + $0x248] sm:$0xff]   ;;  %v6826_v40 = vrot.slane %v6818_v37, 9  ;;  %v2169_v47 = vrot.slane %v9413_v32, 5  ;;  %v8669_v32 = vld [vmem:[%s11008_s3 + $0x2f0] sm:$0xff]  }
  0xa0   : > { %8020 = vmatpush3.bf16.msra.mxu0 %v8640_v52  ;;  %v1944_v51 = vor.u32 %v1943_v44, %v1940_v11  ;;  %v1949_v52 = vrot.slane %v1947_v38, 5  ;;  %v8663_v11 = vld [vmem:[%s11008_s3 + $0x240] sm:$0xff]   ;;  %v6825_v38 = vrot.slane %v6817_v34, 9  ;;  %v8665_v44 = vld [vmem:[%s11008_s3 + $0x2b8] sm:$0xff]   ;;  %v8671_v15 = vld [vmem:[%s11008_s3 + $0x2e8] sm:$0xff]  }
  0xa1   : > { %8044 = vmatpush3.bf16.msra.mxu1 %v8641_v56  ;;  %8021 = vmatprep.subr.bf16.mxu0 %v8642_v62  ;;  %v1936_v56 = vsel %vm9031_vm2, %v1931_v50, %v1935_v33  ;;  %v1958_v58 = vor.u32 %v1957_v53, %v1954_v48  ;;  %v2157_v33 = vrot.slane %v9367_v39, 5  ;;  %v2165_v39 = vrot.slane %v9403_v12, 5  ;;  %v8668_v53 = vld [vmem:[%s11008_s3 + $0x2b0] sm:$0xff]  }
  0xa2   : > { %8045 = vmatprep.subr.bf16.mxu1 %v8643_v1  ;;  %v1945_v57 = vrot.slane %v1944_v51, 4  ;;  %v6803_v16 = vcombine.low %v1922_v55, %v1936_v56  ;;  %v2173_v48 = vrot.slane %v9417_v10, 5  ;;  %v6827_v51 = vrot.slane %v6819_v45, 9  ;;  %v2499_v55 = vld [vmem:[%s8945_s29] sm:$0xf] }
  0xa3   : > { %v1959_v63 = vrot.slane %v1958_v58, 4  ;;  %v2158_v43 = vsel %vm9114_vm5, %v6824_v31, %v2157_v33  ;;  %v2166_v50 = vsel %vm9114_vm5, %v6826_v40, %v2165_v39  ;;  %v9518_v56 = vld [vmem:[%s8945_s29 + $0x4] sm:$0x1]  ;;  %v2781_v31 = vld [vmem:[%s8945_s29] sm:$0xe]  ;;  %v2567_v40 = vshll.u32 %v9546_v23, 16 }
  0xa4   : > { %8022 = vmatpush3.bf16.msra.mxu0 %v8642_v62  ;;  %v1950_v62 = vsel %vm9031_vm2, %v1945_v57, %v1949_v52  ;;  %v6828_v52 = vrot.slane %v6820_v46, 9  ;;  %v2170_v57 = vsel %vm9114_vm5, %v6827_v51, %v2169_v47  ;;  %v2782_v33 = vld [vmem:[%s8945_s29 + $0x8] sm:$0xe]  ;;  %v2807_v45 = vrot.slane %v9518_v56, 5  ;;  %v8676_v46 = vld [vmem:[%s11008_s3 + $0x298] sm:$0xff]  }
  0xa5   : > { %8046 = vmatpush3.bf16.msra.mxu1 %v8643_v1  ;;  %8055 = vmatprep.subr.bf16.mxu0 %v8646_v0  ;;  %v1964_v1 = vsel %vm9031_vm2, %v1959_v63, %v1963_v59  ;;  %v2501_v59 = vld [vmem:[%s8945_s29 + $0x8] sm:$0xf] }
  0xa6   : > { %8079 = vmatprep.subr.bf16.mxu1 %v8647_v18  ;;  %v6804_v4 = vcombine.low %v1950_v62, %v1964_v1  ;;  %v2174_v58 = vsel %vm9114_vm5, %v6828_v52, %v2173_v48  ;;  %v2525_v62 = vshll.u32 %v9518_v56, 16  ;;  %v2530_v63 = vshrl.u32 %v2501_v59, 16  ;;  %v9565_v48 = vld [vmem:[%s8945_s29 + $0x10] sm:$0xe] }
  0xa7   : > { %8024 = vmatmul.mubr.bf16.vlgmr.msra.gmra.mxu0 %v8645_v25  ;;  %v8659_v25 = vld [vmem:[%s11008_s3 + $0x250] sm:$0xff]   ;;  %v2533_v1 = vshll.u32 %v2501_v59, 16  ;;  %v6848_v13 = vcombine.low %v2170_v57, %v2174_v58  ;;  %v6915_v57 = vrot.slane %v9565_v48, 9  ;;  %v2507_v58 = vld [vmem:[%s8945_s29 + $0x20] sm:$0xf] }
  0xa8   : > { %8048 = vmatmul.mubr.bf16.vlgmr.msra.gmra.mxu1 %v6802_v19  ;;  %8056 = vmatpush3.bf16.msra.mxu0 %v8646_v0  ;;  %v8655_v0 = vld [vmem:[%s11008_s3 + $0x260] sm:$0xff]   ;;  %v8679_v59 = vld [vmem:[%s11008_s3 + $0x2d0] sm:$0xff]  }
  0xa9   : > { %8080 = vmatpush3.bf16.msra.mxu1 %v8647_v18  ;;  %8057 = vmatprep.subr.bf16.mxu0 %v8648_v41  ;;  %v2150_v18 = vsel %vm9114_vm5, %v6822_v17, %v2149_v8  ;;  %v8664_v19 = vld [vmem:[%s8945_s29] ss:$8 sps:$4 sm:$0xff]   ;;  %v8673_v17 = vld [vmem:[%s8945_s29 + $0x30] ss:$8 sps:$4 sm:$0xff]  }
  0xaa   : > { %8081 = vmatprep.subr.bf16.mxu1 %v8649_v49  ;;  %8027 = vmatprep.mubr.bf16.mxu0 %v8650_v29  ;;  %v6845_v20 = vcombine.low %v2146_v21, %v2150_v18  ;;  %v8667_v29 = vld [vmem:[%s8945_s29 + $0x10] ss:$8 sps:$4 sm:$0xff]   ;;  %v2532_v21 = vrot.slane %v2530_v63, 4  ;;  %v2535_v18 = vrot.slane %v2533_v1, 5  ;;  %v9599_v63 = vld [vmem:[%s8945_s29 + $0x2c] sm:$0x1] }
  0xab   : > { %8051 = vmatprep.mubr.bf16.mxu1 %v6803_v16  ;;  %v2516_v16 = vshrl.u32 %v2499_v55, 16  ;;  %v2572_v1 = vshrl.u32 %v2507_v58, 16 }
  0xac   : > { %8058 = vmatpush3.bf16.msra.mxu0 %v8648_v41  ;;  %v2154_v41 = vsel %vm9114_vm5, %v6823_v35, %v2153_v30  ;;  %v2558_v35 = vshrl.u32 %v2505_v9, 16  ;;  %v2561_v30 = vshll.u32 %v2505_v9, 16  ;;  %v2513_v9 = vld [vmem:[%s8945_s29 + $0x38] sm:$0xf] }
  0xad   : > { %8082 = vmatpush3.bf16.msra.mxu1 %v8649_v49  ;;  %8059 = vmatprep.subr.bf16.mxu0 %v8652_v54  ;;  %v6846_v12 = vcombine.low %v2154_v41, %v2158_v43  ;;  %v2162_v49 = vsel %vm9114_vm5, %v6825_v38, %v2161_v24  ;;  %v2518_v8 = vrot.slane %v2516_v16, 4 }
  0xae   : > { %8083 = vmatprep.subr.bf16.mxu1 %v8653_v61  ;;  %v6847_v10 = vcombine.low %v2162_v49, %v2166_v50  ;;  %v2560_v39 = vrot.slane %v2558_v35, 4  ;;  %v2563_v38 = vrot.slane %v2561_v30, 5  ;;  %v8677_v49 = vld [vmem:[%s11008_s3 + $0x2d8] sm:$0xff]   ;;  %v8681_v35 = vld [vmem:[%s11008_s3 + $0x2c8] sm:$0xff]  }
  0xaf   : > { %8028 = vmatmul.mubr.bf16.gmra.mxu0 %v8651_v60  ;;  %v9526_v60 = vld [vmem:[%s8945_s29 + $0xc] sm:$0x1] }
  0xb0   : > { %8060 = vmatpush3.bf16.msra.mxu0 %v8652_v54  ;;  %8052 = vmatmul.mubr.bf16.gmra.mxu1 %v6804_v4  ;;  %v8672_v54 = vld [vmem:[%s8945_s29 + $0x20] ss:$8 sps:$4 sm:$0xff]   ;;  %v2503_v4 = vld [vmem:[%s8945_s29 + $0x10] sm:$0xf]  ;;  %v2811_v47 = vrot.slane %v9526_v60, 5 }
  0xb1   : > { %8084 = vmatpush3.bf16.msra.mxu1 %v8653_v61  ;;  %8061 = vmatprep.subr.bf16.mxu0 %v8654_v3  ;;  %v2519_v61 = vshll.u32 %v2499_v55, 16  ;;  %v2547_v26 = vshll.u32 %v2503_v4, 16 }
  0xb2   : > { %8085 = vmatprep.subr.bf16.mxu1 %v8655_v0  ;;  %8095 = vmatprep.mubr.bf16.mxu1 %v8664_v19  ;;  %v9540_v19 = vld [vmem:[%s8945_s29 + $0x14] sm:$0x1] }
  0xb3   : > { %8071 = vmatprep.mubr.bf16.mxu0 %v6845_v20  ;;  %v2549_v37 = vrot.slane %v2547_v26, 5  ;;  %v2815_v16 = vrot.slane %v9540_v19, 5  ;;  %v2595_v26 = vshll.u32 %v9599_v63, 16 }
  0xb4   : > { %8062 = vmatpush3.bf16.msra.mxu0 %v8654_v3  ;;  %v2539_v3 = vshll.u32 %v9526_v60, 16 }
  0xb5   : > { %8086 = vmatpush3.bf16.msra.mxu1 %v8655_v0  ;;  %8063 = vmatprep.subr.bf16.mxu0 %v8656_v5  ;;  %v2521_v0 = vrot.slane %v2519_v61, 5  ;;  %v9595_v61 = vld [vmem:[%s8945_s29 + $0x24] sm:$0x1] }
  0xb6   : > { %8087 = vmatprep.subr.bf16.mxu1 %v8657_v14 }
  0xb7   : > { %v2522_v20 = vor.u32 %v2521_v0, %v2518_v8  ;;  %v9603_v0 = vld [vmem:[%s8945_s29 + $0x34] sm:$0x1] }
  0xb8   : > { %8064 = vmatpush3.bf16.msra.mxu0 %v8656_v5  ;;  %v2527_v5 = vrot.slane %v2525_v62, 5  ;;  %v2509_v62 = vld [vmem:[%s8945_s29 + $0x28] sm:$0xf] }
  0xb9   : > { %8088 = vmatpush3.bf16.msra.mxu1 %v8657_v14  ;;  %8065 = vmatprep.subr.bf16.mxu0 %v8658_v22  ;;  %v8674_v14 = vld [vmem:[%s11008_s3 + $0x2a0] sm:$0xff]   ;;  %v2523_v34 = vrot.slane %v2522_v20, 4  ;;  %v2589_v8 = vshll.u32 %v2509_v62, 16 }
  0xba   : > { %8089 = vmatprep.subr.bf16.mxu1 %v8659_v25 }
  0xbb   : > { %v2528_v41 = vsel %vm9031_vm2, %v2523_v34, %v2527_v5  ;;  %v9608_v5 = vld [vmem:[%s8945_s29 + $0x3c] sm:$0x1]  ;;  %v2617_v34 = vshll.u32 %v2513_v9, 16 }
  0xbc   : > { %8066 = vmatpush3.bf16.msra.mxu0 %v8658_v22  ;;  %v2541_v22 = vrot.slane %v2539_v3, 5  ;;  %v2575_v3 = vshll.u32 %v2507_v58, 16 }
  0xbd   : > { %8090 = vmatpush3.bf16.msra.mxu1 %v8659_v25  ;;  %8067 = vmatprep.subr.bf16.mxu0 %v8660_v27  ;;  %v2544_v25 = vshrl.u32 %v2503_v4, 16  ;;  %v2511_v4 = vld [vmem:[%s8945_s29 + $0x30] sm:$0xf] }
  0xbe   : > { %8091 = vmatprep.subr.bf16.mxu1 %v8661_v28  ;;  %v2603_v20 = vshll.u32 %v2511_v4, 16 }
  0xc0   : > { %8068 = vmatpush3.bf16.msra.mxu0 %v8660_v27  ;;  %v8675_v27 = vld [vmem:[%s11008_s3 + $0x2e0] sm:$0xff]  }
  0xc1   : > { %8092 = vmatpush3.bf16.msra.mxu1 %v8661_v28  ;;  %8069 = vmatprep.subr.bf16.mxu0 %v8662_v36  ;;  %v2536_v28 = vor.u32 %v2535_v18, %v2532_v21  ;;  %v2600_v21 = vshrl.u32 %v2511_v4, 16  ;;  %v2581_v18 = vshll.u32 %v9595_v61, 16 }
  0xc2   : > { %8093 = vmatprep.subr.bf16.mxu1 %v8663_v11 }
  0xc3   : > { %v2537_v24 = vrot.slane %v2536_v28, 4  ;;  %v2609_v28 = vshll.u32 %v9603_v0, 16 }
  0xc4   : > { %8070 = vmatpush3.bf16.msra.mxu0 %v8662_v36  ;;  %v2546_v36 = vrot.slane %v2544_v25, 4 }
  0xc5   : > { %8094 = vmatpush3.bf16.msra.mxu1 %v8663_v11  ;;  %8103 = vmatprep.subr.bf16.mxu0 %v8665_v44  ;;  %v2553_v11 = vshll.u32 %v9540_v19, 16 }
  0xc6   : > { %8127 = vmatprep.subr.bf16.mxu1 %v8666_v7  ;;  %v2550_v43 = vor.u32 %v2549_v37, %v2546_v36 }
  0xc7   : > { %8072 = vmatmul.mubr.bf16.vlgmr.msra.gmra.mxu0 %v6846_v12  ;;  %v2564_v12 = vor.u32 %v2563_v38, %v2560_v39  ;;  %v9572_v52 = vrot.slane %v2553_v11, 5  ;;  %v2819_v11 = vrot.slane %v9546_v23, 5  ;;  %v8682_v39 = vld [vmem:[%s11008_s3 + $0x280] sm:$0xff]   ;;  %v2816_v38 = vsel %vm9114_vm5, %v6915_v57, %v2815_v16 }
  0xc8   : > { %8096 = vmatmul.mubr.bf16.vlgmr.msra.gmra.mxu1 %v8667_v29  ;;  %8104 = vmatpush3.bf16.msra.mxu0 %v8665_v44  ;;  %v6913_v44 = vrot.slane %v2781_v31, 9  ;;  %v6914_v29 = vrot.slane %v2782_v33, 9  ;;  %v9584_v55 = vrot.slane %v2550_v43, 4  ;;  %v2605_v31 = vrot.slane %v2603_v20, 5  ;;  %v8683_v23 = vld [vmem:[%s11008_s3 + $0x2c0] sm:$0xff]  }
  0xc9   : > { %8128 = vmatpush3.bf16.msra.mxu1 %v8666_v7  ;;  %8105 = vmatprep.subr.bf16.mxu0 %v8668_v53  ;;  %v2542_v7 = vsel %vm9031_vm2, %v2537_v24, %v2541_v22  ;;  %v9591_v60 = vrot.slane %v2564_v12, 4  ;;  %v8680_v22 = vld [vmem:[%s11008_s3 + $0x288] sm:$0xff]   ;;  %v2614_v33 = vshrl.u32 %v2513_v9, 16  ;;  %v2623_v24 = vshll.u32 %v9608_v5, 16 }
  0xca   : > { %8129 = vmatprep.subr.bf16.mxu1 %v8669_v32  ;;  %8075 = vmatprep.mubr.bf16.mxu0 %v6847_v10  ;;  %v6901_v50 = vcombine.low %v2528_v41, %v2542_v7  ;;  %v2808_v51 = vsel %vm9114_vm5, %v6913_v44, %v2807_v45  ;;  %v9579_v10 = vld [vmem:[%s8945_s29 + $0x18] sm:$0xe]  ;;  %v2556_v36 = vsel %vm9031_vm2, %v9584_v55, %v9572_v52  ;;  %v2619_v43 = vrot.slane %v2617_v34, 5  ;;  %v2785_v44 = vld [vmem:[%s8945_s29 + $0x20] sm:$0xe] }
  0xcb   : > { %8099 = vmatprep.mubr.bf16.mxu1 %v8672_v54  ;;  %v8678_v54 = vld [vmem:[%s11008_s3 + $0x290] sm:$0xff]   ;;  %v2616_v41 = vrot.slane %v2614_v33, 4  ;;  %v2611_v12 = vrot.slane %v2609_v28, 5  ;;  %v2625_v48 = vrot.slane %v2623_v24, 5  ;;  %v8684_v52 = vld [vmem:[%s11008_s3 + $0x338] sm:$0xff]  }
  0xcc   : > { %8106 = vmatpush3.bf16.msra.mxu0 %v8668_v53  ;;  %v9574_v53 = vrot.slane %v2567_v40, 5  ;;  %v2583_v40 = vrot.slane %v2581_v18, 5  ;;  %v8685_v55 = vld [vmem:[%s11008_s3 + $0x378] sm:$0xff]   ;;  %v8688_v18 = vld [vmem:[%s11008_s3 + $0x328] sm:$0xff]   ;;  %v9690_v28 = vld [vmem:[%s8945_s29 + $0x14] sm:$0x1] }
  0xcd   : > { %8130 = vmatpush3.bf16.msra.mxu1 %v8669_v32  ;;  %8107 = vmatprep.subr.bf16.mxu0 %v8670_v6  ;;  %v2812_v32 = vsel %vm9114_vm5, %v6914_v29, %v2811_v47  ;;  %v2786_v29 = vld [vmem:[%s8945_s29 + $0x28] sm:$0xe] }
  0xce   : > { %8131 = vmatprep.subr.bf16.mxu1 %v8671_v15  ;;  %v6937_v56 = vcombine.low %v2808_v51, %v2812_v32  ;;  %v2570_v37 = vsel %vm9031_vm2, %v9591_v60, %v9574_v53  ;;  %v2787_v51 = vld [vmem:[%s8945_s29 + $0x30] sm:$0xe]  ;;  %v2620_v32 = vor.u32 %v2619_v43, %v2616_v41  ;;  %v6989_v43 = vld [vmem:[%s8945_s29 + $0x18] sm:$0xf] }
  0xcf   : > { %8076 = vmatmul.mubr.bf16.gmra.mxu0 %v6848_v13  ;;  %v6916_v13 = vrot.slane %v9579_v10, 9  ;;  %v6918_v10 = vrot.slane %v2786_v29, 9  ;;  %v6919_v58 = vrot.slane %v2787_v51, 9  ;;  %v8700_v34 = vld [vmem:[%s8945_s29 + $0x8] ss:$8 sps:$4 sm:$0xff]  }
  0xd0   : > { %8108 = vmatpush3.bf16.msra.mxu0 %v8670_v6  ;;  %8100 = vmatmul.mubr.bf16.gmra.mxu1 %v8673_v17  ;;  %v2586_v6 = vshrl.u32 %v2509_v62, 16  ;;  %v2577_v17 = vrot.slane %v2575_v3, 5  ;;  %v2621_v62 = vrot.slane %v2620_v32, 4  ;;  %v9707_v29 = vld [vmem:[%s8945_s29 + $0x24] sm:$0x1] }
  0xd1   : > { %8132 = vmatpush3.bf16.msra.mxu1 %v8671_v15  ;;  %8109 = vmatprep.subr.bf16.mxu0 %v8674_v14  ;;  %v2574_v15 = vrot.slane %v2572_v1, 4  ;;  %v2820_v53 = vsel %vm9114_vm5, %v6916_v13, %v2819_v11  ;;  %v8691_v11 = vld [vmem:[%s11008_s3 + $0x360] sm:$0xff]  }
  0xd2   : > { %8133 = vmatprep.subr.bf16.mxu1 %v8675_v27  ;;  %8119 = vmatprep.mubr.bf16.mxu0 %v6901_v50  ;;  %v2588_v19 = vrot.slane %v2586_v6, 4  ;;  %v2823_v50 = vrot.slane %v9595_v61, 5  ;;  %v6938_v60 = vcombine.low %v2816_v38, %v2820_v53  ;;  %v2835_v6 = vrot.slane %v9608_v5, 5 }
  0xd3   : > { %8143 = vmatprep.mubr.bf16.mxu1 %v6937_v56  ;;  %v2578_v25 = vor.u32 %v2577_v17, %v2574_v15  ;;  %v2788_v56 = vld [vmem:[%s8945_s29 + $0x38] sm:$0xe]  ;;  %v2626_v17 = vsel %vm9031_vm2, %v2621_v62, %v2625_v48  ;;  %v3210_v48 = vshll.u32 %v6989_v43, 16  ;;  %v3230_v62 = vshll.u32 %v9707_v29, 16 }
  0xd4   : > { %8110 = vmatpush3.bf16.msra.mxu0 %v8674_v14  ;;  %v2591_v14 = vrot.slane %v2589_v8, 5  ;;  %v6920_v4 = vrot.slane %v2788_v56, 9  ;;  %v8686_v8 = vld [vmem:[%s11008_s3 + $0x330] sm:$0xff]  }
  0xd5   : > { %8134 = vmatpush3.bf16.msra.mxu1 %v8675_v27  ;;  %8111 = vmatprep.subr.bf16.mxu0 %v8676_v46  ;;  %v2602_v27 = vrot.slane %v2600_v21, 4  ;;  %v2579_v45 = vrot.slane %v2578_v25, 4  ;;  %v8690_v25 = vld [vmem:[%s11008_s3 + $0x320] sm:$0xff]  }
  0xd6   : > { %8135 = vmatprep.subr.bf16.mxu1 %v8677_v49  ;;  %v2592_v30 = vor.u32 %v2591_v14, %v2588_v19  ;;  %v2836_v21 = vsel %vm9114_vm5, %v6920_v4, %v2835_v6  ;;  %v8689_v19 = vld [vmem:[%s11008_s3 + $0x368] sm:$0xff]  }
  0xd7   : > { %v2606_v7 = vor.u32 %v2605_v31, %v2602_v27  ;;  %v2584_v16 = vsel %vm9031_vm2, %v2579_v45, %v2583_v40  ;;  %v6985_v14 = vld [vmem:[%s8945_s29 + $0x8] sm:$0xf]  ;;  %v6987_v27 = vld [vmem:[%s8945_s29 + $0x10] sm:$0xf]  ;;  %v8692_v40 = vld [vmem:[%s11008_s3 + $0x318] sm:$0xff]  }
  0xd8   : > { %8112 = vmatpush3.bf16.msra.mxu0 %v8676_v46  ;;  %v2597_v46 = vrot.slane %v2595_v26, 5  ;;  %v2593_v47 = vrot.slane %v2592_v30, 4  ;;  %v9686_v26 = vld [vmem:[%s8945_s29 + $0xc] sm:$0x1]  ;;  %v3182_v30 = vshll.u32 %v6985_v14, 16  ;;  %v3193_v33 = vshrl.u32 %v6987_v27, 16 }
  0xd9   : > { %8136 = vmatpush3.bf16.msra.mxu1 %v8677_v49  ;;  %8113 = vmatprep.subr.bf16.mxu0 %v8678_v54  ;;  %v6917_v49 = vrot.slane %v2785_v44, 9  ;;  %v2607_v57 = vrot.slane %v2606_v7, 4  ;;  %v3188_v31 = vshll.u32 %v9686_v26, 16  ;;  %v6991_v7 = vld [vmem:[%s8945_s29 + $0x20] sm:$0xf] }
  0xda   : > { %8137 = vmatprep.subr.bf16.mxu1 %v8679_v59  ;;  %v2598_v61 = vsel %vm9031_vm2, %v2593_v47, %v2597_v46  ;;  %v3195_v38 = vrot.slane %v3193_v33, 4  ;;  %v9703_v46 = vld [vmem:[%s8945_s29 + $0x1c] sm:$0x1]  ;;  %v3207_v47 = vshrl.u32 %v6989_v43, 16  ;;  %v3221_v51 = vshrl.u32 %v6991_v7, 16 }
  0xdb   : > { %v2824_v1 = vsel %vm9114_vm5, %v6917_v49, %v2823_v50  ;;  %v6903_v9 = vcombine.low %v2584_v16, %v2598_v61  ;;  %v2612_v13 = vsel %vm9031_vm2, %v2607_v57, %v2611_v12  ;;  %v8693_v49 = vld [vmem:[%s11008_s3 + $0x358] sm:$0xff]   ;;  %v8695_v16 = vld [vmem:[%s11008_s3 + $0x350] sm:$0xff]   ;;  %v6993_v6 = vld [vmem:[%s8945_s29 + $0x28] sm:$0xf] }
  0xdc   : > { %8114 = vmatpush3.bf16.msra.mxu0 %v8678_v54  ;;  %v2827_v54 = vrot.slane %v9599_v63, 5  ;;  %v2831_v63 = vrot.slane %v9603_v0, 5  ;;  %v8687_v0 = vld [vmem:[%s11008_s3 + $0x370] sm:$0xff]   ;;  %v6904_v20 = vcombine.low %v2612_v13, %v2626_v17  ;;  %v3209_v32 = vrot.slane %v3207_v47, 4 }
  0xdd   : > { %8138 = vmatpush3.bf16.msra.mxu1 %v8679_v59  ;;  %8115 = vmatprep.subr.bf16.mxu0 %v8680_v22  ;;  %v6902_v59 = vcombine.low %v2556_v36, %v2570_v37  ;;  %v3196_v36 = vshll.u32 %v6987_v27, 16  ;;  %v3202_v37 = vshll.u32 %v9690_v28, 16  ;;  %v3223_v56 = vrot.slane %v3221_v51, 4  ;;  %v8702_v51 = vld [vmem:[%s11008_s3 + $0x3b8] sm:$0xff]  }
  0xde   : > { %8139 = vmatprep.subr.bf16.mxu1 %v8681_v35  ;;  %v2828_v3 = vsel %vm9114_vm5, %v6918_v10, %v2827_v54  ;;  %v2832_v5 = vsel %vm9114_vm5, %v6919_v58, %v2831_v63  ;;  %v3212_v10 = vrot.slane %v3210_v48, 5  ;;  %v8694_v58 = vld [vmem:[%s11008_s3 + $0x310] sm:$0xff]   ;;  %v8696_v63 = vld [vmem:[%s11008_s3 + $0x308] sm:$0xff]   ;;  %v3232_v13 = vrot.slane %v3230_v62, 5 }
  0xdf   : > { %v6939_v15 = vcombine.low %v2824_v1, %v2828_v3  ;;  %v3198_v41 = vrot.slane %v3196_v36, 5  ;;  %v3204_v45 = vrot.slane %v3202_v37, 5  ;;  %v3235_v17 = vshrl.u32 %v6993_v6, 16  ;;  %v6999_v37 = vld [vmem:[%s8945_s29 + $0x40] sm:$0xf] }
  0xe0   : > { %8116 = vmatpush3.bf16.msra.mxu0 %v8680_v22  ;;  %v6940_v22 = vcombine.low %v2832_v5, %v2836_v21  ;;  %v3238_v5 = vshll.u32 %v6993_v6, 16  ;;  %v3277_v43 = vshrl.u32 %v6999_v37, 16 }
  0xe1   : > { %8140 = vmatpush3.bf16.msra.mxu1 %v8681_v35  ;;  %8117 = vmatprep.subr.bf16.mxu0 %v8682_v39  ;;  %v3179_v35 = vshrl.u32 %v6985_v14, 16  ;;  %v3199_v12 = vor.u32 %v3198_v41, %v3195_v38  ;;  %v9760_v38 = vld [vmem:[%s8945_s29 + $0x44] sm:$0x1] }
  0xe2   : > { %8141 = vmatprep.subr.bf16.mxu1 %v8683_v23 }
  0xe3   : > { %v3181_v24 = vrot.slane %v3179_v35, 4  ;;  %v3200_v53 = vrot.slane %v3199_v12, 4  ;;  %v9746_v35 = vld [vmem:[%s8945_s29 + $0x3c] sm:$0x1] }
  0xe4   : > { %8118 = vmatpush3.bf16.msra.mxu0 %v8682_v39  ;;  %v3184_v39 = vrot.slane %v3182_v30, 5  ;;  %v3272_v41 = vshll.u32 %v9746_v35, 16 }
  0xe5   : > { %8142 = vmatpush3.bf16.msra.mxu1 %v8683_v23  ;;  %8151 = vmatprep.subr.bf16.mxu0 %v8684_v52  ;;  %v3190_v23 = vrot.slane %v3188_v31, 5  ;;  %v8698_v31 = vld [vmem:[%s11008_s3 + $0x300] sm:$0xff]  }
  0xe6   : > { %8175 = vmatprep.subr.bf16.mxu1 %v8685_v55  ;;  %v3185_v44 = vor.u32 %v3184_v39, %v3181_v24  ;;  %v8699_v24 = vld [vmem:[%s11008_s3 + $0x340] sm:$0xff]  }
  0xe7   : > { %8120 = vmatmul.mubr.bf16.vlgmr.msra.gmra.mxu0 %v6902_v59  ;;  %v3205_v59 = vsel %vm9031_vm2, %v3200_v53, %v3204_v45  ;;  %v3280_v45 = vshll.u32 %v6999_v37, 16 }
  0xe8   : > { %8144 = vmatmul.mubr.bf16.vlgmr.msra.gmra.mxu1 %v6938_v60  ;;  %8152 = vmatpush3.bf16.msra.mxu0 %v8684_v52  ;;  %v3186_v50 = vrot.slane %v3185_v44, 4  ;;  %v3224_v52 = vshll.u32 %v6991_v7, 16  ;;  %v3213_v60 = vor.u32 %v3212_v10, %v3209_v32  ;;  %v3286_v7 = vshll.u32 %v9760_v38, 16 }
  0xe9   : > { %8176 = vmatpush3.bf16.msra.mxu1 %v8685_v55  ;;  %8153 = vmatprep.subr.bf16.mxu0 %v8686_v8  ;;  %v3216_v55 = vshll.u32 %v9703_v46, 16 }
  0xea   : > { %8177 = vmatprep.subr.bf16.mxu1 %v8687_v0  ;;  %8123 = vmatprep.mubr.bf16.mxu0 %v6903_v9  ;;  %v3191_v54 = vsel %vm9031_vm2, %v3186_v50, %v3190_v23  ;;  %v3226_v57 = vrot.slane %v3224_v52, 5  ;;  %v9727_v3 = vrot.slane %v3213_v60, 4  ;;  %v8697_v9 = vld [vmem:[%s11008_s3 + $0x348] sm:$0xff]   ;;  %v8701_v50 = vld [vmem:[%s8945_s29 + $0x18] ss:$8 sps:$4 sm:$0xff]   ;;  %v8705_v60 = vld [vmem:[%s11008_s3 + $0x3f0] sm:$0xff]  }
  0xeb   : > { %8147 = vmatprep.mubr.bf16.mxu1 %v6939_v15  ;;  %v7017_v61 = vcombine.low %v3191_v54, %v3205_v59  ;;  %v9729_v4 = vrot.slane %v3216_v55, 5  ;;  %v9740_v15 = vld [vmem:[%s8945_s29 + $0x34] sm:$0x1]  ;;  %v8703_v52 = vld [vmem:[%s11008_s3 + $0x3f8] sm:$0xff]   ;;  %v3282_v54 = vrot.slane %v3280_v45, 5 }
  0xec   : > { %8154 = vmatpush3.bf16.msra.mxu0 %v8686_v8  ;;  %v3227_v1 = vor.u32 %v3226_v57, %v3223_v56  ;;  %v9733_v8 = vld [vmem:[%s8945_s29 + $0x2c] sm:$0x1]  ;;  %v3258_v27 = vshll.u32 %v9740_v15, 16  ;;  %v8704_v55 = vld [vmem:[%s11008_s3 + $0x3b0] sm:$0xff]   ;;  %v3274_v56 = vrot.slane %v3272_v41, 5  ;;  %v8713_v45 = vld [vmem:[%s11008_s3 + $0x3d8] sm:$0xff]  }
  0xed   : > { %8178 = vmatpush3.bf16.msra.mxu1 %v8687_v0  ;;  %8155 = vmatprep.subr.bf16.mxu0 %v8688_v18  ;;  %v6995_v0 = vld [vmem:[%s8945_s29 + $0x30] sm:$0xf]  ;;  %v3219_v33 = vsel %vm9031_vm2, %v9727_v3, %v9729_v4 }
  0xee   : > { %8179 = vmatprep.subr.bf16.mxu1 %v8689_v19  ;;  %v3228_v21 = vrot.slane %v3227_v1, 4  ;;  %v3252_v14 = vshll.u32 %v6995_v0, 16  ;;  %v3260_v48 = vrot.slane %v3258_v27, 5 }
  0xef   : > { %8124 = vmatmul.mubr.bf16.gmra.mxu0 %v6904_v20  ;;  %v6997_v20 = vld [vmem:[%s8945_s29 + $0x38] sm:$0xf] }
  0xf0   : > { %8156 = vmatpush3.bf16.msra.mxu0 %v8688_v18  ;;  %8148 = vmatmul.mubr.bf16.gmra.mxu1 %v6940_v22  ;;  %v3244_v18 = vshll.u32 %v9733_v8, 16  ;;  %v3237_v22 = vrot.slane %v3235_v17, 4  ;;  %v3263_v30 = vshrl.u32 %v6997_v20, 16  ;;  %v3254_v36 = vrot.slane %v3252_v14, 5 }
  0xf1   : > { %8180 = vmatpush3.bf16.msra.mxu1 %v8689_v19  ;;  %8157 = vmatprep.subr.bf16.mxu0 %v8690_v25  ;;  %v3249_v19 = vshrl.u32 %v6995_v0, 16  ;;  %v3233_v53 = vsel %vm9031_vm2, %v3228_v21, %v3232_v13  ;;  %v3470_v0 = vrot.slane %v9686_v26, 5  ;;  %v7030_v26 = vld [vmem:[%s8945_s29 + $0x10] sm:$0xe] }
  0xf2   : > { %8181 = vmatprep.subr.bf16.mxu1 %v8691_v11  ;;  %8167 = vmatprep.mubr.bf16.mxu0 %v8700_v34  ;;  %v3246_v47 = vrot.slane %v3244_v18, 5  ;;  %v7018_v59 = vcombine.low %v3219_v33, %v3233_v53  ;;  %v8716_v53 = vld [vmem:[%s11008_s3 + $0x388] sm:$0xff]  }
  0xf3   : > { %8191 = vmatprep.mubr.bf16.mxu1 %v7017_v61  ;;  %v3251_v34 = vrot.slane %v3249_v19, 4  ;;  %v7029_v19 = vld [vmem:[%s8945_s29 + $0x8] sm:$0xe] }
  0xf4   : > { %8158 = vmatpush3.bf16.msra.mxu0 %v8690_v25  ;;  %v3240_v25 = vrot.slane %v3238_v5, 5  ;;  %v8708_v5 = vld [vmem:[%s11008_s3 + $0x3a8] sm:$0xff]  }
  0xf5   : > { %8182 = vmatpush3.bf16.msra.mxu1 %v8691_v11  ;;  %8159 = vmatprep.subr.bf16.mxu0 %v8692_v40  ;;  %v3266_v11 = vshll.u32 %v6997_v20, 16  ;;  %v3255_v44 = vor.u32 %v3254_v36, %v3251_v34  ;;  %v7037_v20 = vrot.slane %v7029_v19, 9  ;;  %v3494_v19 = vrot.slane %v9746_v35, 5  ;;  %v7111_v35 = vld [vmem:[%s8945_s29 + $0x18] sm:$0xf] }
  0xf6   : > { %8183 = vmatprep.subr.bf16.mxu1 %v8693_v49  ;;  %v3241_v39 = vor.u32 %v3240_v25, %v3237_v22  ;;  %v7038_v22 = vrot.slane %v7030_v26, 9  ;;  %v3498_v26 = vrot.slane %v9760_v38, 5 }
  0xf7   : > { %v3268_v23 = vrot.slane %v3266_v11, 5  ;;  %v3256_v32 = vrot.slane %v3255_v44, 4  ;;  %v3471_v34 = vsel %vm9114_vm5, %v7037_v20, %v3470_v0  ;;  %v8720_v44 = vld [vmem:[%s8945_s29 + $0x10] ss:$8 sps:$4 sm:$0xff]  }
  0xf8   : > { %8160 = vmatpush3.bf16.msra.mxu0 %v8692_v40  ;;  %v3265_v40 = vrot.slane %v3263_v30, 4  ;;  %v3242_v12 = vrot.slane %v3241_v39, 4  ;;  %v8707_v30 = vld [vmem:[%s8945_s29 + $0x38] ss:$8 sps:$4 sm:$0xff]  }
  0xf9   : > { %8184 = vmatpush3.bf16.msra.mxu1 %v8693_v49  ;;  %8161 = vmatprep.subr.bf16.mxu0 %v8694_v58  ;;  %v3279_v49 = vrot.slane %v3277_v43, 4  ;;  %v3261_v62 = vsel %vm9031_vm2, %v3256_v32, %v3260_v48  ;;  %v7031_v48 = vld [vmem:[%s8945_s29 + $0x18] sm:$0xe] }
  0xfa   : > { %8185 = vmatprep.subr.bf16.mxu1 %v8695_v16  ;;  %v3269_v10 = vor.u32 %v3268_v23, %v3265_v40  ;;  %v3247_v61 = vsel %vm9031_vm2, %v3242_v12, %v3246_v47  ;;  %v8711_v40 = vld [vmem:[%s11008_s3 + $0x3e0] sm:$0xff]   ;;  %v8712_v23 = vld [vmem:[%s11008_s3 + $0x398] sm:$0xff]   ;;  %v8714_v12 = vld [vmem:[%s11008_s3 + $0x390] sm:$0xff]   ;;  %v7039_v32 = vrot.slane %v7031_v48, 9 }
  0xfb   : > { %v3283_v57 = vor.u32 %v3282_v54, %v3279_v49  ;;  %v7019_v4 = vcombine.low %v3247_v61, %v3261_v62  ;;  %v8715_v49 = vld [vmem:[%s11008_s3 + $0x3d0] sm:$0xff]   ;;  %v8718_v62 = vld [vmem:[%s11008_s3 + $0x380] sm:$0xff]  }
  0xfc   : > { %8162 = vmatpush3.bf16.msra.mxu0 %v8694_v58  ;;  %v3288_v58 = vrot.slane %v3286_v7, 5 }
  0xfd   : > { %8186 = vmatpush3.bf16.msra.mxu1 %v8695_v16  ;;  %8163 = vmatprep.subr.bf16.mxu0 %v8696_v63  ;;  %v8706_v16 = vld [vmem:[%s8945_s29 + $0x28] ss:$8 sps:$4 sm:$0xff]   ;;  %v3284_v1 = vrot.slane %v3283_v57, 4 }
  0xfe   : > { %8187 = vmatprep.subr.bf16.mxu1 %v8697_v9 }
  0xff   : > { %v3289_v18 = vsel %vm9031_vm2, %v3284_v1, %v3288_v58  ;;  %v7034_v58 = vld [vmem:[%s8945_s29 + $0x30] sm:$0xe]  ;;  %v3490_v1 = vrot.slane %v9740_v15, 5 }
 0x100   : > { %8164 = vmatpush3.bf16.msra.mxu0 %v8696_v63  ;;  %v3270_v63 = vrot.slane %v3269_v10, 4  ;;  %v3478_v10 = vrot.slane %v9703_v46, 5 }
 0x101   : > { %8188 = vmatpush3.bf16.msra.mxu1 %v8697_v9  ;;  %8165 = vmatprep.subr.bf16.mxu0 %v8698_v31  ;;  %v3474_v9 = vrot.slane %v9690_v28, 5  ;;  %v8709_v28 = vld [vmem:[%s11008_s3 + $0x3e8] sm:$0xff]  }
 0x102   : > { %8189 = vmatprep.subr.bf16.mxu1 %v8699_v24  ;;  %v3275_v21 = vsel %vm9031_vm2, %v3270_v63, %v3274_v56  ;;  %v7033_v56 = vld [vmem:[%s8945_s29 + $0x28] sm:$0xe]  ;;  %v3486_v63 = vrot.slane %v9733_v8, 5  ;;  %v3479_v8 = vsel %vm9114_vm5, %v7039_v32, %v3478_v10 }
 0x103   : > { %v7020_v33 = vcombine.low %v3275_v21, %v3289_v18  ;;  %v3475_v36 = vsel %vm9114_vm5, %v7038_v22, %v3474_v9  ;;  %v7035_v9 = vld [vmem:[%s8945_s29 + $0x38] sm:$0xe]  ;;  %v7109_v22 = vld [vmem:[%s8945_s29 + $0x10] sm:$0xf]  ;;  %v9909_v10 = vld [vmem:[%s11008_s3 + $0x428] sm:$0xff]  }
 0x104   : > { %8166 = vmatpush3.bf16.msra.mxu0 %v8698_v31  ;;  %v7061_v41 = vcombine.low %v3471_v34, %v3475_v36  ;;  %v8721_v21 = vld [vmem:[%s11008_s3 + $0x438] sm:$0xff]   ;;  %v3842_v38 = vshrl.u32 %v7109_v22, 16  ;;  %v3845_v34 = vshll.u32 %v7109_v22, 16 }
 0x105   : > { %8190 = vmatpush3.bf16.msra.mxu1 %v8699_v24  ;;  %8199 = vmatprep.subr.bf16.mxu0 %v8702_v51  ;;  %v8710_v24 = vld [vmem:[%s11008_s3 + $0x3a0] sm:$0xff]   ;;  %v8722_v18 = vld [vmem:[%s11008_s3 + $0x478] sm:$0xff]  }
 0x106   : > { %8223 = vmatprep.subr.bf16.mxu1 %v8703_v52 }
 0x107   : > { %v7881_v3 = vpop.f32.mrf.mxu0  ;;  %8168 = vmatmul.mubr.bf16.vlgmr.msra.gmra.mxu0 %v8701_v50  ;;  %v7032_v50 = vld [vmem:[%s8945_s29 + $0x20] sm:$0xe] }
 0x108   : > { %v7905_v6 = vpop.f32.mrf.mxu1  ;;  %8192 = vmatmul.mubr.bf16.vlgmr.msra.gmra.mxu1 %v7018_v59  ;;  %8200 = vmatpush3.bf16.msra.mxu0 %v8702_v51 }
 0x109   : > { %v9786_v13 = vadd.f32 %v7905_v6, %v7881_v3  ;;  %8224 = vmatpush3.bf16.msra.mxu1 %v8703_v52  ;;  %v622_v17 = vpop.f32.mrf.mxu0  ;;  %8201 = vmatprep.subr.bf16.mxu0 %v8704_v55  ;;  %v7041_v6 = vrot.slane %v7033_v56, 9 }
 0x10a   : > { %v759_v14 = vpop.f32.mrf.mxu1  ;;  %8225 = vmatprep.subr.bf16.mxu1 %v8705_v60  ;;  %8171 = vmatprep.mubr.bf16.mxu0 %v8706_v16  ;;  %v3482_v16 = vrot.slane %v9707_v29, 5  ;;  %v7042_v29 = vrot.slane %v7034_v58, 9 }
 0x10b   : > { %v9800_v25 = vadd.f32 %v759_v14, %v622_v17  ;;  %v7882_v27 = vpop.f32.mrf.mxu0  ;;  %8195 = vmatprep.mubr.bf16.mxu1 %v7019_v4  ;;  %v8719_v4 = vld [vmem:[%s11008_s3 + $0x3c0] sm:$0xff]  }
 0x10c   : > { %v7906_v31 = vpop.f32.mrf.mxu1  ;;  %8202 = vmatpush3.bf16.msra.mxu0 %v8704_v55  ;;  %v8717_v55 = vld [vmem:[%s11008_s3 + $0x3c8] sm:$0xff]  }
 0x10d   : > { %v9807_v37 = vadd.f32 %v7906_v31, %v7882_v27  ;;  %8226 = vmatpush3.bf16.msra.mxu1 %v8705_v60  ;;  %v625_v11 = vpop.f32.mrf.mxu0  ;;  %8203 = vmatprep.subr.bf16.mxu0 %v8708_v5  ;;  %v7040_v60 = vrot.slane %v7032_v50, 9  ;;  %v9874_v27 = vld [vmem:[%s8945_s29 + $0x14] sm:$0x1]  ;;  %v3491_v31 = vsel %vm9114_vm5, %v7042_v29, %v3490_v1  ;;  %v7153_v1 = vld [vmem:[%s8945_s29 + $0x10] sm:$0xe] }
 0x10e   : > { %v762_v39 = vpop.f32.mrf.mxu1  ;;  %8227 = vmatprep.subr.bf16.mxu1 %v8709_v28  ;;  %v3851_v36 = vshll.u32 %v9874_v27, 16  ;;  %v7161_v22 = vrot.slane %v7153_v1, 9  ;;  %v7121_v1 = vld [vmem:[%s8945_s29 + $0x40] sm:$0xf] }
 0x10f   : > { %v9815_v43 = vadd.f32 %v762_v39, %v625_v11  ;;  %8172 = vmatmul.mubr.bf16.gmra.mxu0 %v8707_v30  ;;  %v3483_v15 = vsel %vm9114_vm5, %v7040_v60, %v3482_v16  ;;  %v3487_v30 = vsel %vm9114_vm5, %v7041_v6, %v3486_v63  ;;  %v3856_v11 = vshrl.u32 %v7111_v35, 16 }
 0x110   : > { %8204 = vmatpush3.bf16.msra.mxu0 %v8708_v5  ;;  %8196 = vmatmul.mubr.bf16.gmra.mxu1 %v7020_v33  ;;  %v7909_v7 = vpop.f32.mrf.mxu1  ;;  %v7036_v5 = vld [vmem:[%s8945_s29 + $0x40] sm:$0xe]  ;;  %v7062_v14 = vcombine.low %v3479_v8, %v3483_v15  ;;  %v9882_v33 = vld [vmem:[%s8945_s29 + $0x1c] sm:$0x1]  ;;  %v7063_v48 = vcombine.low %v3487_v30, %v3491_v31  ;;  %v3853_v56 = vrot.slane %v3851_v36, 5 }
 0x111   : > { %8228 = vmatpush3.bf16.msra.mxu1 %v8709_v28  ;;  %8205 = vmatprep.subr.bf16.mxu0 %v8710_v24  ;;  %v7043_v28 = vrot.slane %v7035_v9, 9  ;;  %v7044_v20 = vrot.slane %v7036_v5, 9  ;;  %v3865_v39 = vshll.u32 %v9882_v33, 16 }
 0x112   : > { %8229 = vmatprep.subr.bf16.mxu1 %v8711_v40  ;;  %8215 = vmatprep.mubr.bf16.mxu0 %v7061_v41  ;;  %v775_v47 = vpop.f32.mrf.mxu1  ;;  %v7885_v51 = vpop.f32.mrf.mxu0  ;;  %v3844_v41 = vrot.slane %v3842_v38, 4 }
 0x113   : > { %8239 = vmatprep.mubr.bf16.mxu1 %v8720_v44  ;;  %v9836_v54 = vadd.f32 %v7909_v7, %v7885_v51  ;;  %v3847_v44 = vrot.slane %v3845_v34, 5  ;;  %v3858_v7 = vrot.slane %v3856_v11, 4  ;;  %v9900_v50 = vsel %vm9114_vm5, %v7044_v20, %v3498_v26  ;;  %v9928_v26 = vld [vmem:[%s11008_s3 + $0x420] sm:$0xff]  }
 0x114   : > { %8206 = vmatpush3.bf16.msra.mxu0 %v8710_v24  ;;  %v7910_v52 = vpop.f32.mrf.mxu1  ;;  %v638_v57 = vpop.f32.mrf.mxu0  ;;  %v3859_v24 = vshll.u32 %v7111_v35, 16  ;;  %v3867_v58 = vrot.slane %v3865_v39, 5  ;;  %v4133_v34 = vrot.slane %v9874_v27, 5  ;;  %v8731_v27 = vld [vmem:[%s11008_s3 + $0x460] sm:$0xff]  }
 0x115   : > { %8230 = vmatpush3.bf16.msra.mxu1 %v8711_v40  ;;  %8207 = vmatprep.subr.bf16.mxu0 %v8712_v23  ;;  %v9843_v59 = vadd.f32 %v775_v47, %v638_v57  ;;  %v8723_v40 = vld [vmem:[%s8945_s29 + $0x20] ss:$8 sps:$4 sm:$0xff]   ;;  %v8725_v47 = vld [vmem:[%s11008_s3 + $0x470] sm:$0xff]   ;;  %v3848_v51 = vor.u32 %v3847_v44, %v3844_v41 }
 0x116   : > { %8231 = vmatprep.subr.bf16.mxu1 %v8713_v45  ;;  %v7886_v46 = vpop.f32.mrf.mxu0  ;;  %v778_v61 = vpop.f32.mrf.mxu1 }
 0x117   : > { %v9851_v3 = vadd.f32 %v7910_v52, %v7886_v46  ;;  %v9903_v52 = vld [vmem:[%s8945_s29 + $0x24] sm:$0x1] }
 0x118   : > { %8208 = vmatpush3.bf16.msra.mxu0 %v8712_v23  ;;  %v641_v0 = vpop.f32.mrf.mxu0  ;;  %v7113_v23 = vld [vmem:[%s8945_s29 + $0x20] sm:$0xf]  ;;  %v3879_v29 = vshll.u32 %v9903_v52, 16 }
 0x119   : > { %8232 = vmatpush3.bf16.msra.mxu1 %v8713_v45  ;;  %8209 = vmatprep.subr.bf16.mxu0 %v8714_v12  ;;  %v9857_v17 = vadd.f32 %v778_v61, %v641_v0  ;;  %v8724_v45 = vld [vmem:[%s11008_s3 + $0x430] sm:$0xff]   ;;  %v3870_v60 = vshrl.u32 %v7113_v23, 16  ;;  %v8727_v61 = vld [vmem:[%s11008_s3 + $0x468] sm:$0xff]   ;;  %v3873_v63 = vshll.u32 %v7113_v23, 16 }
 0x11a   : > { %8233 = vmatprep.subr.bf16.mxu1 %v8715_v49 }
 0x11b   : > { %v9937_v20 = vrot.slane %v3870_v60, 4  ;;  %v3875_v38 = vrot.slane %v3873_v63, 5 }
 0x11c   : > { %8210 = vmatpush3.bf16.msra.mxu0 %v8714_v12  ;;  %v3861_v12 = vrot.slane %v3859_v24, 5 }
 0x11d   : > { %8234 = vmatpush3.bf16.msra.mxu1 %v8715_v49  ;;  %8211 = vmatprep.subr.bf16.mxu0 %v8716_v53  ;;  %v9896_v49 = vsel %vm9114_vm5, %v7043_v28, %v3494_v19  ;;  %v9935_v28 = vld [vmem:[%s8945_s29 + $0x2c] sm:$0x1] }
 0x11e   : > { %8235 = vmatprep.subr.bf16.mxu1 %v8717_v55  ;;  %v3862_v57 = vor.u32 %v3861_v12, %v3858_v7  ;;  %v7064_v5 = vcombine.low %v9896_v49, %v9900_v50  ;;  %v7117_v7 = vld [vmem:[%s8945_s29 + $0x30] sm:$0xf]  ;;  %v3876_v50 = vor.u32 %v3875_v38, %v9937_v20 }
 0x11f   : > { %v3901_v63 = vshll.u32 %v7117_v7, 16 }
 0x120   : > { %8212 = vmatpush3.bf16.msra.mxu0 %v8716_v53  ;;  %v7115_v53 = vld [vmem:[%s8945_s29 + $0x28] sm:$0xf]  ;;  %v3863_v6 = vrot.slane %v3862_v57, 4  ;;  %v3898_v57 = vshrl.u32 %v7117_v7, 16 }
 0x121   : > { %8236 = vmatpush3.bf16.msra.mxu1 %v8717_v55  ;;  %8213 = vmatprep.subr.bf16.mxu0 %v8718_v62  ;;  %v8728_v55 = vld [vmem:[%s8945_s29 + $0x30] ss:$8 sps:$4 sm:$0xff]   ;;  %v3887_v0 = vshll.u32 %v7115_v53, 16 }
 0x122   : > { %8237 = vmatprep.subr.bf16.mxu1 %v8719_v4 }
 0x123   : > { %v3889_v24 = vrot.slane %v3887_v0, 5 }
 0x124   : > { %8214 = vmatpush3.bf16.msra.mxu0 %v8718_v62  ;;  %v3849_v62 = vrot.slane %v3848_v51, 4  ;;  %v7119_v51 = vld [vmem:[%s8945_s29 + $0x38] sm:$0xf] }
 0x125   : > { %8238 = vmatpush3.bf16.msra.mxu1 %v8719_v4  ;;  %8247 = vmatprep.subr.bf16.mxu0 %v8721_v21  ;;  %v3912_v0 = vshrl.u32 %v7119_v51, 16 }
 0x126   : > { %8271 = vmatprep.subr.bf16.mxu1 %v8722_v18 }
 0x127   : > { %v7929_v32 = vpop.f32.mrf.mxu0  ;;  %8216 = vmatmul.mubr.bf16.vlgmr.msra.gmra.mxu0 %v7062_v14  ;;  %v3868_v14 = vsel %vm9031_vm2, %v3863_v6, %v3867_v58  ;;  %v3914_v20 = vrot.slane %v3912_v0, 4 }
 0x128   : > { %v997_v16 = vadd.f32 %v7929_v32, %v9786_v13  ;;  %8240 = vmatmul.mubr.bf16.vlgmr.msra.gmra.mxu1 %v8723_v40  ;;  %8248 = vmatpush3.bf16.msra.mxu0 %v8721_v21  ;;  %v7953_v46 = vpop.f32.mrf.mxu1  ;;  %v3884_v13 = vshrl.u32 %v7115_v53, 16  ;;  %v8729_v21 = vld [vmem:[%s8945_s29 + $0x40] ss:$8 sps:$4 sm:$0xff]   ;;  %v4137_v40 = vrot.slane %v9882_v33, 5  ;;  %v3893_v33 = vshll.u32 %v9935_v28, 16  ;;  %v8733_v32 = vld [vmem:[%s11008_s3 + $0x458] sm:$0xff]  }
 0x129   : > { %8272 = vmatpush3.bf16.msra.mxu1 %v8722_v18  ;;  %v964_v4 = vpop.f32.mrf.mxu0  ;;  %8249 = vmatprep.subr.bf16.mxu0 %v8724_v45  ;;  %v7154_v18 = vld [vmem:[%s8945_s29 + $0x18] sm:$0xe] }
 0x12a   : > { %v995_v9 = vadd.f32 %v964_v4, %v9800_v25  ;;  %v9919_v8 = vadd.f32 %v7953_v46, %v997_v16  ;;  %v1135_v15 = vpop.f32.mrf.mxu1  ;;  %8273 = vmatprep.subr.bf16.mxu1 %v8725_v47  ;;  %8219 = vmatprep.mubr.bf16.mxu0 %v7063_v48  ;;  %v3854_v25 = vsel %vm9031_vm2, %v3849_v62, %v3853_v56  ;;  %v3886_v11 = vrot.slane %v3884_v13, 4  ;;  %v9971_v56 = vld [vmem:[%s8945_s29 + $0x20] sm:$0xe]  ;;  %v9984_v62 = vld [vmem:[%s8945_s29 + $0x3c] sm:$0x1] }
 0x12b   : > { %v7930_v19 = vpop.f32.mrf.mxu0  ;;  %8243 = vmatprep.mubr.bf16.mxu1 %v8728_v55  ;;  %v7162_v39 = vrot.slane %v7154_v18, 9  ;;  %v7141_v23 = vcombine.low %v3854_v25, %v3868_v14  ;;  %v9978_v46 = vrot.slane %v3879_v29, 5  ;;  %v9990_v6 = vrot.slane %v3893_v33, 5  ;;  %v7157_v33 = vld [vmem:[%s8945_s29 + $0x30] sm:$0xe] }
 0x12c   : > { %v998_v30 = vadd.f32 %v7930_v19, %v9807_v37  ;;  %v9940_v31 = vadd.f32 %v1135_v15, %v995_v9  ;;  %8250 = vmatpush3.bf16.msra.mxu0 %v8724_v45  ;;  %v7954_v35 = vpop.f32.mrf.mxu1  ;;  %v4134_v45 = vsel %vm9114_vm5, %v7161_v22, %v4133_v34  ;;  %v3900_v13 = vrot.slane %v3898_v57, 4  ;;  %v7123_v22 = vld [vmem:[%s8945_s29 + $0x48] sm:$0xf] }
 0x12d   : > { %8274 = vmatpush3.bf16.msra.mxu1 %v8725_v47  ;;  %v967_v36 = vpop.f32.mrf.mxu0  ;;  %8251 = vmatprep.subr.bf16.mxu0 %v9909_v10  ;;  %v3915_v9 = vshll.u32 %v7119_v51, 16  ;;  %v9999_v18 = vrot.slane %v3876_v50, 4  ;;  %v3903_v19 = vrot.slane %v3901_v63, 5  ;;  %v7156_v34 = vld [vmem:[%s8945_s29 + $0x28] sm:$0xe]  ;;  %v3943_v50 = vshll.u32 %v7123_v22, 16 }
 0x12e   : > { %v996_v41 = vadd.f32 %v967_v36, %v9815_v43  ;;  %v9946_v37 = vadd.f32 %v7954_v35, %v998_v30  ;;  %v1138_v44 = vpop.f32.mrf.mxu1  ;;  %8275 = vmatprep.subr.bf16.mxu1 %v8727_v61  ;;  %v4138_v43 = vsel %vm9114_vm5, %v7162_v39, %v4137_v40  ;;  %v4141_v36 = vrot.slane %v9903_v52, 5  ;;  %v8736_v39 = vld [vmem:[%s11008_s3 + $0x408] sm:$0xff]  }
 0x12f   : > { %v7933_v12 = vpop.f32.mrf.mxu0  ;;  %8220 = vmatmul.mubr.bf16.gmra.mxu0 %v7064_v5  ;;  %v7185_v55 = vcombine.low %v4134_v45, %v4138_v43  ;;  %v3904_v40 = vor.u32 %v3903_v19, %v3900_v13  ;;  %v8737_v52 = vld [vmem:[%s11008_s3 + $0x448] sm:$0xff]   ;;  %v7164_v43 = vrot.slane %v7156_v34, 9  ;;  %v7159_v19 = vld [vmem:[%s8945_s29 + $0x40] sm:$0xe] }
 0x130   : > { %v1001_v47 = vadd.f32 %v7933_v12, %v9836_v54  ;;  %v9958_v48 = vadd.f32 %v1138_v44, %v996_v41  ;;  %8252 = vmatpush3.bf16.msra.mxu0 %v9909_v10  ;;  %v7957_v49 = vpop.f32.mrf.mxu1  ;;  %8244 = vmatmul.mubr.bf16.gmra.mxu1 %v8729_v21  ;;  %v8732_v54 = vld [vmem:[%s11008_s3 + $0x418] sm:$0xff]   ;;  %v3890_v10 = vor.u32 %v3889_v24, %v3886_v11  ;;  %v8735_v21 = vld [vmem:[%s11008_s3 + $0x450] sm:$0xff]   ;;  %v10011_v11 = vld [vmem:[%s8945_s29 + $0x44] sm:$0x1]  ;;  %v3926_v24 = vshrl.u32 %v7121_v1, 16 }
 0x131   : > { %8276 = vmatpush3.bf16.msra.mxu1 %v8727_v61  ;;  %v980_v53 = vpop.f32.mrf.mxu0  ;;  %8253 = vmatprep.subr.bf16.mxu0 %v9928_v26  ;;  %v9981_v61 = vld [vmem:[%s8945_s29 + $0x34] sm:$0x1]  ;;  %v10019_v44 = vld [vmem:[%s8945_s29 + $0x4c] sm:$0x1]  ;;  %v3940_v12 = vshrl.u32 %v7123_v22, 16  ;;  %v3882_v22 = vsel %vm9031_vm2, %v9999_v18, %v9978_v46  ;;  %v4157_v34 = vrot.slane %v10011_v11, 5 }
 0x132   : > { %v999_v58 = vadd.f32 %v980_v53, %v9843_v59  ;;  %v9974_v60 = vadd.f32 %v7957_v49, %v1001_v47  ;;  %v1151_v16 = vpop.f32.mrf.mxu1  ;;  %8277 = vmatprep.subr.bf16.mxu1 %v8731_v27  ;;  %8263 = vmatprep.mubr.bf16.mxu0 %v7141_v23  ;;  %v8734_v59 = vld [vmem:[%s11008_s3 + $0x410] sm:$0xff]   ;;  %v10001_v14 = vrot.slane %v3890_v10, 4  ;;  %v3907_v41 = vshll.u32 %v9981_v61, 16  ;;  %v8738_v10 = vld [vmem:[%s11008_s3 + $0x400] sm:$0xff]  }
 0x133   : > { %v7934_v4 = vpop.f32.mrf.mxu0  ;;  %8287 = vmatprep.mubr.bf16.mxu1 %v7185_v55  ;;  %v3928_v7 = vrot.slane %v3926_v24, 4  ;;  %v3935_v49 = vshll.u32 %v10011_v11, 16  ;;  %v3942_v51 = vrot.slane %v3940_v12, 4  ;;  %v3949_v53 = vshll.u32 %v10019_v44, 16  ;;  %v10094_v12 = vld [vmem:[%s8951_s14 + $0xc] sm:$0x1] }
 0x134   : > { %v1002_v29 = vadd.f32 %v7934_v4, %v9851_v3  ;;  %v9993_v15 = vadd.f32 %v1151_v16, %v999_v58  ;;  %8254 = vmatpush3.bf16.msra.mxu0 %v9928_v26  ;;  %v7958_v5 = vpop.f32.mrf.mxu1  ;;  %v7163_v3 = vrot.slane %v9971_v56, 9  ;;  %v3917_v26 = vrot.slane %v3915_v9, 5  ;;  %v10070_v56 = vld [vmem:[%s11008_s3 + $0x4b0] sm:$0xff]  }
 0x135   : > { %8278 = vmatpush3.bf16.msra.mxu1 %v8731_v27  ;;  %v983_v25 = vpop.f32.mrf.mxu0  ;;  %8255 = vmatprep.subr.bf16.mxu0 %v8732_v54  ;;  %v3929_v27 = vshll.u32 %v7121_v1, 16  ;;  %v4145_v55 = vrot.slane %v9935_v28, 5  ;;  %v3945_v58 = vrot.slane %v3943_v50, 5  ;;  %v3905_v16 = vrot.slane %v3904_v40, 4 }
 0x136   : > { %v1000_v30 = vadd.f32 %v983_v25, %v9857_v17  ;;  %v10006_v35 = vadd.f32 %v7958_v5, %v1002_v29  ;;  %v1154_v38 = vpop.f32.mrf.mxu1  ;;  %8279 = vmatprep.subr.bf16.mxu1 %v8733_v32  ;;  %v3921_v17 = vshll.u32 %v9984_v62, 16  ;;  %v3918_v45 = vor.u32 %v3917_v26, %v3914_v20  ;;  %v8740_v25 = vld [vmem:[%s11008_s3 + $0x4b8] sm:$0xff]  }
 0x137   : > { %v3931_v47 = vrot.slane %v3929_v27, 5  ;;  %v3909_v63 = vrot.slane %v3907_v41, 5  ;;  %v10037_v13 = vrot.slane %v3935_v49, 5  ;;  %v3946_v0 = vor.u32 %v3945_v58, %v3942_v51 }
 0x138   : > { %v10021_v23 = vadd.f32 %v1154_v38, %v1000_v30  ;;  %8256 = vmatpush3.bf16.msra.mxu0 %v8732_v54  ;;  %v7158_v54 = vld [vmem:[%s8945_s29 + $0x38] sm:$0xe]  ;;  %v3919_v1 = vrot.slane %v3918_v45, 4  ;;  %v3923_v4 = vrot.slane %v3921_v17, 5  ;;  %v7165_v9 = vrot.slane %v7157_v33, 9 }
 0x139   : > { %8280 = vmatpush3.bf16.msra.mxu1 %v8733_v32  ;;  %8257 = vmatprep.subr.bf16.mxu0 %v8734_v59  ;;  %v3932_v57 = vor.u32 %v3931_v47, %v3928_v7  ;;  %v8739_v32 = vld [vmem:[%s11008_s3 + $0x440] sm:$0xff]   ;;  %v3951_v28 = vrot.slane %v3949_v53, 5  ;;  %v7166_v29 = vrot.slane %v7158_v54, 9  ;;  %v4153_v5 = vrot.slane %v9984_v62, 5  ;;  %v8741_v62 = vld [vmem:[%s11008_s3 + $0x4f8] sm:$0xff]  }
 0x13a   : > { %8281 = vmatprep.subr.bf16.mxu1 %v8735_v21  ;;  %v3947_v26 = vrot.slane %v3946_v0, 4  ;;  %v4142_v30 = vsel %vm9114_vm5, %v7163_v3, %v4141_v36  ;;  %v4146_v38 = vsel %vm9114_vm5, %v7164_v43, %v4145_v55  ;;  %v3910_v46 = vsel %vm9031_vm2, %v3905_v16, %v3909_v63  ;;  %v10076_v36 = vld [vmem:[%s11008_s3 + $0x4f0] sm:$0xff]   ;;  %v10090_v45 = vld [vmem:[%s8951_s14 + $0x4] sm:$0x1]  ;;  %v4489_v7 = vld [vmem:[%s8951_s14 + $0x8] sm:$0xf] }
 0x13b   : > { %v3933_v20 = vrot.slane %v3932_v57, 4  ;;  %v7167_v3 = vrot.slane %v7159_v19, 9  ;;  %v4161_v41 = vrot.slane %v10019_v44, 5  ;;  %v4513_v44 = vshll.u32 %v10090_v45, 16  ;;  %v8744_v63 = vld [vmem:[%s11008_s3 + $0x4a8] sm:$0xff]  }
 0x13c   : > { %8258 = vmatpush3.bf16.msra.mxu0 %v8734_v59  ;;  %v4149_v59 = vrot.slane %v9981_v61, 5  ;;  %v3896_v61 = vsel %vm9031_vm2, %v10001_v14, %v9990_v6  ;;  %v3924_v6 = vsel %vm9031_vm2, %v3919_v1, %v3923_v4  ;;  %v7186_v14 = vcombine.low %v4142_v30, %v4146_v38  ;;  %v10116_v19 = vld [vmem:[%s8951_s14 + $0x14] sm:$0x1] }
 0x13d   : > { %8282 = vmatpush3.bf16.msra.mxu1 %v8735_v21  ;;  %8259 = vmatprep.subr.bf16.mxu0 %v8736_v39  ;;  %v7160_v21 = vld [vmem:[%s8945_s29 + $0x48] sm:$0xe]  ;;  %v7142_v18 = vcombine.low %v3882_v22, %v3896_v61  ;;  %v7143_v17 = vcombine.low %v3910_v46, %v3924_v6  ;;  %v3938_v11 = vsel %vm9031_vm2, %v3933_v20, %v10037_v13  ;;  %v4518_v47 = vshrl.u32 %v4489_v7, 16  ;;  %v8747_v6 = vld [vmem:[%s11008_s3 + $0x4e0] sm:$0xff]  }
 0x13e   : > { %8283 = vmatprep.subr.bf16.mxu1 %v8737_v52  ;;  %v4150_v24 = vsel %vm9114_vm5, %v7165_v9, %v4149_v59  ;;  %v7168_v40 = vrot.slane %v7160_v21, 9  ;;  %v3952_v27 = vsel %vm9031_vm2, %v3947_v26, %v3951_v28  ;;  %v4521_v51 = vshll.u32 %v4489_v7, 16  ;;  %v8745_v28 = vld [vmem:[%s11008_s3 + $0x4e8] sm:$0xff]   ;;  %v4493_v21 = vld [vmem:[%s8951_s14 + $0x18] sm:$0xf] }
 0x13f   : > { %v4527_v53 = vshll.u32 %v10094_v12, 16  ;;  %v4158_v55 = vsel %vm9114_vm5, %v7167_v3, %v4157_v34  ;;  %v7144_v16 = vcombine.low %v3938_v11, %v3952_v27  ;;  %v4520_v1 = vrot.slane %v4518_v47, 4 }
 0x140   : > { %8260 = vmatpush3.bf16.msra.mxu0 %v8736_v39  ;;  %v4154_v39 = vsel %vm9114_vm5, %v7166_v29, %v4153_v5  ;;  %v4523_v4 = vrot.slane %v4521_v51, 5  ;;  %v4515_v29 = vrot.slane %v4513_v44, 5  ;;  %v4491_v5 = vld [vmem:[%s8951_s14 + $0x10] sm:$0xf]  ;;  %v4546_v27 = vshrl.u32 %v4493_v21, 16 }
 0x141   : > { %8284 = vmatpush3.bf16.msra.mxu1 %v8737_v52  ;;  %8261 = vmatprep.subr.bf16.mxu0 %v8738_v10  ;;  %v4487_v52 = vld [vmem:[%s8951_s14] sm:$0xf]  ;;  %v7187_v50 = vcombine.low %v4150_v24, %v4154_v39  ;;  %v4529_v26 = vrot.slane %v4527_v53, 5  ;;  %v4532_v22 = vshrl.u32 %v4491_v5, 16  ;;  %v4535_v61 = vshll.u32 %v4491_v5, 16 }
 0x142   : > { %8285 = vmatprep.subr.bf16.mxu1 %v8739_v32  ;;  %v4504_v33 = vshrl.u32 %v4487_v52, 16  ;;  %v4507_v43 = vshll.u32 %v4487_v52, 16  ;;  %v4524_v20 = vor.u32 %v4523_v4, %v4520_v1  ;;  %v4549_v52 = vshll.u32 %v4493_v21, 16 }
 0x143   : > { %v4534_v34 = vrot.slane %v4532_v22, 4  ;;  %v4537_v24 = vrot.slane %v4535_v61, 5  ;;  %v4499_v61 = vld [vmem:[%s8951_s14 + $0x30] sm:$0xf] }
 0x144   : > { %8262 = vmatpush3.bf16.msra.mxu0 %v8738_v10  ;;  %v4506_v57 = vrot.slane %v4504_v33, 4  ;;  %v4509_v58 = vrot.slane %v4507_v43, 5  ;;  %v4525_v3 = vrot.slane %v4524_v20, 4  ;;  %v8748_v43 = vld [vmem:[%s11008_s3 + $0x498] sm:$0xff]  }
 0x145   : > { %8286 = vmatpush3.bf16.msra.mxu1 %v8739_v32  ;;  %8295 = vmatprep.subr.bf16.mxu0 %v8740_v25 }
 0x146   : > { %8319 = vmatprep.subr.bf16.mxu1 %v8741_v62  ;;  %v4510_v59 = vor.u32 %v4509_v58, %v4506_v57  ;;  %v4548_v57 = vrot.slane %v4546_v27, 4  ;;  %v4551_v58 = vrot.slane %v4549_v52, 5 }
 0x147   : > { %v7977_v49 = vpop.f32.mrf.mxu0  ;;  %8264 = vmatmul.mubr.bf16.vlgmr.msra.gmra.mxu0 %v7142_v18 }
 0x148   : > { %v1450_v54 = vadd.f32 %v7977_v49, %v9919_v8  ;;  %8288 = vmatmul.mubr.bf16.vlgmr.msra.gmra.mxu1 %v7186_v14  ;;  %8296 = vmatpush3.bf16.msra.mxu0 %v8740_v25  ;;  %v8001_v10 = vpop.f32.mrf.mxu1  ;;  %v4162_v8 = vsel %vm9114_vm5, %v7168_v40, %v4161_v41  ;;  %v4511_v18 = vrot.slane %v4510_v59, 4  ;;  %v8756_v41 = vld [vmem:[%s8951_s14] ss:$8 sps:$4 sm:$0xff]   ;;  %v8749_v49 = vld [vmem:[%s11008_s3 + $0x4d8] sm:$0xff]  }
 0x149   : > { %8320 = vmatpush3.bf16.msra.mxu1 %v8741_v62  ;;  %v1417_v32 = vpop.f32.mrf.mxu0  ;;  %8297 = vmatprep.subr.bf16.mxu0 %v10070_v56  ;;  %v7188_v46 = vcombine.low %v4158_v55, %v4162_v8 }
 0x14a   : > { %v1448_v13 = vadd.f32 %v1417_v32, %v9940_v31  ;;  %v10108_v0 = vadd.f32 %v8001_v10, %v1450_v54  ;;  %v1627_v9 = vpop.f32.mrf.mxu1  ;;  %8321 = vmatprep.subr.bf16.mxu1 %v10076_v36  ;;  %8267 = vmatprep.mubr.bf16.mxu0 %v7143_v17  ;;  %v8746_v31 = vld [vmem:[%s11008_s3 + $0x4a0] sm:$0xff]   ;;  %v4516_v17 = vsel %vm9031_vm2, %v4511_v18, %v4515_v29  ;;  %v4501_v18 = vld [vmem:[%s8951_s14 + $0x38] sm:$0xf] }
 0x14b   : > { %v7978_v25 = vpop.f32.mrf.mxu0  ;;  %8291 = vmatprep.mubr.bf16.mxu1 %v7187_v50  ;;  %v4538_v50 = vor.u32 %v4537_v24, %v4534_v34  ;;  %v4495_v32 = vld [vmem:[%s8951_s14 + $0x20] sm:$0xf] }
 0x14c   : > { %v1451_v62 = vadd.f32 %v7978_v25, %v9946_v37  ;;  %v10123_v30 = vadd.f32 %v1627_v9, %v1448_v13  ;;  %8298 = vmatpush3.bf16.msra.mxu0 %v10070_v56  ;;  %v8002_v38 = vpop.f32.mrf.mxu1  ;;  %v4541_v37 = vshll.u32 %v10116_v19, 16  ;;  %v4560_v4 = vshrl.u32 %v4495_v32, 16  ;;  %v8750_v9 = vld [vmem:[%s11008_s3 + $0x490] sm:$0xff]  }
 0x14d   : > { %8322 = vmatpush3.bf16.msra.mxu1 %v10076_v36  ;;  %v1420_v14 = vpop.f32.mrf.mxu0  ;;  %8299 = vmatprep.subr.bf16.mxu0 %v8744_v63  ;;  %v4530_v36 = vsel %vm9031_vm2, %v4525_v3, %v4529_v26  ;;  %v10174_v26 = vld [vmem:[%s8951_s14 + $0x24] sm:$0x1]  ;;  %v10187_v3 = vld [vmem:[%s8951_s14 + $0x2c] sm:$0x1] }
 0x14e   : > { %v1449_v39 = vadd.f32 %v1420_v14, %v9958_v48  ;;  %v10132_v56 = vadd.f32 %v8002_v38, %v1451_v62  ;;  %v1630_v40 = vpop.f32.mrf.mxu1  ;;  %8323 = vmatprep.subr.bf16.mxu1 %v8745_v28  ;;  %v7241_v44 = vcombine.low %v4516_v17, %v4530_v36  ;;  %v10151_v51 = vrot.slane %v4541_v37, 5  ;;  %v8752_v62 = vld [vmem:[%s11008_s3 + $0x488] sm:$0xff]  }
 0x14f   : > { %v7981_v11 = vpop.f32.mrf.mxu0  ;;  %8268 = vmatmul.mubr.bf16.gmra.mxu0 %v7144_v16  ;;  %v4497_v16 = vld [vmem:[%s8951_s14 + $0x28] sm:$0xf]  ;;  %v4562_v21 = vrot.slane %v4560_v4, 4  ;;  %v4552_v38 = vor.u32 %v4551_v58, %v4548_v57  ;;  %v4569_v24 = vshll.u32 %v10174_v26, 16  ;;  %v4588_v37 = vshrl.u32 %v4499_v61, 16 }
 0x150   : > { %v1454_v7 = vadd.f32 %v7981_v11, %v9974_v60  ;;  %v10140_v33 = vadd.f32 %v1630_v40, %v1449_v39  ;;  %8300 = vmatpush3.bf16.msra.mxu0 %v8744_v63  ;;  %v8005_v48 = vpop.f32.mrf.mxu1  ;;  %8292 = vmatmul.mubr.bf16.gmra.mxu1 %v7188_v46  ;;  %v10149_v60 = vld [vmem:[%s8951_s14 + $0x1c] sm:$0x1]  ;;  %v4574_v29 = vshrl.u32 %v4497_v16, 16  ;;  %v4577_v5 = vshll.u32 %v4497_v16, 16  ;;  %v8753_v14 = vld [vmem:[%s11008_s3 + $0x4c8] sm:$0xff]   ;;  %v8754_v11 = vld [vmem:[%s11008_s3 + $0x480] sm:$0xff]  }
 0x151   : > { %8324 = vmatpush3.bf16.msra.mxu1 %v8745_v28  ;;  %v1433_v47 = vpop.f32.mrf.mxu0  ;;  %8301 = vmatprep.subr.bf16.mxu0 %v8746_v31  ;;  %v8751_v28 = vld [vmem:[%s11008_s3 + $0x4d0] sm:$0xff]   ;;  %v4555_v59 = vshll.u32 %v10149_v60, 16  ;;  %v4591_v39 = vshll.u32 %v4499_v61, 16  ;;  %v4605_v17 = vshll.u32 %v4501_v18, 16  ;;  %v4553_v36 = vrot.slane %v4552_v38, 4 }
 0x152   : > { %v1452_v53 = vadd.f32 %v1433_v47, %v9993_v15  ;;  %v10154_v54 = vadd.f32 %v8005_v48, %v1454_v7  ;;  %v1643_v10 = vpop.f32.mrf.mxu1  ;;  %8325 = vmatprep.subr.bf16.mxu1 %v8747_v6  ;;  %8311 = vmatprep.mubr.bf16.mxu0 %v8756_v41  ;;  %v4563_v15 = vshll.u32 %v4495_v32, 16  ;;  %v4576_v46 = vrot.slane %v4574_v29, 4  ;;  %v10191_v40 = vld [vmem:[%s8951_s14 + $0x34] sm:$0x1]  ;;  %v10198_v48 = vld [vmem:[%s8951_s14 + $0x3c] sm:$0x1] }
 0x153   : > { %v7982_v55 = vpop.f32.mrf.mxu0  ;;  %8335 = vmatprep.mubr.bf16.mxu1 %v7241_v44  ;;  %v4557_v34 = vrot.slane %v4555_v59, 5  ;;  %v4602_v41 = vshrl.u32 %v4501_v18, 16  ;;  %v4583_v7 = vshll.u32 %v10187_v3, 16  ;;  %v4590_v44 = vrot.slane %v4588_v37, 4  ;;  %v8762_v59 = vld [vmem:[%s8951_s14 + $0x20] ss:$8 sps:$4 sm:$0xff]  }
 0x154   : > { %v1455_v63 = vadd.f32 %v7982_v55, %v10006_v35  ;;  %v10159_v8 = vadd.f32 %v1643_v10, %v1452_v53  ;;  %8302 = vmatpush3.bf16.msra.mxu0 %v8746_v31  ;;  %v8006_v1 = vpop.f32.mrf.mxu1  ;;  %v10167_v35 = vrot.slane %v4538_v50, 4  ;;  %v4565_v22 = vrot.slane %v4563_v15, 5 }
 0x155   : > { %8326 = vmatpush3.bf16.msra.mxu1 %v8747_v6  ;;  %v1436_v13 = vpop.f32.mrf.mxu0  ;;  %8303 = vmatprep.subr.bf16.mxu0 %v8748_v43  ;;  %v4579_v6 = vrot.slane %v4577_v5, 5  ;;  %v4593_v47 = vrot.slane %v4591_v39, 5  ;;  %v4607_v50 = vrot.slane %v4605_v17, 5  ;;  %v4571_v53 = vrot.slane %v4569_v24, 5 }
 0x156   : > { %v1453_v25 = vadd.f32 %v1436_v13, %v10021_v23  ;;  %v10171_v31 = vadd.f32 %v8006_v1, %v1455_v63  ;;  %v1646_v20 = vpop.f32.mrf.mxu1  ;;  %8327 = vmatprep.subr.bf16.mxu1 %v8749_v49  ;;  %v4566_v27 = vor.u32 %v4565_v22, %v4562_v21  ;;  %v4597_v10 = vshll.u32 %v10191_v40, 16  ;;  %v8758_v1 = vld [vmem:[%s11008_s3 + $0x538] sm:$0xff]   ;;  %v4769_v21 = vld [vmem:[%s8951_s14] sm:$0xe]  ;;  %v4770_v22 = vld [vmem:[%s8951_s14 + $0x8] sm:$0xe] }
 0x157   : > { %v4580_v52 = vor.u32 %v4579_v6, %v4576_v46  ;;  %v4585_v57 = vrot.slane %v4583_v7, 5  ;;  %v4544_v58 = vsel %vm9031_vm2, %v10167_v35, %v10151_v51  ;;  %v4558_v32 = vsel %vm9031_vm2, %v4553_v36, %v4557_v34  ;;  %v8759_v51 = vld [vmem:[%s11008_s3 + $0x578] sm:$0xff]   ;;  %v8761_v35 = vld [vmem:[%s11008_s3 + $0x570] sm:$0xff]   ;;  %v8765_v36 = vld [vmem:[%s11008_s3 + $0x568] sm:$0xff]  }
 0x158   : > { %v10181_v23 = vadd.f32 %v1646_v20, %v1453_v25  ;;  %8304 = vmatpush3.bf16.msra.mxu0 %v8748_v43  ;;  %v8755_v43 = vld [vmem:[%s11008_s3 + $0x4c0] sm:$0xff]   ;;  %v4567_v55 = vrot.slane %v4566_v27, 4  ;;  %v4611_v63 = vshll.u32 %v10198_v48, 16  ;;  %v4594_v4 = vor.u32 %v4593_v47, %v4590_v44  ;;  %v8757_v13 = vld [vmem:[%s8951_s14 + $0x10] ss:$8 sps:$4 sm:$0xff]  }
 0x159   : > { %8328 = vmatpush3.bf16.msra.mxu1 %v8749_v49  ;;  %8305 = vmatprep.subr.bf16.mxu0 %v8750_v9  ;;  %v4604_v49 = vrot.slane %v4602_v41, 4  ;;  %v4581_v16 = vrot.slane %v4580_v52, 4  ;;  %v4599_v25 = vrot.slane %v4597_v10, 5  ;;  %v4795_v38 = vrot.slane %v10090_v45, 5  ;;  %v8764_v45 = vld [vmem:[%s11008_s3 + $0x528] sm:$0xff]  }
 0x15a   : > { %8329 = vmatprep.subr.bf16.mxu1 %v8751_v28  ;;  %v4572_v29 = vsel %vm9031_vm2, %v4567_v55, %v4571_v53  ;;  %v4613_v20 = vrot.slane %v4611_v63, 5  ;;  %v4595_v61 = vrot.slane %v4594_v4, 4  ;;  %v4799_v46 = vrot.slane %v10094_v12, 5  ;;  %v8763_v52 = vld [vmem:[%s8951_s14 + $0x30] ss:$8 sps:$4 sm:$0xff]   ;;  %v8766_v53 = vld [vmem:[%s11008_s3 + $0x520] sm:$0xff]  }
 0x15b   : > { %v4608_v15 = vor.u32 %v4607_v50, %v4604_v49  ;;  %v4586_v5 = vsel %vm9031_vm2, %v4581_v16, %v4585_v57  ;;  %v7254_v34 = vrot.slane %v4770_v22, 9  ;;  %v8776_v16 = vld [vmem:[%s8951_s14 + $0x8] ss:$8 sps:$4 sm:$0xff]  }
 0x15c   : > { %8306 = vmatpush3.bf16.msra.mxu0 %v8750_v9  ;;  %v7242_v9 = vcombine.low %v4544_v58, %v4558_v32  ;;  %v7243_v18 = vcombine.low %v4572_v29, %v4586_v5  ;;  %v4600_v12 = vsel %vm9031_vm2, %v4595_v61, %v4599_v25  ;;  %v8770_v5 = vld [vmem:[%s11008_s3 + $0x510] sm:$0xff]  }
 0x15d   : > { %8330 = vmatpush3.bf16.msra.mxu1 %v8751_v28  ;;  %8307 = vmatprep.subr.bf16.mxu0 %v8752_v62  ;;  %v8760_v28 = vld [vmem:[%s11008_s3 + $0x530] sm:$0xff]  }
 0x15e   : > { %8331 = vmatprep.subr.bf16.mxu1 %v8753_v14 }
 0x160   : > { %8308 = vmatpush3.bf16.msra.mxu0 %v8752_v62  ;;  %v4609_v62 = vrot.slane %v4608_v15, 4  ;;  %v8768_v15 = vld [vmem:[%s11008_s3 + $0x518] sm:$0xff]  }
 0x161   : > { %8332 = vmatpush3.bf16.msra.mxu1 %v8753_v14  ;;  %8309 = vmatprep.subr.bf16.mxu0 %v8754_v11  ;;  %v7253_v14 = vrot.slane %v4769_v21, 9 }
 0x162   : > { %8333 = vmatprep.subr.bf16.mxu1 %v8755_v43  ;;  %v4614_v41 = vsel %vm9031_vm2, %v4609_v62, %v4613_v20  ;;  %v4772_v20 = vld [vmem:[%s8951_s14 + $0x18] sm:$0xe] }
 0x163   : > { %v4796_v7 = vsel %vm9114_vm5, %v7253_v14, %v4795_v38  ;;  %v7244_v49 = vcombine.low %v4600_v12, %v4614_v41  ;;  %v8772_v38 = vld [vmem:[%s11008_s3 + $0x508] sm:$0xff]   ;;  %v4803_v14 = vrot.slane %v10116_v19, 5  ;;  %v4815_v41 = vrot.slane %v10187_v3, 5  ;;  %v8775_v19 = vld [vmem:[%s11008_s3 + $0x540] sm:$0xff]   ;;  %v7329_v3 = vld [vmem:[%s8951_s14 + $0x18] sm:$0xf] }
 0x164   : > { %8310 = vmatpush3.bf16.msra.mxu0 %v8754_v11 }
 0x165   : > { %8334 = vmatpush3.bf16.msra.mxu1 %v8755_v43  ;;  %8343 = vmatprep.subr.bf16.mxu0 %v8758_v1  ;;  %v4800_v43 = vsel %vm9114_vm5, %v7254_v34, %v4799_v46  ;;  %v4773_v46 = vld [vmem:[%s8951_s14 + $0x20] sm:$0xe]  ;;  %v7256_v34 = vrot.slane %v4772_v20, 9  ;;  %v10348_v20 = vld [vmem:[%s8951_s14 + $0x24] sm:$0x1] }
 0x166   : > { %8367 = vmatprep.subr.bf16.mxu1 %v8759_v51  ;;  %v7277_v58 = vcombine.low %v4796_v7, %v4800_v43 }
 0x167   : > { %v8025_v6 = vpop.f32.mrf.mxu0  ;;  %8312 = vmatmul.mubr.bf16.vlgmr.msra.gmra.mxu0 %v8757_v13 }
 0x168   : > { %v1831_v24 = vadd.f32 %v8025_v6, %v10108_v0  ;;  %8336 = vmatmul.mubr.bf16.vlgmr.msra.gmra.mxu1 %v7242_v9  ;;  %8344 = vmatpush3.bf16.msra.mxu0 %v8758_v1  ;;  %v8049_v37 = vpop.f32.mrf.mxu1 }
 0x169   : > { %8368 = vmatpush3.bf16.msra.mxu1 %v8759_v51  ;;  %v1798_v39 = vpop.f32.mrf.mxu0  ;;  %8345 = vmatprep.subr.bf16.mxu0 %v8760_v28 }
 0x16a   : > { %v1829_v17 = vadd.f32 %v1798_v39, %v10123_v30  ;;  %v10242_v0 = vadd.f32 %v8049_v37, %v1831_v24  ;;  %v2080_v11 = vpop.f32.mrf.mxu1  ;;  %8369 = vmatprep.subr.bf16.mxu1 %v8761_v35  ;;  %8315 = vmatprep.mubr.bf16.mxu0 %v8762_v59  ;;  %v4807_v24 = vrot.slane %v10149_v60, 5  ;;  %v4811_v37 = vrot.slane %v10174_v26, 5  ;;  %v8774_v39 = vld [vmem:[%s11008_s3 + $0x500] sm:$0xff]   ;;  %v4775_v60 = vld [vmem:[%s8951_s14 + $0x30] sm:$0xe] }
 0x16b   : > { %v8026_v27 = vpop.f32.mrf.mxu0  ;;  %8339 = vmatprep.mubr.bf16.mxu1 %v7243_v18  ;;  %v4774_v18 = vld [vmem:[%s8951_s14 + $0x28] sm:$0xe]  ;;  %v7327_v26 = vld [vmem:[%s8951_s14 + $0x10] sm:$0xf] }
 0x16c   : > { %v1832_v30 = vadd.f32 %v8026_v27, %v10132_v56  ;;  %v10253_v44 = vadd.f32 %v2080_v11, %v1829_v17  ;;  %8346 = vmatpush3.bf16.msra.mxu0 %v8760_v28  ;;  %v8050_v47 = vpop.f32.mrf.mxu1  ;;  %v8767_v56 = vld [vmem:[%s11008_s3 + $0x560] sm:$0xff]   ;;  %v7258_v12 = vrot.slane %v4774_v18, 9  ;;  %v4819_v17 = vrot.slane %v10191_v40, 5  ;;  %v7325_v11 = vld [vmem:[%s8951_s14 + $0x8] sm:$0xf] }
 0x16d   : > { %8370 = vmatpush3.bf16.msra.mxu1 %v8761_v35  ;;  %v1801_v50 = vpop.f32.mrf.mxu0  ;;  %8347 = vmatprep.subr.bf16.mxu0 %v8764_v45  ;;  %v4771_v35 = vld [vmem:[%s8951_s14 + $0x10] sm:$0xe]  ;;  %v5170_v27 = vshll.u32 %v7325_v11, 16  ;;  %v5181_v7 = vshrl.u32 %v7327_v26, 16  ;;  %v5184_v43 = vshll.u32 %v7327_v26, 16 }
 0x16e   : > { %v1830_v10 = vadd.f32 %v1801_v50, %v10140_v33  ;;  %v10259_v55 = vadd.f32 %v8050_v47, %v1832_v30  ;;  %v2083_v57 = vpop.f32.mrf.mxu1  ;;  %8371 = vmatprep.subr.bf16.mxu1 %v8765_v36  ;;  %v7255_v62 = vrot.slane %v4771_v35, 9  ;;  %v4808_v47 = vsel %vm9114_vm5, %v7256_v34, %v4807_v24  ;;  %v10325_v50 = vld [vmem:[%s8951_s14 + $0x14] sm:$0x1]  ;;  %v7369_v18 = vld [vmem:[%s8951_s14 + $0x8] sm:$0xe] }
 0x16f   : > { %v8029_v32 = vpop.f32.mrf.mxu0  ;;  %8316 = vmatmul.mubr.bf16.gmra.mxu0 %v8763_v52  ;;  %v4776_v52 = vld [vmem:[%s8951_s14 + $0x38] sm:$0xe]  ;;  %v5190_v35 = vshll.u32 %v10325_v50, 16 }
 0x170   : > { %v1835_v63 = vadd.f32 %v8029_v32, %v10154_v54  ;;  %v10266_v1 = vadd.f32 %v2083_v57, %v1830_v10  ;;  %8348 = vmatpush3.bf16.msra.mxu0 %v8764_v45  ;;  %v8053_v4 = vpop.f32.mrf.mxu1  ;;  %8340 = vmatmul.mubr.bf16.gmra.mxu1 %v7244_v49  ;;  %v8769_v54 = vld [vmem:[%s11008_s3 + $0x558] sm:$0xff]   ;;  %v7257_v45 = vrot.slane %v4773_v46, 9  ;;  %v4804_v30 = vsel %vm9114_vm5, %v7255_v62, %v4803_v14  ;;  %v10322_v49 = vld [vmem:[%s8951_s14 + $0xc] sm:$0x1]  ;;  %v8781_v46 = vld [vmem:[%s11008_s3 + $0x5f0] sm:$0xff]  }
 0x171   : > { %8372 = vmatpush3.bf16.msra.mxu1 %v8765_v36  ;;  %v1814_v33 = vpop.f32.mrf.mxu0  ;;  %8349 = vmatprep.subr.bf16.mxu0 %v8766_v53  ;;  %v5167_v36 = vshrl.u32 %v7325_v11, 16  ;;  %v5172_v10 = vrot.slane %v5170_v27, 5  ;;  %v7259_v57 = vrot.slane %v4775_v60, 9  ;;  %v5186_v32 = vrot.slane %v5184_v43, 5  ;;  %v8784_v14 = vld [vmem:[%s8951_s14 + $0x28] ss:$8 sps:$4 sm:$0xff]  }
 0x172   : > { %v1833_v51 = vadd.f32 %v1814_v33, %v10159_v8  ;;  %v10272_v13 = vadd.f32 %v8053_v4, %v1835_v63  ;;  %v2096_v9 = vpop.f32.mrf.mxu1  ;;  %8373 = vmatprep.subr.bf16.mxu1 %v8767_v56  ;;  %8359 = vmatprep.mubr.bf16.mxu0 %v7277_v58  ;;  %v5183_v58 = vrot.slane %v5181_v7, 4  ;;  %v7260_v63 = vrot.slane %v4776_v52, 9  ;;  %v7331_v4 = vld [vmem:[%s8951_s14 + $0x20] sm:$0xf] }
 0x173   : > { %v8030_v28 = vpop.f32.mrf.mxu0  ;;  %8383 = vmatprep.mubr.bf16.mxu1 %v8776_v16  ;;  %v10330_v16 = vsel %vm9114_vm5, %v7257_v45, %v4811_v37  ;;  %v5195_v33 = vshrl.u32 %v7329_v3, 16  ;;  %v5209_v62 = vshrl.u32 %v7331_v4, 16  ;;  %v5192_v37 = vrot.slane %v5190_v35, 5 }
 0x174   : > { %v1836_v59 = vadd.f32 %v8030_v28, %v10171_v31  ;;  %v10279_v29 = vadd.f32 %v2096_v9, %v1833_v51  ;;  %8350 = vmatpush3.bf16.msra.mxu0 %v8766_v53  ;;  %v8054_v8 = vpop.f32.mrf.mxu1  ;;  %v8771_v31 = vld [vmem:[%s11008_s3 + $0x550] sm:$0xff]   ;;  %v5169_v53 = vrot.slane %v5167_v36, 4  ;;  %v8778_v51 = vld [vmem:[%s11008_s3 + $0x5f8] sm:$0xff]   ;;  %v4816_v9 = vsel %vm9114_vm5, %v7258_v12, %v4815_v41 }
 0x175   : > { %8374 = vmatpush3.bf16.msra.mxu1 %v8767_v56  ;;  %v1817_v25 = vpop.f32.mrf.mxu0  ;;  %8351 = vmatprep.subr.bf16.mxu0 %v8768_v15  ;;  %v4823_v56 = vrot.slane %v10198_v48, 5  ;;  %v8777_v48 = vld [vmem:[%s11008_s3 + $0x5b8] sm:$0xff]   ;;  %v5176_v28 = vshll.u32 %v10322_v49, 16  ;;  %v7370_v12 = vld [vmem:[%s8951_s14 + $0x10] sm:$0xe]  ;;  %v5211_v36 = vrot.slane %v5209_v62, 4 }
 0x176   : > { %v1834_v21 = vadd.f32 %v1817_v25, %v10181_v23  ;;  %v10286_v22 = vadd.f32 %v8054_v8, %v1836_v59  ;;  %v2099_v61 = vpop.f32.mrf.mxu1  ;;  %8375 = vmatprep.subr.bf16.mxu1 %v8769_v54  ;;  %v8773_v23 = vld [vmem:[%s11008_s3 + $0x548] sm:$0xff]   ;;  %v7278_v59 = vcombine.low %v4804_v30, %v4808_v47  ;;  %v8779_v8 = vld [vmem:[%s8951_s14 + $0x18] ss:$8 sps:$4 sm:$0xff]   ;;  %v10345_v25 = vld [vmem:[%s8951_s14 + $0x1c] sm:$0x1]  ;;  %v7377_v52 = vrot.slane %v7369_v18, 9 }
 0x177   : > { %v5178_v24 = vrot.slane %v5176_v28, 5  ;;  %v5204_v45 = vshll.u32 %v10345_v25, 16  ;;  %v4824_v41 = vsel %vm9114_vm5, %v7260_v63, %v4823_v56  ;;  %v7378_v43 = vrot.slane %v7370_v12, 9  ;;  %v8782_v47 = vld [vmem:[%s11008_s3 + $0x5a8] sm:$0xff]   ;;  %v8787_v28 = vld [vmem:[%s11008_s3 + $0x5e0] sm:$0xff]  }
 0x178   : > { %v10295_v6 = vadd.f32 %v2099_v61, %v1834_v21  ;;  %8352 = vmatpush3.bf16.msra.mxu0 %v8768_v15  ;;  %v5198_v15 = vshll.u32 %v7329_v3, 16  ;;  %v8780_v21 = vld [vmem:[%s11008_s3 + $0x5b0] sm:$0xff]   ;;  %v5197_v61 = vrot.slane %v5195_v33, 4  ;;  %v5462_v3 = vrot.slane %v10325_v50, 5  ;;  %v8783_v50 = vld [vmem:[%s11008_s3 + $0x5e8] sm:$0xff]  }
 0x179   : > { %8376 = vmatpush3.bf16.msra.mxu1 %v8769_v54  ;;  %8353 = vmatprep.subr.bf16.mxu0 %v8770_v5  ;;  %v5173_v54 = vor.u32 %v5172_v10, %v5169_v53 }
 0x17a   : > { %8377 = vmatprep.subr.bf16.mxu1 %v8771_v31 }
 0x17b   : > { %v5174_v34 = vrot.slane %v5173_v54, 4 }
 0x17c   : > { %8354 = vmatpush3.bf16.msra.mxu0 %v8770_v5  ;;  %v5187_v5 = vor.u32 %v5186_v32, %v5183_v58  ;;  %v10385_v58 = vrot.slane %v5204_v45, 5  ;;  %v5466_v45 = vrot.slane %v10345_v25, 5 }
 0x17d   : > { %8378 = vmatpush3.bf16.msra.mxu1 %v8771_v31  ;;  %8355 = vmatprep.subr.bf16.mxu0 %v8772_v38  ;;  %v5200_v31 = vrot.slane %v5198_v15, 5  ;;  %v5179_v53 = vsel %vm9031_vm2, %v5174_v34, %v5178_v24  ;;  %v10397_v15 = vld [vmem:[%s8951_s14 + $0x18] sm:$0xe] }
 0x17e   : > { %8379 = vmatprep.subr.bf16.mxu1 %v8773_v23  ;;  %v5188_v11 = vrot.slane %v5187_v5, 4  ;;  %v10414_v5 = vld [vmem:[%s8951_s14 + $0x2c] sm:$0x1] }
 0x17f   : > { %v5201_v26 = vor.u32 %v5200_v31, %v5197_v61  ;;  %v7337_v31 = vld [vmem:[%s8951_s14 + $0x38] sm:$0xf]  ;;  %v5474_v25 = vrot.slane %v10414_v5, 5 }
 0x180   : > { %8356 = vmatpush3.bf16.msra.mxu0 %v8772_v38  ;;  %v5212_v38 = vshll.u32 %v7331_v4, 16  ;;  %v5193_v56 = vsel %vm9031_vm2, %v5188_v11, %v5192_v37 }
 0x181   : > { %8380 = vmatpush3.bf16.msra.mxu1 %v8773_v23  ;;  %8357 = vmatprep.subr.bf16.mxu0 %v8774_v39  ;;  %v7279_v23 = vcombine.low %v10330_v16, %v4816_v9  ;;  %v10390_v16 = vld [vmem:[%s11008_s3 + $0x5a0] sm:$0xff]   ;;  %v10392_v63 = vrot.slane %v5201_v26, 4  ;;  %v7357_v61 = vcombine.low %v5179_v53, %v5193_v56  ;;  %v8788_v26 = vld [vmem:[%s11008_s3 + $0x598] sm:$0xff]  }
 0x182   : > { %8381 = vmatprep.subr.bf16.mxu1 %v8775_v19  ;;  %v5214_v27 = vrot.slane %v5212_v38, 5 }
 0x184   : > { %8358 = vmatpush3.bf16.msra.mxu0 %v8774_v39  ;;  %v4820_v39 = vsel %vm9114_vm5, %v7259_v57, %v4819_v17  ;;  %v5458_v17 = vrot.slane %v10322_v49, 5  ;;  %v8785_v57 = vld [vmem:[%s8951_s14 + $0x38] ss:$8 sps:$4 sm:$0xff]   ;;  %v5215_v4 = vor.u32 %v5214_v27, %v5211_v36  ;;  %v5232_v27 = vshll.u32 %v10414_v5, 16 }
 0x185   : > { %8382 = vmatpush3.bf16.msra.mxu1 %v8775_v19  ;;  %8391 = vmatprep.subr.bf16.mxu0 %v8777_v48  ;;  %v5218_v19 = vshll.u32 %v10348_v20, 16 }
 0x186   : > { %8415 = vmatprep.subr.bf16.mxu1 %v8778_v51  ;;  %v5459_v35 = vsel %vm9114_vm5, %v7377_v52, %v5458_v17  ;;  %v10421_v24 = vrot.slane %v5215_v4, 4  ;;  %v5251_v52 = vshrl.u32 %v7337_v31, 16 }
 0x187   : > { %v8073_v60 = vpop.f32.mrf.mxu0  ;;  %8360 = vmatmul.mubr.bf16.vlgmr.msra.gmra.mxu0 %v7278_v59  ;;  %v10394_v33 = vrot.slane %v5218_v19, 5  ;;  %v5463_v59 = vsel %vm9114_vm5, %v7378_v43, %v5462_v3  ;;  %v7339_v19 = vld [vmem:[%s8951_s14 + $0x40] sm:$0xf]  ;;  %v10442_v3 = vld [vmem:[%s8951_s14 + $0x34] sm:$0x1] }
 0x188   : > { %v2323_v7 = vadd.f32 %v8073_v60, %v10242_v0  ;;  %8384 = vmatmul.mubr.bf16.vlgmr.msra.gmra.mxu1 %v8779_v8  ;;  %8392 = vmatpush3.bf16.msra.mxu0 %v8777_v48  ;;  %v8097_v40 = vpop.f32.mrf.mxu1  ;;  %v7333_v48 = vld [vmem:[%s8951_s14 + $0x28] sm:$0xf]  ;;  %v10411_v8 = vld [vmem:[%s8951_s14 + $0x20] sm:$0xe]  ;;  %v7401_v37 = vcombine.low %v5459_v35, %v5463_v59  ;;  %v5253_v35 = vrot.slane %v5251_v52, 4 }
 0x189   : > { %8416 = vmatpush3.bf16.msra.mxu1 %v8778_v51  ;;  %v2290_v30 = vpop.f32.mrf.mxu0  ;;  %8393 = vmatprep.subr.bf16.mxu0 %v8780_v21  ;;  %v5223_v18 = vshrl.u32 %v7333_v48, 16  ;;  %v7380_v36 = vrot.slane %v10411_v8, 9 }
 0x18a   : > { %v2321_v0 = vadd.f32 %v2290_v30, %v10253_v44  ;;  %v10377_v10 = vadd.f32 %v8097_v40, %v2323_v7  ;;  %v2460_v49 = vpop.f32.mrf.mxu1  ;;  %8417 = vmatprep.subr.bf16.mxu1 %v8781_v46  ;;  %8363 = vmatprep.mubr.bf16.mxu0 %v7279_v23  ;;  %v7280_v44 = vcombine.low %v4820_v39, %v4824_v41  ;;  %v5254_v7 = vshll.u32 %v7337_v31, 16 }
 0x18b   : > { %v8074_v32 = vpop.f32.mrf.mxu0  ;;  %8387 = vmatprep.mubr.bf16.mxu1 %v8784_v14  ;;  %v5226_v14 = vshll.u32 %v7333_v48, 16  ;;  %v5225_v30 = vrot.slane %v5223_v18, 4  ;;  %v5470_v18 = vrot.slane %v10348_v20, 5 }
 0x18c   : > { %v2324_v51 = vadd.f32 %v8074_v32, %v10259_v55  ;;  %v10401_v9 = vadd.f32 %v2460_v49, %v2321_v0  ;;  %8394 = vmatpush3.bf16.msra.mxu0 %v8780_v21  ;;  %v8098_v54 = vpop.f32.mrf.mxu1  ;;  %v7335_v21 = vld [vmem:[%s8951_s14 + $0x30] sm:$0xf]  ;;  %v10448_v49 = vld [vmem:[%s8951_s14 + $0x3c] sm:$0x1]  ;;  %v5256_v59 = vrot.slane %v5254_v7, 5  ;;  %v5221_v7 = vsel %vm9031_vm2, %v10421_v24, %v10394_v33 }
 0x18d   : > { %8418 = vmatpush3.bf16.msra.mxu1 %v8781_v46  ;;  %v2293_v55 = vpop.f32.mrf.mxu0  ;;  %8395 = vmatprep.subr.bf16.mxu0 %v8782_v47  ;;  %v7379_v46 = vrot.slane %v10397_v15, 9  ;;  %v5237_v41 = vshrl.u32 %v7335_v21, 16  ;;  %v5240_v11 = vshll.u32 %v7335_v21, 16  ;;  %v8790_v0 = vld [vmem:[%s11008_s3 + $0x590] sm:$0xff]   ;;  %v5246_v21 = vshll.u32 %v10442_v3, 16  ;;  %v8796_v15 = vld [vmem:[%s11008_s3 + $0x638] sm:$0xff]  }
 0x18e   : > { %v2322_v62 = vadd.f32 %v2293_v55, %v10266_v1  ;;  %v10419_v38 = vadd.f32 %v8098_v54, %v2324_v51  ;;  %v2463_v23 = vpop.f32.mrf.mxu1  ;;  %8419 = vmatprep.subr.bf16.mxu1 %v8783_v50  ;;  %v10458_v54 = vld [vmem:[%s8951_s14 + $0x44] sm:$0x1]  ;;  %v7376_v24 = vld [vmem:[%s8951_s14 + $0x40] sm:$0xe] }
 0x18f   : > { %v8077_v34 = vpop.f32.mrf.mxu0  ;;  %8364 = vmatmul.mubr.bf16.gmra.mxu0 %v7280_v44  ;;  %v8791_v44 = vld [vmem:[%s11008_s3 + $0x5d0] sm:$0xff]   ;;  %v5239_v4 = vrot.slane %v5237_v41, 4  ;;  %v5242_v48 = vrot.slane %v5240_v11, 5  ;;  %v7373_v41 = vld [vmem:[%s8951_s14 + $0x28] sm:$0xe] }
 0x190   : > { %v2327_v12 = vadd.f32 %v8077_v34, %v10272_v13  ;;  %v10426_v39 = vadd.f32 %v2463_v23, %v2322_v62  ;;  %8396 = vmatpush3.bf16.msra.mxu0 %v8782_v47  ;;  %v8101_v1 = vpop.f32.mrf.mxu1  ;;  %8388 = vmatmul.mubr.bf16.gmra.mxu1 %v8785_v57  ;;  %v8789_v13 = vld [vmem:[%s11008_s3 + $0x5d8] sm:$0xff]   ;;  %v5228_v47 = vrot.slane %v5226_v14, 5  ;;  %v8792_v23 = vld [vmem:[%s11008_s3 + $0x588] sm:$0xff]   ;;  %v5260_v34 = vshll.u32 %v10448_v49, 16  ;;  %v7374_v11 = vld [vmem:[%s8951_s14 + $0x30] sm:$0xe] }
 0x191   : > { %8420 = vmatpush3.bf16.msra.mxu1 %v8783_v50  ;;  %v2306_v60 = vpop.f32.mrf.mxu0  ;;  %8397 = vmatprep.subr.bf16.mxu0 %v10390_v16  ;;  %v5265_v50 = vshrl.u32 %v7339_v19, 16  ;;  %v5243_v14 = vor.u32 %v5242_v48, %v5239_v4  ;;  %v7382_v8 = vrot.slane %v7374_v11, 9  ;;  %v10535_v48 = vld [vmem:[%s8951_s14 + $0x1c] sm:$0x1] }
 0x192   : > { %v2325_v40 = vadd.f32 %v2306_v60, %v10279_v29  ;;  %v10439_v17 = vadd.f32 %v8101_v1, %v2327_v12  ;;  %v2476_v43 = vpop.f32.mrf.mxu1  ;;  %8421 = vmatprep.subr.bf16.mxu1 %v8787_v28  ;;  %8407 = vmatprep.mubr.bf16.mxu0 %v7357_v61  ;;  %v5268_v29 = vshll.u32 %v7339_v19, 16  ;;  %v5257_v12 = vor.u32 %v5256_v59, %v5253_v35  ;;  %v10480_v19 = vld [vmem:[%s8951_s14 + $0x38] sm:$0xe]  ;;  %v8794_v60 = vld [vmem:[%s11008_s3 + $0x580] sm:$0xff]  }
 0x193   : > { %v8078_v53 = vpop.f32.mrf.mxu0  ;;  %8431 = vmatprep.mubr.bf16.mxu1 %v7401_v37  ;;  %v5267_v31 = vrot.slane %v5265_v50, 4  ;;  %v10474_v37 = vrot.slane %v5232_v27, 5  ;;  %v5274_v1 = vshll.u32 %v10458_v54, 16  ;;  %v5207_v27 = vsel %vm9031_vm2, %v10392_v63, %v10385_v58  ;;  %v8797_v50 = vld [vmem:[%s11008_s3 + $0x678] sm:$0xff]  }
 0x194   : > { %v2328_v57 = vadd.f32 %v8078_v53, %v10286_v22  ;;  %v10451_v56 = vadd.f32 %v2476_v43, %v2325_v40  ;;  %8398 = vmatpush3.bf16.msra.mxu0 %v10390_v16  ;;  %v8102_v32 = vpop.f32.mrf.mxu1  ;;  %v5229_v16 = vor.u32 %v5228_v47, %v5225_v30  ;;  %v5270_v62 = vrot.slane %v5268_v29, 5  ;;  %v7449_v53 = vld [vmem:[%s8951_s14 + $0x10] sm:$0xf]  ;;  %v10526_v29 = vld [vmem:[%s8951_s14 + $0x14] sm:$0x1] }
 0x195   : > { %8422 = vmatpush3.bf16.msra.mxu1 %v8787_v28  ;;  %v2309_v51 = vpop.f32.mrf.mxu0  ;;  %8399 = vmatprep.subr.bf16.mxu0 %v8788_v26  ;;  %v5244_v40 = vrot.slane %v5243_v14, 4  ;;  %v10496_v43 = vrot.slane %v5260_v34, 5  ;;  %v5467_v30 = vsel %vm9114_vm5, %v7379_v46, %v5466_v45  ;;  %v5471_v58 = vsel %vm9114_vm5, %v7380_v36, %v5470_v18 }
 0x196   : > { %v2326_v22 = vadd.f32 %v2309_v51, %v10295_v6  ;;  %v10461_v55 = vadd.f32 %v8102_v32, %v2328_v57  ;;  %v2479_v61 = vpop.f32.mrf.mxu1  ;;  %8423 = vmatprep.subr.bf16.mxu1 %v8789_v13  ;;  %v8793_v6 = vld [vmem:[%s11008_s3 + $0x5c8] sm:$0xff]   ;;  %v5230_v20 = vrot.slane %v5229_v16, 4  ;;  %v5271_v52 = vor.u32 %v5270_v62, %v5267_v31  ;;  %v7451_v57 = vld [vmem:[%s8951_s14 + $0x18] sm:$0xf] }
 0x197   : > { %v10508_v63 = vrot.slane %v5257_v12, 4  ;;  %v10510_v33 = vrot.slane %v5274_v1, 5  ;;  %v7381_v47 = vrot.slane %v7373_v41, 9  ;;  %v5478_v45 = vrot.slane %v10442_v3, 5 }
 0x198   : > { %v10464_v28 = vadd.f32 %v2479_v61, %v2326_v22  ;;  %8400 = vmatpush3.bf16.msra.mxu0 %v8788_v26  ;;  %v5248_v26 = vrot.slane %v5246_v21, 5  ;;  %v10517_v46 = vrot.slane %v5271_v52, 4  ;;  %v7383_v36 = vrot.slane %v10480_v19, 9 }
 0x199   : > { %8424 = vmatpush3.bf16.msra.mxu1 %v8789_v13  ;;  %8401 = vmatprep.subr.bf16.mxu0 %v8790_v0  ;;  %v8795_v13 = vld [vmem:[%s11008_s3 + $0x5c0] sm:$0xff]   ;;  %v7402_v5 = vcombine.low %v5467_v30, %v5471_v58  ;;  %v5830_v32 = vshrl.u32 %v7449_v53, 16  ;;  %v5235_v3 = vsel %vm9031_vm2, %v5230_v20, %v10474_v37  ;;  %v5844_v51 = vshrl.u32 %v7451_v57, 16  ;;  %v8799_v37 = vld [vmem:[%s11008_s3 + $0x670] sm:$0xff]   ;;  %v8800_v30 = vld [vmem:[%s11008_s3 + $0x628] sm:$0xff]  }
 0x19a   : > { %8425 = vmatprep.subr.bf16.mxu1 %v8791_v44  ;;  %v5249_v4 = vsel %vm9031_vm2, %v5244_v40, %v5248_v26  ;;  %v5847_v35 = vshll.u32 %v7451_v57, 16  ;;  %v5482_v59 = vrot.slane %v10448_v49, 5  ;;  %v7384_v22 = vrot.slane %v7376_v24, 9  ;;  %v8798_v49 = vld [vmem:[%s11008_s3 + $0x630] sm:$0xff]  }
 0x19b   : > { %v5832_v61 = vrot.slane %v5830_v32, 4  ;;  %v5486_v21 = vrot.slane %v10458_v54, 5  ;;  %v5839_v31 = vshll.u32 %v10526_v29, 16  ;;  %v5846_v62 = vrot.slane %v5844_v51, 4  ;;  %v8803_v32 = vld [vmem:[%s11008_s3 + $0x660] sm:$0xff]  }
 0x19c   : > { %8402 = vmatpush3.bf16.msra.mxu0 %v8790_v0  ;;  %v7358_v0 = vcombine.low %v5207_v27, %v5221_v7  ;;  %v5479_v18 = vsel %vm9114_vm5, %v7382_v8, %v5478_v45  ;;  %v5853_v34 = vshll.u32 %v10535_v48, 16  ;;  %v7359_v12 = vcombine.low %v5235_v3, %v5249_v4 }
 0x19d   : > { %8426 = vmatpush3.bf16.msra.mxu1 %v8791_v44  ;;  %8403 = vmatprep.subr.bf16.mxu0 %v8792_v23  ;;  %v5833_v44 = vshll.u32 %v7449_v53, 16  ;;  %v5263_v1 = vsel %vm9031_vm2, %v10508_v63, %v10496_v43  ;;  %v5277_v41 = vsel %vm9031_vm2, %v10517_v46, %v10510_v33  ;;  %v5487_v20 = vsel %vm9114_vm5, %v7384_v22, %v5486_v21  ;;  %v8801_v33 = vld [vmem:[%s11008_s3 + $0x668] sm:$0xff]  }
 0x19e   : > { %8427 = vmatprep.subr.bf16.mxu1 %v8793_v6  ;;  %v5841_v26 = vrot.slane %v5839_v31, 5  ;;  %v5855_v40 = vrot.slane %v5853_v34, 5  ;;  %v7455_v53 = vld [vmem:[%s8951_s14 + $0x28] sm:$0xf] }
 0x19f   : > { %v5835_v16 = vrot.slane %v5833_v44, 5  ;;  %v8812_v44 = vld [vmem:[%s8951_s14 + $0x10] ss:$8 sps:$4 sm:$0xff]   ;;  %v5875_v22 = vshll.u32 %v7455_v53, 16 }
 0x1a0   : > { %8404 = vmatpush3.bf16.msra.mxu0 %v8792_v23  ;;  %v5849_v23 = vrot.slane %v5847_v35, 5  ;;  %v8804_v35 = vld [vmem:[%s11008_s3 + $0x618] sm:$0xff]  }
 0x1a1   : > { %8428 = vmatpush3.bf16.msra.mxu1 %v8793_v6  ;;  %8405 = vmatprep.subr.bf16.mxu0 %v8794_v60  ;;  %v5475_v6 = vsel %vm9114_vm5, %v7381_v47, %v5474_v25  ;;  %v5836_v14 = vor.u32 %v5835_v16, %v5832_v61  ;;  %v7360_v47 = vcombine.low %v5263_v1, %v5277_v41  ;;  %v7457_v61 = vld [vmem:[%s8951_s14 + $0x30] sm:$0xf] }
 0x1a2   : > { %8429 = vmatprep.subr.bf16.mxu1 %v8795_v13  ;;  %v5850_v54 = vor.u32 %v5849_v23, %v5846_v62  ;;  %v7403_v19 = vcombine.low %v5475_v6, %v5479_v18  ;;  %v7459_v62 = vld [vmem:[%s8951_s14 + $0x38] sm:$0xf]  ;;  %v10604_v18 = vld [vmem:[%s8951_s14 + $0x24] sm:$0x1]  ;;  %v5886_v1 = vshrl.u32 %v7457_v61, 16  ;;  %v5889_v41 = vshll.u32 %v7457_v61, 16 }
 0x1a3   : > { %v5837_v27 = vrot.slane %v5836_v14, 4  ;;  %v8805_v6 = vld [vmem:[%s11008_s3 + $0x658] sm:$0xff]   ;;  %v8810_v61 = vld [vmem:[%s11008_s3 + $0x600] sm:$0xff]  }
 0x1a4   : > { %8406 = vmatpush3.bf16.msra.mxu0 %v8794_v60  ;;  %v5483_v60 = vsel %vm9114_vm5, %v7383_v36, %v5482_v59  ;;  %v5851_v7 = vrot.slane %v5850_v54, 4  ;;  %v5872_v59 = vshrl.u32 %v7455_v53, 16  ;;  %v8808_v53 = vld [vmem:[%s11008_s3 + $0x608] sm:$0xff]  }
 0x1a5   : > { %8430 = vmatpush3.bf16.msra.mxu1 %v8795_v13  ;;  %8439 = vmatprep.subr.bf16.mxu0 %v8796_v15  ;;  %v7404_v25 = vcombine.low %v5483_v60, %v5487_v20  ;;  %v5842_v45 = vsel %vm9031_vm2, %v5837_v27, %v5841_v26  ;;  %v10616_v27 = vld [vmem:[%s8951_s14 + $0x2c] sm:$0x1] }
 0x1a6   : > { %8463 = vmatprep.subr.bf16.mxu1 %v8797_v50  ;;  %v5856_v36 = vsel %vm9031_vm2, %v5851_v7, %v5855_v40  ;;  %v5874_v26 = vrot.slane %v5872_v59, 4 }
 0x1a7   : > { %v8121_v11 = vpop.f32.mrf.mxu0  ;;  %8408 = vmatmul.mubr.bf16.vlgmr.msra.gmra.mxu0 %v7358_v0 }
 0x1a8   : > { %v2775_v52 = vadd.f32 %v8121_v11, %v10377_v10  ;;  %8432 = vmatmul.mubr.bf16.vlgmr.msra.gmra.mxu1 %v7402_v5  ;;  %8440 = vmatpush3.bf16.msra.mxu0 %v8796_v15  ;;  %v8145_v13 = vpop.f32.mrf.mxu1  ;;  %v7453_v15 = vld [vmem:[%s8951_s14 + $0x20] sm:$0xf]  ;;  %v5900_v11 = vshrl.u32 %v7459_v62, 16 }
 0x1a9   : > { %8464 = vmatpush3.bf16.msra.mxu1 %v8797_v50  ;;  %v2742_v43 = vpop.f32.mrf.mxu0  ;;  %8441 = vmatprep.subr.bf16.mxu0 %v8798_v49  ;;  %v5858_v3 = vshrl.u32 %v7453_v15, 16  ;;  %v5861_v4 = vshll.u32 %v7453_v15, 16 }
 0x1aa   : > { %v2773_v58 = vadd.f32 %v2742_v43, %v10401_v9  ;;  %v10568_v63 = vadd.f32 %v8145_v13, %v2775_v52  ;;  %v2952_v10 = vpop.f32.mrf.mxu1  ;;  %8465 = vmatprep.subr.bf16.mxu1 %v8799_v37  ;;  %8411 = vmatprep.mubr.bf16.mxu0 %v7359_v12  ;;  %v8806_v12 = vld [vmem:[%s11008_s3 + $0x610] sm:$0xff]   ;;  %v5877_v52 = vrot.slane %v5875_v22, 5 }
 0x1ab   : > { %v8122_v24 = vpop.f32.mrf.mxu0  ;;  %8435 = vmatprep.mubr.bf16.mxu1 %v7403_v19  ;;  %v5863_v54 = vrot.slane %v5861_v4, 5  ;;  %v5903_v19 = vshll.u32 %v7459_v62, 16 }
 0x1ac   : > { %v2776_v46 = vadd.f32 %v8122_v24, %v10419_v38  ;;  %v10575_v8 = vadd.f32 %v2952_v10, %v2773_v58  ;;  %8442 = vmatpush3.bf16.msra.mxu0 %v8798_v49  ;;  %v8146_v9 = vpop.f32.mrf.mxu1  ;;  %v8802_v38 = vld [vmem:[%s11008_s3 + $0x620] sm:$0xff]   ;;  %v5860_v49 = vrot.slane %v5858_v3, 4  ;;  %v7463_v10 = vld [vmem:[%s8951_s14 + $0x48] sm:$0xf]  ;;  %v5891_v24 = vrot.slane %v5889_v41, 5 }
 0x1ad   : > { %8466 = vmatpush3.bf16.msra.mxu1 %v8799_v37  ;;  %v2745_v0 = vpop.f32.mrf.mxu0  ;;  %8443 = vmatprep.subr.bf16.mxu0 %v8800_v30  ;;  %v7461_v58 = vld [vmem:[%s8951_s14 + $0x40] sm:$0xf] }
 0x1ae   : > { %v2774_v50 = vadd.f32 %v2745_v0, %v10426_v39  ;;  %v10586_v5 = vadd.f32 %v8146_v9, %v2776_v46  ;;  %v2955_v57 = vpop.f32.mrf.mxu1  ;;  %8467 = vmatprep.subr.bf16.mxu1 %v8801_v33  ;;  %v7481_v39 = vcombine.low %v5842_v45, %v5856_v36  ;;  %v5878_v46 = vor.u32 %v5877_v52, %v5874_v26  ;;  %v10631_v45 = vld [vmem:[%s8951_s14 + $0x34] sm:$0x1]  ;;  %v10634_v36 = vld [vmem:[%s8951_s14 + $0x3c] sm:$0x1]  ;;  %v8813_v52 = vld [vmem:[%s8951_s14 + $0x20] ss:$8 sps:$4 sm:$0xff]  }
 0x1af   : > { %v8125_v51 = vpop.f32.mrf.mxu0  ;;  %8412 = vmatmul.mubr.bf16.gmra.mxu0 %v7360_v47  ;;  %v5902_v47 = vrot.slane %v5900_v11, 4  ;;  %v5881_v9 = vshll.u32 %v10616_v27, 16  ;;  %v5914_v0 = vshrl.u32 %v7461_v58, 16  ;;  %v5895_v3 = vshll.u32 %v10631_v45, 16  ;;  %v8814_v11 = vld [vmem:[%s11008_s3 + $0x6b8] sm:$0xff]  }
 0x1b0   : > { %v2779_v16 = vadd.f32 %v8125_v51, %v10439_v17  ;;  %v10597_v21 = vadd.f32 %v2955_v57, %v2774_v50  ;;  %8444 = vmatpush3.bf16.msra.mxu0 %v8800_v30  ;;  %v8149_v31 = vpop.f32.mrf.mxu1  ;;  %8436 = vmatmul.mubr.bf16.gmra.mxu1 %v7404_v25  ;;  %v5867_v30 = vshll.u32 %v10604_v18, 16  ;;  %v5905_v25 = vrot.slane %v5903_v19, 5 }
 0x1b1   : > { %8468 = vmatpush3.bf16.msra.mxu1 %v8801_v33  ;;  %v2758_v23 = vpop.f32.mrf.mxu0  ;;  %8445 = vmatprep.subr.bf16.mxu0 %v8802_v38  ;;  %v5888_v33 = vrot.slane %v5886_v1, 4  ;;  %v5928_v50 = vshrl.u32 %v7463_v10, 16  ;;  %v5931_v57 = vshll.u32 %v7463_v10, 16  ;;  %v5909_v51 = vshll.u32 %v10634_v36, 16  ;;  %v7497_v10 = vld [vmem:[%s8951_s14 + $0x30] sm:$0xe] }
 0x1b2   : > { %v2777_v14 = vadd.f32 %v2758_v23, %v10451_v56  ;;  %v10607_v34 = vadd.f32 %v8149_v31, %v2779_v16  ;;  %v2968_v17 = vpop.f32.mrf.mxu1  ;;  %8469 = vmatprep.subr.bf16.mxu1 %v8803_v32  ;;  %8455 = vmatprep.mubr.bf16.mxu0 %v8812_v44  ;;  %v5906_v4 = vor.u32 %v5905_v25, %v5902_v47  ;;  %v5879_v59 = vrot.slane %v5878_v46, 4  ;;  %v8816_v46 = vld [vmem:[%s8951_s14 + $0x30] ss:$8 sps:$4 sm:$0xff]  }
 0x1b3   : > { %v8126_v37 = vpop.f32.mrf.mxu0  ;;  %8479 = vmatprep.mubr.bf16.mxu1 %v7481_v39  ;;  %v5892_v44 = vor.u32 %v5891_v24, %v5888_v33  ;;  %v5869_v39 = vrot.slane %v5867_v30, 5  ;;  %v5883_v22 = vrot.slane %v5881_v9, 5  ;;  %v5916_v16 = vrot.slane %v5914_v0, 4  ;;  %v8815_v30 = vld [vmem:[%s11008_s3 + $0x6b0] sm:$0xff]  }
 0x1b4   : > { %v2780_v56 = vadd.f32 %v8126_v37, %v10461_v55  ;;  %v10613_v60 = vadd.f32 %v2968_v17, %v2777_v14  ;;  %8446 = vmatpush3.bf16.msra.mxu0 %v8802_v38  ;;  %v8150_v20 = vpop.f32.mrf.mxu1  ;;  %v8807_v55 = vld [vmem:[%s11008_s3 + $0x650] sm:$0xff]   ;;  %v5917_v38 = vshll.u32 %v7461_v58, 16  ;;  %v5930_v62 = vrot.slane %v5928_v50, 4  ;;  %v10651_v14 = vld [vmem:[%s8951_s14 + $0x44] sm:$0x1] }
 0x1b5   : > { %8470 = vmatpush3.bf16.msra.mxu1 %v8803_v32  ;;  %v2761_v13 = vpop.f32.mrf.mxu0  ;;  %8447 = vmatprep.subr.bf16.mxu0 %v8804_v35  ;;  %v8809_v32 = vld [vmem:[%s11008_s3 + $0x648] sm:$0xff]   ;;  %v5933_v23 = vrot.slane %v5931_v57, 5  ;;  %v5907_v37 = vrot.slane %v5906_v4, 4  ;;  %v5884_v41 = vsel %vm9031_vm2, %v5879_v59, %v5883_v22  ;;  %v7494_v58 = vld [vmem:[%s8951_s14 + $0x18] sm:$0xe]  ;;  %v6121_v0 = vrot.slane %v10526_v29, 5 }
 0x1b6   : > { %v2778_v7 = vadd.f32 %v2761_v13, %v10464_v28  ;;  %v10619_v40 = vadd.f32 %v8150_v20, %v2780_v56  ;;  %v2971_v43 = vpop.f32.mrf.mxu1  ;;  %8471 = vmatprep.subr.bf16.mxu1 %v8805_v6  ;;  %v5864_v28 = vor.u32 %v5863_v54, %v5860_v49  ;;  %v5919_v31 = vrot.slane %v5917_v38, 5  ;;  %v10654_v17 = vld [vmem:[%s8951_s14 + $0x4c] sm:$0x1] }
 0x1b7   : > { %v5893_v49 = vrot.slane %v5892_v44, 4  ;;  %v5897_v54 = vrot.slane %v5895_v3, 5  ;;  %v5923_v56 = vshll.u32 %v10651_v14, 16  ;;  %v5934_v20 = vor.u32 %v5933_v23, %v5930_v62  ;;  %v8818_v29 = vld [vmem:[%s11008_s3 + $0x6a8] sm:$0xff]  }
 0x1b8   : > { %v10627_v15 = vadd.f32 %v2971_v43, %v2778_v7  ;;  %8448 = vmatpush3.bf16.msra.mxu0 %v8804_v35  ;;  %v5865_v35 = vrot.slane %v5864_v28, 4  ;;  %v5920_v19 = vor.u32 %v5919_v31, %v5916_v16  ;;  %v5937_v26 = vshll.u32 %v10654_v17, 16  ;;  %v7493_v43 = vld [vmem:[%s8951_s14 + $0x10] sm:$0xe]  ;;  %v7498_v28 = vld [vmem:[%s8951_s14 + $0x38] sm:$0xe] }
 0x1b9   : > { %8472 = vmatpush3.bf16.msra.mxu1 %v8805_v6  ;;  %8449 = vmatprep.subr.bf16.mxu0 %v8806_v12  ;;  %v8811_v6 = vld [vmem:[%s11008_s3 + $0x640] sm:$0xff]   ;;  %v5898_v13 = vsel %vm9031_vm2, %v5893_v49, %v5897_v54  ;;  %v5925_v24 = vrot.slane %v5923_v56, 5  ;;  %v5935_v47 = vrot.slane %v5934_v20, 4  ;;  %v7502_v50 = vrot.slane %v7494_v58, 9 }
 0x1ba   : > { %8473 = vmatprep.subr.bf16.mxu1 %v8807_v55  ;;  %v5870_v1 = vsel %vm9031_vm2, %v5865_v35, %v5869_v39  ;;  %v5921_v33 = vrot.slane %v5920_v19, 4  ;;  %v5939_v25 = vrot.slane %v5937_v26, 5  ;;  %v6125_v57 = vrot.slane %v10535_v48, 5 }
 0x1bb   : > { %v6137_v44 = vrot.slane %v10631_v45, 5  ;;  %v6141_v35 = vrot.slane %v10634_v36, 5 }
 0x1bc   : > { %8450 = vmatpush3.bf16.msra.mxu0 %v8806_v12  ;;  %v5911_v12 = vrot.slane %v5909_v51, 5  ;;  %v7506_v51 = vrot.slane %v7498_v28, 9  ;;  %v5926_v48 = vsel %vm9031_vm2, %v5921_v33, %v5925_v24  ;;  %v6126_v31 = vsel %vm9114_vm5, %v7502_v50, %v6125_v57  ;;  %v7495_v28 = vld [vmem:[%s8951_s14 + $0x20] sm:$0xe] }
 0x1bd   : > { %8474 = vmatpush3.bf16.msra.mxu1 %v8807_v55  ;;  %8451 = vmatprep.subr.bf16.mxu0 %v8808_v53  ;;  %v7482_v55 = vcombine.low %v5870_v1, %v5884_v41  ;;  %v6133_v50 = vrot.slane %v10616_v27, 5  ;;  %v6145_v57 = vrot.slane %v10651_v14, 5 }
 0x1be   : > { %8475 = vmatprep.subr.bf16.mxu1 %v8809_v32  ;;  %v5912_v7 = vsel %vm9031_vm2, %v5907_v37, %v5911_v12  ;;  %v6142_v49 = vsel %vm9114_vm5, %v7506_v51, %v6141_v35  ;;  %v8819_v37 = vld [vmem:[%s11008_s3 + $0x6a0] sm:$0xff]  }
 0x1bf   : > { %v7483_v9 = vcombine.low %v5898_v13, %v5912_v7 }
 0x1c0   : > { %8452 = vmatpush3.bf16.msra.mxu0 %v8808_v53  ;;  %v7501_v53 = vrot.slane %v7493_v43, 9 }
 0x1c1   : > { %8476 = vmatpush3.bf16.msra.mxu1 %v8809_v32  ;;  %8453 = vmatprep.subr.bf16.mxu0 %v8810_v61  ;;  %v7505_v32 = vrot.slane %v7497_v10, 9 }
 0x1c2   : > { %8477 = vmatprep.subr.bf16.mxu1 %v8811_v6  ;;  %v6122_v16 = vsel %vm9114_vm5, %v7501_v53, %v6121_v0  ;;  %v7500_v53 = vld [vmem:[%s8951_s14 + $0x48] sm:$0xe]  ;;  %v6129_v0 = vrot.slane %v10604_v18, 5 }
 0x1c3   : > { %v6138_v42 = vsel %vm9114_vm5, %v7505_v32, %v6137_v44  ;;  %v7525_v41 = vcombine.low %v6122_v16, %v6126_v31  ;;  %v6149_v32 = vrot.slane %v10654_v17, 5  ;;  %v8823_v44 = vld [vmem:[%s11008_s3 + $0x680] sm:$0xff]  }
 0x1c4   : > { %8454 = vmatpush3.bf16.msra.mxu0 %v8810_v61  ;;  %v8817_v61 = vld [vmem:[%s8951_s14 + $0x40] ss:$8 sps:$4 sm:$0xff]   ;;  %v7527_v19 = vcombine.low %v6138_v42, %v6142_v49 }
 0x1c5   : > { %8478 = vmatpush3.bf16.msra.mxu1 %v8811_v6  ;;  %8487 = vmatprep.subr.bf16.mxu0 %v8814_v11 }
 0x1c6   : > { %8511 = vmatprep.subr.bf16.mxu1 %v8814_v11 }
 0x1c7   : > { %v8169_v38 = vpop.f32.mrf.mxu0  ;;  %8456 = vmatmul.mubr.bf16.vlgmr.msra.gmra.mxu0 %v8813_v52 }
 0x1c8   : > { %v3156_v3 = vadd.f32 %v8169_v38, %v10568_v63  ;;  %8480 = vmatmul.mubr.bf16.vlgmr.msra.gmra.mxu1 %v7482_v55  ;;  %8488 = vmatpush3.bf16.msra.mxu0 %v8814_v11  ;;  %v8193_v4 = vpop.f32.mrf.mxu1  ;;  %v5940_v63 = vsel %vm9031_vm2, %v5935_v47, %v5939_v25  ;;  %v8822_v25 = vld [vmem:[%s11008_s3 + $0x688] sm:$0xff]  }
 0x1c9   : > { %8519 = vmatpush3.bf16.msra.mxu1 %v8814_v11  ;;  %v3123_v39 = vpop.f32.mrf.mxu0  ;;  %8489 = vmatprep.subr.bf16.mxu0 %v8815_v30  ;;  %v7484_v6 = vcombine.low %v5926_v48, %v5940_v63 }
 0x1ca   : > { %v3154_v45 = vadd.f32 %v3123_v39, %v10575_v8  ;;  %v10691_v59 = vadd.f32 %v8193_v4, %v3156_v3  ;;  %v3405_v22 = vpop.f32.mrf.mxu1  ;;  %8512 = vmatprep.subr.bf16.mxu1 %v8815_v30  ;;  %8459 = vmatprep.mubr.bf16.mxu0 %v8816_v46  ;;  %v7496_v46 = vld [vmem:[%s8951_s14 + $0x28] sm:$0xe]  ;;  %v7508_v4 = vrot.slane %v7500_v53, 9 }
 0x1cb   : > { %v8170_v36 = vpop.f32.mrf.mxu0  ;;  %8483 = vmatprep.mubr.bf16.mxu1 %v7483_v9  ;;  %v7499_v9 = vld [vmem:[%s8951_s14 + $0x40] sm:$0xe]  ;;  %v7504_v38 = vrot.slane %v7496_v46, 9 }
 0x1cc   : > { %v3157_v62 = vadd.f32 %v8170_v36, %v10586_v5  ;;  %v10701_v8 = vadd.f32 %v3405_v22, %v3154_v45  ;;  %8490 = vmatpush3.bf16.msra.mxu0 %v8815_v30  ;;  %v8194_v23 = vpop.f32.mrf.mxu1  ;;  %v7507_v3 = vrot.slane %v7499_v9, 9  ;;  %v6150_v17 = vsel %vm9114_vm5, %v7508_v4, %v6149_v32 }
 0x1cd   : > { %8520 = vmatpush3.bf16.msra.mxu1 %v8815_v30  ;;  %v3126_v54 = vpop.f32.mrf.mxu0  ;;  %8491 = vmatprep.subr.bf16.mxu0 %v8818_v29  ;;  %v6134_v27 = vsel %vm9114_vm5, %v7504_v38, %v6133_v50 }
 0x1ce   : > { %v3155_v12 = vadd.f32 %v3126_v54, %v10597_v21  ;;  %v10709_v1 = vadd.f32 %v8194_v23, %v3157_v62  ;;  %v3408_v5 = vpop.f32.mrf.mxu1  ;;  %8513 = vmatprep.subr.bf16.mxu1 %v8818_v29  ;;  %v8820_v21 = vld [vmem:[%s11008_s3 + $0x698] sm:$0xff]   ;;  %v6146_v14 = vsel %vm9114_vm5, %v7507_v3, %v6145_v57 }
 0x1cf   : > { %v8173_v11 = vpop.f32.mrf.mxu0  ;;  %8460 = vmatmul.mubr.bf16.gmra.mxu0 %v8817_v61  ;;  %v7528_v35 = vcombine.low %v6146_v14, %v6150_v17 }
 0x1d0   : > { %v3160_v56 = vadd.f32 %v8173_v11, %v10607_v34  ;;  %v10712_v20 = vadd.f32 %v3408_v5, %v3155_v12  ;;  %8492 = vmatpush3.bf16.msra.mxu0 %v8818_v29  ;;  %v8197_v26 = vpop.f32.mrf.mxu1  ;;  %8484 = vmatmul.mubr.bf16.gmra.mxu1 %v7484_v6 }
 0x1d1   : > { %8521 = vmatpush3.bf16.msra.mxu1 %v8818_v29  ;;  %v3139_v52 = vpop.f32.mrf.mxu0  ;;  %8493 = vmatprep.subr.bf16.mxu0 %v8819_v37 }
 0x1d2   : > { %v3158_v13 = vadd.f32 %v3139_v52, %v10613_v60  ;;  %v10718_v7 = vadd.f32 %v8197_v26, %v3160_v56  ;;  %v3421_v43 = vpop.f32.mrf.mxu1  ;;  %8514 = vmatprep.subr.bf16.mxu1 %v8819_v37  ;;  %8503 = vmatprep.mubr.bf16.mxu0 %v7525_v41  ;;  %v8821_v60 = vld [vmem:[%s11008_s3 + $0x690] sm:$0xff]  }
 0x1d3   : > { %v8174_v34 = vpop.f32.mrf.mxu0  ;;  %8507 = vmatprep.mubr.bf16.mxu1 %v7527_v19 }
 0x1d4   : > { %v3161_v55 = vadd.f32 %v8174_v34, %v10619_v40  ;;  %v10721_v30 = vadd.f32 %v3421_v43, %v3158_v13  ;;  %8494 = vmatpush3.bf16.msra.mxu0 %v8819_v37  ;;  %v8198_v58 = vpop.f32.mrf.mxu1 }
 0x1d5   : > { %8522 = vmatpush3.bf16.msra.mxu1 %v8819_v37  ;;  %v3142_v10 = vpop.f32.mrf.mxu0  ;;  %8495 = vmatprep.subr.bf16.mxu0 %v8820_v21 }
 0x1d6   : > { %v3159_v33 = vadd.f32 %v3142_v10, %v10627_v15  ;;  %v10727_v24 = vadd.f32 %v8198_v58, %v3161_v55  ;;  %v3424_v40 = vpop.f32.mrf.mxu1  ;;  %8515 = vmatprep.subr.bf16.mxu1 %v8820_v21  ;;  %v7503_v15 = vrot.slane %v7495_v28, 9 }
 0x1d8   : > { %v10729_v47 = vadd.f32 %v3424_v40, %v3159_v33  ;;  %8496 = vmatpush3.bf16.msra.mxu0 %v8820_v21  ;;  %v6130_v18 = vsel %vm9114_vm5, %v7503_v15, %v6129_v0 }
 0x1d9   : > { %8523 = vmatpush3.bf16.msra.mxu1 %v8820_v21  ;;  %8497 = vmatprep.subr.bf16.mxu0 %v8821_v60  ;;  %v7526_v51 = vcombine.low %v6130_v18, %v6134_v27 }
 0x1da   : > { %8516 = vmatprep.subr.bf16.mxu1 %v8821_v60 }
 0x1dc   : > { %8498 = vmatpush3.bf16.msra.mxu0 %v8821_v60 }
 0x1dd   : > { %8524 = vmatpush3.bf16.msra.mxu1 %v8821_v60  ;;  %8499 = vmatprep.subr.bf16.mxu0 %v8822_v25 }
 0x1de   : > { %8517 = vmatprep.subr.bf16.mxu1 %v8822_v25 }
 0x1e0   : > { %8500 = vmatpush3.bf16.msra.mxu0 %v8822_v25 }
 0x1e1   : > { %8525 = vmatpush3.bf16.msra.mxu1 %v8822_v25  ;;  %8501 = vmatprep.subr.bf16.mxu0 %v8823_v44 }
 0x1e2   : > { %8518 = vmatprep.subr.bf16.mxu1 %v8823_v44 }
 0x1e4   : > { %8502 = vmatpush3.bf16.msra.mxu0 %v8823_v44 }
 0x1e5   : > { %8526 = vmatpush3.bf16.msra.mxu1 %v8823_v44 }
 0x1e7   : > { %v8217_v39 = vpop.f32.mrf.mxu0  ;;  %8504 = vmatmul.mubr.bf16.vlgmr.msra.gmra.mxu0 %v7526_v51 }
 0x1e8   : > { %v3648_v29 = vadd.f32 %v8217_v39, %v10691_v59  ;;  %8508 = vmatmul.mubr.bf16.vlgmr.msra.gmra.mxu1 %v7528_v35  ;;  %v8241_v48 = vpop.f32.mrf.mxu1 }
 0x1e9   : > { %v3615_v63 = vpop.f32.mrf.mxu0 }
 0x1ea   : > { %v3646_v45 = vadd.f32 %v3615_v63, %v10701_v8  ;;  %v10755_v22 = vadd.f32 %v8241_v48, %v3648_v29  ;;  %v3786_v36 = vpop.f32.mrf.mxu1 }
 0x1eb   : > { %v8218_v61 = vpop.f32.mrf.mxu0 }
 0x1ec   : > { %v3649_v2 = vadd.f32 %v8218_v61, %v10709_v1  ;;  %v10758_v16 = vadd.f32 %v3786_v36, %v3646_v45  ;;  %v8242_v31 = vpop.f32.mrf.mxu1 }
 0x1ed   : > { %v3618_v42 = vpop.f32.mrf.mxu0 }
 0x1ee   : > { %v3647_v62 = vadd.f32 %v3618_v42, %v10712_v20  ;;  %v10761_v23 = vadd.f32 %v8242_v31, %v3649_v2  ;;  %v3789_v59 = vpop.f32.mrf.mxu1 }
 0x1ef   : > { %v8221_v6 = vpop.f32.mrf.mxu0 }
 0x1f0   : > { %v3652_v49 = vadd.f32 %v8221_v6, %v10718_v7  ;;  %v10764_v54 = vadd.f32 %v3789_v59, %v3647_v62  ;;  %v8245_v8 = vpop.f32.mrf.mxu1 }
 0x1f1   : > { %v3631_v37 = vpop.f32.mrf.mxu0 }
 0x1f2   : > { %v3650_v12 = vadd.f32 %v3631_v37, %v10721_v30  ;;  %v10767_v5 = vadd.f32 %v8245_v8, %v3652_v49  ;;  %v3802_v1 = vpop.f32.mrf.mxu1 }
 0x1f3   : > { %v8222_v41 = vpop.f32.mrf.mxu0 }
 0x1f4   : > { %v3653_v11 = vadd.f32 %v8222_v41, %v10727_v24  ;;  %v10770_v19 = vadd.f32 %v3802_v1, %v3650_v12  ;;  %v8246_v56 = vpop.f32.mrf.mxu1 }
 0x1f5   : > { %v3634_v20 = vpop.f32.mrf.mxu0 }
 0x1f6   : > { %v3651_v26 = vadd.f32 %v3634_v20, %v10729_v47  ;;  %v10773_v52 = vadd.f32 %v8246_v56, %v3653_v11  ;;  %v3805_v21 = vpop.f32.mrf.mxu1 }
 0x1f8   : > { %v10775_v13 = vadd.f32 %v3805_v21, %v3651_v26 }
 0x207   : > { %v10777_v7 = vpop.f32.mrf.mxu0 }
 0x208   : > { %v10779_v43 = vpop.f32.mrf.mxu1 }
 0x209   : > { %v10781_v34 = vpop.f32.mrf.mxu0 }
 0x20a   : > { %v10783_v55 = vpop.f32.mrf.mxu1 }
 0x20b   : > { %v10785_v30 = vpop.f32.mrf.mxu0 }
 0x20c   : > { %v10787_v58 = vpop.f32.mrf.mxu1 }
 0x20d   : > { %v10789_v10 = vpop.f32.mrf.mxu0 }
 0x20e   : > { %v10791_v60 = vpop.f32.mrf.mxu1 }
 0x20f   : > { %v8269_v33 = vpop.f32.mrf.mxu0 }
 0x210   : > { %v10793_v24 = vpop.f32.mrf.mxu1 }
 0x211   : > { %v4084_v40 = vpop.f32.mrf.mxu0 }
 0x212   : > { %v10795_v47 = vpop.f32.mrf.mxu1 }
 0x213   : > { %v10797_v25 = vpop.f32.mrf.mxu0 }
 0x214   : > { %v10799_v28 = vpop.f32.mrf.mxu1 }
 0x215   : > { %v10801_v46 = vpop.f32.mrf.mxu0 }
 0x216   : > { %v10803_v9 = vpop.f32.mrf.mxu1 }
 0x227   : > { %v8313_v53 = vpop.f32.mrf.mxu0 }
 0x228   : > { %v10805_v15 = vpop.f32.mrf.mxu1 }
 0x229   : > { %v10807_v0 = vpop.f32.mrf.mxu0 }
 0x22a   : > { %v10809_v38 = vpop.f32.mrf.mxu1 }
 0x22b   : > { %v10811_v50 = vpop.f32.mrf.mxu0 }
 0x22c   : > { %v10813_v57 = vpop.f32.mrf.mxu1 }
 0x22d   : > { %v10815_v32 = vpop.f32.mrf.mxu0 }
 0x22e   : > { %v10817_v44 = vpop.f32.mrf.mxu1 }
 0x22f   : > { %v8317_v3 = vpop.f32.mrf.mxu0 }
 0x230   : > { %v10819_v4 = vpop.f32.mrf.mxu1 }
 0x231   : > { %v4464_v18 = vpop.f32.mrf.mxu0 }
 0x232   : > { %v10821_v27 = vpop.f32.mrf.mxu1 }
 0x233   : > { %v10823_v14 = vpop.f32.mrf.mxu0 }
 0x234   : > { %v10825_v17 = vpop.f32.mrf.mxu1 }
 0x235   : > { %v10827_v51 = vpop.f32.mrf.mxu0 }
 0x236   : > { %v10829_v35 = vpop.f32.mrf.mxu1 }
 0x247   : > { %v10831_v39 = vpop.f32.mrf.mxu0 }
 0x248   : > { %v10833_v29 = vpop.f32.mrf.mxu1 }
 0x249   : > { %v10835_v48 = vpop.f32.mrf.mxu0 }
 0x24a   : > { %v10837_v63 = vpop.f32.mrf.mxu1 }
 0x24b   : > { %v10839_v45 = vpop.f32.mrf.mxu0 }
 0x24c   : > { %v10841_v36 = vpop.f32.mrf.mxu1 }
 0x24d   : > { %11019 = vst [vmem:[#allocation4_spill] sm:$0xff] %v10841_v36  ;;  %v10843_v61 = vpop.f32.mrf.mxu0 }
 0x24e   : > { %v10845_v2 = vpop.f32.mrf.mxu1 }
 0x24f   : > { %11020 = vst [vmem:[#allocation5_spill] sm:$0xff] %v10845_v2  ;;  %v8365_v31 = vpop.f32.mrf.mxu0 }
 0x250   : > { %v10847_v42 = vpop.f32.mrf.mxu1 }
 0x251   : > { %v10849_v62 = vpop.f32.mrf.mxu0 }
 0x252   : > { %v10851_v59 = vpop.f32.mrf.mxu1 }
 0x253   : > { %v10853_v6 = vpop.f32.mrf.mxu0 }
 0x254   : > { %v10855_v49 = vpop.f32.mrf.mxu1 }
 0x255   : > { %11021 = vst [vmem:[#allocation6_spill] sm:$0xff] %v10855_v49  ;;  %v10857_v8 = vpop.f32.mrf.mxu0 }
 0x256   : > { %v10859_v37 = vpop.f32.mrf.mxu1 }
 0x257   : > { %11022 = vst [vmem:[#allocation7_spill] sm:$0xff] %v10859_v37 }
 0x267   : > { %v10861_v12 = vpop.f32.mrf.mxu0 }
 0x268   : > { %v10863_v1 = vpop.f32.mrf.mxu1 }
 0x269   : > { %11023 = vst [vmem:[#allocation8_spill] sm:$0xff] %v10863_v1  ;;  %v10865_v41 = vpop.f32.mrf.mxu0 }
 0x26a   : > { %11024 = vst [vmem:[#allocation9_spill] sm:$0xff] %v10865_v41  ;;  %v10867_v11 = vpop.f32.mrf.mxu1 }
 0x26b   : > { %11025 = vst [vmem:[#allocation10_spill] sm:$0xff] %v10867_v11  ;;  %v10869_v56 = vpop.f32.mrf.mxu0 }
 0x26c   : > { %11026 = vst [vmem:[#allocation11_spill] sm:$0xff] %v10869_v56  ;;  %v10871_v20 = vpop.f32.mrf.mxu1 }
 0x26d   : > { %11027 = vst [vmem:[#allocation12_spill] sm:$0xff] %v10871_v20  ;;  %v10873_v26 = vpop.f32.mrf.mxu0 }
 0x26e   : > { %11028 = vst [vmem:[#allocation13_spill] sm:$0xff] %v10873_v26  ;;  %v10875_v21 = vpop.f32.mrf.mxu1 }
 0x26f   : > { %11029 = vst [vmem:[#allocation14_spill] sm:$0xff] %v10875_v21  ;;  %v10877_v2 = vpop.f32.mrf.mxu0  ;;  %v4101_v21 = vadd.f32 %v10777_v7, %v10755_v22  ;;  %v4106_v7 = vadd.f32 %v10797_v25, %v10773_v52 }
 0x270   : > { %v10879_v49 = vpop.f32.mrf.mxu1 }
 0x271   : > { %11030 = vst [vmem:[#allocation15_spill] sm:$0xff] %v10879_v49  ;;  %v10881_v37 = vpop.f32.mrf.mxu0  ;;  %v4105_v49 = vadd.f32 %v8269_v33, %v10767_v5  ;;  %v4316_v52 = vadd.f32 %v10799_v28, %v4106_v7  ;;  %v11041_v7 = vld [vmem:[#allocation5_spill] sm:$0xff] }
 0x272   : > { %11031 = vst [vmem:[#allocation16_spill] sm:$0xff] %v10881_v37  ;;  %v10883_v36 = vpop.f32.mrf.mxu1 }
 0x273   : > { %11032 = vst [vmem:[#allocation17_spill] sm:$0xff] %v10883_v36  ;;  %v10885_v1 = vpop.f32.mrf.mxu0  ;;  %v4099_v36 = vadd.f32 %v10781_v34, %v10758_v16  ;;  %v4315_v22 = vadd.f32 %v10793_v24, %v4105_v49  ;;  %v4100_v16 = vadd.f32 %v10789_v10, %v10764_v54 }
 0x274   : > { %11033 = vst [vmem:[#allocation18_spill] sm:$0xff] %v10885_v1  ;;  %v10887_v41 = vpop.f32.mrf.mxu1  ;;  %v4103_v1 = vadd.f32 %v4084_v40, %v10770_v19 }
 0x275   : > { %11034 = vst [vmem:[#allocation19_spill] sm:$0xff] %v10887_v41  ;;  %v10889_v11 = vpop.f32.mrf.mxu0  ;;  %v4311_v41 = vadd.f32 %v10779_v43, %v4101_v21  ;;  %v4309_v5 = vadd.f32 %v10783_v55, %v4099_v36  ;;  %v4104_v43 = vadd.f32 %v10801_v46, %v10775_v13  ;;  %v4485_v33 = vadd.f32 %v8317_v3, %v4315_v22  ;;  %v11039_v21 = vld [vmem:[#allocation6_spill] sm:$0xff] }
 0x276   : > { %11035 = vst [vmem:[#allocation20_spill] sm:$0xff] %v10889_v11  ;;  %v10891_v56 = vpop.f32.mrf.mxu1  ;;  %v4313_v34 = vadd.f32 %v10795_v47, %v4103_v1  ;;  %v4310_v54 = vadd.f32 %v10791_v60, %v4100_v16  ;;  %v4486_v46 = vadd.f32 %v10823_v14, %v4316_v52  ;;  %v11037_v1 = vld [vmem:[#allocation4_spill] sm:$0xff]  ;;  %v11043_v16 = vld [vmem:[#allocation11_spill] sm:$0xff] }
 0x277   : > { %11036 = vst [vmem:[#allocation21_spill] sm:$0xff] %v10891_v56  ;;  %v4102_v56 = vadd.f32 %v10785_v30, %v10761_v23  ;;  %v4481_v19 = vadd.f32 %v8313_v53, %v4311_v41  ;;  %v4479_v24 = vadd.f32 %v10807_v0, %v4309_v5  ;;  %v4314_v13 = vadd.f32 %v10803_v9, %v4104_v43  ;;  %v11042_v5 = vld [vmem:[#allocation8_spill] sm:$0xff] }
 0x278   : > { %v4483_v55 = vadd.f32 %v4464_v18, %v4313_v34  ;;  %v4767_v25 = vadd.f32 %v10819_v4, %v4485_v33  ;;  %v4480_v0 = vadd.f32 %v10815_v32, %v4310_v54  ;;  %v4768_v18 = vadd.f32 %v10825_v17, %v4486_v46  ;;  %v11045_v34 = vld [vmem:[#allocation15_spill] sm:$0xff] }
 0x279   : > { %v4312_v30 = vadd.f32 %v10787_v58, %v4102_v56  ;;  %v4763_v10 = vadd.f32 %v10805_v15, %v4481_v19  ;;  %v4761_v53 = vadd.f32 %v10809_v38, %v4479_v24  ;;  %v4484_v15 = vadd.f32 %v10827_v51, %v4314_v13  ;;  %v11040_v22 = vld [vmem:[#allocation16_spill] sm:$0xff]  ;;  %v11044_v19 = vld [vmem:[#allocation7_spill] sm:$0xff]  ;;  %v11047_v24 = vld [vmem:[#allocation10_spill] sm:$0xff] }
 0x27a   : > { %v4765_v60 = vadd.f32 %v10821_v27, %v4483_v55  ;;  %v4762_v32 = vadd.f32 %v10817_v44, %v4480_v0  ;;  %v11048_v55 = vld [vmem:[#allocation13_spill] sm:$0xff] }
 0x27b   : > { %v4482_v47 = vadd.f32 %v10811_v50, %v4312_v30  ;;  %v4973_v28 = vadd.f32 %v10831_v39, %v4763_v10  ;;  %v4977_v50 = vadd.f32 %v8365_v31, %v4767_v25  ;;  %v4971_v4 = vadd.f32 %v10835_v48, %v4761_v53  ;;  %v11046_v43 = vld [vmem:[#allocation18_spill] sm:$0xff]  ;;  %v11049_v13 = vld [vmem:[#allocation17_spill] sm:$0xff] }
 0x27c   : > { %v4975_v14 = vadd.f32 %v10849_v62, %v4765_v60  ;;  %v4766_v27 = vadd.f32 %v10829_v35, %v4484_v15  ;;  %v4972_v17 = vadd.f32 %v10843_v61, %v4762_v32  ;;  %v11038_v35 = vld [vmem:[#allocation9_spill] sm:$0xff] }
 0x27d   : > { %v4764_v9 = vadd.f32 %v10813_v57, %v4482_v47  ;;  %v5144_v39 = vadd.f32 %v10833_v29, %v4973_v28  ;;  %v5148_v51 = vadd.f32 %v10847_v42, %v4977_v50  ;;  %v4978_v57 = vadd.f32 %v10853_v6, %v4768_v18  ;;  %v11050_v46 = vld [vmem:[#allocation20_spill] sm:$0xff]  ;;  %v11052_v50 = vld [vmem:[#allocation19_spill] sm:$0xff] }
 0x27e   : > { %v5142_v48 = vadd.f32 %v10837_v63, %v4971_v4  ;;  %v5146_v62 = vadd.f32 %v10851_v59, %v4975_v14  ;;  %v4976_v44 = vadd.f32 %v10857_v8, %v4766_v27  ;;  %v5143_v61 = vadd.f32 %v11041_v7, %v4972_v17  ;;  %v11051_v28 = vld [vmem:[#allocation12_spill] sm:$0xff]  ;;  %v11053_v14 = vld [vmem:[#allocation14_spill] sm:$0xff]  ;;  %v11054_v27 = vld [vmem:[#allocation21_spill] sm:$0xff] }
 0x27f   : > { %v4974_v36 = vadd.f32 %v10839_v45, %v4764_v9  ;;  %v5426_v31 = vadd.f32 %v10861_v12, %v5144_v39  ;;  %v5430_v29 = vadd.f32 %v10877_v2, %v5148_v51  ;;  %v5149_v6 = vadd.f32 %v11039_v21, %v4978_v57 }
 0x280   : > { %v5424_v56 = vadd.f32 %v11038_v35, %v5142_v48  ;;  %v5428_v63 = vadd.f32 %v11040_v22, %v5146_v62  ;;  %v5147_v8 = vadd.f32 %v11044_v19, %v4976_v44  ;;  %v5425_v54 = vadd.f32 %v11048_v55, %v5143_v61 }
 0x281   : > { %v5145_v41 = vadd.f32 %v11037_v1, %v4974_v36  ;;  %v5636_v12 = vadd.f32 %v11042_v5, %v5426_v31  ;;  %v5640_v2 = vadd.f32 %v11045_v34, %v5430_v29  ;;  %v5431_v33 = vadd.f32 %v11046_v43, %v5149_v6 }
 0x282   : > { %v5634_v52 = vadd.f32 %v11047_v24, %v5424_v56  ;;  %v5638_v25 = vadd.f32 %v11049_v13, %v5428_v63  ;;  %v5429_v53 = vadd.f32 %v11050_v46, %v5147_v8  ;;  %v5635_v32 = vadd.f32 %v11053_v14, %v5425_v54 }
 0x283   : > { %v5427_v59 = vadd.f32 %v11043_v16, %v5145_v41  ;;  %v5641_v9 = vadd.f32 %v11052_v50, %v5431_v33 }
 0x284   : > { %v5639_v51 = vadd.f32 %v11054_v27, %v5429_v53 }
 0x285   : > { %v5637_v60 = vadd.f32 %v11051_v28, %v5427_v59 }
 0x287   : > { %v10893_v20 = vpop.f32.mrf.mxu0 }
 0x288   : > { %v10897_v26 = vpop.f32.mrf.mxu1  ;;  %v5807_v10 = vadd.f32 %v10893_v20, %v5636_v12 }
 0x289   : > { %v10903_v37 = vpop.f32.mrf.mxu0 }
 0x28a   : > { %v10908_v11 = vpop.f32.mrf.mxu1  ;;  %v5805_v15 = vadd.f32 %v10903_v37, %v5634_v52  ;;  %v6089_v39 = vadd.f32 %v10897_v26, %v5807_v10 }
 0x28b   : > { %v10919_v23 = vpop.f32.mrf.mxu0 }
 0x28c   : > { %v10923_v40 = vpop.f32.mrf.mxu1  ;;  %v5808_v20 = vadd.f32 %v10919_v23, %v5637_v60  ;;  %v6087_v37 = vadd.f32 %v10908_v11, %v5805_v15 }
 0x28d   : > { %v5777_v58 = vpop.f32.mrf.mxu0 }
 0x28e   : > { %v10935_v3 = vpop.f32.mrf.mxu1  ;;  %v5806_v17 = vadd.f32 %v5777_v58, %v5635_v32  ;;  %v6090_v23 = vadd.f32 %v10923_v40, %v5808_v20  ;;  %v6313_v32 = vld [vmem:[%s8940_s16] sm:$0x3] }
 0x28f   : > { %v8461_v38 = vpop.f32.mrf.mxu0 }
 0x290   : > { %v8485_v49 = vpop.f32.mrf.mxu1  ;;  %v5811_v0 = vadd.f32 %v8461_v38, %v5640_v2  ;;  %v6088_v58 = vadd.f32 %v10935_v3, %v5806_v17 }
 0x291   : > { %v5790_v45 = vpop.f32.mrf.mxu0 }
 0x292   : > { %v6072_v42 = vpop.f32.mrf.mxu1  ;;  %v5809_v4 = vadd.f32 %v5790_v45, %v5638_v25  ;;  %v6093_v57 = vadd.f32 %v8485_v49, %v5811_v0 }
 0x293   : > { %v8462_v30 = vpop.f32.mrf.mxu0 }
 0x294   : > { %v8486_v47 = vpop.f32.mrf.mxu1  ;;  %v5812_v38 = vadd.f32 %v8462_v30, %v5641_v9  ;;  %v6091_v44 = vadd.f32 %v6072_v42, %v5809_v4 }
 0x295   : > { %v5793_v18 = vpop.f32.mrf.mxu0 }
 0x296   : > { %v6075_v36 = vpop.f32.mrf.mxu1  ;;  %v5810_v29 = vadd.f32 %v5793_v18, %v5639_v51  ;;  %v6094_v41 = vadd.f32 %v8486_v47, %v5812_v38 }
 0x298   : > { %v6092_v21 = vadd.f32 %v6075_v36, %v5810_v29 }
 0x2a7   : > { %v8505_v48 = vpop.f32.mrf.mxu0 }
 0x2a8   : > { %v6299_v31 = vadd.f32 %v8505_v48, %v6089_v39  ;;  %v8509_v62 = vpop.f32.mrf.mxu1 }
 0x2a9   : > { %v6303_v26 = vadd.f32 %v8509_v62, %v6093_v57  ;;  %v6266_v45 = vpop.f32.mrf.mxu0 }
 0x2aa   : > { %6307 = vst [vmem:[%s8956_s17 + $0x10] sm:$0xff] %v6299_v31  ;;  %v6297_v1 = vadd.f32 %v6266_v45, %v6087_v37  ;;  %v6282_v49 = vpop.f32.mrf.mxu1  ;;  %v6329_v16 = vmul.f32 %v6299_v31, %v6299_v31 }
 0x2ab   : > { %6311 = vst [vmem:[%s8956_s17 + $0x30] sm:$0xff] %v6303_v26  ;;  %v6301_v35 = vadd.f32 %v6282_v49, %v6091_v44  ;;  %v8506_v11 = vpop.f32.mrf.mxu0  ;;  %v6333_v55 = vmul.f32 %v6303_v26, %v6303_v26 }
 0x2ac   : > { %6305 = vst [vmem:[%s8956_s17] sm:$0xff] %v6297_v1  ;;  %v6300_v56 = vadd.f32 %v8506_v11, %v6090_v23  ;;  %v8510_v42 = vpop.f32.mrf.mxu1  ;;  %v6327_v61 = vmul.f32 %v6297_v1, %v6297_v1 }
 0x2ad   : > { %6309 = vst [vmem:[%s8956_s17 + $0x20] sm:$0xff] %v6301_v35  ;;  %v6304_v6 = vadd.f32 %v8510_v42, %v6094_v41  ;;  %v6269_v40 = vpop.f32.mrf.mxu0  ;;  %v6331_v2 = vmul.f32 %v6301_v35, %v6301_v35 }
 0x2ae   : > { %6308 = vst [vmem:[%s8956_s17 + $0x18] sm:$0xff] %v6300_v56  ;;  %v6298_v22 = vadd.f32 %v6269_v40, %v6088_v58  ;;  %v6285_v63 = vpop.f32.mrf.mxu1  ;;  %v6330_v19 = vmul.f32 %v6300_v56, %v6300_v56 }
 0x2af   : > { %6312 = vst [vmem:[%s8956_s17 + $0x38] sm:$0xff] %v6304_v6  ;;  %v6302_v7 = vadd.f32 %v6285_v63, %v6092_v21  ;;  %v6334_v47 = vmul.f32 %v6304_v6, %v6304_v6 }
 0x2b0   : > { %6306 = vst [vmem:[%s8956_s17 + $0x8] sm:$0xff] %v6298_v22  ;;  %v6314_v5 = vadd.f32 %v6298_v22, %v6297_v1  ;;  %v6328_v12 = vmul.f32 %v6298_v22, %v6298_v22 }
 0x2b1   : > { %6310 = vst [vmem:[%s8956_s17 + $0x28] sm:$0xff] %v6302_v7  ;;  %v6332_v24 = vmul.f32 %v6302_v7, %v6302_v7 }
 0x2b2   : > { %v6315_v3 = vadd.f32 %v6314_v5, %v6299_v31  ;;  %v6335_v59 = vadd.f32 %v6328_v12, %v6327_v61 }
 0x2b4   : > { %v6336_v8 = vadd.f32 %v6335_v59, %v6329_v16  ;;  %v6316_v34 = vadd.f32 %v6315_v3, %v6300_v56 }
 0x2b6   : > { %v6317_v43 = vadd.f32 %v6316_v34, %v6301_v35  ;;  %v6337_v33 = vadd.f32 %v6336_v8, %v6330_v19 }
 0x2b8   : > { %v6318_v30 = vadd.f32 %v6317_v43, %v6302_v7  ;;  %v6338_v52 = vadd.f32 %v6337_v33, %v6331_v2 }
 0x2ba   : > { %v6319_v54 = vadd.f32 %v6318_v30, %v6303_v26  ;;  %v6339_v10 = vadd.f32 %v6338_v52, %v6332_v24 }
 0x2bc   : > { %v6320_v13 = vadd.f32 %v6319_v54, %v6304_v6  ;;  %v6340_v25 = vadd.f32 %v6339_v10, %v6333_v55 }
 0x2be   : > { %v6321_v46 = vrot.slane %v6320_v13, 4  ;;  %v6341_v53 = vadd.f32 %v6340_v25, %v6334_v47 }
 0x2c0   : > { %v6322_v0 = vadd.f32 %v6321_v46, %v6320_v13  ;;  %v6342_v28 = vrot.slane %v6341_v53, 4 }
 0x2c2   : > { %v6323_v60 = vrot.slane %v6322_v0, 2  ;;  %v6343_v15 = vadd.f32 %v6342_v28, %v6341_v53 }
 0x2c4   : > { %v6324_v50 = vadd.f32 %v6323_v60, %v6322_v0  ;;  %v6344_v9 = vrot.slane %v6343_v15, 2 }
 0x2c6   : > { %v6325_v4 = vrot.slane %v6324_v50, 1  ;;  %v6345_v18 = vadd.f32 %v6344_v9, %v6343_v15 }
 0x2c8   : > { %v6346_v14 = vrot.slane %v6345_v18, 1  ;;  %v6326_v39 = vadd.f32 %v6325_v4, %v6324_v50 }
 0x2ca   : > { %v6347_v20 = vadd.f32 %v6346_v14, %v6345_v18 }
 0x2cc   : > { %v6349_v36 = vsel %vm6348_vm6, %v6326_v39, %v6347_v20 }
 0x2cd   : > { %v6350_v27 = vadd.f32 %v6349_v36, %v6313_v32 }
 0x2cf   : > { %6351 = vst [vmem:[%s8940_s16] sm:$0x3] %v6350_v27 }
 0x2d0 PF: > { %s16_s22 = sadd.s32 1, %s8862_s22   ;;  %s11055_s14 = sld [smem:[#allocation2_spill]] }
 0x2d1   : > { %p13_p11 = scmp.ge.s32.totalorder %s16_s22, 18   ;;  %s11056_s17 = sld [smem:[#allocation3_spill]] }
 0x2d2   : > { %s11057_s18 = smov %s8854_s20  ;;  %s11058_s19 = smov %s8858_s21 }
 0x2d3   :  { %15 = sbr.rel (!%p13_p11) target bundleno = 3 (0x3), region = 120 }
 0x2d6   : > { %s11059_s20 = smov %s11055_s14 }
 0x2d7   : > { %s11060_s21 = smov %s11056_s17 }

</bundles_post_ra>
